<compile_context>
chip_gen: v5e
topology: v5e:2x2
jax: 0.10.0
libtpu: 0.0.40
codegen_flags: <defaults>
</compile_context>

<pallas_src>
import functools

import numpy as np
import jax
import jax.numpy as jnp
from jax.experimental import pallas as pl
from jax.experimental.pallas import tpu as pltpu

EPS = 1e-5                      # nn.InstanceNorm2d default eps
NUM_RESIDUALS = 6
RES_CH = 256                    # channels inside the residual stack
RES_HW = 3                      # spatial size inside the residual stack (3x3)
RES_M = RES_HW * RES_HW         # 9 real spatial positions
RES_MP = 16                     # rows padded to the bf16 sublane tile (16)
RES_K = 9 * RES_CH              # 2304: im2col K for a 3x3x256 conv

# Row offset in the flattened 3x3 grid for each of the 9 taps (tap-major order
# t = di*3 + dj, matching the weight packing below).
_TAP_OFFSETS = tuple((di - 1) * 3 + (dj - 1) for di in range(3) for dj in range(3))


def _round_up(x, m):
    return (x + m - 1) // m * m


# ---------------------------------------------------------------------------
# Generic fused conv kernel: im2col-patches @ W [+ bias] -> InstanceNorm ->
# ReLU / tanh.  One grid step per batch sample ("parallel" for v7x megacore).
# ---------------------------------------------------------------------------
def _conv_kernel(*refs, m_real, norm, act, has_bias):
    if has_bias:
        p_ref, w_ref, b_ref, o_ref = refs
    else:
        p_ref, w_ref, o_ref = refs

    # bf16 x bf16 -> f32 accumulation on the MXU.
    y = jnp.dot(p_ref[...], w_ref[...], preferred_element_type=jnp.float32)

    if has_bias:                       # only for layers without InstanceNorm
        y = y + b_ref[...]

    if norm:
        # InstanceNorm2d(affine=False): per-channel stats over the m_real real
        # rows.  Padded patch rows are exactly zero (zero rows x W, no bias),
        # so sums over all rows divided by m_real are exact.
        inv_m = 1.0 / m_real
        s1 = jnp.sum(y, axis=0, keepdims=True)
        s2 = jnp.sum(y * y, axis=0, keepdims=True)
        mean = s1 * inv_m
        var = jnp.maximum(s2 * inv_m - mean * mean, 0.0)
        y = (y - mean) * jax.lax.rsqrt(var + EPS)

    if act == "relu":
        y = jnp.maximum(y, 0.0)
    elif act == "tanh":
        y = jnp.tanh(y)

    o_ref[...] = y.astype(o_ref.dtype)


def _fused_conv_mm(patches, w_mat, bias, *, m_real, norm, act, out_dtype):
    """patches: (N, Mp, Kp); w_mat: (Kp, Cp); bias: (Cp,) f32 or None."""
    N, Mp, Kp = patches.shape
    Cp = w_mat.shape[1]
    has_bias = bias is not None

    inputs = [patches.astype(jnp.bfloat16), w_mat.astype(jnp.bfloat16)]
    in_specs = [
        pl.BlockSpec((pl.Squeezed(), Mp, Kp), lambda n: (n, 0, 0)),
        pl.BlockSpec((Kp, Cp), lambda n: (0, 0)),
    ]
    if has_bias:
        inputs.append(bias.reshape(1, Cp).astype(jnp.float32))
        in_specs.append(pl.BlockSpec((1, Cp), lambda n: (0, 0)))

    kernel = functools.partial(
        _conv_kernel, m_real=m_real, norm=norm, act=act, has_bias=has_bias
    )
    return pl.pallas_call(
        kernel,
        out_shape=jax.ShapeDtypeStruct((N, Mp, Cp), out_dtype),
        grid=(N,),
        in_specs=in_specs,
        out_specs=pl.BlockSpec((pl.Squeezed(), Mp, Cp), lambda n: (n, 0, 0)),
        compiler_params=pltpu.CompilerParams(dimension_semantics=("parallel",)),
    )(*inputs)


# ---------------------------------------------------------------------------
# Fused residual stack: grid over the 6 residual blocks ("arbitrary" axis).
# The (N, 16, 256) activation is the resident f32 output block (stays in VMEM
# across all grid steps); only the (2, 2304, 256) bf16 weight slab of the
# current residual block is streamed / prefetched per step.
#
# Each 3x3 conv = one (16, 2304) @ (2304, 256) matmul per sample, where the
# (16, 2304) operand is the lane-concat of 9 statically shifted copies of the
# activation, zeroed by a constant 0/1 mask (handles the 3x3 zero padding and
# the padded rows >= 9).
# ---------------------------------------------------------------------------
def _residual_stack_kernel(x_ref, m_ref, w_ref, o_ref):
    @pl.when(pl.program_id(0) == 0)
    def _():
        o_ref[...] = x_ref[...].astype(o_ref.dtype)

    mask = m_ref[...]                          # (16, 2304) bf16, 0/1
    x = o_ref[...]                             # (N, 16, 256) f32 (resident)
    n = x.shape[0]
    inv_m = 1.0 / RES_M

    outs = []
    for s in range(n):                         # N is tiny (2): unrolled
        skip = x[s]                            # (16, 256) f32
        h = skip
        for c in range(2):                     # Conv+IN+ReLU then Conv+IN
            hb = h.astype(jnp.bfloat16)        # single bf16 quantization/conv
            parts = []
            for o in _TAP_OFFSETS:
                if o > 0:
                    sh = jnp.concatenate(
                        [hb[o:, :], jnp.zeros((o, RES_CH), jnp.bfloat16)], axis=0)
                elif o < 0:
                    sh = jnp.concatenate(
                        [jnp.zeros((-o, RES_CH), jnp.bfloat16), hb[:RES_MP + o, :]],
                        axis=0)
                else:
                    sh = hb
                parts.append(sh)
            # (16, 2304) bf16 im2col operand; mask zeroes out-of-bounds taps
            # and the padded rows >= 9 (so IN stats below are exact).
            p_op = jnp.concatenate(parts, axis=1) * mask
            acc = jnp.dot(p_op, w_ref[c], preferred_element_type=jnp.float32)

            # InstanceNorm over the 9 real spatial rows (padded rows are 0).
            s1 = jnp.sum(acc, axis=0, keepdims=True)
            s2 = jnp.sum(acc * acc, axis=0, keepdims=True)
            mean = s1 * inv_m
            var = jnp.maximum(s2 * inv_m - mean * mean, 0.0)
            h = (acc - mean) * jax.lax.rsqrt(var + EPS)
            if c == 0:
                h = jnp.maximum(h, 0.0)
        outs.append(skip + h)                  # residual skip, fused in-kernel

    o_ref[...] = jnp.stack(outs, axis=0)


def _residual_stack(x, mask, w_all):
    """x: (N, 16, 256) (rows >= 9 are don't-care), w_all: (12, 2304, 256) bf16."""
    N, Mp, C = x.shape
    assert Mp == RES_MP and C == RES_CH, (Mp, C)
    n_blocks = w_all.shape[0] // 2
    return pl.pallas_call(
        _residual_stack_kernel,
        out_shape=jax.ShapeDtypeStruct((N, Mp, C), jnp.float32),
        grid=(n_blocks,),
        in_specs=[
            pl.BlockSpec((N, Mp, C), lambda r: (0, 0, 0)),
            pl.BlockSpec(mask.shape, lambda r: (0, 0)),
            pl.BlockSpec((2, RES_K, RES_CH), lambda r: (r, 0, 0)),  # streamed
        ],
        out_specs=pl.BlockSpec((N, Mp, C), lambda r: (0, 0, 0)),    # resident
        compiler_params=pltpu.CompilerParams(dimension_semantics=("arbitrary",)),
    )(x, mask, w_all)


def _residual_tap_mask():
    """(16, 9*256) bf16 0/1 mask: column block t keeps row p iff tap t of output
    position p lies inside the 3x3 input (and p < 9)."""
    m = np.zeros((RES_MP, RES_K), np.float32)
    for di in range(3):
        for dj in range(3):
            t = di * 3 + dj
            for i in range(RES_HW):
                for j in range(RES_HW):
                    if 0 <= i + di - 1 < RES_HW and 0 <= j + dj - 1 < RES_HW:
                        m[i * RES_HW + j, t * RES_CH:(t + 1) * RES_CH] = 1.0
    return jnp.asarray(m, jnp.bfloat16)


def _pack_residual_weights(params):
    """(12, 2304, 256) bf16, tap-major rows (di, dj, cin); biases dropped
    (they cancel exactly under affine=False InstanceNorm)."""
    mats = []
    for i in range(NUM_RESIDUALS):
        for name in (f"res{i}_1", f"res{i}_2"):
            w, _b = params[name]                      # (256, 256, 3, 3)
            mats.append(jnp.transpose(w, (2, 3, 1, 0)).reshape(RES_K, RES_CH))
    return jnp.stack(mats, axis=0).astype(jnp.bfloat16)


def _residual_stack_reference(x_nhwc, params):
    """Pure-JAX reference with the same bf16 quantization points (self-test)."""
    x = x_nhwc.astype(jnp.float32)
    for i in range(NUM_RESIDUALS):
        h = x
        for c, name in enumerate((f"res{i}_1", f"res{i}_2")):
            w, _b = params[name]
            wb = jnp.transpose(w, (2, 3, 1, 0)).astype(jnp.bfloat16)  # HWIO
            y = jax.lax.conv_general_dilated(
                h.astype(jnp.bfloat16), wb, (1, 1), "SAME",
                dimension_numbers=("NHWC", "HWIO", "NHWC"),
                preferred_element_type=jnp.float32)
            mean = jnp.mean(y, axis=(1, 2), keepdims=True)
            var = jnp.mean(jnp.square(y - mean), axis=(1, 2), keepdims=True)
            y = (y - mean) * jax.lax.rsqrt(var + EPS)
            if c == 0:
                y = jnp.maximum(y, 0.0)
            h = y
        x = x + h
    return x


# ---------------------------------------------------------------------------
# Host-side glue: im2col patch extraction (pure slicing) + padding to
# lane/sublane-dense shapes.
# ---------------------------------------------------------------------------
def _im2col(x, k, stride):
    # x: (N, H, W, C) -> (N, Ho*Wo, k*k*C); patch order = (di, dj, c)
    N, H, W, C = x.shape
    Ho = (H - k) // stride + 1
    Wo = (W - k) // stride + 1
    cols = []
    for di in range(k):
        for dj in range(k):
            cols.append(x[:, di:di + stride * (Ho - 1) + 1:stride,
                          dj:dj + stride * (Wo - 1) + 1:stride, :])
    patches = jnp.concatenate(cols, axis=-1)
    return patches.reshape(N, Ho * Wo, k * k * C), Ho, Wo


def _conv_core(xp, w, b, *, stride, norm, act, out_dtype, return_padded=False):
    # xp: already spatially padded NHWC; w: (Cout, Cin, k, k) (PyTorch layout)
    Cout, Cin, k, _ = w.shape
    N = xp.shape[0]
    patches, Ho, Wo = _im2col(xp, k, stride)
    M, K = Ho * Wo, k * k * Cin
    Mp, Kp, Cp = _round_up(M, 16), _round_up(K, 128), _round_up(Cout, 128)

    patches = jnp.pad(patches, ((0, 0), (0, Mp - M), (0, Kp - K)))
    w_mat = jnp.transpose(w, (2, 3, 1, 0)).reshape(K, Cout)
    w_mat = jnp.pad(w_mat, ((0, Kp - K), (0, Cp - Cout)))
    bias = None if norm else jnp.pad(b, (0, Cp - Cout))   # bias cancels under IN

    out = _fused_conv_mm(patches, w_mat, bias, m_real=M, norm=norm, act=act,
                         out_dtype=out_dtype)
    if return_padded:
        return out, Ho, Wo
    return out[:, :M, :Cout].reshape(N, Ho, Wo, Cout)


def conv2d(x, w, b, *, stride, padding, norm, act, out_dtype=jnp.bfloat16,
           return_padded=False):
    xp = jnp.pad(x, ((0, 0), (padding, padding), (padding, padding), (0, 0)))
    return _conv_core(xp, w, b, stride=stride, norm=norm, act=act,
                      out_dtype=out_dtype, return_padded=return_padded)


def conv_transpose2d(x, w, b, *, stride, padding, output_padding, norm, act,
                     out_dtype=jnp.bfloat16):
    # x: (N, H, W, Cin); w: (Cin, Cout, k, k) (PyTorch ConvTranspose2d layout)
    Cin, Cout, k, _ = w.shape
    N, H, W, _ = x.shape
    Hd, Wd = (H - 1) * stride + 1, (W - 1) * stride + 1
    xd = jnp.zeros((N, Hd, Wd, Cin), x.dtype).at[:, ::stride, ::stride, :].set(x)
    p_lo = k - 1 - padding
    p_hi = k - 1 - padding + output_padding
    xp = jnp.pad(xd, ((0, 0), (p_lo, p_hi), (p_lo, p_hi), (0, 0)))
    w_eff = jnp.transpose(w[:, :, ::-1, ::-1], (1, 0, 2, 3))   # (Cout, Cin, k, k)
    return _conv_core(xp, w_eff, b, stride=1, norm=norm, act=act,
                      out_dtype=out_dtype)


# ---------------------------------------------------------------------------
# Parameters (deterministic, in-script init) and forward pass
# ---------------------------------------------------------------------------
def init_params(key, img_channels=3, num_residuals=NUM_RESIDUALS):
    def conv_p(k, cout, cin, ksz):
        k1, k2 = jax.random.split(k)
        w = jax.random.normal(k1, (cout, cin, ksz, ksz), jnp.float32) / jnp.sqrt(cin * ksz * ksz)
        b = 0.01 * jax.random.normal(k2, (cout,), jnp.float32)
        return w, b

    def convt_p(k, cin, cout, ksz):
        k1, k2 = jax.random.split(k)
        w = jax.random.normal(k1, (cin, cout, ksz, ksz), jnp.float32) / jnp.sqrt(cin * ksz * ksz)
        b = 0.01 * jax.random.normal(k2, (cout,), jnp.float32)
        return w, b

    keys = jax.random.split(key, 64)
    ki = iter(range(64))
    p = {}
    p["initial"] = conv_p(keys[next(ki)], 64, img_channels, 3)
    p["down1"] = conv_p(keys[next(ki)], 128, 64, 3)
    p["down2"] = conv_p(keys[next(ki)], 256, 128, 3)
    for i in range(num_residuals):
        p[f"res{i}_1"] = conv_p(keys[next(ki)], 256, 256, 3)
        p[f"res{i}_2"] = conv_p(keys[next(ki)], 256, 256, 3)
    p["up1"] = convt_p(keys[next(ki)], 256, 128, 3)
    p["up2"] = convt_p(keys[next(ki)], 128, 64, 3)
    p["up3"] = convt_p(keys[next(ki)], 64, 32, 3)
    p["up4"] = convt_p(keys[next(ki)], 32, 16, 3)
    p["last"] = conv_p(keys[next(ki)], img_channels, 16, 6)
    return p


@jax.jit
def generator_forward(params, x_nchw):
    x = jnp.transpose(x_nchw, (0, 2, 3, 1)).astype(jnp.float32)   # NCHW -> NHWC
    N = x.shape[0]

    # initial: Conv2d(img_ch, 64, 3, s=2, p=1) + ReLU  (no norm -> keep bias)
    w, b = params["initial"]
    x = conv2d(x, w, b, stride=2, padding=1, norm=False, act="relu")

    # down blocks: Conv + InstanceNorm + ReLU  (bias dropped: cancels under IN)
    w, b = params["down1"]
    x = conv2d(x, w, b, stride=2, padding=1, norm=True, act="relu")
    w, b = params["down2"]
    xpad, Ho, Wo = conv2d(x, w, b, stride=2, padding=0, norm=True, act="relu",
                          return_padded=True)      # (N, 16, 256) bf16; rows >= 9 unused

    # residual stack: 12 convs + 6 skips in ONE pallas_call, weights streamed
    xres = _residual_stack(xpad, _residual_tap_mask(), _pack_residual_weights(params))
    x = xres[:, :Ho * Wo, :RES_CH].reshape(N, Ho, Wo, RES_CH)

    # up blocks: ConvTranspose2d + InstanceNorm + ReLU
    for name in ("up1", "up2", "up3", "up4"):
        w, b = params[name]
        x = conv_transpose2d(x, w, b, stride=2, padding=1, output_padding=0,
                             norm=True, act="relu")

    # last: Conv2d(16, img_ch, 6, s=1, p=0) + tanh  (no norm -> keep bias, f32 out)
    w, b = params["last"]
    x = conv2d(x, w, b, stride=1, padding=0, norm=False, act="tanh",
               out_dtype=jnp.float32)

    return jnp.transpose(x, (0, 3, 1, 2))                          # NHWC -> NCHW


if __name__ == "__main__":
    key = jax.random.PRNGKey(0)
    pkey, xkey, rkey = jax.random.split(key, 3)
    params = init_params(pkey, img_channels=3, num_residuals=NUM_RESIDUALS)

    # --- standalone check of the fused residual-stack kernel ---------------
    xr = jax.random.normal(rkey, (2, RES_HW, RES_HW, RES_CH), jnp.float32)
    xr = xr.astype(jnp.bfloat16)
    xr_pad = jnp.zeros((2, RES_MP, RES_CH), jnp.bfloat16)
    xr_pad = xr_pad.at[:, :RES_M, :].set(xr.reshape(2, RES_M, RES_CH))
    got = _residual_stack(xr_pad, _residual_tap_mask(),
                          _pack_residual_weights(params))
    got = got[:, :RES_M, :].reshape(2, RES_HW, RES_HW, RES_CH)
    want = _residual_stack_reference(xr.astype(jnp.float32), params)
    err = float(jnp.max(jnp.abs(got - want)))
    assert err < 0.1, f"residual stack mismatch: max abs err = {err}"

    # --- full forward pass --------------------------------------------------
    # batch=2, img_channels=3, 28x28 — consistent with the PyTorch module
    x = jax.random.normal(xkey, (2, 3, 28, 28), jnp.float32)

    y = generator_forward(params, x)
    y = jax.block_until_ready(y)

    assert y.shape == (2, 3, 28, 28), y.shape
    assert bool(jnp.all(jnp.isfinite(y)))
    assert bool(jnp.all(jnp.abs(y) <= 1.0))  # tanh output range
    print("KERNEL_OK")
</pallas_src>

<mosaic_0001>
module attributes {stable_mosaic.version = 11 : i64} {
  func.func @_residual_stack_kernel(%arg0: i32, %arg1: memref<2x16x256xbf16, #tpu.memory_space<vmem>>, %arg2: memref<16x2304xbf16, #tpu.memory_space<vmem>>, %arg3: memref<2x2304x256xbf16, #tpu.memory_space<vmem>>, %arg4: memref<2x16x256xf32, #tpu.memory_space<vmem>>) attributes {dimension_semantics = [#tpu.dimension_semantics<arbitrary>], iteration_bounds = array<i64: 6>, scalar_prefetch = 0 : i64, scratch_operands = 0 : i64, tpu.core_type = #tpu.core_type<tc>, window_params = [{pipeline_mode = #tpu.pipeline_mode<synchronous>, transform_indices = @transform_0, window_bounds = array<i64: 2, 16, 256>}, {pipeline_mode = #tpu.pipeline_mode<synchronous>, transform_indices = @transform_1, window_bounds = array<i64: 16, 2304>}, {transform_indices = @transform_2, window_bounds = array<i64: 2, 2304, 256>}, {pipeline_mode = #tpu.pipeline_mode<synchronous>, transform_indices = @transform_3, window_bounds = array<i64: 2, 16, 256>}]} {
    %c0_i32 = arith.constant 0 : i32
    %0 = arith.cmpi eq, %arg0, %c0_i32 : i32
    %1 = arith.extui %0 : i1 to i32
    %c0_i32_0 = arith.constant 0 : i32
    %2 = arith.cmpi ne, %1, %c0_i32_0 : i32
    scf.if %2 {
      %c0_80 = arith.constant 0 : index
      %c0_81 = arith.constant 0 : index
      %c0_82 = arith.constant 0 : index
      %219 = vector.load %arg1[%c0_80, %c0_81, %c0_82] : memref<2x16x256xbf16, #tpu.memory_space<vmem>>, vector<2x16x256xbf16>
      %220 = arith.extf %219 : vector<2x16x256xbf16> to vector<2x16x256xf32>
      %c0_83 = arith.constant 0 : index
      %c0_84 = arith.constant 0 : index
      %c0_85 = arith.constant 0 : index
      %221 = vector.load %arg4[%c0_83, %c0_84, %c0_85] : memref<2x16x256xf32, #tpu.memory_space<vmem>>, vector<2x16x256xf32>
      tpu.vector_store %arg4[%c0_83, %c0_84, %c0_85], %220 {strides = array<i32>} : memref<2x16x256xf32, #tpu.memory_space<vmem>>, vector<2x16x256xf32>,
    } else {
    }
    %c0 = arith.constant 0 : index
    %c0_1 = arith.constant 0 : index
    %3 = vector.load %arg2[%c0, %c0_1] : memref<16x2304xbf16, #tpu.memory_space<vmem>>, vector<16x2304xbf16>
    %c0_2 = arith.constant 0 : index
    %c0_3 = arith.constant 0 : index
    %c0_4 = arith.constant 0 : index
    %4 = vector.load %arg4[%c0_2, %c0_3, %c0_4] : memref<2x16x256xf32, #tpu.memory_space<vmem>>, vector<2x16x256xf32>
    %5 = vector.extract_strided_slice %4 {offsets = [0, 0, 0], sizes = [1, 16, 256], strides = [1, 1, 1]} : vector<2x16x256xf32> to vector<1x16x256xf32>
    %6 = vector.shape_cast %5 : vector<1x16x256xf32> to vector<16x256xf32>
    %7 = arith.truncf %6 : vector<16x256xf32> to vector<16x256xbf16>
    %cst = arith.constant 0.000000e+00 : bf16
    %8 = vector.broadcast %cst : bf16 to vector<4x256xbf16>
    %9 = vector.extract_strided_slice %7 {offsets = [0, 0], sizes = [12, 256], strides = [1, 1]} : vector<16x256xbf16> to vector<12x256xbf16>
    %10 = tpu.concatenate %8, %9 in 0 : vector<4x256xbf16>, vector<12x256xbf16> -> vector<16x256xbf16>
    %cst_5 = arith.constant 0.000000e+00 : bf16
    %11 = vector.broadcast %cst_5 : bf16 to vector<3x256xbf16>
    %12 = vector.extract_strided_slice %7 {offsets = [0, 0], sizes = [13, 256], strides = [1, 1]} : vector<16x256xbf16> to vector<13x256xbf16>
    %13 = tpu.concatenate %11, %12 in 0 : vector<3x256xbf16>, vector<13x256xbf16> -> vector<16x256xbf16>
    %cst_6 = arith.constant 0.000000e+00 : bf16
    %14 = vector.broadcast %cst_6 : bf16 to vector<2x256xbf16>
    %15 = vector.extract_strided_slice %7 {offsets = [0, 0], sizes = [14, 256], strides = [1, 1]} : vector<16x256xbf16> to vector<14x256xbf16>
    %16 = tpu.concatenate %14, %15 in 0 : vector<2x256xbf16>, vector<14x256xbf16> -> vector<16x256xbf16>
    %cst_7 = arith.constant 0.000000e+00 : bf16
    %17 = vector.broadcast %cst_7 : bf16 to vector<1x256xbf16>
    %18 = vector.extract_strided_slice %7 {offsets = [0, 0], sizes = [15, 256], strides = [1, 1]} : vector<16x256xbf16> to vector<15x256xbf16>
    %19 = tpu.concatenate %17, %18 in 0 : vector<1x256xbf16>, vector<15x256xbf16> -> vector<16x256xbf16>
    %20 = vector.extract_strided_slice %7 {offsets = [1, 0], sizes = [15, 256], strides = [1, 1]} : vector<16x256xbf16> to vector<15x256xbf16>
    %cst_8 = arith.constant 0.000000e+00 : bf16
    %21 = vector.broadcast %cst_8 : bf16 to vector<1x256xbf16>
    %22 = tpu.concatenate %20, %21 in 0 : vector<15x256xbf16>, vector<1x256xbf16> -> vector<16x256xbf16>
    %23 = vector.extract_strided_slice %7 {offsets = [2, 0], sizes = [14, 256], strides = [1, 1]} : vector<16x256xbf16> to vector<14x256xbf16>
    %cst_9 = arith.constant 0.000000e+00 : bf16
    %24 = vector.broadcast %cst_9 : bf16 to vector<2x256xbf16>
    %25 = tpu.concatenate %23, %24 in 0 : vector<14x256xbf16>, vector<2x256xbf16> -> vector<16x256xbf16>
    %26 = vector.extract_strided_slice %7 {offsets = [3, 0], sizes = [13, 256], strides = [1, 1]} : vector<16x256xbf16> to vector<13x256xbf16>
    %cst_10 = arith.constant 0.000000e+00 : bf16
    %27 = vector.broadcast %cst_10 : bf16 to vector<3x256xbf16>
    %28 = tpu.concatenate %26, %27 in 0 : vector<13x256xbf16>, vector<3x256xbf16> -> vector<16x256xbf16>
    %29 = vector.extract_strided_slice %7 {offsets = [4, 0], sizes = [12, 256], strides = [1, 1]} : vector<16x256xbf16> to vector<12x256xbf16>
    %cst_11 = arith.constant 0.000000e+00 : bf16
    %30 = vector.broadcast %cst_11 : bf16 to vector<4x256xbf16>
    %31 = tpu.concatenate %29, %30 in 0 : vector<12x256xbf16>, vector<4x256xbf16> -> vector<16x256xbf16>
    %32 = tpu.concatenate %10, %13, %16, %19, %7, %22, %25, %28, %31 in 1 : vector<16x256xbf16>, vector<16x256xbf16>, vector<16x256xbf16>, vector<16x256xbf16>, vector<16x256xbf16>, vector<16x256xbf16>, vector<16x256xbf16>, vector<16x256xbf16>, vector<16x256xbf16> -> vector<16x2304xbf16>
    %33 = arith.mulf %32, %3 : vector<16x2304xbf16>
    %c0_12 = arith.constant 0 : index
    %c0_13 = arith.constant 0 : index
    %c0_14 = arith.constant 0 : index
    %34 = vector.load %arg3[%c0_12, %c0_13, %c0_14] : memref<2x2304x256xbf16, #tpu.memory_space<vmem>>, vector<1x2304x256xbf16>
    %35 = vector.shape_cast %34 : vector<1x2304x256xbf16> to vector<2304x256xbf16>
    %cst_15 = arith.constant dense<0.000000e+00> : vector<16x256xf32>
    %36 = tpu.matmul %33, %35, %cst_15 {dimension_numbers = #tpu.dot_dimension_numbers<[1], [0], [0], [1], [0, 0, 1, 1], [], []>} : vector<16x2304xbf16>, vector<2304x256xbf16>, vector<16x256xf32> -> vector<16x256xf32>
    %cst_16 = arith.constant dense<0.000000e+00> : vector<256xf32>
    %37 = vector.multi_reduction <add>, %36, %cst_16 [0] : vector<16x256xf32> to vector<256xf32>
    %38 = vector.shape_cast %37 : vector<256xf32> to vector<1x256xf32>
    %39 = arith.mulf %36, %36 : vector<16x256xf32>
    %cst_17 = arith.constant dense<0.000000e+00> : vector<256xf32>
    %40 = vector.multi_reduction <add>, %39, %cst_17 [0] : vector<16x256xf32> to vector<256xf32>
    %41 = vector.shape_cast %40 : vector<256xf32> to vector<1x256xf32>
    %cst_18 = arith.constant 0.111111112 : f32
    %42 = vector.broadcast %cst_18 : f32 to vector<1x256xf32>
    %43 = arith.mulf %38, %42 : vector<1x256xf32>
    %cst_19 = arith.constant 0.111111112 : f32
    %44 = vector.broadcast %cst_19 : f32 to vector<1x256xf32>
    %45 = arith.mulf %41, %44 : vector<1x256xf32>
    %46 = arith.mulf %43, %43 : vector<1x256xf32>
    %47 = arith.subf %45, %46 : vector<1x256xf32>
    %cst_20 = arith.constant 0.000000e+00 : f32
    %48 = vector.broadcast %cst_20 : f32 to vector<1x256xf32>
    %49 = arith.maximumf %47, %48 : vector<1x256xf32>
    %50 = vector.broadcast %43 : vector<1x256xf32> to vector<16x256xf32>
    %51 = arith.subf %36, %50 : vector<16x256xf32>
    %cst_21 = arith.constant 9.99999974E-6 : f32
    %52 = vector.broadcast %cst_21 : f32 to vector<1x256xf32>
    %53 = arith.addf %49, %52 : vector<1x256xf32>
    %54 = math.rsqrt %53 : vector<1x256xf32>
    %55 = vector.broadcast %54 : vector<1x256xf32> to vector<16x256xf32>
    %56 = arith.mulf %51, %55 : vector<16x256xf32>
    %cst_22 = arith.constant 0.000000e+00 : f32
    %57 = vector.broadcast %cst_22 : f32 to vector<16x256xf32>
    %58 = arith.maximumf %56, %57 : vector<16x256xf32>
    %59 = arith.truncf %58 : vector<16x256xf32> to vector<16x256xbf16>
    %cst_23 = arith.constant 0.000000e+00 : bf16
    %60 = vector.broadcast %cst_23 : bf16 to vector<4x256xbf16>
    %61 = vector.extract_strided_slice %59 {offsets = [0, 0], sizes = [12, 256], strides = [1, 1]} : vector<16x256xbf16> to vector<12x256xbf16>
    %62 = tpu.concatenate %60, %61 in 0 : vector<4x256xbf16>, vector<12x256xbf16> -> vector<16x256xbf16>
    %cst_24 = arith.constant 0.000000e+00 : bf16
    %63 = vector.broadcast %cst_24 : bf16 to vector<3x256xbf16>
    %64 = vector.extract_strided_slice %59 {offsets = [0, 0], sizes = [13, 256], strides = [1, 1]} : vector<16x256xbf16> to vector<13x256xbf16>
    %65 = tpu.concatenate %63, %64 in 0 : vector<3x256xbf16>, vector<13x256xbf16> -> vector<16x256xbf16>
    %cst_25 = arith.constant 0.000000e+00 : bf16
    %66 = vector.broadcast %cst_25 : bf16 to vector<2x256xbf16>
    %67 = vector.extract_strided_slice %59 {offsets = [0, 0], sizes = [14, 256], strides = [1, 1]} : vector<16x256xbf16> to vector<14x256xbf16>
    %68 = tpu.concatenate %66, %67 in 0 : vector<2x256xbf16>, vector<14x256xbf16> -> vector<16x256xbf16>
    %cst_26 = arith.constant 0.000000e+00 : bf16
    %69 = vector.broadcast %cst_26 : bf16 to vector<1x256xbf16>
    %70 = vector.extract_strided_slice %59 {offsets = [0, 0], sizes = [15, 256], strides = [1, 1]} : vector<16x256xbf16> to vector<15x256xbf16>
    %71 = tpu.concatenate %69, %70 in 0 : vector<1x256xbf16>, vector<15x256xbf16> -> vector<16x256xbf16>
    %72 = vector.extract_strided_slice %59 {offsets = [1, 0], sizes = [15, 256], strides = [1, 1]} : vector<16x256xbf16> to vector<15x256xbf16>
    %cst_27 = arith.constant 0.000000e+00 : bf16
    %73 = vector.broadcast %cst_27 : bf16 to vector<1x256xbf16>
    %74 = tpu.concatenate %72, %73 in 0 : vector<15x256xbf16>, vector<1x256xbf16> -> vector<16x256xbf16>
    %75 = vector.extract_strided_slice %59 {offsets = [2, 0], sizes = [14, 256], strides = [1, 1]} : vector<16x256xbf16> to vector<14x256xbf16>
    %cst_28 = arith.constant 0.000000e+00 : bf16
    %76 = vector.broadcast %cst_28 : bf16 to vector<2x256xbf16>
    %77 = tpu.concatenate %75, %76 in 0 : vector<14x256xbf16>, vector<2x256xbf16> -> vector<16x256xbf16>
    %78 = vector.extract_strided_slice %59 {offsets = [3, 0], sizes = [13, 256], strides = [1, 1]} : vector<16x256xbf16> to vector<13x256xbf16>
    %cst_29 = arith.constant 0.000000e+00 : bf16
    %79 = vector.broadcast %cst_29 : bf16 to vector<3x256xbf16>
    %80 = tpu.concatenate %78, %79 in 0 : vector<13x256xbf16>, vector<3x256xbf16> -> vector<16x256xbf16>
    %81 = vector.extract_strided_slice %59 {offsets = [4, 0], sizes = [12, 256], strides = [1, 1]} : vector<16x256xbf16> to vector<12x256xbf16>
    %cst_30 = arith.constant 0.000000e+00 : bf16
    %82 = vector.broadcast %cst_30 : bf16 to vector<4x256xbf16>
    %83 = tpu.concatenate %81, %82 in 0 : vector<12x256xbf16>, vector<4x256xbf16> -> vector<16x256xbf16>
    %84 = tpu.concatenate %62, %65, %68, %71, %59, %74, %77, %80, %83 in 1 : vector<16x256xbf16>, vector<16x256xbf16>, vector<16x256xbf16>, vector<16x256xbf16>, vector<16x256xbf16>, vector<16x256xbf16>, vector<16x256xbf16>, vector<16x256xbf16>, vector<16x256xbf16> -> vector<16x2304xbf16>
    %85 = arith.mulf %84, %3 : vector<16x2304xbf16>
    %c1 = arith.constant 1 : index
    %c0_31 = arith.constant 0 : index
    %c0_32 = arith.constant 0 : index
    %86 = vector.load %arg3[%c1, %c0_31, %c0_32] : memref<2x2304x256xbf16, #tpu.memory_space<vmem>>, vector<1x2304x256xbf16>
    %87 = vector.shape_cast %86 : vector<1x2304x256xbf16> to vector<2304x256xbf16>
    %cst_33 = arith.constant dense<0.000000e+00> : vector<16x256xf32>
    %88 = tpu.matmul %85, %87, %cst_33 {dimension_numbers = #tpu.dot_dimension_numbers<[1], [0], [0], [1], [0, 0, 1, 1], [], []>} : vector<16x2304xbf16>, vector<2304x256xbf16>, vector<16x256xf32> -> vector<16x256xf32>
    %cst_34 = arith.constant dense<0.000000e+00> : vector<256xf32>
    %89 = vector.multi_reduction <add>, %88, %cst_34 [0] : vector<16x256xf32> to vector<256xf32>
    %90 = vector.shape_cast %89 : vector<256xf32> to vector<1x256xf32>
    %91 = arith.mulf %88, %88 : vector<16x256xf32>
    %cst_35 = arith.constant dense<0.000000e+00> : vector<256xf32>
    %92 = vector.multi_reduction <add>, %91, %cst_35 [0] : vector<16x256xf32> to vector<256xf32>
    %93 = vector.shape_cast %92 : vector<256xf32> to vector<1x256xf32>
    %cst_36 = arith.constant 0.111111112 : f32
    %94 = vector.broadcast %cst_36 : f32 to vector<1x256xf32>
    %95 = arith.mulf %90, %94 : vector<1x256xf32>
    %cst_37 = arith.constant 0.111111112 : f32
    %96 = vector.broadcast %cst_37 : f32 to vector<1x256xf32>
    %97 = arith.mulf %93, %96 : vector<1x256xf32>
    %98 = arith.mulf %95, %95 : vector<1x256xf32>
    %99 = arith.subf %97, %98 : vector<1x256xf32>
    %cst_38 = arith.constant 0.000000e+00 : f32
    %100 = vector.broadcast %cst_38 : f32 to vector<1x256xf32>
    %101 = arith.maximumf %99, %100 : vector<1x256xf32>
    %102 = vector.broadcast %95 : vector<1x256xf32> to vector<16x256xf32>
    %103 = arith.subf %88, %102 : vector<16x256xf32>
    %cst_39 = arith.constant 9.99999974E-6 : f32
    %104 = vector.broadcast %cst_39 : f32 to vector<1x256xf32>
    %105 = arith.addf %101, %104 : vector<1x256xf32>
    %106 = math.rsqrt %105 : vector<1x256xf32>
    %107 = vector.broadcast %106 : vector<1x256xf32> to vector<16x256xf32>
    %108 = arith.mulf %103, %107 : vector<16x256xf32>
    %109 = arith.addf %6, %108 : vector<16x256xf32>
    %110 = vector.extract_strided_slice %4 {offsets = [1, 0, 0], sizes = [1, 16, 256], strides = [1, 1, 1]} : vector<2x16x256xf32> to vector<1x16x256xf32>
    %111 = vector.shape_cast %110 : vector<1x16x256xf32> to vector<16x256xf32>
    %112 = arith.truncf %111 : vector<16x256xf32> to vector<16x256xbf16>
    %cst_40 = arith.constant 0.000000e+00 : bf16
    %113 = vector.broadcast %cst_40 : bf16 to vector<4x256xbf16>
    %114 = vector.extract_strided_slice %112 {offsets = [0, 0], sizes = [12, 256], strides = [1, 1]} : vector<16x256xbf16> to vector<12x256xbf16>
    %115 = tpu.concatenate %113, %114 in 0 : vector<4x256xbf16>, vector<12x256xbf16> -> vector<16x256xbf16>
    %cst_41 = arith.constant 0.000000e+00 : bf16
    %116 = vector.broadcast %cst_41 : bf16 to vector<3x256xbf16>
    %117 = vector.extract_strided_slice %112 {offsets = [0, 0], sizes = [13, 256], strides = [1, 1]} : vector<16x256xbf16> to vector<13x256xbf16>
    %118 = tpu.concatenate %116, %117 in 0 : vector<3x256xbf16>, vector<13x256xbf16> -> vector<16x256xbf16>
    %cst_42 = arith.constant 0.000000e+00 : bf16
    %119 = vector.broadcast %cst_42 : bf16 to vector<2x256xbf16>
    %120 = vector.extract_strided_slice %112 {offsets = [0, 0], sizes = [14, 256], strides = [1, 1]} : vector<16x256xbf16> to vector<14x256xbf16>
    %121 = tpu.concatenate %119, %120 in 0 : vector<2x256xbf16>, vector<14x256xbf16> -> vector<16x256xbf16>
    %cst_43 = arith.constant 0.000000e+00 : bf16
    %122 = vector.broadcast %cst_43 : bf16 to vector<1x256xbf16>
    %123 = vector.extract_strided_slice %112 {offsets = [0, 0], sizes = [15, 256], strides = [1, 1]} : vector<16x256xbf16> to vector<15x256xbf16>
    %124 = tpu.concatenate %122, %123 in 0 : vector<1x256xbf16>, vector<15x256xbf16> -> vector<16x256xbf16>
    %125 = vector.extract_strided_slice %112 {offsets = [1, 0], sizes = [15, 256], strides = [1, 1]} : vector<16x256xbf16> to vector<15x256xbf16>
    %cst_44 = arith.constant 0.000000e+00 : bf16
    %126 = vector.broadcast %cst_44 : bf16 to vector<1x256xbf16>
    %127 = tpu.concatenate %125, %126 in 0 : vector<15x256xbf16>, vector<1x256xbf16> -> vector<16x256xbf16>
    %128 = vector.extract_strided_slice %112 {offsets = [2, 0], sizes = [14, 256], strides = [1, 1]} : vector<16x256xbf16> to vector<14x256xbf16>
    %cst_45 = arith.constant 0.000000e+00 : bf16
    %129 = vector.broadcast %cst_45 : bf16 to vector<2x256xbf16>
    %130 = tpu.concatenate %128, %129 in 0 : vector<14x256xbf16>, vector<2x256xbf16> -> vector<16x256xbf16>
    %131 = vector.extract_strided_slice %112 {offsets = [3, 0], sizes = [13, 256], strides = [1, 1]} : vector<16x256xbf16> to vector<13x256xbf16>
    %cst_46 = arith.constant 0.000000e+00 : bf16
    %132 = vector.broadcast %cst_46 : bf16 to vector<3x256xbf16>
    %133 = tpu.concatenate %131, %132 in 0 : vector<13x256xbf16>, vector<3x256xbf16> -> vector<16x256xbf16>
    %134 = vector.extract_strided_slice %112 {offsets = [4, 0], sizes = [12, 256], strides = [1, 1]} : vector<16x256xbf16> to vector<12x256xbf16>
    %cst_47 = arith.constant 0.000000e+00 : bf16
    %135 = vector.broadcast %cst_47 : bf16 to vector<4x256xbf16>
    %136 = tpu.concatenate %134, %135 in 0 : vector<12x256xbf16>, vector<4x256xbf16> -> vector<16x256xbf16>
    %137 = tpu.concatenate %115, %118, %121, %124, %112, %127, %130, %133, %136 in 1 : vector<16x256xbf16>, vector<16x256xbf16>, vector<16x256xbf16>, vector<16x256xbf16>, vector<16x256xbf16>, vector<16x256xbf16>, vector<16x256xbf16>, vector<16x256xbf16>, vector<16x256xbf16> -> vector<16x2304xbf16>
    %138 = arith.mulf %137, %3 : vector<16x2304xbf16>
    %c0_48 = arith.constant 0 : index
    %c0_49 = arith.constant 0 : index
    %c0_50 = arith.constant 0 : index
    %139 = vector.load %arg3[%c0_48, %c0_49, %c0_50] : memref<2x2304x256xbf16, #tpu.memory_space<vmem>>, vector<1x2304x256xbf16>
    %140 = vector.shape_cast %139 : vector<1x2304x256xbf16> to vector<2304x256xbf16>
    %cst_51 = arith.constant dense<0.000000e+00> : vector<16x256xf32>
    %141 = tpu.matmul %138, %140, %cst_51 {dimension_numbers = #tpu.dot_dimension_numbers<[1], [0], [0], [1], [0, 0, 1, 1], [], []>} : vector<16x2304xbf16>, vector<2304x256xbf16>, vector<16x256xf32> -> vector<16x256xf32>
    %cst_52 = arith.constant dense<0.000000e+00> : vector<256xf32>
    %142 = vector.multi_reduction <add>, %141, %cst_52 [0] : vector<16x256xf32> to vector<256xf32>
    %143 = vector.shape_cast %142 : vector<256xf32> to vector<1x256xf32>
    %144 = arith.mulf %141, %141 : vector<16x256xf32>
    %cst_53 = arith.constant dense<0.000000e+00> : vector<256xf32>
    %145 = vector.multi_reduction <add>, %144, %cst_53 [0] : vector<16x256xf32> to vector<256xf32>
    %146 = vector.shape_cast %145 : vector<256xf32> to vector<1x256xf32>
    %cst_54 = arith.constant 0.111111112 : f32
    %147 = vector.broadcast %cst_54 : f32 to vector<1x256xf32>
    %148 = arith.mulf %143, %147 : vector<1x256xf32>
    %cst_55 = arith.constant 0.111111112 : f32
    %149 = vector.broadcast %cst_55 : f32 to vector<1x256xf32>
    %150 = arith.mulf %146, %149 : vector<1x256xf32>
    %151 = arith.mulf %148, %148 : vector<1x256xf32>
    %152 = arith.subf %150, %151 : vector<1x256xf32>
    %cst_56 = arith.constant 0.000000e+00 : f32
    %153 = vector.broadcast %cst_56 : f32 to vector<1x256xf32>
    %154 = arith.maximumf %152, %153 : vector<1x256xf32>
    %155 = vector.broadcast %148 : vector<1x256xf32> to vector<16x256xf32>
    %156 = arith.subf %141, %155 : vector<16x256xf32>
    %cst_57 = arith.constant 9.99999974E-6 : f32
    %157 = vector.broadcast %cst_57 : f32 to vector<1x256xf32>
    %158 = arith.addf %154, %157 : vector<1x256xf32>
    %159 = math.rsqrt %158 : vector<1x256xf32>
    %160 = vector.broadcast %159 : vector<1x256xf32> to vector<16x256xf32>
    %161 = arith.mulf %156, %160 : vector<16x256xf32>
    %cst_58 = arith.constant 0.000000e+00 : f32
    %162 = vector.broadcast %cst_58 : f32 to vector<16x256xf32>
    %163 = arith.maximumf %161, %162 : vector<16x256xf32>
    %164 = arith.truncf %163 : vector<16x256xf32> to vector<16x256xbf16>
    %cst_59 = arith.constant 0.000000e+00 : bf16
    %165 = vector.broadcast %cst_59 : bf16 to vector<4x256xbf16>
    %166 = vector.extract_strided_slice %164 {offsets = [0, 0], sizes = [12, 256], strides = [1, 1]} : vector<16x256xbf16> to vector<12x256xbf16>
    %167 = tpu.concatenate %165, %166 in 0 : vector<4x256xbf16>, vector<12x256xbf16> -> vector<16x256xbf16>
    %cst_60 = arith.constant 0.000000e+00 : bf16
    %168 = vector.broadcast %cst_60 : bf16 to vector<3x256xbf16>
    %169 = vector.extract_strided_slice %164 {offsets = [0, 0], sizes = [13, 256], strides = [1, 1]} : vector<16x256xbf16> to vector<13x256xbf16>
    %170 = tpu.concatenate %168, %169 in 0 : vector<3x256xbf16>, vector<13x256xbf16> -> vector<16x256xbf16>
    %cst_61 = arith.constant 0.000000e+00 : bf16
    %171 = vector.broadcast %cst_61 : bf16 to vector<2x256xbf16>
    %172 = vector.extract_strided_slice %164 {offsets = [0, 0], sizes = [14, 256], strides = [1, 1]} : vector<16x256xbf16> to vector<14x256xbf16>
    %173 = tpu.concatenate %171, %172 in 0 : vector<2x256xbf16>, vector<14x256xbf16> -> vector<16x256xbf16>
    %cst_62 = arith.constant 0.000000e+00 : bf16
    %174 = vector.broadcast %cst_62 : bf16 to vector<1x256xbf16>
    %175 = vector.extract_strided_slice %164 {offsets = [0, 0], sizes = [15, 256], strides = [1, 1]} : vector<16x256xbf16> to vector<15x256xbf16>
    %176 = tpu.concatenate %174, %175 in 0 : vector<1x256xbf16>, vector<15x256xbf16> -> vector<16x256xbf16>
    %177 = vector.extract_strided_slice %164 {offsets = [1, 0], sizes = [15, 256], strides = [1, 1]} : vector<16x256xbf16> to vector<15x256xbf16>
    %cst_63 = arith.constant 0.000000e+00 : bf16
    %178 = vector.broadcast %cst_63 : bf16 to vector<1x256xbf16>
    %179 = tpu.concatenate %177, %178 in 0 : vector<15x256xbf16>, vector<1x256xbf16> -> vector<16x256xbf16>
    %180 = vector.extract_strided_slice %164 {offsets = [2, 0], sizes = [14, 256], strides = [1, 1]} : vector<16x256xbf16> to vector<14x256xbf16>
    %cst_64 = arith.constant 0.000000e+00 : bf16
    %181 = vector.broadcast %cst_64 : bf16 to vector<2x256xbf16>
    %182 = tpu.concatenate %180, %181 in 0 : vector<14x256xbf16>, vector<2x256xbf16> -> vector<16x256xbf16>
    %183 = vector.extract_strided_slice %164 {offsets = [3, 0], sizes = [13, 256], strides = [1, 1]} : vector<16x256xbf16> to vector<13x256xbf16>
    %cst_65 = arith.constant 0.000000e+00 : bf16
    %184 = vector.broadcast %cst_65 : bf16 to vector<3x256xbf16>
    %185 = tpu.concatenate %183, %184 in 0 : vector<13x256xbf16>, vector<3x256xbf16> -> vector<16x256xbf16>
    %186 = vector.extract_strided_slice %164 {offsets = [4, 0], sizes = [12, 256], strides = [1, 1]} : vector<16x256xbf16> to vector<12x256xbf16>
    %cst_66 = arith.constant 0.000000e+00 : bf16
    %187 = vector.broadcast %cst_66 : bf16 to vector<4x256xbf16>
    %188 = tpu.concatenate %186, %187 in 0 : vector<12x256xbf16>, vector<4x256xbf16> -> vector<16x256xbf16>
    %189 = tpu.concatenate %167, %170, %173, %176, %164, %179, %182, %185, %188 in 1 : vector<16x256xbf16>, vector<16x256xbf16>, vector<16x256xbf16>, vector<16x256xbf16>, vector<16x256xbf16>, vector<16x256xbf16>, vector<16x256xbf16>, vector<16x256xbf16>, vector<16x256xbf16> -> vector<16x2304xbf16>
    %190 = arith.mulf %189, %3 : vector<16x2304xbf16>
    %c1_67 = arith.constant 1 : index
    %c0_68 = arith.constant 0 : index
    %c0_69 = arith.constant 0 : index
    %191 = vector.load %arg3[%c1_67, %c0_68, %c0_69] : memref<2x2304x256xbf16, #tpu.memory_space<vmem>>, vector<1x2304x256xbf16>
    %192 = vector.shape_cast %191 : vector<1x2304x256xbf16> to vector<2304x256xbf16>
    %cst_70 = arith.constant dense<0.000000e+00> : vector<16x256xf32>
    %193 = tpu.matmul %190, %192, %cst_70 {dimension_numbers = #tpu.dot_dimension_numbers<[1], [0], [0], [1], [0, 0, 1, 1], [], []>} : vector<16x2304xbf16>, vector<2304x256xbf16>, vector<16x256xf32> -> vector<16x256xf32>
    %cst_71 = arith.constant dense<0.000000e+00> : vector<256xf32>
    %194 = vector.multi_reduction <add>, %193, %cst_71 [0] : vector<16x256xf32> to vector<256xf32>
    %195 = vector.shape_cast %194 : vector<256xf32> to vector<1x256xf32>
    %196 = arith.mulf %193, %193 : vector<16x256xf32>
    %cst_72 = arith.constant dense<0.000000e+00> : vector<256xf32>
    %197 = vector.multi_reduction <add>, %196, %cst_72 [0] : vector<16x256xf32> to vector<256xf32>
    %198 = vector.shape_cast %197 : vector<256xf32> to vector<1x256xf32>
    %cst_73 = arith.constant 0.111111112 : f32
    %199 = vector.broadcast %cst_73 : f32 to vector<1x256xf32>
    %200 = arith.mulf %195, %199 : vector<1x256xf32>
    %cst_74 = arith.constant 0.111111112 : f32
    %201 = vector.broadcast %cst_74 : f32 to vector<1x256xf32>
    %202 = arith.mulf %198, %201 : vector<1x256xf32>
    %203 = arith.mulf %200, %200 : vector<1x256xf32>
    %204 = arith.subf %202, %203 : vector<1x256xf32>
    %cst_75 = arith.constant 0.000000e+00 : f32
    %205 = vector.broadcast %cst_75 : f32 to vector<1x256xf32>
    %206 = arith.maximumf %204, %205 : vector<1x256xf32>
    %207 = vector.broadcast %200 : vector<1x256xf32> to vector<16x256xf32>
    %208 = arith.subf %193, %207 : vector<16x256xf32>
    %cst_76 = arith.constant 9.99999974E-6 : f32
    %209 = vector.broadcast %cst_76 : f32 to vector<1x256xf32>
    %210 = arith.addf %206, %209 : vector<1x256xf32>
    %211 = math.rsqrt %210 : vector<1x256xf32>
    %212 = vector.broadcast %211 : vector<1x256xf32> to vector<16x256xf32>
    %213 = arith.mulf %208, %212 : vector<16x256xf32>
    %214 = arith.addf %111, %213 : vector<16x256xf32>
    %215 = vector.shape_cast %109 : vector<16x256xf32> to vector<1x16x256xf32>
    %216 = vector.shape_cast %214 : vector<16x256xf32> to vector<1x16x256xf32>
    %217 = tpu.concatenate %215, %216 in 0 : vector<1x16x256xf32>, vector<1x16x256xf32> -> vector<2x16x256xf32>
    %c0_77 = arith.constant 0 : index
    %c0_78 = arith.constant 0 : index
    %c0_79 = arith.constant 0 : index
    %218 = vector.load %arg4[%c0_77, %c0_78, %c0_79] : memref<2x16x256xf32, #tpu.memory_space<vmem>>, vector<2x16x256xf32>
    tpu.vector_store %arg4[%c0_77, %c0_78, %c0_79], %217 {strides = array<i32>} : memref<2x16x256xf32, #tpu.memory_space<vmem>>, vector<2x16x256xf32>,
    return
  }
  func.func @transform_0(%arg0: i32) -> (i32, i32, i32) {
    %c0_i32 = arith.constant 0 : i32
    %c0_i32_0 = arith.constant 0 : i32
    %c0_i32_1 = arith.constant 0 : i32
    %c0_i32_2 = arith.constant 0 : i32
    return %c0_i32, %c0_i32_0, %c0_i32_1 : i32, i32, i32
  }
  func.func @transform_1(%arg0: i32) -> (i32, i32) {
    %c0_i32 = arith.constant 0 : i32
    %c0_i32_0 = arith.constant 0 : i32
    %c0_i32_1 = arith.constant 0 : i32
    return %c0_i32, %c0_i32_0 : i32, i32
  }
  func.func @transform_2(%arg0: i32) -> (i32, i32, i32) {
    %c0_i32 = arith.constant 0 : i32
    %c0_i32_0 = arith.constant 0 : i32
    %c0_i32_1 = arith.constant 0 : i32
    return %arg0, %c0_i32, %c0_i32_0 : i32, i32, i32
  }
  func.func @transform_3(%arg0: i32) -> (i32, i32, i32) {
    %c0_i32 = arith.constant 0 : i32
    %c0_i32_0 = arith.constant 0 : i32
    %c0_i32_1 = arith.constant 0 : i32
    %c0_i32_2 = arith.constant 0 : i32
    return %c0_i32, %c0_i32_0, %c0_i32_1 : i32, i32, i32
  }
}

</mosaic_0001>

<bundles_post_ra>
// kernel: tpu_custom_call.1
= control target key start
LH: loop header
LB: loop body
LE: loop exit
PB: predicated region body
PF: predicated region fallthrough
CT: control target
= control target key end

     0   :  { %8 = vsyncpa [#allocation3], 0  ;;  %s15054_s0 = inlined_call_operand.hbm [shape: bf16[2,16,256], index: 0, kind: input, shape index: {}]   ;;  %s15055_s1 = inlined_call_operand.hbm [shape: bf16[16,2304], index: 1, kind: input, shape index: {}]   ;;  %s15056_s2 = inlined_call_operand.hbm [shape: bf16[12,2304,256], index: 2, kind: input, shape index: {}]   ;;  %s15057_s3 = inlined_call_operand.hbm [shape: f32[2,16,256], index: 3, kind: output, shape index: {}]  }
   0x1   :  { %9 = vsyncpa [#allocation6], 0 }
   0x2   :  { %10 = vsyncpa [#allocation4], 0  ;;  %s10380_s12 = smov 0   ;;  %s10382_s13 = smov 0  }
   0x3   :  { %s10384_s14 = smov 0   ;;  %s10386_s15 = smov 0  }
   0x4 LB: > { %s10399_s16 = sadd.s32 4294967295, %s10349_s15   ;;  %p78_p0 = scmp.ne.s32.totalorder %s10341_s13, %s10337_s12  ;;  %s10349_s15 = sphi %s10386_s15, %s16947_s15   ;;  %s10345_s14 = sphi %s10384_s14, %s16946_s14   ;;  %s10341_s13 = sphi %s10382_s13, %s16945_s13   ;;  %s10337_s12 = sphi %s10380_s12, %s16944_s12  }
   0x5   : > { %p79_p1 = scmp.eq.s32.totalorder %s10399_s16, 0  ;;  %p6902_p2 = scmp.ge.s32.totalorder %s10349_s15, 1 }
   0x6   : > { %p110_p3 = scmp.lt.s32.totalorder %s10349_s15, 7  ;;  %p6903_p4 = scmp.ne.s32.totalorder %s10399_s16, 0 }
   0x7   : > { %p10408_p5 = por %p79_p1, %p78_p0  ;;  %s121_s20 = sshll.u32 %s15054_s0, 4  ;;  %s122_s20 = int_to_ptr.hbm [resolvable:$true] %s121_s20 }
   0x8   : > { %p10415_p6 = pnand %p6902_p2, %p110_p3  ;;  %s10351_s22 = smov [#allocation2]  }
   0x9   : > { %s123_s23 = sshll.u32 %s10351_s22, 4  ;;  %s135_s26 = sshll.u32 %s15055_s1, 4  ;;  %s124_s23 = int_to_ptr.vmem [resolvable:$true] %s123_s23  ;;  %s136_s26 = int_to_ptr.hbm [resolvable:$true] %s135_s26 }
   0xa   : > { %p10102_p7 = pneg %p10415_p6  ;;  %s10352_s27 = smov 128  }
   0xb   : > { %s10353_s28 = smov 8   ;;  %s10354_s29 = smov [#allocation5]  }
   0xc   : > { %p10103_p8 = pnand %p10102_p7, %p79_p1  ;;  %s137_s30 = sshll.u32 %s10354_s29, 4  ;;  %s138_s30 = int_to_ptr.vmem [resolvable:$true] %s137_s30 }
   0xd   : > { %s10355_s4 = smov 1152   ;;  %s10356_s5 = smov 72  }
   0xe   : > { %10105 = dma.hbm_to_vmem [thread:$0]  (!%p10103_p8), %s122_s20, 512, %s124_s23, [#allocation3], %s10352_s27, %s10352_s27, %s10353_s28  }
   0xf   : > { %10108 = dma.hbm_to_vmem [thread:$0]  (!%p10103_p8), %s136_s26, 2304, %s138_s30, [#allocation6], %s10355_s4, %s10355_s4, %s10356_s5  }
  0x10   : > { %s10430_s6 = sadd.s32 1, %s10349_s15   ;;  %s65_s8 = sadd.s32 1, %s10345_s14 }
  0x11   : > { %s62_s7 = ssub.s32 %s10349_s15, %s10430_s6  ;;  %p72_p10 = scmp.ne.s32.totalorder %s10345_s14, %s10341_s13 }
  0x12   : > { %p63_p9 = scmp.eq.s32.totalorder %s62_s7, 0  ;;  %p73_p11 = scmp.eq.s32.totalorder %s10349_s15, 0 }
  0x13   : > { %p10115_p13 = scmp.lt.s32.totalorder %s10349_s15, 6  ;;  %s151_s10 = sand.u32 1, %s10349_s15  }
  0x14   : > { %s10439_s9 = scalar_select %p63_p9, %s10345_s14, %s65_s8  }
  0x15   : > { %p74_p12 = por %p73_p11, %p72_p10  ;;  %s153_s11 = sand.u32 1, %s10345_s14  }
  0x16   : > { %s10085_s12 = smul.u32 4608, %s153_s11  ;;  %s152_s29 = scalar_lea.sflag [#allocation3], %s151_s10 }
  0x17   : > { %s10086_s18 = smul.u32 4608, %s10349_s15  ;;  %p10445_p0 = pnand %p10115_p13, %p74_p12 }
  0x18   : > { %s155_s24 = scalar_lea.vmem [#allocation7], %s10085_s12  ;;  %s10252_s7 = scalar_lea.hbm %s15056_s2, 27648 }
  0x19   : > { %s161_s23 = scalar_lea.hbm %s15056_s2, %s10086_s18  ;;  %s164_s25 = sshll.u32 %s155_s24, 4  ;;  %s165_s25 = int_to_ptr.vmem [resolvable:$true] %s164_s25 }
  0x1a   : > { %s162_s26 = sshll.u32 %s161_s23, 4  ;;  %p10249_p3 = pneg %p10445_p0  ;;  %s163_s26 = int_to_ptr.hbm [resolvable:$true] %s162_s26 }
  0x1b   : > { %s10245_s30 = sshra.s32 %s163_s26, 4  ;;  %s10246_s30 = int_to_ptr.hbm [resolvable:$true] %s10245_s30 }
  0x1c   : > { %s10247_s4 = scalar_lea.hbm %s10246_s30, 4608  ;;  %p10253_p9 = scmp.lt.s32.totalorder %s10246_s30, %s15056_s2 }
  0x1d   : > { %p10248_p2 = scmp.ne.s32.totalorder %s10246_s30, %s10247_s4  ;;  %p10254_p10 = scmp.lt.s32.totalorder %s10252_s7, %s10247_s4 }
  0x1f   : > { %p10250_p7 = pnand %p10249_p3, %p10248_p2  ;;  %p10255_p11 = por %p10254_p10, %p10253_p9 }
  0x21   : > { %p10251_p8 = pneg %p10250_p7 }
  0x23   : > { %p10256_p12 = pnand %p10255_p11, %p10251_p8 }
  0x25   : > { %10259 = shalt.err (!%p10256_p12)
}
  0x26   : > { %10112 = dma.hbm_to_vmem [thread:$0]  (!%p10445_p0), %s163_s26, 73728, %s165_s25, %s152_s29, %s10352_s27, %s10352_s27, %s10353_s28  }
  0x27   : > { %176 = sbr.rel (%p10415_p6) target bundleno = 1739 (0x6cb), region = 32 }
  0x2c   : > { %10320 = dma.done.wait (%p79_p1), [#allocation3], 512  }
  0x2d   : > { %10322 = vsyncadd (%p79_p1), [#allocation3], 4294966784 }
  0x2e   : > { %10324 = dma.done.wait (%p79_p1), [#allocation6], 2304  }
  0x2f   : > { %10326 = vsyncadd (%p79_p1), [#allocation6], 4294964992  ;;  %s188_s10 = sand.u32 1, %s10399_s16   ;;  %s190_s27 = sand.u32 1, %s10341_s13  }
  0x30   : > { %s10087_s28 = smul.u32 4608, %s190_s27  ;;  %s189_s21 = scalar_lea.sflag [#allocation3], %s188_s10 }
  0x32   : > { %s10477_s12 = scalar_lea.vmem [#allocation7], %s10087_s28 }
  0x33   : > { %10328 = dma.done.wait (%p10408_p5), %s189_s21, 73728  }
  0x34   : > { %10330 = vsyncadd (%p10408_p5), %s189_s21, 4294893568  ;;  %216 = sbr.rel (%p6903_p4) target bundleno = 68 (0x44), region = 48 }
  0x39   : > { %v217_v0 = vld [vmem:[#allocation2] sm:$0xff]  ;;  %v218_v1 = vld [vmem:[#allocation2 + $0x8] sm:$0xff]  ;;  %v219_v2 = vld [vmem:[#allocation2 + $0x10] sm:$0xff] }
  0x3a   : > { %v221_v3 = vunpack.c.l.bf16 %v217_v0  ;;  %v222_v4 = vunpack.c.h.bf16 %v217_v0  ;;  %v223_v5 = vunpack.c.l.bf16 %v218_v1  ;;  %v224_v6 = vunpack.c.h.bf16 %v218_v1  ;;  %v220_v7 = vld [vmem:[#allocation2 + $0x18] sm:$0xff] }
  0x3b   : > { %v225_v8 = vunpack.c.l.bf16 %v219_v2  ;;  %v226_v9 = vunpack.c.h.bf16 %v219_v2  ;;  %v227_v10 = vunpack.c.l.bf16 %v220_v7  ;;  %v228_v11 = vunpack.c.h.bf16 %v220_v7 }
  0x3c   : > { %229 = vst [vmem:[#allocation8] sm:$0xff] %v221_v3 }
  0x3d   : > { %230 = vst [vmem:[#allocation8 + $0x8] sm:$0xff] %v222_v4 }
  0x3e   : > { %231 = vst [vmem:[#allocation8 + $0x10] sm:$0xff] %v223_v5 }
  0x3f   : > { %232 = vst [vmem:[#allocation8 + $0x18] sm:$0xff] %v224_v6 }
  0x40   : > { %233 = vst [vmem:[#allocation8 + $0x20] sm:$0xff] %v225_v8 }
  0x41   : > { %234 = vst [vmem:[#allocation8 + $0x28] sm:$0xff] %v226_v9 }
  0x42   : > { %235 = vst [vmem:[#allocation8 + $0x30] sm:$0xff] %v227_v10 }
  0x43   : > { %236 = vst [vmem:[#allocation8 + $0x38] sm:$0xff] %v228_v11 }
  0x44 PF: > { %v6971_v12 = vld [vmem:[%s10477_s12 + $0x70] sm:$0xf]  ;;  %v9524_v13 = vld [vmem:[%s10477_s12 + $0x74] sm:$0xf0]  ;;  %v6963_v23 = vld [vmem:[%s10477_s12 + $0x60] sm:$0xf] }
  0x45   : > { %v7035_v14 = vld [vmem:[%s10477_s12 + $0xf0] sm:$0xf]  ;;  %v10488_v15 = vor.u32 %v9524_v13, %v6971_v12  ;;  %v9540_v16 = vld [vmem:[%s10477_s12 + $0xf4] sm:$0xf0]  ;;  %v9522_v25 = vld [vmem:[%s10477_s12 + $0x64] sm:$0xf0] }
  0x46   : > { %v7099_v17 = vld [vmem:[%s10477_s12 + $0x170] sm:$0xf]  ;;  %v9556_v18 = vld [vmem:[%s10477_s12 + $0x174] sm:$0xf0]  ;;  %v10493_v19 = vor.u32 %v9540_v16, %v7035_v14  ;;  %v7027_v26 = vld [vmem:[%s10477_s12 + $0xe0] sm:$0xf]  ;;  %v10508_v28 = vor.u32 %v9522_v25, %v6963_v23 }
  0x47   : > { %15697 = vst [vmem:[#allocation13_spill] sm:$0xff] %v10488_v15  ;;  %v10495_v20 = vor.u32 %v9556_v18, %v7099_v17  ;;  %v7163_v21 = vld [vmem:[%s10477_s12 + $0x1f0] sm:$0xf]  ;;  %v9572_v22 = vld [vmem:[%s10477_s12 + $0x1f4] sm:$0xf0]  ;;  %2224 = vmatpush.bf16.msra.mxu0 %v10488_v15  ;;  %vm275_vm0 = vcmask 1041408  }
  0x48   : > { %15698 = vst [vmem:[#allocation14_spill] sm:$0xff] %v10493_v19  ;;  %v10501_v24 = vor.u32 %v9572_v22, %v7163_v21  ;;  %v9538_v27 = vld [vmem:[%s10477_s12 + $0xe4] sm:$0xf0]  ;;  %2238 = vmatpush.bf16.msra.mxu1 %v10493_v19  ;;  %v7091_v30 = vld [vmem:[%s10477_s12 + $0x160] sm:$0xf]  ;;  %vm308_vm2 = vcmask 1040384  }
  0x49   : > { %15699 = vst [vmem:[#allocation15_spill] sm:$0xff] %v10495_v20  ;;  %2252 = vmatpush.bf16.msra.mxu2 %v10495_v20  ;;  %v10510_v29 = vor.u32 %v9538_v27, %v7027_v26  ;;  %v9554_v31 = vld [vmem:[%s10477_s12 + $0x164] sm:$0xf0]  ;;  %v7155_v32 = vld [vmem:[%s10477_s12 + $0x1e0] sm:$0xf]  ;;  %vm332_vm6 = vcmask 1047552  }
  0x4a   : > { %15700 = vst [vmem:[#allocation16_spill] sm:$0xff] %v10501_v24  ;;  %2266 = vmatpush.bf16.msra.mxu3 %v10501_v24  ;;  %v10516_v33 = vor.u32 %v9554_v31, %v7091_v30  ;;  %v9570_v34 = vld [vmem:[%s10477_s12 + $0x1e4] sm:$0xf0]  ;;  %v6955_v35 = vld [vmem:[%s10477_s12 + $0x50] sm:$0xf]  ;;  %vm339_vm9 = vcmask 1046528  }
  0x4b   : > { %15701 = vst [vmem:[#allocation17_spill] sm:$0xff] %v10508_v28  ;;  %v9520_v36 = vld [vmem:[%s10477_s12 + $0x54] sm:$0xf0]  ;;  %v10521_v37 = vor.u32 %v9570_v34, %v7155_v32  ;;  %v7019_v38 = vld [vmem:[%s10477_s12 + $0xd0] sm:$0xf]  ;;  %2225 = vmatpush.bf16.msra.mxu0 %v10508_v28  ;;  %vm361_vm12 = vcmask 1045504  }
  0x4c   : > { %15702 = vst [vmem:[#allocation18_spill] sm:$0xff] %v10510_v29  ;;  %v9536_v39 = vld [vmem:[%s10477_s12 + $0xd4] sm:$0xf0]  ;;  %v7083_v40 = vld [vmem:[%s10477_s12 + $0x150] sm:$0xf]  ;;  %v10527_v41 = vor.u32 %v9520_v36, %v6955_v35  ;;  %2239 = vmatpush.bf16.msra.mxu1 %v10510_v29  ;;  %s10357_s17 = smov [#allocation8]  }
  0x4d   : > { %15703 = vst [vmem:[#allocation19_spill] sm:$0xff] %v10516_v33  ;;  %v9552_v42 = vld [vmem:[%s10477_s12 + $0x154] sm:$0xf0]  ;;  %v7147_v43 = vld [vmem:[%s10477_s12 + $0x1d0] sm:$0xf]  ;;  %2253 = vmatpush.bf16.msra.mxu2 %v10516_v33  ;;  %v10534_v45 = vor.u32 %v9536_v39, %v7019_v38  ;;  %s6826_s18 = sshll.u32 %s10357_s17, 4  ;;  %s6827_s18 = int_to_ptr.vmem [resolvable:$true] %s6826_s18 }
  0x4e   : > { %15704 = vst [vmem:[#allocation20_spill] sm:$0xff] %v10521_v37  ;;  %v9568_v44 = vld [vmem:[%s10477_s12 + $0x1d4] sm:$0xf0]  ;;  %v10536_v46 = vor.u32 %v9552_v42, %v7083_v40  ;;  %v6947_v47 = vld [vmem:[%s10477_s12 + $0x40] sm:$0xf]  ;;  %2267 = vmatpush.bf16.msra.mxu3 %v10521_v37  ;;  %s6828_s22 = sshll.u32 %s15057_s3, 4  ;;  %s6829_s22 = int_to_ptr.hbm [resolvable:$true] %s6828_s22 }
  0x4f   : > { %15705 = vst [vmem:[#allocation21_spill] sm:$0xff] %v10527_v41  ;;  %v9518_v48 = vld [vmem:[%s10477_s12 + $0x44] sm:$0xf0]  ;;  %v7011_v49 = vld [vmem:[%s10477_s12 + $0xc0] sm:$0xf]  ;;  %v10542_v50 = vor.u32 %v9568_v44, %v7147_v43  ;;  %2226 = vmatpush.bf16.msra.mxu0 %v10527_v41  ;;  %p10118_p1 = scmp.eq.s32.totalorder %s10399_s16, 5 }
  0x50   : > { %15706 = vst [vmem:[#allocation22_spill] sm:$0xff] %v10534_v45  ;;  %v9534_v51 = vld [vmem:[%s10477_s12 + $0xc4] sm:$0xf0]  ;;  %v7075_v52 = vld [vmem:[%s10477_s12 + $0x140] sm:$0xf]  ;;  %v10550_v56 = vor.u32 %v9518_v48, %v6947_v47  ;;  %2240 = vmatpush.bf16.msra.mxu1 %v10534_v45  ;;  %s10358_s23 = smov 256  }
  0x51   : > { %15707 = vst [vmem:[#allocation23_spill] sm:$0xff] %v10536_v46  ;;  %v9550_v53 = vld [vmem:[%s10477_s12 + $0x144] sm:$0xf0]  ;;  %v7139_v54 = vld [vmem:[%s10477_s12 + $0x1c0] sm:$0xf]  ;;  %2254 = vmatpush.bf16.msra.mxu2 %v10536_v46  ;;  %v10554_v57 = vor.u32 %v9534_v51, %v7011_v49  ;;  %s10359_s24 = smov 16  }
  0x52   : > { %15708 = vst [vmem:[#allocation24_spill] sm:$0xff] %v10542_v50  ;;  %v9566_v55 = vld [vmem:[%s10477_s12 + $0x1c4] sm:$0xf0]  ;;  %v10556_v58 = vor.u32 %v9550_v53, %v7075_v52  ;;  %v6939_v59 = vld [vmem:[%s10477_s12 + $0x30] sm:$0xf]  ;;  %2268 = vmatpush.bf16.msra.mxu3 %v10542_v50 }
  0x53   : > { %15709 = vst [vmem:[#allocation25_spill] sm:$0xff] %v10550_v56  ;;  %v9516_v60 = vld [vmem:[%s10477_s12 + $0x34] sm:$0xf0]  ;;  %v7003_v61 = vld [vmem:[%s10477_s12 + $0xb0] sm:$0xf]  ;;  %v10562_v62 = vor.u32 %v9566_v55, %v7139_v54  ;;  %2227 = vmatpush.bf16.msra.mxu0 %v10550_v56 }
  0x54   : > { %15710 = vst [vmem:[#allocation26_spill] sm:$0xff] %v10554_v57  ;;  %v9532_v63 = vld [vmem:[%s10477_s12 + $0xb4] sm:$0xf0]  ;;  %v7067_v0 = vld [vmem:[%s10477_s12 + $0x130] sm:$0xf]  ;;  %v10570_v4 = vor.u32 %v9516_v60, %v6939_v59  ;;  %2241 = vmatpush.bf16.msra.mxu1 %v10554_v57 }
  0x55   : > { %15711 = vst [vmem:[#allocation27_spill] sm:$0xff] %v10556_v58  ;;  %v9548_v1 = vld [vmem:[%s10477_s12 + $0x134] sm:$0xf0]  ;;  %v7131_v2 = vld [vmem:[%s10477_s12 + $0x1b0] sm:$0xf]  ;;  %2255 = vmatpush.bf16.msra.mxu2 %v10556_v58  ;;  %v10574_v5 = vor.u32 %v9532_v63, %v7003_v61 }
  0x56   : > { %15712 = vst [vmem:[#allocation28_spill] sm:$0xff] %v10562_v62  ;;  %v9564_v3 = vld [vmem:[%s10477_s12 + $0x1b4] sm:$0xf0]  ;;  %v10576_v6 = vor.u32 %v9548_v1, %v7067_v0  ;;  %v6931_v7 = vld [vmem:[%s10477_s12 + $0x20] sm:$0xf]  ;;  %2269 = vmatpush.bf16.msra.mxu3 %v10562_v62 }
  0x57   : > { %15713 = vst [vmem:[#allocation29_spill] sm:$0xff] %v10570_v4  ;;  %v9514_v8 = vld [vmem:[%s10477_s12 + $0x24] sm:$0xf0]  ;;  %v6995_v9 = vld [vmem:[%s10477_s12 + $0xa0] sm:$0xf]  ;;  %v10582_v10 = vor.u32 %v9564_v3, %v7131_v2  ;;  %2228 = vmatpush.bf16.msra.mxu0 %v10570_v4 }
  0x58   : > { %15714 = vst [vmem:[#allocation30_spill] sm:$0xff] %v10574_v5  ;;  %v9530_v11 = vld [vmem:[%s10477_s12 + $0xa4] sm:$0xf0]  ;;  %v7059_v12 = vld [vmem:[%s10477_s12 + $0x120] sm:$0xf]  ;;  %v10590_v17 = vor.u32 %v9514_v8, %v6931_v7  ;;  %2242 = vmatpush.bf16.msra.mxu1 %v10574_v5 }
  0x59   : > { %15715 = vst [vmem:[#allocation31_spill] sm:$0xff] %v10576_v6  ;;  %v9546_v13 = vld [vmem:[%s10477_s12 + $0x124] sm:$0xf0]  ;;  %v7123_v14 = vld [vmem:[%s10477_s12 + $0x1a0] sm:$0xf]  ;;  %2256 = vmatpush.bf16.msra.mxu2 %v10576_v6  ;;  %v10595_v21 = vor.u32 %v9530_v11, %v6995_v9 }
  0x5a   : > { %15716 = vst [vmem:[#allocation32_spill] sm:$0xff] %v10582_v10  ;;  %v9562_v16 = vld [vmem:[%s10477_s12 + $0x1a4] sm:$0xf0]  ;;  %v6923_v18 = vld [vmem:[%s10477_s12 + $0x10] sm:$0xf]  ;;  %v10597_v22 = vor.u32 %v9546_v13, %v7059_v12  ;;  %2270 = vmatpush.bf16.msra.mxu3 %v10582_v10 }
  0x5b   : > { %15717 = vst [vmem:[#allocation33_spill] sm:$0xff] %v10590_v17  ;;  %v9512_v23 = vld [vmem:[%s10477_s12 + $0x14] sm:$0xf0]  ;;  %v6987_v25 = vld [vmem:[%s10477_s12 + $0x90] sm:$0xf]  ;;  %v10603_v27 = vor.u32 %v9562_v16, %v7123_v14  ;;  %2229 = vmatpush.bf16.msra.mxu0 %v10590_v17 }
  0x5c   : > { %15718 = vst [vmem:[#allocation34_spill] sm:$0xff] %v10595_v21  ;;  %v9528_v26 = vld [vmem:[%s10477_s12 + $0x94] sm:$0xf0]  ;;  %v7051_v30 = vld [vmem:[%s10477_s12 + $0x110] sm:$0xf]  ;;  %v10612_v38 = vor.u32 %v9512_v23, %v6923_v18  ;;  %2243 = vmatpush.bf16.msra.mxu1 %v10595_v21 }
  0x5d   : > { %15719 = vst [vmem:[#allocation35_spill] sm:$0xff] %v10597_v22  ;;  %v9544_v31 = vld [vmem:[%s10477_s12 + $0x114] sm:$0xf0]  ;;  %v7115_v32 = vld [vmem:[%s10477_s12 + $0x190] sm:$0xf]  ;;  %2257 = vmatpush.bf16.msra.mxu2 %v10597_v22  ;;  %v10620_v44 = vor.u32 %v9528_v26, %v6987_v25 }
  0x5e   : > { %15720 = vst [vmem:[#allocation36_spill] sm:$0xff] %v10603_v27  ;;  %v9560_v34 = vld [vmem:[%s10477_s12 + $0x194] sm:$0xf0]  ;;  %v6915_v35 = vld [vmem:[%s10477_s12] sm:$0xf]  ;;  %v10622_v47 = vor.u32 %v9544_v31, %v7051_v30  ;;  %2271 = vmatpush.bf16.msra.mxu3 %v10603_v27 }
  0x5f   : > { %v9510_v36 = vld [vmem:[%s10477_s12 + $0x4] sm:$0xf0]  ;;  %15721 = vst [vmem:[#allocation37_spill] sm:$0xff] %v10612_v38  ;;  %v6979_v39 = vld [vmem:[%s10477_s12 + $0x80] sm:$0xf]  ;;  %v10629_v53 = vor.u32 %v9560_v34, %v7115_v32  ;;  %2230 = vmatpush.bf16.msra.mxu0 %v10612_v38 }
  0x60   : > { %v9526_v40 = vld [vmem:[%s10477_s12 + $0x84] sm:$0xf0]  ;;  %v7043_v42 = vld [vmem:[%s10477_s12 + $0x100] sm:$0xf]  ;;  %15722 = vst [vmem:[#allocation38_spill] sm:$0xff] %v10620_v44  ;;  %v10640_v2 = vor.u32 %v9510_v36, %v6915_v35  ;;  %2244 = vmatpush.bf16.msra.mxu1 %v10620_v44 }
  0x61   : > { %v9542_v43 = vld [vmem:[%s10477_s12 + $0x104] sm:$0xf0]  ;;  %15723 = vst [vmem:[#allocation39_spill] sm:$0xff] %v10622_v47  ;;  %v7107_v48 = vld [vmem:[%s10477_s12 + $0x180] sm:$0xf]  ;;  %2258 = vmatpush.bf16.msra.mxu2 %v10622_v47  ;;  %v10650_v13 = vor.u32 %v9526_v40, %v6979_v39 }
  0x62   : > { %v9558_v49 = vld [vmem:[%s10477_s12 + $0x184] sm:$0xf0]  ;;  %v7227_v51 = vld [vmem:[%s10477_s12 + $0x270] sm:$0xf]  ;;  %v9588_v52 = vld [vmem:[%s10477_s12 + $0x274] sm:$0xf0]  ;;  %v10652_v14 = vor.u32 %v9542_v43, %v7043_v42  ;;  %2272 = vmatpush.bf16.msra.mxu3 %v10629_v53 }
  0x63   : > { %15724 = vst [vmem:[#allocation40_spill] sm:$0xff] %v10629_v53  ;;  %v7291_v54 = vld [vmem:[%s10477_s12 + $0x2f0] sm:$0xf]  ;;  %v9604_v55 = vld [vmem:[%s10477_s12 + $0x2f4] sm:$0xf0]  ;;  %v10660_v30 = vor.u32 %v9558_v49, %v7107_v48  ;;  %v10662_v31 = vor.u32 %v9588_v52, %v7227_v51  ;;  %2231 = vmatpush.bf16.msra.mxu0 %v10640_v2 }
  0x64   : > { %v7355_v59 = vld [vmem:[%s10477_s12 + $0x370] sm:$0xf]  ;;  %v9620_v60 = vld [vmem:[%s10477_s12 + $0x374] sm:$0xf0]  ;;  %v7219_v0 = vld [vmem:[%s10477_s12 + $0x260] sm:$0xf]  ;;  %v10667_v36 = vor.u32 %v9604_v55, %v7291_v54  ;;  %2245 = vmatpush.bf16.msra.mxu1 %v10650_v13 }
  0x65   : > { %v7419_v61 = vld [vmem:[%s10477_s12 + $0x3f0] sm:$0xf]  ;;  %v9636_v63 = vld [vmem:[%s10477_s12 + $0x3f4] sm:$0xf0]  ;;  %v9586_v1 = vld [vmem:[%s10477_s12 + $0x264] sm:$0xf0]  ;;  %v10669_v39 = vor.u32 %v9620_v60, %v7355_v59  ;;  %2259 = vmatpush.bf16.msra.mxu2 %v10652_v14 }
  0x66   : > { %15725 = vst [vmem:[#allocation41_spill] sm:$0xff] %v10640_v2  ;;  %v7283_v3 = vld [vmem:[%s10477_s12 + $0x2e0] sm:$0xf]  ;;  %v9602_v7 = vld [vmem:[%s10477_s12 + $0x2e4] sm:$0xf0]  ;;  %v10675_v53 = vor.u32 %v9636_v63, %v7419_v61  ;;  %v10677_v48 = vor.u32 %v9586_v1, %v7219_v0  ;;  %2273 = vmatpush.bf16.msra.mxu3 %v10660_v30 }
  0x67   : > { %v7347_v8 = vld [vmem:[%s10477_s12 + $0x360] sm:$0xf]  ;;  %v9618_v9 = vld [vmem:[%s10477_s12 + $0x364] sm:$0xf0]  ;;  %15726 = vst [vmem:[#allocation42_spill] sm:$0xff] %v10650_v13  ;;  %v10684_v54 = vor.u32 %v9602_v7, %v7283_v3  ;;  %2280 = vmatpush.bf16.msrb.mxu0 %v10662_v31  ;;  %v257_v3 = vld [vmem:[#allocation8 + $0x10] sm:$0xff] }
  0x68   : > { %v7411_v11 = vld [vmem:[%s10477_s12 + $0x3e0] sm:$0xf]  ;;  %v9634_v12 = vld [vmem:[%s10477_s12 + $0x3e4] sm:$0xf0]  ;;  %15727 = vst [vmem:[#allocation43_spill] sm:$0xff] %v10652_v14  ;;  %v10686_v55 = vor.u32 %v9618_v9, %v7347_v8  ;;  %v258_v7 = vld [vmem:[#allocation8 + $0x18] sm:$0xff]  ;;  %2294 = vmatpush.bf16.msrb.mxu1 %v10667_v36 }
  0x69   : > { %v7211_v16 = vld [vmem:[%s10477_s12 + $0x250] sm:$0xf]  ;;  %v9584_v18 = vld [vmem:[%s10477_s12 + $0x254] sm:$0xf0]  ;;  %15728 = vst [vmem:[#allocation44_spill] sm:$0xff] %v10660_v30  ;;  %v10688_v59 = vor.u32 %v9634_v12, %v7411_v11  ;;  %v255_v2 = vld [vmem:[#allocation8] sm:$0xff]  ;;  %2308 = vmatpush.bf16.msrb.mxu2 %v10669_v39  ;;  %v264_v30 = vpack.c.bf16 %v258_v7, %v257_v3 }
  0x6a   : > { %v7275_v23 = vld [vmem:[%s10477_s12 + $0x2d0] sm:$0xf]  ;;  %v9600_v25 = vld [vmem:[%s10477_s12 + $0x2d4] sm:$0xf0]  ;;  %15729 = vst [vmem:[#allocation45_spill] sm:$0xff] %v10662_v31  ;;  %v10694_v61 = vor.u32 %v9584_v18, %v7211_v16  ;;  %v256_v1 = vld [vmem:[#allocation8 + $0x8] sm:$0xff]  ;;  %2322 = vmatpush.bf16.msrb.mxu3 %v10675_v53 }
  0x6b   : > { %v7339_v26 = vld [vmem:[%s10477_s12 + $0x350] sm:$0xf]  ;;  %v9616_v32 = vld [vmem:[%s10477_s12 + $0x354] sm:$0xf0]  ;;  %15730 = vst [vmem:[#allocation46_spill] sm:$0xff] %v10667_v36  ;;  %v10696_v63 = vor.u32 %v9600_v25, %v7275_v23  ;;  %v263_v12 = vpack.c.bf16 %v256_v1, %v255_v2  ;;  %v247_v2 = vld [vmem:[#allocation5 + $0x50] sm:$0xff]  ;;  %2281 = vmatpush.bf16.msrb.mxu0 %v10677_v48 }
  0x6c   : > { %v7403_v34 = vld [vmem:[%s10477_s12 + $0x3d0] sm:$0xf]  ;;  %v9632_v35 = vld [vmem:[%s10477_s12 + $0x3d4] sm:$0xf0]  ;;  %15731 = vst [vmem:[#allocation47_spill] sm:$0xff] %v10669_v39  ;;  %v10698_v0 = vor.u32 %v9616_v32, %v7339_v26  ;;  %2295 = vmatpush.bf16.msrb.mxu1 %v10684_v54 }
  0x6d   : > { %v7203_v40 = vld [vmem:[%s10477_s12 + $0x240] sm:$0xf]  ;;  %v9582_v42 = vld [vmem:[%s10477_s12 + $0x244] sm:$0xf0]  ;;  %15732 = vst [vmem:[#allocation48_spill] sm:$0xff] %v10675_v53  ;;  %v10702_v8 = vor.u32 %v9632_v35, %v7403_v34  ;;  %v237_v9 = vld [vmem:[#allocation5] sm:$0xff]  ;;  %v267_v32 = vunpack.c.l.b16 %v263_v12  ;;  %v269_v34 = vunpack.c.l.b16 %v264_v30  ;;  %v268_v35 = vunpack.c.h.b16 %v263_v12  ;;  %2309 = vmatpush.bf16.msrb.mxu2 %v10686_v55 }
  0x6e   : > { %v7267_v43 = vld [vmem:[%s10477_s12 + $0x2c0] sm:$0xf]  ;;  %15733 = vst [vmem:[#allocation49_spill] sm:$0xff] %v10677_v48  ;;  %v9598_v49 = vld [vmem:[%s10477_s12 + $0x2c4] sm:$0xf0]  ;;  %v246_v11 = vld [vmem:[#allocation5 + $0x48] sm:$0xff]  ;;  %v10705_v16 = vor.u32 %v9582_v42, %v7203_v40  ;;  %v10714_v1 = vunpack.c.l.bf16 %v237_v9  ;;  %v10728_v3 = vunpack.c.h.bf16 %v237_v9  ;;  %2323 = vmatpush.bf16.msrb.mxu3 %v10688_v59  ;;  %v10733_v12 = vunpack.c.l.bf16 %v247_v2 }
  0x6f   : > { %v7331_v51 = vld [vmem:[%s10477_s12 + $0x340] sm:$0xf]  ;;  %v9614_v52 = vld [vmem:[%s10477_s12 + $0x344] sm:$0xf0]  ;;  %15734 = vst [vmem:[#allocation50_spill] sm:$0xff] %v10684_v54  ;;  %v10707_v18 = vor.u32 %v9598_v49, %v7267_v43  ;;  %v238_v26 = vld [vmem:[#allocation5 + $0x8] sm:$0xff]  ;;  %v10716_v40 = vunpack.c.l.bf16 %v246_v11  ;;  %v270_v43 = vunpack.c.h.b16 %v264_v30  ;;  %v10722_v49 = vpack.c.b16 %v269_v34, %v267_v32  ;;  %2282 = vmatpush.bf16.msrb.mxu0 %v10694_v61 }
  0x70   : > { %15735 = vst [vmem:[#allocation51_spill] sm:$0xff] %v10686_v55  ;;  %v7395_v60 = vld [vmem:[%s10477_s12 + $0x3c0] sm:$0xf]  ;;  %v9630_v47 = vld [vmem:[%s10477_s12 + $0x3c4] sm:$0xf0]  ;;  %v10709_v23 = vor.u32 %v9614_v52, %v7331_v51  ;;  %v10724_v51 = vunpack.c.l.bf16 %v238_v26  ;;  %v10730_v7 = vunpack.c.h.bf16 %v246_v11  ;;  %v10739_v32 = vunpack.c.h.bf16 %v238_v26  ;;  %2296 = vmatpush.bf16.msrb.mxu1 %v10696_v63 }
  0x71   : > { %15736 = vst [vmem:[#allocation52_spill] sm:$0xff] %v10688_v59  ;;  %v10711_v25 = vor.u32 %v9630_v47, %v7395_v60  ;;  %vm302_vm1 = vsmask.f32 1280  ;;  %v7195_v42 = vld [vmem:[%s10477_s12 + $0x230] sm:$0xf]  ;;  %v10737_v39 = vpack.c.b16 %v270_v43, %v268_v35  ;;  %v10741_v34 = vunpack.c.h.bf16 %v247_v2  ;;  %2310 = vmatpush.bf16.msrb.mxu2 %v10698_v0 }
  0x72   : > { %15737 = vst [vmem:[#allocation53_spill] sm:$0xff] %v10694_v61  ;;  %v9580_v47 = vld [vmem:[%s10477_s12 + $0x234] sm:$0xf0]  ;;  %v7259_v52 = vld [vmem:[%s10477_s12 + $0x2b0] sm:$0xf]  ;;  %v273_v55 = vrot.slane %v10722_v49, 6  ;;  %2324 = vmatpush.bf16.msrb.mxu3 %v10702_v8  ;;  %vm10776_vm3 = vmand %vm275_vm0, %vm302_vm1  ;;  %v396_v20 = vunpack.c.h.bf16 %v10722_v49 }
  0x73   : > { %15738 = vst [vmem:[#allocation54_spill] sm:$0xff] %v10696_v63  ;;  %v9596_v60 = vld [vmem:[%s10477_s12 + $0x2b4] sm:$0xf0]  ;;  %v7323_v30 = vld [vmem:[%s10477_s12 + $0x330] sm:$0xf]  ;;  %v10745_v9 = vshrl.u32 %v10722_v49, 16  ;;  %v10750_v59 = vor.u32 %v9580_v47, %v7195_v42  ;;  %2283 = vmatpush.bf16.msrb.mxu0 %v10705_v16 }
  0x74   : > { %15739 = vst [vmem:[#allocation55_spill] sm:$0xff] %v10698_v0  ;;  %v9612_v53 = vld [vmem:[%s10477_s12 + $0x334] sm:$0xf0]  ;;  %v10748_v11 = vshll.u32 %v10722_v49, 16  ;;  %v7387_v54 = vld [vmem:[%s10477_s12 + $0x3b0] sm:$0xf]  ;;  %v10754_v26 = vor.u32 %v9596_v60, %v7259_v52  ;;  %2297 = vmatpush.bf16.msrb.mxu1 %v10707_v18 }
  0x75   : > { %15740 = vst [vmem:[#allocation56_spill] sm:$0xff] %v10702_v8  ;;  %v9628_v2 = vld [vmem:[%s10477_s12 + $0x3b4] sm:$0xf0]  ;;  %v274_v35 = vrot.slane %v10737_v39, 6  ;;  %v10759_v43 = vshrl.u32 %v10737_v39, 16  ;;  %v10762_v48 = vshll.u32 %v10737_v39, 16  ;;  %v10769_v60 = vor.u32 %v9612_v53, %v7323_v30  ;;  %2311 = vmatpush.bf16.msrb.mxu2 %v10709_v23 }
  0x76   : > { %15741 = vst [vmem:[#allocation57_spill] sm:$0xff] %v10705_v16  ;;  %v278_v42 = vsel %vm275_vm0, 0, %v273_v55  ;;  %v286_v47 = vrot.slane %v10745_v9, 6  ;;  %v289_v52 = vrot.slane %v10748_v11, 7  ;;  %v7187_v61 = vld [vmem:[%s10477_s12 + $0x220] sm:$0xf]  ;;  %v10790_v10 = vor.u32 %v9628_v2, %v7387_v54  ;;  %2325 = vmatpush.bf16.msrb.mxu3 %v10711_v25 }
  0x77   : > { %15742 = vst [vmem:[#allocation58_spill] sm:$0xff] %v10707_v18  ;;  %v9578_v14 = vld [vmem:[%s10477_s12 + $0x224] sm:$0xf0]  ;;  %v370_v36 = vunpack.c.l.bf16 %v278_v42  ;;  %v388_v31 = vunpack.c.h.bf16 %v278_v42  ;;  %v281_v55 = vsel %vm275_vm0, 0, %v274_v35  ;;  %v294_v53 = vrot.slane %v10759_v43, 6  ;;  %2284 = vmatpush.bf16.msrb.mxu0 %v10750_v59 }
  0x78   : > { %15743 = vst [vmem:[#allocation59_spill] sm:$0xff] %v10709_v23  ;;  %v7251_v30 = vld [vmem:[%s10477_s12 + $0x2a0] sm:$0xf]  ;;  %v9594_v63 = vld [vmem:[%s10477_s12 + $0x2a4] sm:$0xf0]  ;;  %v290_v13 = vor.u32 %v289_v52, %v286_v47  ;;  %v371_v8 = vunpack.c.l.bf16 %v281_v55  ;;  %v389_v27 = vunpack.c.h.bf16 %v281_v55  ;;  %v297_v42 = vrot.slane %v10762_v48, 7  ;;  %2298 = vmatpush.bf16.msrb.mxu1 %v10754_v26 }
  0x79   : > { %15744 = vst [vmem:[#allocation60_spill] sm:$0xff] %v10711_v25  ;;  %v7315_v22 = vld [vmem:[%s10477_s12 + $0x320] sm:$0xf]  ;;  %v9610_v44 = vld [vmem:[%s10477_s12 + $0x324] sm:$0xf0]  ;;  %v442_v35 = vmul.f32 %v10714_v1, %v370_v36  ;;  %v460_v38 = vmul.f32 %v10716_v40, %v388_v31  ;;  %v306_v55 = vrot.slane %v10722_v49, 7  ;;  %v10808_v5 = vor.u32 %v9578_v14, %v7187_v61  ;;  %2312 = vmatpush.bf16.msrb.mxu2 %v10769_v60 }
  0x7a   : > { %15745 = vst [vmem:[#allocation61_spill] sm:$0xff] %v10741_v34  ;;  %vm322_vm4 = vsmask.f32 256  ;;  %v7379_v6 = vld [vmem:[%s10477_s12 + $0x3a0] sm:$0xf]  ;;  %v304_v36 = vsel %vm10776_vm3, 0, %v290_v13  ;;  %v443_v31 = vmul.f32 %v10728_v3, %v371_v8  ;;  %v461_v54 = vmul.f32 %v10730_v7, %v389_v27  ;;  %2326 = vmatpush.bf16.msrb.mxu3 %v10790_v10 }
  0x7b   : > { %15746 = vst [vmem:[#allocation62_spill] sm:$0xff] %v10750_v59  ;;  %v9626_v21 = vld [vmem:[%s10477_s12 + $0x3a4] sm:$0xf0]  ;;  %v7179_v47 = vld [vmem:[%s10477_s12 + $0x210] sm:$0xf]  ;;  %v298_v2 = vor.u32 %v297_v42, %v294_v53  ;;  %v10806_v62 = vpack.c.bf16 %v460_v38, %v442_v35  ;;  %v372_v58 = vunpack.c.l.bf16 %v304_v36  ;;  %v390_v18 = vunpack.c.h.bf16 %v304_v36  ;;  %v239_v14 = vld [vmem:[#allocation5 + $0x10] sm:$0xff]  ;;  %2285 = vmatpush.bf16.msrb.mxu0 %v10808_v5 }
  0x7c   : > { %15747 = vst [vmem:[#allocation63_spill] sm:$0xff] %v10754_v26  ;;  %v9576_v52 = vld [vmem:[%s10477_s12 + $0x214] sm:$0xf0]  ;;  %v7243_v16 = vld [vmem:[%s10477_s12 + $0x290] sm:$0xf]  ;;  %v10813_v27 = vpack.c.bf16 %v461_v54, %v443_v31  ;;  %v10817_v42 = vor.u32 %v9594_v63, %v7251_v30  ;;  %v10819_v25 = vor.u32 %v9610_v44, %v7315_v22  ;;  %v10831_v44 = vor.u32 %v9626_v21, %v7379_v6  ;;  %vm10884_vm5 = vmand %vm308_vm2, %vm322_vm4 }
  0x7d   : > { %15748 = vst [vmem:[#allocation64_spill] sm:$0xff] %v10769_v60  ;;  %v9592_v17 = vld [vmem:[%s10477_s12 + $0x294] sm:$0xf0]  ;;  %v7307_v23 = vld [vmem:[%s10477_s12 + $0x310] sm:$0xf]  ;;  %v305_v53 = vsel %vm10776_vm3, 0, %v298_v2  ;;  %2232 = vmatmul.bf16.vlgmr.msra.gmra.mxu0 %v10806_v62  ;;  %v444_v61 = vmul.f32 %v10724_v51, %v372_v58  ;;  %v462_v36 = vmul.f32 %v10733_v12, %v390_v18  ;;  %v10833_v30 = vor.u32 %v9576_v52, %v7179_v47 }
  0x7e   : > { %15751 = vst [vmem:[#allocation65_spill] sm:$0xff] %v10790_v10  ;;  %v9608_v13 = vld [vmem:[%s10477_s12 + $0x314] sm:$0xf0]  ;;  %v7371_v8 = vld [vmem:[%s10477_s12 + $0x390] sm:$0xf]  ;;  %v373_v31 = vunpack.c.l.bf16 %v305_v53  ;;  %v391_v54 = vunpack.c.h.bf16 %v305_v53  ;;  %v10835_v2 = vor.u32 %v9592_v17, %v7243_v16  ;;  %v248_v17 = vld [vmem:[#allocation5 + $0x58] sm:$0xff]  ;;  %2246 = vmatmul.bf16.vlgmr.msra.gmra.mxu1 %v10813_v27  ;;  %v10866_v57 = vunpack.c.l.bf16 %v239_v14  ;;  %2313 = vmatpush.bf16.msrb.mxu2 %v10819_v25 }
  0x7f   : > { %15752 = vst [vmem:[#allocation66_spill] sm:$0xff] %v10808_v5  ;;  %v9624_v38 = vld [vmem:[%s10477_s12 + $0x394] sm:$0xf0]  ;;  %v7171_v35 = vld [vmem:[%s10477_s12 + $0x200] sm:$0xf]  ;;  %v10840_v53 = vpack.c.bf16 %v462_v36, %v444_v61  ;;  %v310_v16 = vsel %vm308_vm2, 0, %v306_v55  ;;  %v10850_v52 = vor.u32 %v9608_v13, %v7307_v23  ;;  %2299 = vmatpush.bf16.msrb.mxu1 %v10817_v42  ;;  %v10870_v23 = vunpack.c.l.bf16 %v248_v17  ;;  %2327 = vmatpush.bf16.msrb.mxu3 %v10831_v44 }
  0x80   : > { %15753 = vst [vmem:[#allocation67_spill] sm:$0xff] %v10817_v42  ;;  %v9574_v4 = vld [vmem:[%s10477_s12 + $0x204] sm:$0xf0]  ;;  %v7235_v63 = vld [vmem:[%s10477_s12 + $0x280] sm:$0xf]  ;;  %v445_v26 = vmul.f32 %v10739_v32, %v373_v31  ;;  %v463_v6 = vmul.f32 %v10741_v34, %v391_v54  ;;  %v10852_v61 = vor.u32 %v9624_v38, %v7371_v8  ;;  %v374_v55 = vunpack.c.l.bf16 %v310_v16  ;;  %v249_v8 = vld [vmem:[#allocation5 + $0x60] sm:$0xff]  ;;  %2286 = vmatpush.bf16.msrb.mxu0 %v10833_v30 }
  0x81   : > { %15754 = vst [vmem:[#allocation68_spill] sm:$0xff] %v10819_v25  ;;  %v9590_v22 = vld [vmem:[%s10477_s12 + $0x284] sm:$0xf0]  ;;  %v7299_v58 = vld [vmem:[%s10477_s12 + $0x300] sm:$0xf]  ;;  %v10854_v36 = vor.u32 %v9574_v4, %v7171_v35  ;;  %2260 = vmatmul.bf16.vlgmr.msra.gmra.mxu2 %v10840_v53  ;;  %v392_v4 = vunpack.c.h.bf16 %v310_v16  ;;  %v315_v38 = vrot.slane %v10745_v9, 7 }
  0x82   : > { %15755 = vst [vmem:[#allocation69_spill] sm:$0xff] %v10831_v44  ;;  %v9606_v50 = vld [vmem:[%s10477_s12 + $0x304] sm:$0xf0]  ;;  %v7363_v18 = vld [vmem:[%s10477_s12 + $0x380] sm:$0xf]  ;;  %v10856_v60 = vor.u32 %v9590_v22, %v7235_v63  ;;  %v10862_v54 = vpack.c.bf16 %v463_v6, %v445_v26  ;;  %v307_v26 = vrot.slane %v10737_v39, 7  ;;  %2314 = vmatpush.bf16.msrb.mxu2 %v10850_v52 }
  0x83   : > { %15756 = vst [vmem:[#allocation70_spill] sm:$0xff] %v10833_v30  ;;  %v9622_v21 = vld [vmem:[%s10477_s12 + $0x384] sm:$0xf0]  ;;  %v7483_v47 = vld [vmem:[%s10477_s12 + $0x470] sm:$0xf]  ;;  %v10864_v46 = vor.u32 %v9606_v50, %v7299_v58  ;;  %v15768_v22 = vmov 0  ;;  %v10888_v58 = vunpack.c.h.bf16 %v239_v14  ;;  %2300 = vmatpush.bf16.msrb.mxu1 %v10835_v2  ;;  %2328 = vmatpush.bf16.msrb.mxu3 %v10852_v61 }
  0x84   : > { %15757 = vst [vmem:[#allocation71_spill] sm:$0xff] %v10835_v2  ;;  %v9652_v10 = vld [vmem:[%s10477_s12 + $0x474] sm:$0xf0]  ;;  %v7547_v59 = vld [vmem:[%s10477_s12 + $0x4f0] sm:$0xf]  ;;  %v240_v13 = vld [vmem:[#allocation5 + $0x18] sm:$0xff]  ;;  %2274 = vmatmul.bf16.vlgmr.msra.gmra.mxu3 %v10862_v54  ;;  %v10876_v50 = vor.u32 %v9622_v21, %v7363_v18  ;;  %v316_v18 = vor.u32 %v315_v38, %v10748_v11  ;;  %v446_v38 = vmul.f32 %v10866_v57, %v374_v55 }
  0x85   : > { %15758 = vst [vmem:[#allocation72_spill] sm:$0xff] %v10850_v52  ;;  %v9668_v31 = vld [vmem:[%s10477_s12 + $0x4f4] sm:$0xf0]  ;;  %v10878_v35 = vor.u32 %v9652_v10, %v7483_v47  ;;  %v15769_v22 = vsel %vm10884_vm5, 4294967295, %v15768_v22  ;;  %v7611_v6 = vld [vmem:[%s10477_s12 + $0x570] sm:$0xf]  ;;  %v10898_v47 = vunpack.c.l.bf16 %v240_v13  ;;  %v10914_v2 = vunpack.c.h.bf16 %v240_v13  ;;  %2287 = vmatpush.bf16.msrb.mxu0 %v10854_v36 }
  0x86   : > { %15759 = vst [vmem:[#allocation73_spill] sm:$0xff] %v10852_v61  ;;  %v10880_v63 = vor.u32 %v9668_v31, %v7547_v59  ;;  %v9684_v16 = vld [vmem:[%s10477_s12 + $0x574] sm:$0xf0]  ;;  %v313_v10 = vsel %vm308_vm2, 0, %v307_v26  ;;  %v10895_v59 = vunpack.c.h.bf16 %v248_v17  ;;  %v317_v21 = vrot.slane %v10759_v43, 7  ;;  %2315 = vmatpush.bf16.msrb.mxu2 %v10864_v46 }
  0x87   : > { %15760 = vst [vmem:[#allocation74_spill] sm:$0xff] %v10854_v36  ;;  %v10900_v31 = vunpack.c.l.bf16 %v249_v8  ;;  %v375_v25 = vunpack.c.l.bf16 %v313_v10  ;;  %v393_v42 = vunpack.c.h.bf16 %v313_v10  ;;  %v7675_v14 = vld [vmem:[%s10477_s12 + $0x5f0] sm:$0xf]  ;;  %v9700_v44 = vld [vmem:[%s10477_s12 + $0x5f4] sm:$0xf0]  ;;  %v464_v17 = vmul.f32 %v10870_v23, %v392_v4  ;;  %2301 = vmatpush.bf16.msrb.mxu1 %v10856_v60  ;;  %2329 = vmatpush.bf16.msrb.mxu3 %v10876_v50 }
  0x88   : > { %15761 = vst [vmem:[#allocation75_spill] sm:$0xff] %v10856_v60  ;;  %v324_v26 = vsel %vm10884_vm5, 0, %v316_v18  ;;  %v318_v5 = vor.u32 %v317_v21, %v10762_v48  ;;  %v10912_v10 = vor.u32 %v9684_v16, %v7611_v6  ;;  %v10921_v21 = vunpack.c.h.bf16 %v249_v8  ;;  %v7475_v6 = vld [vmem:[%s10477_s12 + $0x460] sm:$0xf]  ;;  %v9650_v16 = vld [vmem:[%s10477_s12 + $0x464] sm:$0xf0] }
  0x89   : > { %15762 = vst [vmem:[#allocation76_spill] sm:$0xff] %v10864_v46  ;;  %v376_v30 = vunpack.c.l.bf16 %v324_v26  ;;  %v394_v56 = vunpack.c.h.bf16 %v324_v26  ;;  %v447_v55 = vmul.f32 %v10888_v58, %v375_v25  ;;  %v465_v4 = vmul.f32 %v10895_v59, %v393_v42  ;;  %v7539_v8 = vld [vmem:[%s10477_s12 + $0x4e0] sm:$0xf]  ;;  %v9666_v52 = vld [vmem:[%s10477_s12 + $0x4e4] sm:$0xf0]  ;;  %2336 = vmatpush.bf16.msra.mxu0 %v10878_v35 }
  0x8a   : > { %15763 = vst [vmem:[#allocation77_spill] sm:$0xff] %v10866_v57  ;;  %v325_v18 = vsel %vm10884_vm5, 0, %v318_v5  ;;  %v10925_v26 = vor.u32 %v9700_v44, %v7675_v14  ;;  %v10931_v42 = vpack.c.bf16 %v464_v17, %v446_v38  ;;  %v7603_v44 = vld [vmem:[%s10477_s12 + $0x560] sm:$0xf]  ;;  %v9682_v14 = vld [vmem:[%s10477_s12 + $0x564] sm:$0xf0]  ;;  %2364 = vmatpush.bf16.msra.mxu2 %v10912_v10 }
  0x8b   : > { %15764 = vst [vmem:[#allocation78_spill] sm:$0xff] %v10870_v23  ;;  %v448_v13 = vmul.f32 %v10898_v47, %v376_v30  ;;  %v466_v61 = vmul.f32 %v10900_v31, %v394_v56  ;;  %v377_v25 = vunpack.c.l.bf16 %v325_v18  ;;  %v395_v5 = vunpack.c.h.bf16 %v325_v18  ;;  %v7667_v36 = vld [vmem:[%s10477_s12 + $0x5e0] sm:$0xf]  ;;  %v9698_v38 = vld [vmem:[%s10477_s12 + $0x5e4] sm:$0xf0]  ;;  %2350 = vmatpush.bf16.msra.mxu1 %v10880_v63 }
  0x8c   : > { %15765 = vst [vmem:[#allocation79_spill] sm:$0xff] %v10876_v50  ;;  %v10939_v56 = vor.u32 %v9650_v16, %v7475_v6  ;;  %v10946_v17 = vpack.c.bf16 %v465_v4, %v447_v55  ;;  %v7467_v46 = vld [vmem:[%s10477_s12 + $0x450] sm:$0xf]  ;;  %2378 = vmatpush.bf16.msra.mxu3 %v10925_v26  ;;  %v10955_v16 = vor.u32 %v9666_v52, %v7539_v8  ;;  %v9664_v50 = vld [vmem:[%s10477_s12 + $0x4d4] sm:$0xf0] }
  0x8d   : > { %15766 = vst [vmem:[#allocation80_spill] sm:$0xff] %v10878_v35  ;;  %v449_v30 = vmul.f32 %v10914_v2, %v377_v25  ;;  %v467_v18 = vmul.f32 %v10921_v21, %v395_v5  ;;  %v9648_v25 = vld [vmem:[%s10477_s12 + $0x454] sm:$0xf0]  ;;  %v10953_v6 = vpack.c.bf16 %v466_v61, %v448_v13  ;;  %2288 = vmatmul.bf16.vlgmr.msrb.gmra.mxu0 %v10931_v42  ;;  %v7531_v5 = vld [vmem:[%s10477_s12 + $0x4d0] sm:$0xf] }
  0x8e   : > { %15767 = vst [vmem:[#allocation81_spill] sm:$0xff] %v10880_v63  ;;  %v10958_v55 = vor.u32 %v9682_v14, %v7603_v44  ;;  %v10960_v4 = vor.u32 %v9698_v38, %v7667_v36  ;;  %v7595_v63 = vld [vmem:[%s10477_s12 + $0x550] sm:$0xf]  ;;  %2337 = vmatpush.bf16.msra.mxu0 %v10939_v56  ;;  %v10968_v61 = vor.u32 %v9648_v25, %v7467_v46  ;;  %v9680_v52 = vld [vmem:[%s10477_s12 + $0x554] sm:$0xf0] }
  0x8f   : > { %15770 = vst [vmem:[#allocation82_spill] sm:$0xff] %v15769_v22  ;;  %v10965_v35 = vpack.c.bf16 %v467_v18, %v449_v30  ;;  %v7659_v13 = vld [vmem:[%s10477_s12 + $0x5d0] sm:$0xf]  ;;  %v9696_v8 = vld [vmem:[%s10477_s12 + $0x5d4] sm:$0xf0]  ;;  %2302 = vmatmul.bf16.vlgmr.msrb.gmra.mxu1 %v10946_v17  ;;  %v10978_v30 = vor.u32 %v9664_v50, %v7531_v5  ;;  %v10982_v46 = vor.u32 %v9680_v52, %v7595_v63 }
  0x90   : > { %15771 = vst [vmem:[#allocation83_spill] sm:$0xff] %v10888_v58  ;;  %v7459_v36 = vld [vmem:[%s10477_s12 + $0x440] sm:$0xf]  ;;  %v9646_v44 = vld [vmem:[%s10477_s12 + $0x444] sm:$0xf0]  ;;  %2351 = vmatpush.bf16.msra.mxu1 %v10955_v16  ;;  %2365 = vmatpush.bf16.msra.mxu2 %v10958_v55  ;;  %v10984_v14 = vor.u32 %v9696_v8, %v7659_v13 }
  0x91   : > { %15772 = vst [vmem:[#allocation84_spill] sm:$0xff] %v10895_v59  ;;  %2316 = vmatmul.bf16.vlgmr.msrb.gmra.mxu2 %v10953_v6  ;;  %2379 = vmatpush.bf16.msra.mxu3 %v10960_v4  ;;  %v7523_v38 = vld [vmem:[%s10477_s12 + $0x4c0] sm:$0xf]  ;;  %v9662_v18 = vld [vmem:[%s10477_s12 + $0x4c4] sm:$0xf0]  ;;  %v10991_v50 = vor.u32 %v9646_v44, %v7459_v36 }
  0x92   : > { %15773 = vst [vmem:[#allocation85_spill] sm:$0xff] %v10898_v47  ;;  %v7587_v25 = vld [vmem:[%s10477_s12 + $0x540] sm:$0xf]  ;;  %2338 = vmatpush.bf16.msra.mxu0 %v10968_v61  ;;  %v9678_v5 = vld [vmem:[%s10477_s12 + $0x544] sm:$0xf0]  ;;  %v10999_v13 = vor.u32 %v9662_v18, %v7523_v38  ;;  %v326_v38 = vrot.slane %v10748_v11, 1 }
  0x93   : > { %15774 = vst [vmem:[#allocation86_spill] sm:$0xff] %v10900_v31  ;;  %v7451_v63 = vld [vmem:[%s10477_s12 + $0x430] sm:$0xf]  ;;  %v9644_v52 = vld [vmem:[%s10477_s12 + $0x434] sm:$0xf0]  ;;  %v11006_v44 = vor.u32 %v9678_v5, %v7587_v25 }
  0x94   : > { %15775 = vst [vmem:[#allocation87_spill] sm:$0xff] %v10912_v10  ;;  %2330 = vmatmul.bf16.vlgmr.msrb.gmra.mxu3 %v10965_v35  ;;  %2352 = vmatpush.bf16.msra.mxu1 %v10978_v30  ;;  %v7515_v8 = vld [vmem:[%s10477_s12 + $0x4b0] sm:$0xf]  ;;  %v9676_v10 = vld [vmem:[%s10477_s12 + $0x534] sm:$0xf0]  ;;  %v11014_v18 = vor.u32 %v9644_v52, %v7451_v63  ;;  %v327_v33 = vor.u32 %v326_v38, %v10745_v9 }
  0x95   : > { %15776 = vst [vmem:[#allocation88_spill] sm:$0xff] %v10914_v2  ;;  %v7579_v36 = vld [vmem:[%s10477_s12 + $0x530] sm:$0xf]  ;;  %2366 = vmatpush.bf16.msra.mxu2 %v10982_v46  ;;  %2380 = vmatpush.bf16.msra.mxu3 %v10984_v14  ;;  %v9642_v60 = vld [vmem:[%s10477_s12 + $0x424] sm:$0xf0] }
  0x96   : > { %15777 = vst [vmem:[#allocation89_spill] sm:$0xff] %v10921_v21  ;;  %2339 = vmatpush.bf16.msra.mxu0 %v10991_v50  ;;  %v9658_v25 = vld [vmem:[%s10477_s12 + $0x4a4] sm:$0xf0]  ;;  %vm333_vm7 = vsmask.f32 7424  ;;  %v241_v52 = vld [vmem:[#allocation5 + $0x20] sm:$0xff] }
  0x97   : > { %15778 = vst [vmem:[#allocation90_spill] sm:$0xff] %v10925_v26  ;;  %v9674_v5 = vld [vmem:[%s10477_s12 + $0x524] sm:$0xf0]  ;;  %v7635_v63 = vld [vmem:[%s10477_s12 + $0x5a0] sm:$0xf]  ;;  %vm11045_vm8 = vmand %vm332_vm6, %vm333_vm7  ;;  %v11061_v29 = vunpack.c.l.bf16 %v241_v52 }
  0x98   : > { %15779 = vst [vmem:[#allocation91_spill] sm:$0xff] %v10939_v56  ;;  %v7443_v56 = vld [vmem:[%s10477_s12 + $0x420] sm:$0xf]  ;;  %2353 = vmatpush.bf16.msra.mxu1 %v10999_v13  ;;  %v7499_v41 = vld [vmem:[%s10477_s12 + $0x490] sm:$0xf] }
  0x99   : > { %15780 = vst [vmem:[#allocation92_spill] sm:$0xff] %v10955_v16  ;;  %v9692_v16 = vld [vmem:[%s10477_s12 + $0x5b4] sm:$0xf0]  ;;  %2367 = vmatpush.bf16.msra.mxu2 %v11006_v44  ;;  %v11039_v45 = vor.u32 %v9642_v60, %v7443_v56  ;;  %v7803_v47 = vld [vmem:[%s10477_s12 + $0x6f0] sm:$0xf] }
  0x9a   : > { %15781 = vst [vmem:[#allocation93_spill] sm:$0xff] %v10958_v55  ;;  %v9694_v55 = vld [vmem:[%s10477_s12 + $0x5c4] sm:$0xf0]  ;;  %2340 = vmatpush.bf16.msra.mxu0 %v11014_v18  ;;  %v9656_v24 = vld [vmem:[%s10477_s12 + $0x494] sm:$0xf0] }
  0x9b   : > { %15782 = vst [vmem:[#allocation94_spill] sm:$0xff] %v10960_v4  ;;  %v7651_v4 = vld [vmem:[%s10477_s12 + $0x5c0] sm:$0xf]  ;;  %v9688_v56 = vld [vmem:[%s10477_s12 + $0x594] sm:$0xf0] }
  0x9c   : > { %15783 = vst [vmem:[#allocation95_spill] sm:$0xff] %v10968_v61  ;;  %v9660_v61 = vld [vmem:[%s10477_s12 + $0x4b4] sm:$0xf0]  ;;  %v11008_v26 = vor.u32 %v9694_v55, %v7651_v4  ;;  %v7571_v55 = vld [vmem:[%s10477_s12 + $0x520] sm:$0xf] }
  0x9d   : > { %15784 = vst [vmem:[#allocation96_spill] sm:$0xff] %v10978_v30  ;;  %v7643_v30 = vld [vmem:[%s10477_s12 + $0x5b0] sm:$0xf]  ;;  %v11023_v4 = vor.u32 %v9660_v61, %v7515_v8  ;;  %v9640_v8 = vld [vmem:[%s10477_s12 + $0x414] sm:$0xf0]  ;;  %v11057_v60 = vor.u32 %v9674_v5, %v7571_v55  ;;  %v251_v55 = vld [vmem:[#allocation5 + $0x70] sm:$0xff] }
  0x9e   : > { %15785 = vst [vmem:[#allocation97_spill] sm:$0xff] %v10982_v46  ;;  %v7507_v46 = vld [vmem:[%s10477_s12 + $0x4a0] sm:$0xf]  ;;  %2381 = vmatpush.bf16.msra.mxu3 %v11008_v26  ;;  %v11032_v37 = vor.u32 %v9692_v16, %v7643_v30  ;;  %v7435_v61 = vld [vmem:[%s10477_s12 + $0x410] sm:$0xf]  ;;  %v335_v5 = vsel %vm11045_vm8, %v327_v33, 0  ;;  %2341 = vmatpush.bf16.msra.mxu0 %v11039_v45  ;;  %v11105_v31 = vunpack.c.h.bf16 %v251_v55 }
  0x9f   : > { %15786 = vst [vmem:[#allocation98_spill] sm:$0xff] %v10984_v14  ;;  %v328_v14 = vrot.slane %v10762_v48, 1  ;;  %v7563_v16 = vld [vmem:[%s10477_s12 + $0x510] sm:$0xf]  ;;  %v9672_v30 = vld [vmem:[%s10477_s12 + $0x514] sm:$0xf0]  ;;  %2354 = vmatpush.bf16.msra.mxu1 %v11023_v4  ;;  %v11055_v38 = vor.u32 %v9658_v25, %v7507_v46  ;;  %v11067_v46 = vor.u32 %v9640_v8, %v7435_v61  ;;  %v11069_v25 = vor.u32 %v9656_v24, %v7499_v41 }
  0xa0   : > { %15787 = vst [vmem:[#allocation99_spill] sm:$0xff] %v10991_v50  ;;  %v11030_v50 = vor.u32 %v9676_v10, %v7579_v36  ;;  %v7627_v36 = vld [vmem:[%s10477_s12 + $0x590] sm:$0xf]  ;;  %v7427_v41 = vld [vmem:[%s10477_s12 + $0x400] sm:$0xf] }
  0xa1   : > { %15788 = vst [vmem:[#allocation100_spill] sm:$0xff] %v10999_v13  ;;  %v9690_v13 = vld [vmem:[%s10477_s12 + $0x5a4] sm:$0xf0]  ;;  %v329_v10 = vor.u32 %v328_v14, %v10759_v43  ;;  %v242_v14 = vld [vmem:[#allocation5 + $0x28] sm:$0xff]  ;;  %v11080_v24 = vor.u32 %v9688_v56, %v7627_v36  ;;  %v7491_v8 = vld [vmem:[%s10477_s12 + $0x480] sm:$0xf]  ;;  %v398_v36 = vunpack.c.h.bf16 %v335_v5  ;;  %v11095_v56 = vunpack.c.l.bf16 %v251_v55 }
  0xa2   : > { %15789 = vst [vmem:[#allocation101_spill] sm:$0xff] %v11006_v44  ;;  %v378_v44 = vunpack.c.l.bf16 %v10722_v49  ;;  %2368 = vmatpush.bf16.msra.mxu2 %v11030_v50  ;;  %2382 = vmatpush.bf16.msra.mxu3 %v11032_v37  ;;  %v11065_v28 = vor.u32 %v9690_v13, %v7635_v63  ;;  %v397_v13 = vunpack.c.h.bf16 %v10737_v39  ;;  %v9638_v61 = vld [vmem:[%s10477_s12 + $0x404] sm:$0xf0]  ;;  %v9716_v19 = vld [vmem:[%s10477_s12 + $0x674] sm:$0xf0]  ;;  %v11103_v2 = vunpack.c.h.bf16 %v242_v14 }
  0xa3   : > { %15790 = vst [vmem:[#allocation102_spill] sm:$0xff] %v11008_v26  ;;  %v15796_v26 = vmov 0  ;;  %v336_v63 = vsel %vm11045_vm8, %v329_v10, 0  ;;  %2355 = vmatpush.bf16.msra.mxu1 %v11055_v38  ;;  %v380_v10 = vunpack.c.l.bf16 %v335_v5  ;;  %2342 = vmatpush.bf16.msra.mxu0 %v11067_v46  ;;  %v7619_v5 = vld [vmem:[%s10477_s12 + $0x580] sm:$0xf] }
  0xa4   : > { %15791 = vst [vmem:[#allocation103_spill] sm:$0xff] %v11014_v18  ;;  %v15797_v26 = vsel %vm11045_vm8, 4294967295, %v15796_v26  ;;  %v250_v18 = vld [vmem:[#allocation5 + $0x68] sm:$0xff]  ;;  %v399_v21 = vunpack.c.h.bf16 %v336_v63  ;;  %vm355_vm10 = vsmask.f32 6400 }
  0xa5   : > { %15792 = vst [vmem:[#allocation104_spill] sm:$0xff] %v11023_v4  ;;  %v11074_v4 = vor.u32 %v9672_v30, %v7563_v16  ;;  %v11085_v33 = vunpack.c.l.bf16 %v250_v18  ;;  %v11089_v16 = vunpack.c.h.bf16 %v241_v52  ;;  %v9654_v30 = vld [vmem:[%s10477_s12 + $0x484] sm:$0xf0]  ;;  %v11097_v15 = vunpack.c.h.bf16 %v250_v18  ;;  %v7555_v52 = vld [vmem:[%s10477_s12 + $0x500] sm:$0xf]  ;;  %vm11260_vm11 = vmand %vm339_vm9, %vm355_vm10 }
  0xa6   : > { %15793 = vst [vmem:[#allocation105_spill] sm:$0xff] %v11030_v50  ;;  %v379_v50 = vunpack.c.l.bf16 %v10737_v39  ;;  %2369 = vmatpush.bf16.msra.mxu2 %v11057_v60  ;;  %2383 = vmatpush.bf16.msra.mxu3 %v11065_v28  ;;  %v11108_v18 = vor.u32 %v9638_v61, %v7427_v41  ;;  %v11114_v59 = vor.u32 %v9654_v30, %v7491_v8  ;;  %v9748_v23 = vld [vmem:[%s10477_s12 + $0x774] sm:$0xf0]  ;;  %v7931_v61 = vld [vmem:[%s10477_s12 + $0x7f0] sm:$0xf] }
  0xa7   : > { %15794 = vst [vmem:[#allocation106_spill] sm:$0xff] %v11032_v37  ;;  %v11087_v37 = vunpack.c.l.bf16 %v242_v14  ;;  %v7867_v14 = vld [vmem:[%s10477_s12 + $0x770] sm:$0xf]  ;;  %v468_v55 = vmul.f32 %v11085_v33, %v396_v20  ;;  %2356 = vmatpush.bf16.msra.mxu1 %v11069_v25  ;;  %v10020_v22 = vld [vmem:[%s10477_s12 + $0xff4] sm:$0xf0] }
  0xa8   : > { %15795 = vst [vmem:[#allocation107_spill] sm:$0xff] %v11039_v45  ;;  %v7739_v45 = vld [vmem:[%s10477_s12 + $0x670] sm:$0xf]  ;;  %v451_v57 = vmul.f32 %v11089_v16, %v379_v50  ;;  %2343 = vmatpush.bf16.msra.mxu0 %v11108_v18 }
  0xa9   : > { %15798 = vst [vmem:[#allocation108_spill] sm:$0xff] %v15797_v26  ;;  %v381_v26 = vunpack.c.l.bf16 %v336_v63  ;;  %v11116_v58 = vor.u32 %v9716_v19, %v7739_v45  ;;  %v9732_v63 = vld [vmem:[%s10477_s12 + $0x6f4] sm:$0xf0]  ;;  %v452_v8 = vmul.f32 %v11087_v37, %v380_v10  ;;  %v470_v19 = vmul.f32 %v11095_v56, %v398_v36  ;;  %v9714_v36 = vld [vmem:[%s10477_s12 + $0x664] sm:$0xf0] }
  0xaa   : > { %15799 = vst [vmem:[#allocation109_spill] sm:$0xff] %v11055_v38  ;;  %v9670_v38 = vld [vmem:[%s10477_s12 + $0x504] sm:$0xf0]  ;;  %v469_v45 = vmul.f32 %v11097_v15, %v397_v13  ;;  %2370 = vmatpush.bf16.msra.mxu2 %v11074_v4  ;;  %2384 = vmatpush.bf16.msra.mxu3 %v11080_v24  ;;  %v11138_v30 = vor.u32 %v9732_v63, %v7803_v47  ;;  %v7731_v13 = vld [vmem:[%s10477_s12 + $0x660] sm:$0xf] }
  0xab   : > { %15800 = vst [vmem:[#allocation110_spill] sm:$0xff] %v11057_v60  ;;  %v9686_v60 = vld [vmem:[%s10477_s12 + $0x584] sm:$0xf0]  ;;  %v11124_v41 = vor.u32 %v9670_v38, %v7555_v52  ;;  %v453_v50 = vmul.f32 %v11103_v2, %v381_v26  ;;  %v471_v38 = vmul.f32 %v11105_v31, %v399_v21  ;;  %v11140_v10 = vor.u32 %v9748_v23, %v7867_v14  ;;  %v7795_v52 = vld [vmem:[%s10477_s12 + $0x6e0] sm:$0xf] }
  0xac   : > { %15801 = vst [vmem:[#allocation111_spill] sm:$0xff] %v11061_v29  ;;  %v11133_v20 = vor.u32 %v9686_v60, %v7619_v5  ;;  %2392 = vmatpush.bf16.msrb.mxu0 %v11116_v58  ;;  %v9730_v26 = vld [vmem:[%s10477_s12 + $0x6e4] sm:$0xf0]  ;;  %v7859_v21 = vld [vmem:[%s10477_s12 + $0x760] sm:$0xf]  ;;  %2357 = vmatpush.bf16.msra.mxu1 %v11114_v59  ;;  %v11154_v47 = vpack.c.bf16 %v470_v19, %v452_v8 }
  0xad   : > { %15802 = vst [vmem:[#allocation112_spill] sm:$0xff] %v11065_v28  ;;  %v450_v28 = vmul.f32 %v11061_v29, %v378_v44  ;;  %v9764_v44 = vld [vmem:[%s10477_s12 + $0x7f4] sm:$0xf0]  ;;  %v9746_v5 = vld [vmem:[%s10477_s12 + $0x764] sm:$0xf0]  ;;  %v11156_v23 = vpack.c.bf16 %v469_v45, %v451_v57  ;;  %v11168_v57 = vor.u32 %v9730_v26, %v7795_v52 }
  0xae   : > { %15803 = vst [vmem:[#allocation113_spill] sm:$0xff] %v11067_v46  ;;  %v7923_v63 = vld [vmem:[%s10477_s12 + $0x7e0] sm:$0xf]  ;;  %v9762_v14 = vld [vmem:[%s10477_s12 + $0x7e4] sm:$0xf0]  ;;  %2371 = vmatpush.bf16.msra.mxu2 %v11124_v41  ;;  %2385 = vmatpush.bf16.msra.mxu3 %v11133_v20 }
  0xaf   : > { %15804 = vst [vmem:[#allocation114_spill] sm:$0xff] %v11069_v25  ;;  %v11148_v60 = vpack.c.bf16 %v468_v55, %v450_v28  ;;  %v11162_v28 = vpack.c.bf16 %v471_v38, %v453_v50  ;;  %v11164_v55 = vor.u32 %v9714_v36, %v7731_v13  ;;  %v9712_v8 = vld [vmem:[%s10477_s12 + $0x654] sm:$0xf0]  ;;  %v7787_v19 = vld [vmem:[%s10477_s12 + $0x6d0] sm:$0xf]  ;;  %v11177_v45 = vor.u32 %v9762_v14, %v7923_v63 }
  0xb0   : > { %15805 = vst [vmem:[#allocation115_spill] sm:$0xff] %v11074_v4  ;;  %2406 = vmatpush.bf16.msrb.mxu1 %v11138_v30  ;;  %v9728_v50 = vld [vmem:[%s10477_s12 + $0x6d4] sm:$0xf0]  ;;  %v7851_v38 = vld [vmem:[%s10477_s12 + $0x750] sm:$0xf] }
  0xb1   : > { %15806 = vst [vmem:[#allocation116_spill] sm:$0xff] %v11080_v24  ;;  %v11146_v24 = vor.u32 %v9764_v44, %v7931_v61  ;;  %v11170_v61 = vor.u32 %v9746_v5, %v7859_v21  ;;  %v7723_v44 = vld [vmem:[%s10477_s12 + $0x650] sm:$0xf]  ;;  %2344 = vmatmul.bf16.vlgmr.msra.gmra.mxu0 %v11148_v60  ;;  %v9744_v13 = vld [vmem:[%s10477_s12 + $0x754] sm:$0xf0]  ;;  %2372 = vmatmul.bf16.vlgmr.msra.gmra.mxu2 %v11154_v47 }
  0xb2   : > { %15807 = vst [vmem:[#allocation117_spill] sm:$0xff] %v11085_v33  ;;  %2420 = vmatpush.bf16.msrb.mxu2 %v11140_v10  ;;  %2358 = vmatmul.bf16.vlgmr.msra.gmra.mxu1 %v11156_v23  ;;  %v7915_v36 = vld [vmem:[%s10477_s12 + $0x7d0] sm:$0xf]  ;;  %v9760_v52 = vld [vmem:[%s10477_s12 + $0x7d4] sm:$0xf0]  ;;  %v11188_v26 = vor.u32 %v9712_v8, %v7723_v44  ;;  %v11194_v63 = vor.u32 %v9728_v50, %v7787_v19 }
  0xb3   : > { %15808 = vst [vmem:[#allocation118_spill] sm:$0xff] %v11087_v37  ;;  %2434 = vmatpush.bf16.msrb.mxu3 %v11146_v24  ;;  %2393 = vmatpush.bf16.msrb.mxu0 %v11164_v55  ;;  %v7715_v21 = vld [vmem:[%s10477_s12 + $0x640] sm:$0xf]  ;;  %v9710_v5 = vld [vmem:[%s10477_s12 + $0x644] sm:$0xf0]  ;;  %v11196_v14 = vor.u32 %v9744_v13, %v7851_v38  ;;  %v11202_v44 = vor.u32 %v9760_v52, %v7915_v36 }
  0xb4   : > { %15809 = vst [vmem:[#allocation119_spill] sm:$0xff] %v11089_v16  ;;  %2386 = vmatmul.bf16.vlgmr.msra.gmra.mxu3 %v11162_v28  ;;  %2407 = vmatpush.bf16.msrb.mxu1 %v11168_v57  ;;  %v7843_v8 = vld [vmem:[%s10477_s12 + $0x740] sm:$0xf]  ;;  %v9758_v19 = vld [vmem:[%s10477_s12 + $0x7c4] sm:$0xf0]  ;;  %v11210_v50 = vor.u32 %v9710_v5, %v7715_v21 }
  0xb5   : > { %15810 = vst [vmem:[#allocation120_spill] sm:$0xff] %v11095_v56  ;;  %v7707_v38 = vld [vmem:[%s10477_s12 + $0x630] sm:$0xf]  ;;  %v9724_v21 = vld [vmem:[%s10477_s12 + $0x6b4] sm:$0xf0] }
  0xb6   : > { %15811 = vst [vmem:[#allocation121_spill] sm:$0xff] %v11097_v15  ;;  %2421 = vmatpush.bf16.msrb.mxu2 %v11170_v61  ;;  %v7771_v13 = vld [vmem:[%s10477_s12 + $0x6b0] sm:$0xf]  ;;  %v9736_v46 = vld [vmem:[%s10477_s12 + $0x714] sm:$0xf0] }
  0xb7   : > { %15812 = vst [vmem:[#allocation122_spill] sm:$0xff] %v11103_v2  ;;  %2435 = vmatpush.bf16.msrb.mxu3 %v11177_v45  ;;  %2394 = vmatpush.bf16.msrb.mxu0 %v11188_v26  ;;  %v7835_v5 = vld [vmem:[%s10477_s12 + $0x730] sm:$0xf]  ;;  %v11246_v4 = vor.u32 %v9724_v21, %v7771_v13  ;;  %v9752_v21 = vld [vmem:[%s10477_s12 + $0x794] sm:$0xf0] }
  0xb8   : > { %15813 = vst [vmem:[#allocation123_spill] sm:$0xff] %v11105_v31  ;;  %2408 = vmatpush.bf16.msrb.mxu1 %v11194_v63  ;;  %v7819_v25 = vld [vmem:[%s10477_s12 + $0x710] sm:$0xf]  ;;  %v9796_v16 = vld [vmem:[%s10477_s12 + $0x8f4] sm:$0xf0] }
  0xb9   : > { %15814 = vst [vmem:[#allocation124_spill] sm:$0xff] %v11108_v18  ;;  %v7883_v13 = vld [vmem:[%s10477_s12 + $0x790] sm:$0xf]  ;;  %v9523_v33 = vld [vmem:[%s10477_s12 + $0x74] sm:$0xf] }
  0xba   : > { %15815 = vst [vmem:[#allocation125_spill] sm:$0xff] %v11114_v59  ;;  %2422 = vmatpush.bf16.msrb.mxu2 %v11196_v14  ;;  %v8059_v15 = vld [vmem:[%s10477_s12 + $0x8f0] sm:$0xf] }
  0xbb   : > { %15816 = vst [vmem:[#allocation126_spill] sm:$0xff] %v11116_v58  ;;  %2436 = vmatpush.bf16.msrb.mxu3 %v11202_v44  ;;  %2395 = vmatpush.bf16.msrb.mxu0 %v11210_v50 }
  0xbc   : > { %15817 = vst [vmem:[#allocation127_spill] sm:$0xff] %v11124_v41  ;;  %v7827_v41 = vld [vmem:[%s10477_s12 + $0x720] sm:$0xf] }
  0xbd   : > { %15818 = vst [vmem:[#allocation128_spill] sm:$0xff] %v11133_v20  ;;  %v346_v20 = vrot.slane %v10745_v9, 1  ;;  %v9708_v9 = vld [vmem:[%s10477_s12 + $0x634] sm:$0xf0] }
  0xbe   : > { %15819 = vst [vmem:[#allocation129_spill] sm:$0xff] %v11138_v30  ;;  %v337_v30 = vrot.slane %v10722_v49, 1 }
  0xbf   : > { %15820 = vst [vmem:[#allocation130_spill] sm:$0xff] %v11140_v10  ;;  %v9726_v10 = vld [vmem:[%s10477_s12 + $0x6c4] sm:$0xf0] }
  0xc0   : > { %15821 = vst [vmem:[#allocation131_spill] sm:$0xff] %v11146_v24  ;;  %v7779_v24 = vld [vmem:[%s10477_s12 + $0x6c0] sm:$0xf] }
  0xc1   : > { %15822 = vst [vmem:[#allocation132_spill] sm:$0xff] %v11164_v55  ;;  %v7907_v55 = vld [vmem:[%s10477_s12 + $0x7c0] sm:$0xf] }
  0xc2   : > { %15823 = vst [vmem:[#allocation133_spill] sm:$0xff] %v11168_v57  ;;  %v9742_v57 = vld [vmem:[%s10477_s12 + $0x744] sm:$0xf0] }
  0xc3   : > { %15824 = vst [vmem:[#allocation134_spill] sm:$0xff] %v11170_v61  ;;  %v347_v61 = vrot.slane %v10748_v11, 2  ;;  %v11217_v11 = vor.u32 %v9726_v10, %v7779_v24  ;;  %v11219_v52 = vor.u32 %v9742_v57, %v7843_v8  ;;  %v9756_v24 = vld [vmem:[%s10477_s12 + $0x7b4] sm:$0xf0]  ;;  %v7699_v10 = vld [vmem:[%s10477_s12 + $0x620] sm:$0xf] }
  0xc4   : > { %15825 = vst [vmem:[#allocation135_spill] sm:$0xff] %v11177_v45  ;;  %v349_v45 = vrot.slane %v10759_v43, 1  ;;  %v7763_v57 = vld [vmem:[%s10477_s12 + $0x6a0] sm:$0xf]  ;;  %v9722_v8 = vld [vmem:[%s10477_s12 + $0x6a4] sm:$0xf0] }
  0xc5   : > { %15826 = vst [vmem:[#allocation136_spill] sm:$0xff] %v11188_v26  ;;  %v348_v36 = vor.u32 %v347_v61, %v346_v20  ;;  %v350_v26 = vrot.slane %v10762_v48, 2  ;;  %v11226_v20 = vor.u32 %v9758_v19, %v7907_v55  ;;  %v9740_v61 = vld [vmem:[%s10477_s12 + $0x734] sm:$0xf0]  ;;  %v9738_v43 = vld [vmem:[%s10477_s12 + $0x724] sm:$0xf0]  ;;  %v11238_v48 = vor.u32 %v9708_v9, %v7707_v38  ;;  %2409 = vmatpush.bf16.msrb.mxu1 %v11217_v11 }
  0xc6   : > { %15827 = vst [vmem:[#allocation137_spill] sm:$0xff] %v11194_v63  ;;  %v9706_v63 = vld [vmem:[%s10477_s12 + $0x624] sm:$0xf0]  ;;  %v7891_v55 = vld [vmem:[%s10477_s12 + $0x7a0] sm:$0xf]  ;;  %2423 = vmatpush.bf16.msrb.mxu2 %v11219_v52  ;;  %v11248_v59 = vor.u32 %v9740_v61, %v7835_v5 }
  0xc7   : > { %15828 = vst [vmem:[#allocation138_spill] sm:$0xff] %v11196_v14  ;;  %v7899_v14 = vld [vmem:[%s10477_s12 + $0x7b0] sm:$0xf]  ;;  %v9754_v19 = vld [vmem:[%s10477_s12 + $0x7a4] sm:$0xf0]  ;;  %v351_v58 = vor.u32 %v350_v26, %v349_v45  ;;  %2437 = vmatpush.bf16.msrb.mxu3 %v11226_v20  ;;  %v15838_v45 = vmov 0  ;;  %2396 = vmatpush.bf16.msrb.mxu0 %v11238_v48  ;;  %v11268_v61 = vor.u32 %v9706_v63, %v7699_v10 }
  0xc8   : > { %15829 = vst [vmem:[#allocation139_spill] sm:$0xff] %v11202_v44  ;;  %v7691_v44 = vld [vmem:[%s10477_s12 + $0x610] sm:$0xf]  ;;  %v9720_v9 = vld [vmem:[%s10477_s12 + $0x694] sm:$0xf0]  ;;  %v11254_v18 = vor.u32 %v9756_v24, %v7899_v14  ;;  %v15839_v45 = vsel %vm11260_vm11, 4294967295, %v15838_v45  ;;  %v11272_v14 = vor.u32 %v9738_v43, %v7827_v41 }
  0xc9   : > { %15830 = vst [vmem:[#allocation140_spill] sm:$0xff] %v11210_v50  ;;  %v9704_v50 = vld [vmem:[%s10477_s12 + $0x614] sm:$0xf0]  ;;  %v7755_v38 = vld [vmem:[%s10477_s12 + $0x690] sm:$0xf]  ;;  %v338_v26 = vrot.slane %v10737_v39, 1  ;;  %2410 = vmatpush.bf16.msrb.mxu1 %v11246_v4 }
  0xca   : > { %15831 = vst [vmem:[#allocation141_spill] sm:$0xff] %v11217_v11  ;;  %v243_v5 = vld [vmem:[#allocation5 + $0x30] sm:$0xff]  ;;  %v252_v24 = vld [vmem:[#allocation5 + $0x78] sm:$0xff]  ;;  %2424 = vmatpush.bf16.msrb.mxu2 %v11248_v59  ;;  %v11277_v11 = vor.u32 %v9754_v19, %v7891_v55  ;;  %v11279_v31 = vor.u32 %v9704_v50, %v7691_v44  ;;  %v253_v41 = vld [vmem:[#allocation5 + $0x80] sm:$0xff]  ;;  %v357_v10 = vsel %vm11260_vm11, %v348_v36, 0  ;;  %v358_v36 = vsel %vm11260_vm11, %v351_v58, 0 }
  0xcb   : > { %15832 = vst [vmem:[#allocation142_spill] sm:$0xff] %v11219_v52  ;;  %v341_v52 = vsel %vm339_vm9, %v337_v30, 0  ;;  %v244_v63 = vld [vmem:[#allocation5 + $0x38] sm:$0xff]  ;;  %2438 = vmatpush.bf16.msrb.mxu3 %v11254_v18  ;;  %v11286_v30 = vor.u32 %v9736_v46, %v7819_v25  ;;  %v344_v44 = vsel %vm339_vm9, %v338_v26, 0  ;;  %v7683_v50 = vld [vmem:[%s10477_s12 + $0x600] sm:$0xf]  ;;  %v11294_v19 = vunpack.c.l.bf16 %v252_v24  ;;  %2397 = vmatpush.bf16.msrb.mxu0 %v11268_v61 }
  0xcc   : > { %15833 = vst [vmem:[#allocation143_spill] sm:$0xff] %v11226_v20  ;;  %v11270_v20 = vor.u32 %v9722_v8, %v7763_v57  ;;  %v11288_v57 = vor.u32 %v9752_v21, %v7883_v13  ;;  %v11290_v8 = vunpack.c.l.bf16 %v243_v5  ;;  %v382_v43 = vunpack.c.l.bf16 %v341_v52  ;;  %v9702_v46 = vld [vmem:[%s10477_s12 + $0x604] sm:$0xf0]  ;;  %v7747_v25 = vld [vmem:[%s10477_s12 + $0x680] sm:$0xf] }
  0xcd   : > { %15834 = vst [vmem:[#allocation144_spill] sm:$0xff] %v11238_v48  ;;  %v11281_v48 = vor.u32 %v9720_v9, %v7755_v38  ;;  %v400_v55 = vunpack.c.h.bf16 %v341_v52  ;;  %v9718_v38 = vld [vmem:[%s10477_s12 + $0x684] sm:$0xf0]  ;;  %v384_v9 = vunpack.c.l.bf16 %v357_v10  ;;  %v11302_v13 = vunpack.c.l.bf16 %v244_v63  ;;  %v7811_v58 = vld [vmem:[%s10477_s12 + $0x700] sm:$0xf] }
  0xce   : > { %15835 = vst [vmem:[#allocation145_spill] sm:$0xff] %v11246_v4  ;;  %v11304_v26 = vunpack.c.l.bf16 %v253_v41  ;;  %v11306_v21 = vunpack.c.h.bf16 %v243_v5  ;;  %2411 = vmatpush.bf16.msrb.mxu1 %v11270_v20  ;;  %2425 = vmatpush.bf16.msrb.mxu2 %v11272_v14  ;;  %v9734_v52 = vld [vmem:[%s10477_s12 + $0x704] sm:$0xf0]  ;;  %v11312_v4 = vunpack.c.h.bf16 %v252_v24  ;;  %v7875_v5 = vld [vmem:[%s10477_s12 + $0x780] sm:$0xf]  ;;  %v403_v2 = vunpack.c.h.bf16 %v358_v36 }
  0xcf   : > { %15836 = vst [vmem:[#allocation146_spill] sm:$0xff] %v11248_v59  ;;  %v383_v59 = vunpack.c.l.bf16 %v344_v44  ;;  %2439 = vmatpush.bf16.msrb.mxu3 %v11277_v11  ;;  %v11319_v56 = vunpack.c.h.bf16 %v253_v41  ;;  %v11321_v37 = vor.u32 %v9702_v46, %v7683_v50  ;;  %v7995_v24 = vld [vmem:[%s10477_s12 + $0x870] sm:$0xf]  ;;  %2398 = vmatpush.bf16.msrb.mxu0 %v11279_v31  ;;  %v472_v41 = vmul.f32 %v11294_v19, %v400_v55  ;;  %v9539_v46 = vld [vmem:[%s10477_s12 + $0xf4] sm:$0xf] }
  0xd0   : > { %15837 = vst [vmem:[#allocation147_spill] sm:$0xff] %v11254_v18  ;;  %v402_v18 = vunpack.c.h.bf16 %v357_v10  ;;  %v11323_v10 = vor.u32 %v9718_v38, %v7747_v25  ;;  %v456_v50 = vmul.f32 %v11302_v13, %v384_v9  ;;  %v7037_v25 = vld [vmem:[%s10477_s12 + $0xf8] sm:$0xf0] }
  0xd1   : > { %15840 = vst [vmem:[#allocation148_spill] sm:$0xff] %v15839_v45  ;;  %v9750_v45 = vld [vmem:[%s10477_s12 + $0x784] sm:$0xf0] }
  0xd2   : > { %15841 = vst [vmem:[#allocation149_spill] sm:$0xff] %v11268_v61  ;;  %v401_v61 = vunpack.c.h.bf16 %v344_v44  ;;  %v9780_v44 = vld [vmem:[%s10477_s12 + $0x874] sm:$0xf0]  ;;  %2412 = vmatpush.bf16.msrb.mxu1 %v11281_v48  ;;  %2426 = vmatpush.bf16.msrb.mxu2 %v11286_v30  ;;  %v474_v38 = vmul.f32 %v11304_v26, %v402_v18  ;;  %v11345_v55 = vor.u32 %v9750_v45, %v7875_v5  ;;  %v9794_v5 = vld [vmem:[%s10477_s12 + $0x8e4] sm:$0xf0] }
  0xd3   : > { %15842 = vst [vmem:[#allocation150_spill] sm:$0xff] %v11270_v20  ;;  %v385_v20 = vunpack.c.l.bf16 %v358_v36  ;;  %v6973_v36 = vld [vmem:[%s10477_s12 + $0x78] sm:$0xf0]  ;;  %2440 = vmatpush.bf16.msrb.mxu3 %v11288_v57  ;;  %v11347_v9 = vor.u32 %v9780_v44, %v7995_v24  ;;  %2399 = vmatpush.bf16.msrb.mxu0 %v11321_v37  ;;  %v9521_v24 = vld [vmem:[%s10477_s12 + $0x64] sm:$0xf] }
  0xd4   : > { %15843 = vst [vmem:[#allocation151_spill] sm:$0xff] %v11272_v14  ;;  %v11317_v14 = vunpack.c.h.bf16 %v244_v63  ;;  %v454_v63 = vmul.f32 %v11290_v8, %v382_v43  ;;  %v473_v43 = vmul.f32 %v11312_v4, %v401_v61  ;;  %v11353_v18 = vor.u32 %v9523_v33, %v6973_v36  ;;  %v8051_v61 = vld [vmem:[%s10477_s12 + $0x8e0] sm:$0xf]  ;;  %v9537_v33 = vld [vmem:[%s10477_s12 + $0xe4] sm:$0xf] }
  0xd5   : > { %15844 = vst [vmem:[#allocation152_spill] sm:$0xff] %v11277_v11  ;;  %v11329_v11 = vor.u32 %v9734_v52, %v7811_v58  ;;  %v455_v58 = vmul.f32 %v11306_v21, %v383_v59  ;;  %v7987_v59 = vld [vmem:[%s10477_s12 + $0x860] sm:$0xf] }
  0xd6   : > { %15845 = vst [vmem:[#allocation153_spill] sm:$0xff] %v11279_v31  ;;  %v457_v52 = vmul.f32 %v11317_v14, %v385_v20  ;;  %v9778_v31 = vld [vmem:[%s10477_s12 + $0x864] sm:$0xf0]  ;;  %v11361_v45 = vpack.c.bf16 %v472_v41, %v454_v63  ;;  %v6965_v20 = vld [vmem:[%s10477_s12 + $0x68] sm:$0xf0]  ;;  %2413 = vmatpush.bf16.msrb.mxu1 %v11323_v10  ;;  %v11382_v63 = vor.u32 %v9794_v5, %v8051_v61 }
  0xd7   : > { %15846 = vst [vmem:[#allocation154_spill] sm:$0xff] %v11281_v48  ;;  %v11351_v48 = vor.u32 %v9796_v16, %v8059_v15  ;;  %2427 = vmatpush.bf16.msrb.mxu2 %v11329_v11  ;;  %v11368_v15 = vpack.c.bf16 %v474_v38, %v456_v50  ;;  %v7029_v16 = vld [vmem:[%s10477_s12 + $0xe8] sm:$0xf0]  ;;  %2441 = vmatpush.bf16.msrb.mxu3 %v11345_v55  ;;  %v7979_v50 = vld [vmem:[%s10477_s12 + $0x850] sm:$0xf] }
  0xd8   : > { %15847 = vst [vmem:[#allocation155_spill] sm:$0xff] %v11286_v30  ;;  %v475_v30 = vmul.f32 %v11319_v56, %v403_v2  ;;  %v11370_v2 = vpack.c.bf16 %v473_v43, %v455_v58  ;;  %2448 = vmatpush.bf16.msra.mxu0 %v11347_v9  ;;  %v11378_v36 = vor.u32 %v9778_v31, %v7987_v59  ;;  %v9519_v38 = vld [vmem:[%s10477_s12 + $0x54] sm:$0xf]  ;;  %v6957_v58 = vld [vmem:[%s10477_s12 + $0x58] sm:$0xf0] }
  0xd9   : > { %15848 = vst [vmem:[#allocation156_spill] sm:$0xff] %v11288_v57  ;;  %v11359_v57 = vor.u32 %v9539_v46, %v7037_v25  ;;  %v11384_v41 = vor.u32 %v9521_v24, %v6965_v20  ;;  %v9776_v46 = vld [vmem:[%s10477_s12 + $0x854] sm:$0xf0]  ;;  %v8043_v25 = vld [vmem:[%s10477_s12 + $0x8d0] sm:$0xf]  ;;  %2400 = vmatmul.bf16.vlgmr.msrb.gmra.mxu0 %v11361_v45  ;;  %v11391_v31 = vor.u32 %v9537_v33, %v7029_v16 }
  0xda   : > { %15849 = vst [vmem:[#allocation157_spill] sm:$0xff] %v11290_v8  ;;  %v11376_v44 = vpack.c.bf16 %v475_v30, %v457_v52  ;;  %2462 = vmatpush.bf16.msra.mxu1 %v11351_v48  ;;  %v9792_v30 = vld [vmem:[%s10477_s12 + $0x8d4] sm:$0xf0]  ;;  %2428 = vmatmul.bf16.vlgmr.msrb.gmra.mxu2 %v11368_v15  ;;  %v9535_v43 = vld [vmem:[%s10477_s12 + $0xd4] sm:$0xf]  ;;  %v11402_v59 = vor.u32 %v9776_v46, %v7979_v50 }
  0xdb   : > { %15850 = vst [vmem:[#allocation158_spill] sm:$0xff] %v11294_v19  ;;  %2476 = vmatpush.bf16.msra.mxu2 %v11353_v18  ;;  %2490 = vmatpush.bf16.msra.mxu3 %v11359_v57  ;;  %v7021_v52 = vld [vmem:[%s10477_s12 + $0xd8] sm:$0xf0]  ;;  %v11406_v61 = vor.u32 %v9792_v30, %v8043_v25  ;;  %v11408_v5 = vor.u32 %v9519_v38, %v6957_v58  ;;  %v7971_v24 = vld [vmem:[%s10477_s12 + $0x840] sm:$0xf] }
  0xdc   : > { %15851 = vst [vmem:[#allocation159_spill] sm:$0xff] %v11306_v21  ;;  %2414 = vmatmul.bf16.vlgmr.msrb.gmra.mxu1 %v11370_v2  ;;  %2442 = vmatmul.bf16.vlgmr.msrb.gmra.mxu3 %v11376_v44  ;;  %v9774_v20 = vld [vmem:[%s10477_s12 + $0x844] sm:$0xf0]  ;;  %v8035_v33 = vld [vmem:[%s10477_s12 + $0x8c0] sm:$0xf]  ;;  %v11414_v16 = vor.u32 %v9535_v43, %v7021_v52 }
  0xdd   : > { %15852 = vst [vmem:[#allocation160_spill] sm:$0xff] %v11312_v4  ;;  %2449 = vmatpush.bf16.msra.mxu0 %v11378_v36  ;;  %v9790_v50 = vld [vmem:[%s10477_s12 + $0x8c4] sm:$0xf0]  ;;  %v9517_v46 = vld [vmem:[%s10477_s12 + $0x44] sm:$0xf]  ;;  %v11422_v38 = vor.u32 %v9774_v20, %v7971_v24 }
  0xde   : > { %15853 = vst [vmem:[#allocation161_spill] sm:$0xff] %v11317_v14  ;;  %2463 = vmatpush.bf16.msra.mxu1 %v11382_v63  ;;  %v9533_v25 = vld [vmem:[%s10477_s12 + $0xc4] sm:$0xf]  ;;  %v7013_v30 = vld [vmem:[%s10477_s12 + $0xc8] sm:$0xf0]  ;;  %v11426_v58 = vor.u32 %v9790_v50, %v8035_v33 }
  0xdf   : > { %15854 = vst [vmem:[#allocation162_spill] sm:$0xff] %v11319_v56  ;;  %2477 = vmatpush.bf16.msra.mxu2 %v11384_v41  ;;  %2491 = vmatpush.bf16.msra.mxu3 %v11391_v31  ;;  %v7963_v52 = vld [vmem:[%s10477_s12 + $0x830] sm:$0xf]  ;;  %v9788_v24 = vld [vmem:[%s10477_s12 + $0x8b4] sm:$0xf0] }
  0xe0   : > { %15855 = vst [vmem:[#allocation163_spill] sm:$0xff] %v11321_v37  ;;  %v9515_v20 = vld [vmem:[%s10477_s12 + $0x34] sm:$0xf]  ;;  %v7955_v33 = vld [vmem:[%s10477_s12 + $0x820] sm:$0xf] }
  0xe1   : > { %15856 = vst [vmem:[#allocation164_spill] sm:$0xff] %v11323_v10  ;;  %2450 = vmatpush.bf16.msra.mxu0 %v11402_v59  ;;  %v9770_v50 = vld [vmem:[%s10477_s12 + $0x824] sm:$0xf0]  ;;  %v7101_v10 = vld [vmem:[%s10477_s12 + $0x178] sm:$0xf0] }
  0xe2   : > { %15857 = vst [vmem:[#allocation165_spill] sm:$0xff] %v11329_v11  ;;  %2464 = vmatpush.bf16.msra.mxu1 %v11406_v61  ;;  %v9511_v11 = vld [vmem:[%s10477_s12 + $0x14] sm:$0xf] }
  0xe3   : > { %15858 = vst [vmem:[#allocation166_spill] sm:$0xff] %v11345_v55  ;;  %2478 = vmatpush.bf16.msra.mxu2 %v11408_v5  ;;  %2492 = vmatpush.bf16.msra.mxu3 %v11414_v16  ;;  %v6997_v55 = vld [vmem:[%s10477_s12 + $0xa8] sm:$0xf0]  ;;  %v9571_v37 = vld [vmem:[%s10477_s12 + $0x1f4] sm:$0xf] }
  0xe4   : > { %15859 = vst [vmem:[#allocation167_spill] sm:$0xff] %v11347_v9  ;;  %v9555_v9 = vld [vmem:[%s10477_s12 + $0x174] sm:$0xf] }
  0xe5   : > { %15860 = vst [vmem:[#allocation168_spill] sm:$0xff] %v11351_v48  ;;  %2451 = vmatpush.bf16.msra.mxu0 %v11422_v38  ;;  %v9525_v48 = vld [vmem:[%s10477_s12 + $0x84] sm:$0xf]  ;;  %v9587_v56 = vld [vmem:[%s10477_s12 + $0x274] sm:$0xf] }
  0xe6   : > { %15861 = vst [vmem:[#allocation169_spill] sm:$0xff] %v11353_v18  ;;  %v7005_v18 = vld [vmem:[%s10477_s12 + $0xb8] sm:$0xf0]  ;;  %2465 = vmatpush.bf16.msra.mxu1 %v11426_v58 }
  0xe7   : > { %15862 = vst [vmem:[#allocation170_spill] sm:$0xff] %v11359_v57  ;;  %v6949_v57 = vld [vmem:[%s10477_s12 + $0x48] sm:$0xf0] }
  0xe8   : > { %15863 = vst [vmem:[#allocation171_spill] sm:$0xff] %v11378_v36  ;;  %v11428_v43 = vor.u32 %v9517_v46, %v6949_v57  ;;  %v8019_v46 = vld [vmem:[%s10477_s12 + $0x8a0] sm:$0xf]  ;;  %v9529_v36 = vld [vmem:[%s10477_s12 + $0xa4] sm:$0xf] }
  0xe9   : > { %15864 = vst [vmem:[#allocation172_spill] sm:$0xff] %v11382_v63  ;;  %v9513_v63 = vld [vmem:[%s10477_s12 + $0x24] sm:$0xf] }
  0xea   : > { %15865 = vst [vmem:[#allocation173_spill] sm:$0xff] %v11384_v41  ;;  %v8027_v41 = vld [vmem:[%s10477_s12 + $0x8b0] sm:$0xf]  ;;  %2479 = vmatpush.bf16.msra.mxu2 %v11428_v43 }
  0xeb   : > { %15866 = vst [vmem:[#allocation174_spill] sm:$0xff] %v11391_v31  ;;  %v9772_v31 = vld [vmem:[%s10477_s12 + $0x834] sm:$0xf0] }
  0xec   : > { %15867 = vst [vmem:[#allocation175_spill] sm:$0xff] %v11402_v59  ;;  %v11434_v59 = vor.u32 %v9533_v25, %v7013_v30  ;;  %v11443_v57 = vor.u32 %v9772_v31, %v7963_v52  ;;  %v9786_v25 = vld [vmem:[%s10477_s12 + $0x8a4] sm:$0xf0]  ;;  %v11450_v30 = vor.u32 %v9788_v24, %v8027_v41  ;;  %v6933_v31 = vld [vmem:[%s10477_s12 + $0x28] sm:$0xf0]  ;;  %v359_v52 = vrot.slane %v10722_v49, 2 }
  0xed   : > { %15868 = vst [vmem:[#allocation176_spill] sm:$0xff] %v11406_v61  ;;  %v6941_v61 = vld [vmem:[%s10477_s12 + $0x38] sm:$0xf0]  ;;  %v7947_v41 = vld [vmem:[%s10477_s12 + $0x810] sm:$0xf] }
  0xee   : > { %15869 = vst [vmem:[#allocation177_spill] sm:$0xff] %v11408_v5  ;;  %v9531_v5 = vld [vmem:[%s10477_s12 + $0xb4] sm:$0xf]  ;;  %2493 = vmatpush.bf16.msra.mxu3 %v11434_v59  ;;  %v9768_v24 = vld [vmem:[%s10477_s12 + $0x814] sm:$0xf0]  ;;  %2452 = vmatpush.bf16.msra.mxu0 %v11443_v57 }
  0xef   : > { %15870 = vst [vmem:[#allocation178_spill] sm:$0xff] %v11414_v16  ;;  %v11452_v16 = vor.u32 %v9515_v20, %v6941_v61  ;;  %v11467_v61 = vor.u32 %v9770_v50, %v7955_v33  ;;  %v9784_v20 = vld [vmem:[%s10477_s12 + $0x894] sm:$0xf0]  ;;  %v6925_v49 = vld [vmem:[%s10477_s12 + $0x18] sm:$0xf0]  ;;  %2466 = vmatpush.bf16.msra.mxu1 %v11450_v30  ;;  %v363_v33 = vsel %vm361_vm12, %v359_v52, 0  ;;  %v11480_v50 = vor.u32 %v9529_v36, %v6997_v55 }
  0xf0   : > { %15871 = vst [vmem:[#allocation179_spill] sm:$0xff] %v11422_v38  ;;  %v11458_v38 = vor.u32 %v9531_v5, %v7005_v18  ;;  %v11474_v18 = vor.u32 %v9786_v25, %v8019_v46  ;;  %v245_v5 = vld [vmem:[#allocation5 + $0x40] sm:$0xff]  ;;  %v11487_v46 = vor.u32 %v9511_v11, %v6925_v49  ;;  %v6989_v25 = vld [vmem:[%s10477_s12 + $0x98] sm:$0xf0]  ;;  %v9766_v52 = vld [vmem:[%s10477_s12 + $0x804] sm:$0xf0]  ;;  %v386_v55 = vunpack.c.l.bf16 %v363_v33 }
  0xf1   : > { %15872 = vst [vmem:[#allocation180_spill] sm:$0xff] %v11426_v58  ;;  %v8011_v58 = vld [vmem:[%s10477_s12 + $0x890] sm:$0xf]  ;;  %2480 = vmatpush.bf16.msra.mxu2 %v11452_v16  ;;  %v404_v36 = vunpack.c.h.bf16 %v363_v33  ;;  %v8003_v11 = vld [vmem:[%s10477_s12 + $0x880] sm:$0xf]  ;;  %v11503_v33 = vunpack.c.h.bf16 %v245_v5 }
  0xf2   : > { %15873 = vst [vmem:[#allocation181_spill] sm:$0xff] %v11428_v43  ;;  %v360_v43 = vrot.slane %v10737_v39, 2  ;;  %v11476_v39 = vor.u32 %v9513_v63, %v6933_v31  ;;  %2494 = vmatpush.bf16.msra.mxu3 %v11458_v38  ;;  %v9527_v63 = vld [vmem:[%s10477_s12 + $0x94] sm:$0xf]  ;;  %2453 = vmatpush.bf16.msra.mxu0 %v11467_v61  ;;  %v7939_v31 = vld [vmem:[%s10477_s12 + $0x800] sm:$0xf] }
  0xf3   : > { %15874 = vst [vmem:[#allocation182_spill] sm:$0xff] %v11434_v59  ;;  %v254_v59 = vld [vmem:[#allocation5 + $0x88] sm:$0xff]  ;;  %2467 = vmatpush.bf16.msra.mxu1 %v11474_v18 }
  0xf4   : > { %15875 = vst [vmem:[#allocation183_spill] sm:$0xff] %v11443_v57  ;;  %v366_v57 = vsel %vm361_vm12, %v360_v43, 0  ;;  %v11494_v43 = vunpack.c.l.bf16 %v245_v5 }
  0xf5   : > { %15876 = vst [vmem:[#allocation184_spill] sm:$0xff] %v11450_v30  ;;  %v11483_v30 = vor.u32 %v9768_v24, %v7947_v41  ;;  %v11496_v41 = vunpack.c.l.bf16 %v254_v59  ;;  %2481 = vmatpush.bf16.msra.mxu2 %v11476_v39  ;;  %v9509_v24 = vld [vmem:[%s10477_s12 + $0x4] sm:$0xf]  ;;  %v405_v49 = vunpack.c.h.bf16 %v366_v57 }
  0xf6   : > { %15877 = vst [vmem:[#allocation185_spill] sm:$0xff] %v11452_v16  ;;  %v11485_v16 = vor.u32 %v9784_v20, %v8011_v58  ;;  %v9782_v58 = vld [vmem:[%s10477_s12 + $0x884] sm:$0xf0]  ;;  %v387_v20 = vunpack.c.l.bf16 %v366_v57  ;;  %2495 = vmatpush.bf16.msra.mxu3 %v11480_v50  ;;  %v11517_v57 = vor.u32 %v9766_v52, %v7939_v31  ;;  %v9603_v31 = vld [vmem:[%s10477_s12 + $0x2f4] sm:$0xf] }
  0xf7   : > { %15878 = vst [vmem:[#allocation186_spill] sm:$0xff] %v11458_v38  ;;  %v11505_v38 = vunpack.c.h.bf16 %v254_v59  ;;  %2454 = vmatpush.bf16.msra.mxu0 %v11483_v30  ;;  %v11519_v5 = vor.u32 %v9782_v58, %v8003_v11  ;;  %v7165_v59 = vld [vmem:[%s10477_s12 + $0x1f8] sm:$0xf0] }
  0xf8   : > { %15879 = vst [vmem:[#allocation187_spill] sm:$0xff] %v11467_v61  ;;  %v11508_v61 = vor.u32 %v9527_v63, %v6989_v25  ;;  %v458_v63 = vmul.f32 %v11494_v43, %v386_v55  ;;  %v476_v25 = vmul.f32 %v11496_v41, %v404_v36  ;;  %2468 = vmatpush.bf16.msra.mxu1 %v11485_v16  ;;  %v7293_v52 = vld [vmem:[%s10477_s12 + $0x2f8] sm:$0xf0] }
  0xf9   : > { %15880 = vst [vmem:[#allocation188_spill] sm:$0xff] %v11474_v18  ;;  %v6917_v18 = vld [vmem:[%s10477_s12 + $0x8] sm:$0xf0]  ;;  %2482 = vmatpush.bf16.msra.mxu2 %v11487_v46  ;;  %v459_v11 = vmul.f32 %v11503_v33, %v387_v20  ;;  %v477_v58 = vmul.f32 %v11505_v38, %v405_v49  ;;  %v11537_v36 = vor.u32 %v9555_v9, %v7101_v10 }
  0xfa   : > { %15881 = vst [vmem:[#allocation189_spill] sm:$0xff] %v11476_v39  ;;  %v6981_v39 = vld [vmem:[%s10477_s12 + $0x88] sm:$0xf0]  ;;  %v11528_v14 = vor.u32 %v9509_v24, %v6917_v18  ;;  %2496 = vmatpush.bf16.msra.mxu3 %v11508_v61  ;;  %v9553_v24 = vld [vmem:[%s10477_s12 + $0x164] sm:$0xf]  ;;  %v11547_v20 = vor.u32 %v9603_v31, %v7293_v52  ;;  %v11549_v49 = vpack.c.bf16 %v476_v25, %v458_v63 }
  0xfb   : > { %15882 = vst [vmem:[#allocation190_spill] sm:$0xff] %v11480_v50  ;;  %v7229_v50 = vld [vmem:[%s10477_s12 + $0x278] sm:$0xf0]  ;;  %v11535_v55 = vor.u32 %v9525_v48, %v6981_v39  ;;  %2455 = vmatpush.bf16.msra.mxu0 %v11517_v57  ;;  %v7157_v48 = vld [vmem:[%s10477_s12 + $0x1e8] sm:$0xf0] }
  0xfc   : > { %15883 = vst [vmem:[#allocation191_spill] sm:$0xff] %v11483_v30  ;;  %v11541_v18 = vor.u32 %v9587_v56, %v7229_v50  ;;  %v9569_v30 = vld [vmem:[%s10477_s12 + $0x1e4] sm:$0xf]  ;;  %v7221_v10 = vld [vmem:[%s10477_s12 + $0x268] sm:$0xf0]  ;;  %2469 = vmatpush.bf16.msra.mxu1 %v11519_v5 }
  0xfd   : > { %15884 = vst [vmem:[#allocation192_spill] sm:$0xff] %v11485_v16  ;;  %v7093_v16 = vld [vmem:[%s10477_s12 + $0x168] sm:$0xf0]  ;;  %v9585_v39 = vld [vmem:[%s10477_s12 + $0x264] sm:$0xf]  ;;  %2483 = vmatpush.bf16.msra.mxu2 %v11528_v14 }
  0xfe   : > { %15885 = vst [vmem:[#allocation193_spill] sm:$0xff] %v11487_v46  ;;  %v11539_v46 = vor.u32 %v9571_v37, %v7165_v59  ;;  %v11556_v37 = vpack.c.bf16 %v477_v58, %v459_v11  ;;  %v9601_v56 = vld [vmem:[%s10477_s12 + $0x2e4] sm:$0xf]  ;;  %v7285_v9 = vld [vmem:[%s10477_s12 + $0x2e8] sm:$0xf0]  ;;  %2497 = vmatpush.bf16.msra.mxu3 %v11535_v55  ;;  %v11562_v50 = vor.u32 %v9553_v24, %v7093_v16 }
  0xff   : > { %15886 = vst [vmem:[#allocation194_spill] sm:$0xff] %v11505_v38  ;;  %2504 = vmatpush.bf16.msrb.mxu0 %v11537_v36  ;;  %v11566_v59 = vor.u32 %v9569_v30, %v7157_v48  ;;  %v11568_v63 = vor.u32 %v9585_v39, %v7221_v10  ;;  %v9551_v25 = vld [vmem:[%s10477_s12 + $0x154] sm:$0xf]  ;;  %v7085_v31 = vld [vmem:[%s10477_s12 + $0x158] sm:$0xf0]  ;;  %v11575_v11 = vor.u32 %v9601_v56, %v7285_v9 }
 0x100   : > { %15887 = vst [vmem:[#allocation195_spill] sm:$0xff] %v11508_v61  ;;  %2518 = vmatpush.bf16.msrb.mxu1 %v11539_v46  ;;  %v9567_v52 = vld [vmem:[%s10477_s12 + $0x1d4] sm:$0xf]  ;;  %2456 = vmatmul.bf16.vlgmr.msra.gmra.mxu0 %v11549_v49  ;;  %v7149_v16 = vld [vmem:[%s10477_s12 + $0x1d8] sm:$0xf0]  ;;  %v11585_v39 = vor.u32 %v9551_v25, %v7085_v31 }
 0x101   : > { %15888 = vst [vmem:[#allocation196_spill] sm:$0xff] %v11517_v57  ;;  %2532 = vmatpush.bf16.msrb.mxu2 %v11541_v18  ;;  %v9583_v58 = vld [vmem:[%s10477_s12 + $0x254] sm:$0xf]  ;;  %v7213_v24 = vld [vmem:[%s10477_s12 + $0x258] sm:$0xf0]  ;;  %2470 = vmatmul.bf16.vlgmr.msra.gmra.mxu1 %v11556_v37  ;;  %v11590_v10 = vor.u32 %v9567_v52, %v7149_v16 }
 0x102   : > { %15889 = vst [vmem:[#allocation197_spill] sm:$0xff] %v11519_v5  ;;  %2546 = vmatpush.bf16.msrb.mxu3 %v11547_v20  ;;  %v9599_v30 = vld [vmem:[%s10477_s12 + $0x2d4] sm:$0xf]  ;;  %v7277_v48 = vld [vmem:[%s10477_s12 + $0x2d8] sm:$0xf0]  ;;  %2484 = vmatmul.bf16.vlgmr.msra.gmra.mxu2 %v10806_v62  ;;  %v11592_v56 = vor.u32 %v9583_v58, %v7213_v24 }
 0x103   : > { %15890 = vst [vmem:[#allocation198_spill] sm:$0xff] %v11528_v14  ;;  %2505 = vmatpush.bf16.msrb.mxu0 %v11562_v50  ;;  %2498 = vmatmul.bf16.vlgmr.msra.gmra.mxu3 %v10813_v27  ;;  %v9549_v9 = vld [vmem:[%s10477_s12 + $0x144] sm:$0xf]  ;;  %v11598_v25 = vor.u32 %v9599_v30, %v7277_v48  ;;  %v7141_v31 = vld [vmem:[%s10477_s12 + $0x1c8] sm:$0xf0] }
 0x104   : > { %15891 = vst [vmem:[#allocation199_spill] sm:$0xff] %v11535_v55  ;;  %2519 = vmatpush.bf16.msrb.mxu1 %v11566_v59  ;;  %v9565_v62 = vld [vmem:[%s10477_s12 + $0x1c4] sm:$0xf]  ;;  %v7269_v16 = vld [vmem:[%s10477_s12 + $0x2c8] sm:$0xf0] }
 0x105   : > { %15892 = vst [vmem:[#allocation200_spill] sm:$0xff] %v11537_v36  ;;  %2533 = vmatpush.bf16.msrb.mxu2 %v11568_v63  ;;  %v9581_v27 = vld [vmem:[%s10477_s12 + $0x244] sm:$0xf]  ;;  %v11610_v24 = vor.u32 %v9565_v62, %v7141_v31  ;;  %v9547_v48 = vld [vmem:[%s10477_s12 + $0x134] sm:$0xf] }
 0x106   : > { %15893 = vst [vmem:[#allocation201_spill] sm:$0xff] %v11539_v46  ;;  %2547 = vmatpush.bf16.msrb.mxu3 %v11575_v11  ;;  %v9597_v52 = vld [vmem:[%s10477_s12 + $0x2c4] sm:$0xf]  ;;  %v9595_v62 = vld [vmem:[%s10477_s12 + $0x2b4] sm:$0xf] }
 0x107   : > { %15894 = vst [vmem:[#allocation202_spill] sm:$0xff] %v11541_v18  ;;  %v7205_v18 = vld [vmem:[%s10477_s12 + $0x248] sm:$0xf0]  ;;  %2506 = vmatpush.bf16.msrb.mxu0 %v11585_v39  ;;  %v9589_v55 = vld [vmem:[%s10477_s12 + $0x284] sm:$0xf] }
 0x108   : > { %15895 = vst [vmem:[#allocation203_spill] sm:$0xff] %v11547_v20  ;;  %v7077_v20 = vld [vmem:[%s10477_s12 + $0x148] sm:$0xf0]  ;;  %2520 = vmatpush.bf16.msrb.mxu1 %v11590_v10  ;;  %v11612_v30 = vor.u32 %v9581_v27, %v7205_v18  ;;  %v7261_v18 = vld [vmem:[%s10477_s12 + $0x2b8] sm:$0xf0] }
 0x109   : > { %15896 = vst [vmem:[#allocation204_spill] sm:$0xff] %v11562_v50  ;;  %v11606_v58 = vor.u32 %v9549_v9, %v7077_v20  ;;  %2534 = vmatpush.bf16.msrb.mxu2 %v11592_v56  ;;  %v7133_v20 = vld [vmem:[%s10477_s12 + $0x1b8] sm:$0xf0]  ;;  %v9579_v9 = vld [vmem:[%s10477_s12 + $0x234] sm:$0xf] }
 0x10a   : > { %15897 = vst [vmem:[#allocation205_spill] sm:$0xff] %v11566_v59  ;;  %2548 = vmatpush.bf16.msrb.mxu3 %v11598_v25  ;;  %v11618_v59 = vor.u32 %v9597_v52, %v7269_v16  ;;  %v9545_v16 = vld [vmem:[%s10477_s12 + $0x124] sm:$0xf]  ;;  %v7173_v50 = vld [vmem:[%s10477_s12 + $0x208] sm:$0xf0] }
 0x10b   : > { %15898 = vst [vmem:[#allocation206_spill] sm:$0xff] %v11568_v63  ;;  %v9563_v63 = vld [vmem:[%s10477_s12 + $0x1b4] sm:$0xf]  ;;  %2507 = vmatpush.bf16.msrb.mxu0 %v11606_v58  ;;  %v7421_v46 = vld [vmem:[%s10477_s12 + $0x3f8] sm:$0xf0] }
 0x10c   : > { %15899 = vst [vmem:[#allocation207_spill] sm:$0xff] %v11575_v11  ;;  %v7069_v11 = vld [vmem:[%s10477_s12 + $0x138] sm:$0xf0]  ;;  %2521 = vmatpush.bf16.msrb.mxu1 %v11610_v24  ;;  %v11630_v27 = vor.u32 %v9563_v63, %v7133_v20  ;;  %v9593_v63 = vld [vmem:[%s10477_s12 + $0x2a4] sm:$0xf] }
 0x10d   : > { %15900 = vst [vmem:[#allocation208_spill] sm:$0xff] %v11585_v39  ;;  %v11626_v31 = vor.u32 %v9547_v48, %v7069_v11  ;;  %2535 = vmatpush.bf16.msrb.mxu2 %v11612_v30  ;;  %v11638_v39 = vor.u32 %v9595_v62, %v7261_v18  ;;  %v7125_v11 = vld [vmem:[%s10477_s12 + $0x1a8] sm:$0xf0]  ;;  %v9577_v48 = vld [vmem:[%s10477_s12 + $0x224] sm:$0xf] }
 0x10e   : > { %15901 = vst [vmem:[#allocation209_spill] sm:$0xff] %v11590_v10  ;;  %v7197_v10 = vld [vmem:[%s10477_s12 + $0x238] sm:$0xf0]  ;;  %2549 = vmatpush.bf16.msrb.mxu3 %v11618_v59  ;;  %v9543_v18 = vld [vmem:[%s10477_s12 + $0x114] sm:$0xf] }
 0x10f   : > { %15902 = vst [vmem:[#allocation210_spill] sm:$0xff] %v11592_v56  ;;  %v11632_v52 = vor.u32 %v9579_v9, %v7197_v10  ;;  %v9561_v56 = vld [vmem:[%s10477_s12 + $0x1a4] sm:$0xf]  ;;  %v7253_v10 = vld [vmem:[%s10477_s12 + $0x2a8] sm:$0xf0]  ;;  %2508 = vmatpush.bf16.msrb.mxu0 %v11626_v31 }
 0x110   : > { %15903 = vst [vmem:[#allocation211_spill] sm:$0xff] %v11598_v25  ;;  %v7061_v25 = vld [vmem:[%s10477_s12 + $0x128] sm:$0xf0]  ;;  %2522 = vmatpush.bf16.msrb.mxu1 %v11630_v27  ;;  %v11650_v9 = vor.u32 %v9561_v56, %v7125_v11  ;;  %v7245_v56 = vld [vmem:[%s10477_s12 + $0x298] sm:$0xf0] }
 0x111   : > { %15904 = vst [vmem:[#allocation212_spill] sm:$0xff] %v11606_v58  ;;  %v11646_v20 = vor.u32 %v9545_v16, %v7061_v25  ;;  %2536 = vmatpush.bf16.msrb.mxu2 %v11632_v52  ;;  %v11658_v58 = vor.u32 %v9593_v63, %v7253_v10  ;;  %v7117_v25 = vld [vmem:[%s10477_s12 + $0x198] sm:$0xf0]  ;;  %v9575_v16 = vld [vmem:[%s10477_s12 + $0x214] sm:$0xf] }
 0x112   : > { %15905 = vst [vmem:[#allocation213_spill] sm:$0xff] %v11610_v24  ;;  %v7189_v24 = vld [vmem:[%s10477_s12 + $0x228] sm:$0xf0]  ;;  %2550 = vmatpush.bf16.msrb.mxu3 %v11638_v39  ;;  %v9649_v61 = vld [vmem:[%s10477_s12 + $0x464] sm:$0xf] }
 0x113   : > { %15906 = vst [vmem:[#allocation214_spill] sm:$0xff] %v11612_v30  ;;  %v11652_v62 = vor.u32 %v9577_v48, %v7189_v24  ;;  %v9559_v30 = vld [vmem:[%s10477_s12 + $0x194] sm:$0xf]  ;;  %2509 = vmatpush.bf16.msrb.mxu0 %v11646_v20  ;;  %v2233_v24 = vpop.f32.mrf.mxu0  ;;  %v9541_v48 = vld [vmem:[%s10477_s12 + $0x104] sm:$0xf] }
 0x114   : > { %15907 = vst [vmem:[#allocation215_spill] sm:$0xff] %v11618_v59  ;;  %v7053_v59 = vld [vmem:[%s10477_s12 + $0x118] sm:$0xf0]  ;;  %v7045_v63 = vld [vmem:[%s10477_s12 + $0x108] sm:$0xf0]  ;;  %2523 = vmatpush.bf16.msrb.mxu1 %v11650_v9  ;;  %v11672_v10 = vor.u32 %v9559_v30, %v7117_v25 }
 0x115   : > { %15908 = vst [vmem:[#allocation216_spill] sm:$0xff] %v11626_v31  ;;  %v11666_v11 = vor.u32 %v9543_v18, %v7053_v59  ;;  %2537 = vmatpush.bf16.msrb.mxu2 %v11652_v62  ;;  %v9557_v31 = vld [vmem:[%s10477_s12 + $0x184] sm:$0xf]  ;;  %v9619_v30 = vld [vmem:[%s10477_s12 + $0x374] sm:$0xf]  ;;  %v11689_v14 = vor.u32 %v9541_v48, %v7045_v63 }
 0x116   : > { %15909 = vst [vmem:[#allocation217_spill] sm:$0xff] %v11630_v27  ;;  %v7181_v27 = vld [vmem:[%s10477_s12 + $0x218] sm:$0xf0]  ;;  %v9573_v59 = vld [vmem:[%s10477_s12 + $0x204] sm:$0xf]  ;;  %2551 = vmatpush.bf16.msrb.mxu3 %v11658_v58 }
 0x117   : > { %15910 = vst [vmem:[#allocation218_spill] sm:$0xff] %v11632_v52  ;;  %v9591_v52 = vld [vmem:[%s10477_s12 + $0x294] sm:$0xf]  ;;  %v7357_v25 = vld [vmem:[%s10477_s12 + $0x378] sm:$0xf0]  ;;  %2510 = vmatpush.bf16.msrb.mxu0 %v11666_v11  ;;  %v11698_v36 = vor.u32 %v9573_v59, %v7173_v50 }
 0x118   : > { %15911 = vst [vmem:[#allocation219_spill] sm:$0xff] %v11638_v39  ;;  %v11674_v39 = vor.u32 %v9575_v16, %v7181_v27  ;;  %v11680_v18 = vor.u32 %v9591_v52, %v7245_v56  ;;  %v9635_v27 = vld [vmem:[%s10477_s12 + $0x3f4] sm:$0xf]  ;;  %v7485_v56 = vld [vmem:[%s10477_s12 + $0x478] sm:$0xf0]  ;;  %2524 = vmatpush.bf16.msrb.mxu1 %v11672_v10  ;;  %v11705_v63 = vor.u32 %v9619_v30, %v7357_v25  ;;  %v2261_v30 = vpop.f32.mrf.mxu2 }
 0x119   : > { %15912 = vst [vmem:[#allocation220_spill] sm:$0xff] %v11646_v20  ;;  %v7109_v20 = vld [vmem:[%s10477_s12 + $0x188] sm:$0xf0]  ;;  %v9651_v52 = vld [vmem:[%s10477_s12 + $0x474] sm:$0xf] }
 0x11a   : > { %15913 = vst [vmem:[#allocation221_spill] sm:$0xff] %v11650_v9  ;;  %v7237_v9 = vld [vmem:[%s10477_s12 + $0x288] sm:$0xf0]  ;;  %2538 = vmatpush.bf16.msrb.mxu2 %v11674_v39  ;;  %2552 = vmatpush.bf16.msrb.mxu3 %v11680_v18  ;;  %v9946_v57 = vld [vmem:[%s10477_s12 + $0xda4] sm:$0xf0] }
 0x11b   : > { %15914 = vst [vmem:[#allocation222_spill] sm:$0xff] %v11652_v62  ;;  %v2247_v62 = vpop.f32.mrf.mxu1  ;;  %v11703_v48 = vor.u32 %v9589_v55, %v7237_v9  ;;  %2511 = vmatpush.bf16.msrb.mxu0 %v11689_v14  ;;  %v11717_v59 = vpop.f32.mrf.mxu0  ;;  %v7477_v55 = vld [vmem:[%s10477_s12 + $0x468] sm:$0xf0] }
 0x11c   : > { %15915 = vst [vmem:[#allocation223_spill] sm:$0xff] %v11658_v58  ;;  %v2248_v16 = vadd.f32 %v2247_v62, %v2233_v24  ;;  %v11696_v58 = vor.u32 %v9557_v31, %v7109_v20  ;;  %v9667_v62 = vld [vmem:[%s10477_s12 + $0x4f4] sm:$0xf]  ;;  %v7549_v24 = vld [vmem:[%s10477_s12 + $0x4f8] sm:$0xf0] }
 0x11d   : > { %15916 = vst [vmem:[#allocation224_spill] sm:$0xff] %v11666_v11  ;;  %v9617_v31 = vld [vmem:[%s10477_s12 + $0x364] sm:$0xf]  ;;  %v7349_v20 = vld [vmem:[%s10477_s12 + $0x368] sm:$0xf0]  ;;  %v11715_v50 = vor.u32 %v9667_v62, %v7549_v24 }
 0x11e   : > { %15917 = vst [vmem:[#allocation225_spill] sm:$0xff] %v11672_v10  ;;  %v11707_v10 = vor.u32 %v9635_v27, %v7421_v46  ;;  %v9633_v11 = vld [vmem:[%s10477_s12 + $0x3e4] sm:$0xf]  ;;  %2525 = vmatpush.bf16.msrb.mxu1 %v11696_v58  ;;  %2539 = vmatpush.bf16.msrb.mxu2 %v11698_v36  ;;  %v7541_v9 = vld [vmem:[%s10477_s12 + $0x4e8] sm:$0xf0]  ;;  %v11728_v25 = vor.u32 %v9617_v31, %v7349_v20  ;;  %v2275_v31 = vpop.f32.mrf.mxu3 }
 0x11f   : > { %15918 = vst [vmem:[#allocation226_spill] sm:$0xff] %v11674_v39  ;;  %v11709_v39 = vor.u32 %v9651_v52, %v7485_v56  ;;  %v9665_v46 = vld [vmem:[%s10477_s12 + $0x4e4] sm:$0xf]  ;;  %2553 = vmatpush.bf16.msrb.mxu3 %v11703_v48  ;;  %2560 = vmatpush.bf16.msra.mxu0 %v11705_v63  ;;  %v2262_v27 = vadd.f32 %v2261_v30, %v2248_v16  ;;  %v9615_v24 = vld [vmem:[%s10477_s12 + $0x354] sm:$0xf] }
 0x120   : > { %15919 = vst [vmem:[#allocation227_spill] sm:$0xff] %v11680_v18  ;;  %v7413_v18 = vld [vmem:[%s10477_s12 + $0x3e8] sm:$0xf0]  ;;  %v11734_v56 = vor.u32 %v9649_v61, %v7477_v55  ;;  %2512 = vmatmul.bf16.vlgmr.msrb.gmra.mxu0 %v10840_v53  ;;  %v11743_v20 = vor.u32 %v9665_v46, %v7541_v9  ;;  %v7405_v16 = vld [vmem:[%s10477_s12 + $0x3d8] sm:$0xf0] }
 0x121   : > { %15920 = vst [vmem:[#allocation228_spill] sm:$0xff] %v11689_v14  ;;  %v11732_v52 = vor.u32 %v9633_v11, %v7413_v18  ;;  %v9647_v11 = vld [vmem:[%s10477_s12 + $0x454] sm:$0xf]  ;;  %v7469_v61 = vld [vmem:[%s10477_s12 + $0x458] sm:$0xf0]  ;;  %2540 = vmatmul.bf16.vlgmr.msrb.gmra.mxu2 %v10931_v42  ;;  %v2276_v18 = vadd.f32 %v2275_v31, %v2262_v27  ;;  %2526 = vmatmul.bf16.vlgmr.msrb.gmra.mxu1 %v10862_v54 }
 0x122   : > { %15921 = vst [vmem:[#allocation229_spill] sm:$0xff] %v11696_v58  ;;  %2574 = vmatpush.bf16.msra.mxu1 %v11707_v10  ;;  %2588 = vmatpush.bf16.msra.mxu2 %v11709_v39  ;;  %v9663_v55 = vld [vmem:[%s10477_s12 + $0x4d4] sm:$0xf]  ;;  %v7533_v30 = vld [vmem:[%s10477_s12 + $0x4d8] sm:$0xf0]  ;;  %v11760_v46 = vor.u32 %v9647_v11, %v7469_v61 }
 0x123   : > { %15922 = vst [vmem:[#allocation230_spill] sm:$0xff] %v11698_v36  ;;  %v11736_v62 = vpop.f32.mrf.mxu1  ;;  %v9631_v36 = vld [vmem:[%s10477_s12 + $0x3d4] sm:$0xf]  ;;  %2602 = vmatpush.bf16.msra.mxu3 %v11715_v50  ;;  %2561 = vmatpush.bf16.msra.mxu0 %v11728_v25  ;;  %v9613_v54 = vld [vmem:[%s10477_s12 + $0x344] sm:$0xf] }
 0x124   : > { %15923 = vst [vmem:[#allocation231_spill] sm:$0xff] %v11703_v48  ;;  %v7341_v48 = vld [vmem:[%s10477_s12 + $0x358] sm:$0xf0]  ;;  %2554 = vmatmul.bf16.vlgmr.msrb.gmra.mxu3 %v10946_v17  ;;  %v11758_v42 = vor.u32 %v9631_v36, %v7405_v16  ;;  %v7333_v9 = vld [vmem:[%s10477_s12 + $0x348] sm:$0xf0]  ;;  %v11766_v17 = vor.u32 %v9663_v55, %v7533_v30  ;;  %v11774_v36 = vpop.f32.mrf.mxu2 }
 0x125   : > { %15924 = vst [vmem:[#allocation232_spill] sm:$0xff] %v11705_v63  ;;  %v11754_v53 = vor.u32 %v9615_v24, %v7341_v48  ;;  %v9629_v27 = vld [vmem:[%s10477_s12 + $0x3c4] sm:$0xf]  ;;  %v7397_v31 = vld [vmem:[%s10477_s12 + $0x3c8] sm:$0xf0]  ;;  %v11776_v11 = vor.u32 %v9613_v54, %v7333_v9 }
 0x126   : > { %15925 = vst [vmem:[#allocation233_spill] sm:$0xff] %v11707_v10  ;;  %2575 = vmatpush.bf16.msra.mxu1 %v11732_v52  ;;  %2589 = vmatpush.bf16.msra.mxu2 %v11734_v56  ;;  %v9645_v48 = vld [vmem:[%s10477_s12 + $0x444] sm:$0xf]  ;;  %v7461_v24 = vld [vmem:[%s10477_s12 + $0x448] sm:$0xf0]  ;;  %v11780_v61 = vor.u32 %v9629_v27, %v7397_v31 }
 0x127   : > { %15926 = vst [vmem:[#allocation234_spill] sm:$0xff] %v11709_v39  ;;  %2603 = vmatpush.bf16.msra.mxu3 %v11743_v20  ;;  %v9661_v39 = vld [vmem:[%s10477_s12 + $0x4c4] sm:$0xf]  ;;  %2562 = vmatpush.bf16.msra.mxu0 %v11754_v53  ;;  %v11782_v55 = vor.u32 %v9645_v48, %v7461_v24  ;;  %v7389_v9 = vld [vmem:[%s10477_s12 + $0x3b8] sm:$0xf0] }
 0x128   : > { %15927 = vst [vmem:[#allocation235_spill] sm:$0xff] %v11715_v50  ;;  %v2289_v50 = vpop.f32.mrf.mxu0  ;;  %v9643_v27 = vld [vmem:[%s10477_s12 + $0x434] sm:$0xf]  ;;  %v7453_v31 = vld [vmem:[%s10477_s12 + $0x438] sm:$0xf0] }
 0x129   : > { %15928 = vst [vmem:[#allocation236_spill] sm:$0xff] %v11728_v25  ;;  %v2290_v16 = vadd.f32 %v2289_v50, %v2276_v18  ;;  %v11788_v50 = vpop.f32.mrf.mxu3  ;;  %v9659_v48 = vld [vmem:[%s10477_s12 + $0x4b4] sm:$0xf]  ;;  %v7517_v24 = vld [vmem:[%s10477_s12 + $0x4b8] sm:$0xf0] }
 0x12a   : > { %15929 = vst [vmem:[#allocation237_spill] sm:$0xff] %v11732_v52  ;;  %2576 = vmatpush.bf16.msra.mxu1 %v11758_v42  ;;  %2590 = vmatpush.bf16.msra.mxu2 %v11760_v46  ;;  %v9627_v52 = vld [vmem:[%s10477_s12 + $0x3b4] sm:$0xf]  ;;  %v7493_v25 = vld [vmem:[%s10477_s12 + $0x488] sm:$0xf0] }
 0x12b   : > { %15930 = vst [vmem:[#allocation238_spill] sm:$0xff] %v11734_v56  ;;  %v7525_v56 = vld [vmem:[%s10477_s12 + $0x4c8] sm:$0xf0]  ;;  %v2303_v30 = vpop.f32.mrf.mxu1  ;;  %2604 = vmatpush.bf16.msra.mxu3 %v11766_v17  ;;  %2563 = vmatpush.bf16.msra.mxu0 %v11776_v11  ;;  %v7613_v10 = vld [vmem:[%s10477_s12 + $0x578] sm:$0xf0] }
 0x12c   : > { %15931 = vst [vmem:[#allocation239_spill] sm:$0xff] %v11743_v20  ;;  %v9611_v20 = vld [vmem:[%s10477_s12 + $0x334] sm:$0xf]  ;;  %v11790_v18 = vor.u32 %v9661_v39, %v7525_v56  ;;  %v2304_v54 = vadd.f32 %v2303_v30, %v2290_v16  ;;  %v11802_v39 = vor.u32 %v9627_v52, %v7389_v9  ;;  %v11804_v56 = vor.u32 %v9643_v27, %v7453_v31  ;;  %v9609_v16 = vld [vmem:[%s10477_s12 + $0x324] sm:$0xf]  ;;  %v2317_v52 = vpop.f32.mrf.mxu2 }
 0x12d   : > { %15932 = vst [vmem:[#allocation240_spill] sm:$0xff] %v11754_v53  ;;  %v7325_v53 = vld [vmem:[%s10477_s12 + $0x338] sm:$0xf0]  ;;  %v7317_v30 = vld [vmem:[%s10477_s12 + $0x328] sm:$0xf0] }
 0x12e   : > { %15933 = vst [vmem:[#allocation241_spill] sm:$0xff] %v11758_v42  ;;  %2577 = vmatpush.bf16.msra.mxu1 %v11780_v61  ;;  %2591 = vmatpush.bf16.msra.mxu2 %v11782_v55  ;;  %v11810_v42 = vor.u32 %v9659_v48, %v7517_v24  ;;  %v11818_v9 = vor.u32 %v9609_v16, %v7317_v30  ;;  %v9607_v24 = vld [vmem:[%s10477_s12 + $0x314] sm:$0xf]  ;;  %v7805_v63 = vld [vmem:[%s10477_s12 + $0x6f8] sm:$0xf0] }
 0x12f   : > { %15934 = vst [vmem:[#allocation242_spill] sm:$0xff] %v11760_v46  ;;  %v9625_v46 = vld [vmem:[%s10477_s12 + $0x3a4] sm:$0xf]  ;;  %2605 = vmatpush.bf16.msra.mxu3 %v11790_v18  ;;  %v2318_v27 = vadd.f32 %v2317_v52, %v2304_v54  ;;  %v7437_v54 = vld [vmem:[%s10477_s12 + $0x418] sm:$0xf0] }
 0x130   : > { %15935 = vst [vmem:[#allocation243_spill] sm:$0xff] %v11766_v17  ;;  %v11798_v17 = vor.u32 %v9611_v20, %v7325_v53  ;;  %v7381_v20 = vld [vmem:[%s10477_s12 + $0x3a8] sm:$0xf0]  ;;  %v9641_v53 = vld [vmem:[%s10477_s12 + $0x424] sm:$0xf] }
 0x131   : > { %15936 = vst [vmem:[#allocation244_spill] sm:$0xff] %v11776_v11  ;;  %v7445_v11 = vld [vmem:[%s10477_s12 + $0x428] sm:$0xf0]  ;;  %v11822_v31 = vor.u32 %v9625_v46, %v7381_v20  ;;  %v2331_v16 = vpop.f32.mrf.mxu3  ;;  %v7501_v20 = vld [vmem:[%s10477_s12 + $0x498] sm:$0xf0] }
 0x132   : > { %15937 = vst [vmem:[#allocation245_spill] sm:$0xff] %v11780_v61  ;;  %v9657_v61 = vld [vmem:[%s10477_s12 + $0x4a4] sm:$0xf]  ;;  %2564 = vmatpush.bf16.msra.mxu0 %v11798_v17  ;;  %2578 = vmatpush.bf16.msra.mxu1 %v11802_v39  ;;  %v11824_v48 = vor.u32 %v9641_v53, %v7445_v11  ;;  %v11835_v46 = vadd.f32 %v2331_v16, %v2318_v27  ;;  %v9655_v11 = vld [vmem:[%s10477_s12 + $0x494] sm:$0xf] }
 0x133   : > { %15938 = vst [vmem:[#allocation246_spill] sm:$0xff] %v11782_v55  ;;  %v7509_v55 = vld [vmem:[%s10477_s12 + $0x4a8] sm:$0xf0]  ;;  %2592 = vmatpush.bf16.msra.mxu2 %v11804_v56  ;;  %2606 = vmatpush.bf16.msra.mxu3 %v11810_v42  ;;  %v9621_v16 = vld [vmem:[%s10477_s12 + $0x384] sm:$0xf] }
 0x134   : > { %15939 = vst [vmem:[#allocation247_spill] sm:$0xff] %v11790_v18  ;;  %v7309_v18 = vld [vmem:[%s10477_s12 + $0x318] sm:$0xf0]  ;;  %v11830_v30 = vor.u32 %v9657_v61, %v7509_v55  ;;  %v9605_v61 = vld [vmem:[%s10477_s12 + $0x304] sm:$0xf] }
 0x135   : > { %15940 = vst [vmem:[#allocation248_spill] sm:$0xff] %v11798_v17  ;;  %v9623_v17 = vld [vmem:[%s10477_s12 + $0x394] sm:$0xf]  ;;  %v11840_v53 = vor.u32 %v9607_v24, %v7309_v18  ;;  %v7301_v55 = vld [vmem:[%s10477_s12 + $0x308] sm:$0xf0]  ;;  %v11854_v18 = vor.u32 %v9655_v11, %v7501_v20 }
 0x136   : > { %15941 = vst [vmem:[#allocation249_spill] sm:$0xff] %v11802_v39  ;;  %v7373_v39 = vld [vmem:[%s10477_s12 + $0x398] sm:$0xf0]  ;;  %2565 = vmatpush.bf16.msra.mxu0 %v11818_v9  ;;  %2579 = vmatpush.bf16.msra.mxu1 %v11822_v31  ;;  %v7429_v24 = vld [vmem:[%s10477_s12 + $0x408] sm:$0xf0] }
 0x137   : > { %15942 = vst [vmem:[#allocation250_spill] sm:$0xff] %v11804_v56  ;;  %v9639_v56 = vld [vmem:[%s10477_s12 + $0x414] sm:$0xf]  ;;  %2593 = vmatpush.bf16.msra.mxu2 %v11824_v48  ;;  %v11846_v52 = vor.u32 %v9623_v17, %v7373_v39  ;;  %2607 = vmatpush.bf16.msra.mxu3 %v11830_v30  ;;  %v11863_v39 = vor.u32 %v9605_v61, %v7301_v55 }
 0x138   : > { %15943 = vst [vmem:[#allocation251_spill] sm:$0xff] %v11810_v42  ;;  %v11848_v27 = vor.u32 %v9639_v56, %v7437_v54  ;;  %v7365_v42 = vld [vmem:[%s10477_s12 + $0x388] sm:$0xf0]  ;;  %v9699_v17 = vld [vmem:[%s10477_s12 + $0x5f4] sm:$0xf] }
 0x139   : > { %15944 = vst [vmem:[#allocation252_spill] sm:$0xff] %v11818_v9  ;;  %v9637_v9 = vld [vmem:[%s10477_s12 + $0x404] sm:$0xf]  ;;  %v7677_v56 = vld [vmem:[%s10477_s12 + $0x5f8] sm:$0xf0]  ;;  %v11870_v11 = vor.u32 %v9621_v16, %v7365_v42 }
 0x13a   : > { %15945 = vst [vmem:[#allocation253_spill] sm:$0xff] %v11822_v31  ;;  %v9653_v31 = vld [vmem:[%s10477_s12 + $0x484] sm:$0xf]  ;;  %2566 = vmatpush.bf16.msra.mxu0 %v11840_v53  ;;  %v9715_v54 = vld [vmem:[%s10477_s12 + $0x674] sm:$0xf]  ;;  %2580 = vmatpush.bf16.msra.mxu1 %v11846_v52  ;;  %v11872_v20 = vor.u32 %v9637_v9, %v7429_v24 }
 0x13b   : > { %15946 = vst [vmem:[#allocation254_spill] sm:$0xff] %v11824_v48  ;;  %v9683_v48 = vld [vmem:[%s10477_s12 + $0x574] sm:$0xf]  ;;  %2594 = vmatpush.bf16.msra.mxu2 %v11848_v27  ;;  %2608 = vmatpush.bf16.msra.mxu3 %v11854_v18  ;;  %v11877_v61 = vor.u32 %v9653_v31, %v7493_v25  ;;  %v7605_v42 = vld [vmem:[%s10477_s12 + $0x568] sm:$0xf0]  ;;  %v11894_v31 = vpop.f32.mrf.mxu0 }
 0x13c   : > { %15947 = vst [vmem:[#allocation255_spill] sm:$0xff] %v11830_v30  ;;  %v7741_v30 = vld [vmem:[%s10477_s12 + $0x678] sm:$0xf0]  ;;  %v11879_v55 = vor.u32 %v9683_v48, %v7613_v10  ;;  %v9697_v16 = vld [vmem:[%s10477_s12 + $0x5e4] sm:$0xf] }
 0x13d   : > { %15948 = vst [vmem:[#allocation256_spill] sm:$0xff] %v11840_v53  ;;  %v9731_v53 = vld [vmem:[%s10477_s12 + $0x6f4] sm:$0xf]  ;;  %v11883_v58 = vor.u32 %v9715_v54, %v7741_v30  ;;  %v7669_v24 = vld [vmem:[%s10477_s12 + $0x5e8] sm:$0xf0]  ;;  %v11900_v30 = vpop.f32.mrf.mxu1 }
 0x13e   : > { %15949 = vst [vmem:[#allocation257_spill] sm:$0xff] %v11846_v52  ;;  %v11881_v52 = vor.u32 %v9699_v17, %v7677_v56  ;;  %2567 = vmatpush.bf16.msra.mxu0 %v11863_v39  ;;  %v11889_v9 = vor.u32 %v9731_v53, %v7805_v63  ;;  %v7733_v25 = vld [vmem:[%s10477_s12 + $0x668] sm:$0xf0]  ;;  %2581 = vmatpush.bf16.msra.mxu1 %v11870_v11  ;;  %v9729_v10 = vld [vmem:[%s10477_s12 + $0x6e4] sm:$0xf] }
 0x13f   : > { %15950 = vst [vmem:[#allocation258_spill] sm:$0xff] %v11848_v27  ;;  %v9681_v27 = vld [vmem:[%s10477_s12 + $0x564] sm:$0xf]  ;;  %2595 = vmatpush.bf16.msra.mxu2 %v11872_v20  ;;  %v7797_v48 = vld [vmem:[%s10477_s12 + $0x6e8] sm:$0xf0]  ;;  %2609 = vmatpush.bf16.msra.mxu3 %v11877_v61  ;;  %v11908_v53 = vor.u32 %v9697_v16, %v7669_v24 }
 0x140   : > { %15951 = vst [vmem:[#allocation259_spill] sm:$0xff] %v11854_v18  ;;  %v9713_v18 = vld [vmem:[%s10477_s12 + $0x664] sm:$0xf]  ;;  %v11904_v63 = vor.u32 %v9681_v27, %v7605_v42  ;;  %v9679_v56 = vld [vmem:[%s10477_s12 + $0x554] sm:$0xf]  ;;  %v11917_v27 = vor.u32 %v9729_v10, %v7797_v48  ;;  %v11939_v48 = vpop.f32.mrf.mxu2 }
 0x141   : > { %15952 = vst [vmem:[#allocation260_spill] sm:$0xff] %v11863_v39  ;;  %v11910_v17 = vor.u32 %v9713_v18, %v7733_v25  ;;  %v7597_v54 = vld [vmem:[%s10477_s12 + $0x558] sm:$0xf0]  ;;  %2568 = vmatmul.bf16.vlgmr.msra.gmra.mxu0 %v10953_v6  ;;  %2582 = vmatmul.bf16.vlgmr.msra.gmra.mxu1 %v10965_v35  ;;  %v9727_v18 = vld [vmem:[%s10477_s12 + $0x6d4] sm:$0xf] }
 0x142   : > { %15953 = vst [vmem:[#allocation261_spill] sm:$0xff] %v11870_v11  ;;  %2616 = vmatpush.bf16.msrb.mxu0 %v11879_v55  ;;  %2630 = vmatpush.bf16.msrb.mxu1 %v11881_v52  ;;  %v7661_v42 = vld [vmem:[%s10477_s12 + $0x5d8] sm:$0xf0]  ;;  %v11928_v6 = vor.u32 %v9679_v56, %v7597_v54  ;;  %v9677_v24 = vld [vmem:[%s10477_s12 + $0x544] sm:$0xf] }
 0x143   : > { %15954 = vst [vmem:[#allocation262_spill] sm:$0xff] %v11872_v20  ;;  %2644 = vmatpush.bf16.msrb.mxu2 %v11883_v58  ;;  %v9695_v20 = vld [vmem:[%s10477_s12 + $0x5d4] sm:$0xf]  ;;  %2658 = vmatpush.bf16.msrb.mxu3 %v11889_v9  ;;  %v7789_v16 = vld [vmem:[%s10477_s12 + $0x6d8] sm:$0xf0] }
 0x144   : > { %15955 = vst [vmem:[#allocation263_spill] sm:$0xff] %v11877_v61  ;;  %v9711_v61 = vld [vmem:[%s10477_s12 + $0x654] sm:$0xf]  ;;  %2596 = vmatmul.bf16.vlgmr.msra.gmra.mxu2 %v11148_v60  ;;  %2610 = vmatmul.bf16.vlgmr.msra.gmra.mxu3 %v11156_v23  ;;  %v11932_v60 = vor.u32 %v9695_v20, %v7661_v42  ;;  %v7589_v25 = vld [vmem:[%s10477_s12 + $0x548] sm:$0xf0]  ;;  %v11942_v23 = vor.u32 %v9727_v18, %v7789_v16  ;;  %v2345_v20 = vpop.f32.mrf.mxu0 }
 0x145   : > { %15956 = vst [vmem:[#allocation264_spill] sm:$0xff] %v11879_v55  ;;  %v9693_v10 = vld [vmem:[%s10477_s12 + $0x5c4] sm:$0xf]  ;;  %v7653_v56 = vld [vmem:[%s10477_s12 + $0x5c8] sm:$0xf0]  ;;  %v2346_v42 = vadd.f32 %v2345_v20, %v11835_v46  ;;  %v11953_v18 = vor.u32 %v9677_v24, %v7589_v25  ;;  %v2359_v16 = vpop.f32.mrf.mxu1 }
 0x146   : > { %15957 = vst [vmem:[#allocation265_spill] sm:$0xff] %v11881_v52  ;;  %v7725_v52 = vld [vmem:[%s10477_s12 + $0x658] sm:$0xf0]  ;;  %2617 = vmatpush.bf16.msrb.mxu0 %v11904_v63  ;;  %2631 = vmatpush.bf16.msrb.mxu1 %v11908_v53  ;;  %v9709_v54 = vld [vmem:[%s10477_s12 + $0x644] sm:$0xf] }
 0x147   : > { %15958 = vst [vmem:[#allocation266_spill] sm:$0xff] %v11883_v58  ;;  %2645 = vmatpush.bf16.msrb.mxu2 %v11910_v17  ;;  %v11934_v35 = vor.u32 %v9711_v61, %v7725_v52  ;;  %2659 = vmatpush.bf16.msrb.mxu3 %v11917_v27  ;;  %v9725_v52 = vld [vmem:[%s10477_s12 + $0x6c4] sm:$0xf]  ;;  %v7781_v61 = vld [vmem:[%s10477_s12 + $0x6c8] sm:$0xf0]  ;;  %v2360_v24 = vadd.f32 %v2359_v16, %v2346_v42 }
 0x148   : > { %15959 = vst [vmem:[#allocation267_spill] sm:$0xff] %v11889_v9  ;;  %v7717_v9 = vld [vmem:[%s10477_s12 + $0x648] sm:$0xf0]  ;;  %v11965_v46 = vor.u32 %v9725_v52, %v7781_v61  ;;  %v7645_v25 = vld [vmem:[%s10477_s12 + $0x5b8] sm:$0xf0] }
 0x149   : > { %15960 = vst [vmem:[#allocation268_spill] sm:$0xff] %v11904_v63  ;;  %v11959_v58 = vor.u32 %v9709_v54, %v7717_v9  ;;  %v7581_v63 = vld [vmem:[%s10477_s12 + $0x538] sm:$0xf0]  ;;  %v9707_v20 = vld [vmem:[%s10477_s12 + $0x634] sm:$0xf] }
 0x14a   : > { %15961 = vst [vmem:[#allocation269_spill] sm:$0xff] %v11908_v53  ;;  %2618 = vmatpush.bf16.msrb.mxu0 %v11928_v6  ;;  %2632 = vmatpush.bf16.msrb.mxu1 %v11932_v60  ;;  %v9675_v53 = vld [vmem:[%s10477_s12 + $0x534] sm:$0xf]  ;;  %v7773_v9 = vld [vmem:[%s10477_s12 + $0x6b8] sm:$0xf0] }
 0x14b   : > { %15962 = vst [vmem:[#allocation270_spill] sm:$0xff] %v11910_v17  ;;  %v11947_v17 = vpop.f32.mrf.mxu3  ;;  %2646 = vmatpush.bf16.msrb.mxu2 %v11934_v35  ;;  %2660 = vmatpush.bf16.msrb.mxu3 %v11942_v23  ;;  %v9673_v61 = vld [vmem:[%s10477_s12 + $0x524] sm:$0xf]  ;;  %v7573_v42 = vld [vmem:[%s10477_s12 + $0x528] sm:$0xf0] }
 0x14c   : > { %15963 = vst [vmem:[#allocation271_spill] sm:$0xff] %v11917_v27  ;;  %v11957_v27 = vor.u32 %v9693_v10, %v7653_v56  ;;  %v9723_v10 = vld [vmem:[%s10477_s12 + $0x6b4] sm:$0xf]  ;;  %v11973_v56 = vor.u32 %v9675_v53, %v7581_v63  ;;  %v9689_v16 = vld [vmem:[%s10477_s12 + $0x5a4] sm:$0xf]  ;;  %v2373_v63 = vpop.f32.mrf.mxu2 }
 0x14d   : > { %15964 = vst [vmem:[#allocation272_spill] sm:$0xff] %v11928_v6  ;;  %v9691_v6 = vld [vmem:[%s10477_s12 + $0x5b4] sm:$0xf]  ;;  %v7637_v53 = vld [vmem:[%s10477_s12 + $0x5a8] sm:$0xf0] }
 0x14e   : > { %15965 = vst [vmem:[#allocation273_spill] sm:$0xff] %v11932_v60  ;;  %v7709_v60 = vld [vmem:[%s10477_s12 + $0x638] sm:$0xf0]  ;;  %2619 = vmatpush.bf16.msrb.mxu0 %v11953_v18  ;;  %2633 = vmatpush.bf16.msrb.mxu1 %v11957_v27  ;;  %v11977_v54 = vor.u32 %v9691_v6, %v7645_v25  ;;  %v7765_v25 = vld [vmem:[%s10477_s12 + $0x6a8] sm:$0xf0] }
 0x14f   : > { %15966 = vst [vmem:[#allocation274_spill] sm:$0xff] %v11934_v35  ;;  %2647 = vmatpush.bf16.msrb.mxu2 %v11959_v58  ;;  %v11979_v52 = vor.u32 %v9707_v20, %v7709_v60  ;;  %2661 = vmatpush.bf16.msrb.mxu3 %v11965_v46  ;;  %v9705_v35 = vld [vmem:[%s10477_s12 + $0x624] sm:$0xf]  ;;  %v11993_v20 = vor.u32 %v9673_v61, %v7573_v42  ;;  %v7629_v42 = vld [vmem:[%s10477_s12 + $0x598] sm:$0xf0] }
 0x150   : > { %15967 = vst [vmem:[#allocation275_spill] sm:$0xff] %v11942_v23  ;;  %v11985_v23 = vor.u32 %v9723_v10, %v7773_v9  ;;  %v9721_v60 = vld [vmem:[%s10477_s12 + $0x6a4] sm:$0xf]  ;;  %v7869_v55 = vld [vmem:[%s10477_s12 + $0x778] sm:$0xf0] }
 0x151   : > { %15968 = vst [vmem:[#allocation276_spill] sm:$0xff] %v11953_v18  ;;  %v2374_v18 = vadd.f32 %v2373_v63, %v2360_v24  ;;  %v11999_v24 = vor.u32 %v9689_v16, %v7637_v53  ;;  %v9671_v63 = vld [vmem:[%s10477_s12 + $0x514] sm:$0xf]  ;;  %v12007_v61 = vor.u32 %v9721_v60, %v7765_v25  ;;  %v7757_v16 = vld [vmem:[%s10477_s12 + $0x698] sm:$0xf0] }
 0x152   : > { %15969 = vst [vmem:[#allocation277_spill] sm:$0xff] %v11957_v27  ;;  %v7701_v27 = vld [vmem:[%s10477_s12 + $0x628] sm:$0xf0]  ;;  %2620 = vmatpush.bf16.msrb.mxu0 %v11973_v56  ;;  %2634 = vmatpush.bf16.msrb.mxu1 %v11977_v54  ;;  %v9685_v25 = vld [vmem:[%s10477_s12 + $0x584] sm:$0xf] }
 0x153   : > { %15970 = vst [vmem:[#allocation278_spill] sm:$0xff] %v11959_v58  ;;  %v2387_v6 = vpop.f32.mrf.mxu3  ;;  %2648 = vmatpush.bf16.msrb.mxu2 %v11979_v52  ;;  %v12001_v9 = vor.u32 %v9705_v35, %v7701_v27  ;;  %v9687_v58 = vld [vmem:[%s10477_s12 + $0x594] sm:$0xf]  ;;  %2662 = vmatpush.bf16.msrb.mxu3 %v11985_v23  ;;  %v9669_v35 = vld [vmem:[%s10477_s12 + $0x504] sm:$0xf] }
 0x154   : > { %15971 = vst [vmem:[#allocation279_spill] sm:$0xff] %v11965_v46  ;;  %v11997_v10 = vadd.f32 %v2387_v6, %v2374_v18  ;;  %v7565_v46 = vld [vmem:[%s10477_s12 + $0x518] sm:$0xf0]  ;;  %v9719_v18 = vld [vmem:[%s10477_s12 + $0x694] sm:$0xf]  ;;  %v12021_v6 = vor.u32 %v9687_v58, %v7629_v42 }
 0x155   : > { %15972 = vst [vmem:[#allocation280_spill] sm:$0xff] %v11973_v56  ;;  %v12015_v27 = vor.u32 %v9671_v63, %v7565_v46  ;;  %v7557_v53 = vld [vmem:[%s10477_s12 + $0x508] sm:$0xf0]  ;;  %v12029_v46 = vor.u32 %v9719_v18, %v7757_v16  ;;  %v9763_v58 = vld [vmem:[%s10477_s12 + $0x7f4] sm:$0xf] }
 0x156   : > { %15973 = vst [vmem:[#allocation281_spill] sm:$0xff] %v11977_v54  ;;  %v7693_v54 = vld [vmem:[%s10477_s12 + $0x618] sm:$0xf0]  ;;  %2621 = vmatpush.bf16.msrb.mxu0 %v11993_v20  ;;  %2635 = vmatpush.bf16.msrb.mxu1 %v11999_v24  ;;  %v7685_v63 = vld [vmem:[%s10477_s12 + $0x608] sm:$0xf0] }
 0x157   : > { %15974 = vst [vmem:[#allocation282_spill] sm:$0xff] %v11979_v52  ;;  %v9703_v52 = vld [vmem:[%s10477_s12 + $0x614] sm:$0xf]  ;;  %2649 = vmatpush.bf16.msrb.mxu2 %v12001_v9  ;;  %2663 = vmatpush.bf16.msrb.mxu3 %v12007_v61  ;;  %v7749_v56 = vld [vmem:[%s10477_s12 + $0x688] sm:$0xf0] }
 0x158   : > { %15975 = vst [vmem:[#allocation283_spill] sm:$0xff] %v11985_v23  ;;  %v12023_v60 = vor.u32 %v9703_v52, %v7693_v54  ;;  %v7621_v23 = vld [vmem:[%s10477_s12 + $0x588] sm:$0xf0]  ;;  %v12038_v54 = vor.u32 %v9669_v35, %v7557_v53  ;;  %v7933_v52 = vld [vmem:[%s10477_s12 + $0x7f8] sm:$0xf0] }
 0x159   : > { %15976 = vst [vmem:[#allocation284_spill] sm:$0xff] %v11993_v20  ;;  %v9701_v20 = vld [vmem:[%s10477_s12 + $0x604] sm:$0xf]  ;;  %v9779_v42 = vld [vmem:[%s10477_s12 + $0x874] sm:$0xf]  ;;  %v12045_v18 = vor.u32 %v9685_v25, %v7621_v23 }
 0x15a   : > { %15977 = vst [vmem:[#allocation285_spill] sm:$0xff] %v11999_v24  ;;  %v9717_v24 = vld [vmem:[%s10477_s12 + $0x684] sm:$0xf]  ;;  %2622 = vmatpush.bf16.msrb.mxu0 %v12015_v27  ;;  %2636 = vmatpush.bf16.msrb.mxu1 %v12021_v6  ;;  %v12047_v16 = vor.u32 %v9701_v20, %v7685_v63  ;;  %v8061_v11 = vld [vmem:[%s10477_s12 + $0x8f8] sm:$0xf0] }
 0x15b   : > { %15978 = vst [vmem:[#allocation286_spill] sm:$0xff] %v12001_v9  ;;  %v9747_v9 = vld [vmem:[%s10477_s12 + $0x774] sm:$0xf]  ;;  %2650 = vmatpush.bf16.msrb.mxu2 %v12023_v60  ;;  %2664 = vmatpush.bf16.msrb.mxu3 %v12029_v46  ;;  %v12052_v35 = vor.u32 %v9717_v24, %v7749_v56  ;;  %v7861_v23 = vld [vmem:[%s10477_s12 + $0x768] sm:$0xf0]  ;;  %v12069_v24 = vpop.f32.mrf.mxu0 }
 0x15c   : > { %15979 = vst [vmem:[#allocation287_spill] sm:$0xff] %v12007_v61  ;;  %v7997_v61 = vld [vmem:[%s10477_s12 + $0x878] sm:$0xf0]  ;;  %v12054_v53 = vor.u32 %v9747_v9, %v7869_v55  ;;  %v9761_v25 = vld [vmem:[%s10477_s12 + $0x7e4] sm:$0xf] }
 0x15d   : > { %15980 = vst [vmem:[#allocation288_spill] sm:$0xff] %v12015_v27  ;;  %v9795_v27 = vld [vmem:[%s10477_s12 + $0x8f4] sm:$0xf]  ;;  %v12058_v39 = vor.u32 %v9779_v42, %v7997_v61  ;;  %v7925_v63 = vld [vmem:[%s10477_s12 + $0x7e8] sm:$0xf0]  ;;  %v12075_v61 = vpop.f32.mrf.mxu1 }
 0x15e   : > { %15981 = vst [vmem:[#allocation289_spill] sm:$0xff] %v12021_v6  ;;  %v12056_v6 = vor.u32 %v9763_v58, %v7933_v52  ;;  %2623 = vmatpush.bf16.msrb.mxu0 %v12038_v54  ;;  %v12064_v20 = vor.u32 %v9795_v27, %v8061_v11  ;;  %v7989_v56 = vld [vmem:[%s10477_s12 + $0x868] sm:$0xf0]  ;;  %2637 = vmatpush.bf16.msrb.mxu1 %v12045_v18  ;;  %v9793_v55 = vld [vmem:[%s10477_s12 + $0x8e4] sm:$0xf] }
 0x15f   : > { %15982 = vst [vmem:[#allocation290_spill] sm:$0xff] %v12023_v60  ;;  %v9745_v60 = vld [vmem:[%s10477_s12 + $0x764] sm:$0xf]  ;;  %2651 = vmatpush.bf16.msrb.mxu2 %v12047_v16  ;;  %v8053_v9 = vld [vmem:[%s10477_s12 + $0x8e8] sm:$0xf0]  ;;  %2665 = vmatpush.bf16.msrb.mxu3 %v12052_v35  ;;  %v12083_v27 = vor.u32 %v9761_v25, %v7925_v63 }
 0x160   : > { %15983 = vst [vmem:[#allocation291_spill] sm:$0xff] %v12029_v46  ;;  %v9777_v46 = vld [vmem:[%s10477_s12 + $0x864] sm:$0xf]  ;;  %v12079_v11 = vor.u32 %v9745_v60, %v7861_v23  ;;  %v9743_v52 = vld [vmem:[%s10477_s12 + $0x754] sm:$0xf]  ;;  %v12092_v60 = vor.u32 %v9793_v55, %v8053_v9  ;;  %v12114_v9 = vpop.f32.mrf.mxu2 }
 0x161   : > { %15984 = vst [vmem:[#allocation292_spill] sm:$0xff] %v12038_v54  ;;  %v12085_v58 = vor.u32 %v9777_v46, %v7989_v56  ;;  %v7853_v42 = vld [vmem:[%s10477_s12 + $0x758] sm:$0xf0]  ;;  %2624 = vmatmul.bf16.vlgmr.msrb.gmra.mxu0 %v11154_v47  ;;  %2638 = vmatmul.bf16.vlgmr.msrb.gmra.mxu1 %v11162_v28  ;;  %v9791_v46 = vld [vmem:[%s10477_s12 + $0x8d4] sm:$0xf] }
 0x162   : > { %15985 = vst [vmem:[#allocation293_spill] sm:$0xff] %v12045_v18  ;;  %2672 = vmatpush.bf16.msra.mxu0 %v12054_v53  ;;  %2686 = vmatpush.bf16.msra.mxu1 %v12056_v6  ;;  %v7917_v23 = vld [vmem:[%s10477_s12 + $0x7d8] sm:$0xf0]  ;;  %v12103_v47 = vor.u32 %v9743_v52, %v7853_v42  ;;  %v9741_v63 = vld [vmem:[%s10477_s12 + $0x744] sm:$0xf] }
 0x163   : > { %15986 = vst [vmem:[#allocation294_spill] sm:$0xff] %v12047_v16  ;;  %2700 = vmatpush.bf16.msra.mxu2 %v12058_v39  ;;  %v9759_v16 = vld [vmem:[%s10477_s12 + $0x7d4] sm:$0xf]  ;;  %2714 = vmatpush.bf16.msra.mxu3 %v12064_v20  ;;  %v8045_v25 = vld [vmem:[%s10477_s12 + $0x8d8] sm:$0xf0] }
 0x164   : > { %15987 = vst [vmem:[#allocation295_spill] sm:$0xff] %v12052_v35  ;;  %v9775_v35 = vld [vmem:[%s10477_s12 + $0x854] sm:$0xf]  ;;  %2652 = vmatmul.bf16.vlgmr.msrb.gmra.mxu2 %v11361_v45  ;;  %2666 = vmatmul.bf16.vlgmr.msrb.gmra.mxu3 %v11370_v2  ;;  %v12107_v45 = vor.u32 %v9759_v16, %v7917_v23  ;;  %v7845_v56 = vld [vmem:[%s10477_s12 + $0x748] sm:$0xf0]  ;;  %v12117_v2 = vor.u32 %v9791_v46, %v8045_v25  ;;  %v2401_v16 = vpop.f32.mrf.mxu0 }
 0x165   : > { %15988 = vst [vmem:[#allocation296_spill] sm:$0xff] %v12054_v53  ;;  %v9757_v55 = vld [vmem:[%s10477_s12 + $0x7c4] sm:$0xf]  ;;  %v7909_v52 = vld [vmem:[%s10477_s12 + $0x7c8] sm:$0xf0]  ;;  %v2402_v23 = vadd.f32 %v2401_v16, %v11997_v10  ;;  %v12128_v46 = vor.u32 %v9741_v63, %v7845_v56  ;;  %v2415_v25 = vpop.f32.mrf.mxu1 }
 0x166   : > { %15989 = vst [vmem:[#allocation297_spill] sm:$0xff] %v12056_v6  ;;  %v7981_v6 = vld [vmem:[%s10477_s12 + $0x858] sm:$0xf0]  ;;  %2673 = vmatpush.bf16.msra.mxu0 %v12079_v11  ;;  %2687 = vmatpush.bf16.msra.mxu1 %v12083_v27  ;;  %v9773_v42 = vld [vmem:[%s10477_s12 + $0x844] sm:$0xf] }
 0x167   : > { %15990 = vst [vmem:[#allocation298_spill] sm:$0xff] %v12058_v39  ;;  %2701 = vmatpush.bf16.msra.mxu2 %v12085_v58  ;;  %v12109_v28 = vor.u32 %v9775_v35, %v7981_v6  ;;  %2715 = vmatpush.bf16.msra.mxu3 %v12092_v60  ;;  %v9789_v6 = vld [vmem:[%s10477_s12 + $0x8c4] sm:$0xf]  ;;  %v8037_v35 = vld [vmem:[%s10477_s12 + $0x8c8] sm:$0xf0]  ;;  %v2416_v63 = vadd.f32 %v2415_v25, %v2402_v23 }
 0x168   : > { %15991 = vst [vmem:[#allocation299_spill] sm:$0xff] %v12064_v20  ;;  %v7973_v20 = vld [vmem:[%s10477_s12 + $0x848] sm:$0xf0]  ;;  %v12140_v10 = vor.u32 %v9789_v6, %v8037_v35  ;;  %v7901_v56 = vld [vmem:[%s10477_s12 + $0x7b8] sm:$0xf0] }
 0x169   : > { %15992 = vst [vmem:[#allocation300_spill] sm:$0xff] %v12079_v11  ;;  %v12134_v39 = vor.u32 %v9773_v42, %v7973_v20  ;;  %v7837_v11 = vld [vmem:[%s10477_s12 + $0x738] sm:$0xf0]  ;;  %v9771_v16 = vld [vmem:[%s10477_s12 + $0x834] sm:$0xf] }
 0x16a   : > { %15993 = vst [vmem:[#allocation301_spill] sm:$0xff] %v12083_v27  ;;  %2674 = vmatpush.bf16.msra.mxu0 %v12103_v47  ;;  %2688 = vmatpush.bf16.msra.mxu1 %v12107_v45  ;;  %v9739_v27 = vld [vmem:[%s10477_s12 + $0x734] sm:$0xf]  ;;  %v8029_v20 = vld [vmem:[%s10477_s12 + $0x8b8] sm:$0xf0] }
 0x16b   : > { %15994 = vst [vmem:[#allocation302_spill] sm:$0xff] %v12085_v58  ;;  %v12122_v58 = vpop.f32.mrf.mxu3  ;;  %2702 = vmatpush.bf16.msra.mxu2 %v12109_v28  ;;  %2716 = vmatpush.bf16.msra.mxu3 %v12117_v2  ;;  %v9737_v35 = vld [vmem:[%s10477_s12 + $0x724] sm:$0xf]  ;;  %v7829_v23 = vld [vmem:[%s10477_s12 + $0x728] sm:$0xf0] }
 0x16c   : > { %15995 = vst [vmem:[#allocation303_spill] sm:$0xff] %v12092_v60  ;;  %v12132_v60 = vor.u32 %v9757_v55, %v7909_v52  ;;  %v9787_v55 = vld [vmem:[%s10477_s12 + $0x8b4] sm:$0xf]  ;;  %v12148_v52 = vor.u32 %v9739_v27, %v7837_v11  ;;  %v9753_v25 = vld [vmem:[%s10477_s12 + $0x7a4] sm:$0xf]  ;;  %v2429_v11 = vpop.f32.mrf.mxu2 }
 0x16d   : > { %15996 = vst [vmem:[#allocation304_spill] sm:$0xff] %v12103_v47  ;;  %v9755_v47 = vld [vmem:[%s10477_s12 + $0x7b4] sm:$0xf]  ;;  %v7893_v27 = vld [vmem:[%s10477_s12 + $0x7a8] sm:$0xf0] }
 0x16e   : > { %15997 = vst [vmem:[#allocation305_spill] sm:$0xff] %v12107_v45  ;;  %v7965_v45 = vld [vmem:[%s10477_s12 + $0x838] sm:$0xf0]  ;;  %2675 = vmatpush.bf16.msra.mxu0 %v12128_v46  ;;  %2689 = vmatpush.bf16.msra.mxu1 %v12132_v60  ;;  %v12152_v42 = vor.u32 %v9755_v47, %v7901_v56  ;;  %v8021_v56 = vld [vmem:[%s10477_s12 + $0x8a8] sm:$0xf0] }
 0x16f   : > { %15998 = vst [vmem:[#allocation306_spill] sm:$0xff] %v12109_v28  ;;  %2703 = vmatpush.bf16.msra.mxu2 %v12134_v39  ;;  %v12154_v6 = vor.u32 %v9771_v16, %v7965_v45  ;;  %2717 = vmatpush.bf16.msra.mxu3 %v12140_v10  ;;  %v9769_v28 = vld [vmem:[%s10477_s12 + $0x824] sm:$0xf]  ;;  %v12168_v16 = vor.u32 %v9737_v35, %v7829_v23  ;;  %v7885_v35 = vld [vmem:[%s10477_s12 + $0x798] sm:$0xf0] }
 0x170   : > { %15999 = vst [vmem:[#allocation307_spill] sm:$0xff] %v12117_v2  ;;  %v12160_v2 = vor.u32 %v9787_v55, %v8029_v20  ;;  %v9785_v45 = vld [vmem:[%s10477_s12 + $0x8a4] sm:$0xf]  ;;  %v12172_v20 = vor.u32 %v9753_v25, %v7893_v27  ;;  %v9767_v23 = vld [vmem:[%s10477_s12 + $0x814] sm:$0xf] }
 0x171   : > { %16000 = vst [vmem:[#allocation308_spill] sm:$0xff] %v12128_v46  ;;  %v2430_v46 = vadd.f32 %v2429_v11, %v2416_v63  ;;  %v9735_v11 = vld [vmem:[%s10477_s12 + $0x714] sm:$0xf]  ;;  %v9765_v53 = vld [vmem:[%s10477_s12 + $0x804] sm:$0xf] }
 0x172   : > { %16001 = vst [vmem:[#allocation309_spill] sm:$0xff] %v12132_v60  ;;  %v7957_v60 = vld [vmem:[%s10477_s12 + $0x828] sm:$0xf0]  ;;  %2676 = vmatpush.bf16.msra.mxu0 %v12148_v52  ;;  %2690 = vmatpush.bf16.msra.mxu1 %v12152_v42  ;;  %v9091_v54 = vld [vmem:[%s10477_s12 + $0xec0] sm:$0xf] }
 0x173   : > { %16002 = vst [vmem:[#allocation310_spill] sm:$0xff] %v12134_v39  ;;  %v2443_v47 = vpop.f32.mrf.mxu3  ;;  %2704 = vmatpush.bf16.msra.mxu2 %v12154_v6  ;;  %v12174_v63 = vor.u32 %v9769_v28, %v7957_v60  ;;  %v9751_v39 = vld [vmem:[%s10477_s12 + $0x794] sm:$0xf]  ;;  %2718 = vmatpush.bf16.msra.mxu3 %v12160_v2  ;;  %v8013_v60 = vld [vmem:[%s10477_s12 + $0x898] sm:$0xf0] }
 0x174   : > { %16003 = vst [vmem:[#allocation311_spill] sm:$0xff] %v12140_v10  ;;  %v2444_v55 = vadd.f32 %v2443_v47, %v2430_v46  ;;  %v7821_v10 = vld [vmem:[%s10477_s12 + $0x718] sm:$0xf0]  ;;  %v9783_v46 = vld [vmem:[%s10477_s12 + $0x894] sm:$0xf]  ;;  %v12192_v25 = vor.u32 %v9751_v39, %v7885_v35 }
 0x175   : > { %16004 = vst [vmem:[#allocation312_spill] sm:$0xff] %v12148_v52  ;;  %v12180_v52 = vor.u32 %v9785_v45, %v8021_v56  ;;  %v12188_v28 = vor.u32 %v9735_v11, %v7821_v10  ;;  %v9733_v47 = vld [vmem:[%s10477_s12 + $0x704] sm:$0xf]  ;;  %v7813_v45 = vld [vmem:[%s10477_s12 + $0x708] sm:$0xf0] }
 0x176   : > { %16005 = vst [vmem:[#allocation313_spill] sm:$0xff] %v12152_v42  ;;  %2677 = vmatpush.bf16.msra.mxu0 %v12168_v16  ;;  %2691 = vmatpush.bf16.msra.mxu1 %v12172_v20  ;;  %v9749_v56 = vld [vmem:[%s10477_s12 + $0x784] sm:$0xf]  ;;  %v7877_v42 = vld [vmem:[%s10477_s12 + $0x788] sm:$0xf0] }
 0x177   : > { %16006 = vst [vmem:[#allocation314_spill] sm:$0xff] %v12154_v6  ;;  %v7949_v6 = vld [vmem:[%s10477_s12 + $0x818] sm:$0xf0]  ;;  %2705 = vmatpush.bf16.msra.mxu2 %v12174_v63  ;;  %2719 = vmatpush.bf16.msra.mxu3 %v12180_v52  ;;  %v9781_v10 = vld [vmem:[%s10477_s12 + $0x884] sm:$0xf]  ;;  %v12212_v39 = vor.u32 %v9749_v56, %v7877_v42 }
 0x178   : > { %16007 = vst [vmem:[#allocation315_spill] sm:$0xff] %v12160_v2  ;;  %v12194_v27 = vor.u32 %v9767_v23, %v7949_v6  ;;  %v12200_v2 = vor.u32 %v9783_v46, %v8013_v60  ;;  %v8005_v11 = vld [vmem:[%s10477_s12 + $0x888] sm:$0xf0]  ;;  %v2403_v23 = vpop.f32.mrf.mxu0  ;;  %v2417_v46 = vpop.f32.mrf.mxu1 }
 0x179   : > { %16008 = vst [vmem:[#allocation316_spill] sm:$0xff] %v12168_v16  ;;  %v7941_v16 = vld [vmem:[%s10477_s12 + $0x808] sm:$0xf0]  ;;  %v12217_v35 = vor.u32 %v9781_v10, %v8005_v11  ;;  %v2431_v10 = vpop.f32.mrf.mxu2 }
 0x17a   : > { %16009 = vst [vmem:[#allocation317_spill] sm:$0xff] %v12172_v20  ;;  %2678 = vmatpush.bf16.msra.mxu0 %v12188_v28  ;;  %v12208_v20 = vor.u32 %v9733_v47, %v7813_v45  ;;  %2692 = vmatpush.bf16.msra.mxu1 %v12192_v25  ;;  %v12214_v6 = vor.u32 %v9765_v53, %v7941_v16 }
 0x17b   : > { %16010 = vst [vmem:[#allocation318_spill] sm:$0xff] %v12174_v63  ;;  %2706 = vmatpush.bf16.msra.mxu2 %v12194_v27  ;;  %2720 = vmatpush.bf16.msra.mxu3 %v12200_v2  ;;  %v2250_v47 = vadd.f32 %v11736_v62, %v11717_v59 }
 0x17c   : > { %16011 = vst [vmem:[#allocation319_spill] sm:$0xff] %v12180_v52 }
 0x17d   : > { %16012 = vst [vmem:[#allocation320_spill] sm:$0xff] %v12188_v28  ;;  %v2264_v45 = vadd.f32 %v11774_v36, %v2250_v47 }
 0x17e   : > { %16013 = vst [vmem:[#allocation321_spill] sm:$0xff] %v12192_v25  ;;  %2679 = vmatpush.bf16.msra.mxu0 %v12208_v20  ;;  %2693 = vmatpush.bf16.msra.mxu1 %v12212_v39 }
 0x17f   : > { %16014 = vst [vmem:[#allocation322_spill] sm:$0xff] %v12194_v27  ;;  %2707 = vmatpush.bf16.msra.mxu2 %v12214_v6  ;;  %2721 = vmatpush.bf16.msra.mxu3 %v12217_v35  ;;  %v2278_v56 = vadd.f32 %v11788_v50, %v2264_v45 }
 0x180   : > { %16015 = vst [vmem:[#allocation323_spill] sm:$0xff] %v12200_v2  ;;  %v2457_v53 = vpop.f32.mrf.mxu0  ;;  %v2471_v16 = vpop.f32.mrf.mxu1 }
 0x181   : > { %16016 = vst [vmem:[#allocation324_spill] sm:$0xff] %v12208_v20  ;;  %2680 = vmatmul.bf16.vlgmr.msra.gmra.mxu0 %v11368_v15  ;;  %2694 = vmatmul.bf16.vlgmr.msra.gmra.mxu1 %v11376_v44  ;;  %v2458_v42 = vadd.f32 %v2457_v53, %v2444_v55  ;;  %v2445_v15 = vpop.f32.mrf.mxu3  ;;  %v2292_v44 = vadd.f32 %v11894_v31, %v2278_v56  ;;  %v8899_v20 = vld [vmem:[%s10477_s12 + $0xd40] sm:$0xf] }
 0x182   : > { %16017 = vst [vmem:[#allocation325_spill] sm:$0xff] %v12212_v39  ;;  %2708 = vmatmul.bf16.vlgmr.msra.gmra.mxu2 %v11549_v49  ;;  %2722 = vmatmul.bf16.vlgmr.msra.gmra.mxu3 %v11556_v37 }
 0x183   : > { %16018 = vst [vmem:[#allocation326_spill] sm:$0xff] %v12214_v6  ;;  %v12227_v60 = vadd.f32 %v2471_v16, %v2458_v42  ;;  %v2306_v49 = vadd.f32 %v11900_v30, %v2292_v44 }
 0x184   : > { %16019 = vst [vmem:[#allocation327_spill] sm:$0xff] %v12217_v35 }
 0x185   : > { %v2320_v37 = vadd.f32 %v11939_v48, %v2306_v49  ;;  %v2485_v11 = vpop.f32.mrf.mxu2 }
 0x187   : > { %v2334_v53 = vadd.f32 %v11947_v17, %v2320_v37 }
 0x188   : > { %v2459_v42 = vpop.f32.mrf.mxu0  ;;  %v2473_v59 = vpop.f32.mrf.mxu1 }
 0x189   : > { %v2499_v55 = vpop.f32.mrf.mxu3  ;;  %v2348_v16 = vadd.f32 %v12069_v24, %v2334_v53 }
 0x18a   : > { %v2500_v2 = vadd.f32 %v2499_v55, %v2485_v11 }
 0x18b   : > { %v2362_v62 = vadd.f32 %v12075_v61, %v2348_v16 }
 0x18d   : > { %v2487_v36 = vpop.f32.mrf.mxu2  ;;  %v2376_v47 = vadd.f32 %v12114_v9, %v2362_v62 }
 0x18f   : > { %v2390_v31 = vadd.f32 %v12122_v58, %v2376_v47 }
 0x191   : > { %v2501_v50 = vpop.f32.mrf.mxu3  ;;  %v2404_v56 = vadd.f32 %v2403_v23, %v2390_v31 }
 0x192   : > { %v2502_v47 = vadd.f32 %v2501_v50, %v2487_v36 }
 0x193   : > { %v2418_v49 = vadd.f32 %v2417_v46, %v2404_v56 }
 0x195   : > { %v2432_v17 = vadd.f32 %v2431_v10, %v2418_v49 }
 0x197   : > { %v2446_v6 = vadd.f32 %v2445_v15, %v2432_v17 }
 0x199   : > { %v2460_v24 = vadd.f32 %v2459_v42, %v2446_v6  ;;  %v2742_v6 = vmul.f32 %v12227_v60, %v12227_v60 }
 0x19b   : > { %v12241_v27 = vadd.f32 %v2473_v59, %v2460_v24 }
 0x19d   : > { %v2513_v45 = vpop.f32.mrf.mxu0  ;;  %v2744_v58 = vmul.f32 %v12241_v27, %v12241_v27  ;;  %v2728_v46 = vadd.f32 %v12241_v27, %v12227_v60 }
 0x19e   : > { %v2527_v30 = vpop.f32.mrf.mxu1  ;;  %v2514_v62 = vadd.f32 %v2513_v45, %v2500_v2 }
 0x19f   : > { %v2746_v55 = vadd.f32 %v2744_v58, %v2742_v6  ;;  %v2729_v42 = vrot.slane %v2728_v46, 4 }
 0x1a0   : > { %v2528_v10 = vadd.f32 %v2527_v30, %v2514_v62 }
 0x1a1   : > { %v2747_v45 = vrot.slane %v2746_v55, 4  ;;  %v2730_v49 = vadd.f32 %v2729_v42, %v2728_v46  ;;  %v8475_v42 = vld [vmem:[%s10477_s12 + $0x9f0] sm:$0xf] }
 0x1a3   : > { %v2748_v62 = vadd.f32 %v2747_v45, %v2746_v55 }
 0x1a4   : > { %v2541_v48 = vpop.f32.mrf.mxu2 }
 0x1a5   : > { %v2515_v35 = vpop.f32.mrf.mxu0  ;;  %v2542_v59 = vadd.f32 %v2541_v48, %v2528_v10  ;;  %v2749_v10 = vrot.slane %v2748_v62, 2 }
 0x1a6   : > { %v2529_v37 = vpop.f32.mrf.mxu1  ;;  %v2516_v15 = vadd.f32 %v2515_v35, %v2502_v47  ;;  %v2731_v35 = vrot.slane %v2730_v49, 2 }
 0x1a7   : > { %v2555_v44 = vpop.f32.mrf.mxu3 }
 0x1a8   : > { %v2530_v2 = vadd.f32 %v2529_v37, %v2516_v15  ;;  %v2556_v17 = vadd.f32 %v2555_v44, %v2542_v59  ;;  %v2732_v37 = vadd.f32 %v2731_v35, %v2730_v49  ;;  %v8411_v44 = vld [vmem:[%s10477_s12 + $0x970] sm:$0xf] }
 0x1ac   : > { %v2543_v53 = vpop.f32.mrf.mxu2 }
 0x1ad   : > { %v2544_v24 = vadd.f32 %v2543_v53, %v2530_v2  ;;  %v9812_v53 = vld [vmem:[%s10477_s12 + $0x974] sm:$0xf0] }
 0x1ae   : > { %v12254_v55 = vor.u32 %v9812_v53, %v8411_v44  ;;  %v9860_v44 = vld [vmem:[%s10477_s12 + $0xaf4] sm:$0xf0] }
 0x1af   : > { %v2557_v61 = vpop.f32.mrf.mxu3 }
 0x1b0   : > { %v2558_v47 = vadd.f32 %v2557_v61, %v2544_v24  ;;  %16020 = vst [vmem:[#allocation328_spill] sm:$0xff] %v12254_v55  ;;  %v9828_v61 = vld [vmem:[%s10477_s12 + $0x9f4] sm:$0xf0]  ;;  %4713 = vmatpush.bf16.msrb.mxu0 %v12254_v55  ;;  %v8467_v24 = vld [vmem:[%s10477_s12 + $0x9e0] sm:$0xf] }
 0x1b1   : > { %v9986_v55 = vld [vmem:[%s10477_s12 + $0xee4] sm:$0xf0] }
 0x1be   : > { %v2569_v16 = vpop.f32.mrf.mxu0  ;;  %v2583_v9 = vpop.f32.mrf.mxu1 }
 0x1bf   : > { %v2570_v36 = vadd.f32 %v2569_v16, %v2556_v17  ;;  %v9810_v17 = vld [vmem:[%s10477_s12 + $0x964] sm:$0xf0] }
 0x1c1   : > { %v2584_v6 = vadd.f32 %v2583_v9, %v2570_v36  ;;  %v2750_v9 = vadd.f32 %v2749_v10, %v2748_v62  ;;  %v9826_v62 = vld [vmem:[%s10477_s12 + $0x9e4] sm:$0xf0] }
 0x1c6   : > { %v2571_v11 = vpop.f32.mrf.mxu0  ;;  %v2585_v56 = vpop.f32.mrf.mxu1 }
 0x1c7   : > { %v2597_v23 = vpop.f32.mrf.mxu2  ;;  %v2611_v31 = vpop.f32.mrf.mxu3  ;;  %v2572_v48 = vadd.f32 %v2571_v11, %v2558_v47  ;;  %v12257_v11 = vor.u32 %v9828_v61, %v8475_v42  ;;  %v8539_v47 = vld [vmem:[%s10477_s12 + $0xa70] sm:$0xf]  ;;  %v9808_v61 = vld [vmem:[%s10477_s12 + $0x954] sm:$0xf0] }
 0x1c8   : > { %v2598_v15 = vadd.f32 %v2597_v23, %v2584_v6  ;;  %v2733_v23 = vrot.slane %v2732_v37, 1 }
 0x1c9   : > { %v2586_v16 = vadd.f32 %v2585_v56, %v2572_v48  ;;  %16021 = vst [vmem:[#allocation329_spill] sm:$0xff] %v12257_v11  ;;  %4727 = vmatpush.bf16.msrb.mxu1 %v12257_v11  ;;  %v8403_v56 = vld [vmem:[%s10477_s12 + $0x960] sm:$0xf]  ;;  %v12269_v48 = vor.u32 %v9826_v62, %v8467_v24 }
 0x1ca   : > { %v2612_v2 = vadd.f32 %v2611_v31, %v2598_v15  ;;  %v12264_v35 = vor.u32 %v9810_v17, %v8403_v56  ;;  %v9844_v31 = vld [vmem:[%s10477_s12 + $0xa74] sm:$0xf0]  ;;  %v8603_v15 = vld [vmem:[%s10477_s12 + $0xaf0] sm:$0xf] }
 0x1cb   : > { %16023 = vst [vmem:[#allocation331_spill] sm:$0xff] %v12269_v48  ;;  %v12271_v10 = vor.u32 %v9844_v31, %v8539_v47  ;;  %v12276_v42 = vor.u32 %v9860_v44, %v8603_v15  ;;  %v8595_v15 = vld [vmem:[%s10477_s12 + $0xae0] sm:$0xf] }
 0x1cc   : > { %16022 = vst [vmem:[#allocation330_spill] sm:$0xff] %v12264_v35  ;;  %4714 = vmatpush.bf16.msrb.mxu0 %v12264_v35 }
 0x1cd   : > { %16024 = vst [vmem:[#allocation332_spill] sm:$0xff] %v12271_v10  ;;  %4728 = vmatpush.bf16.msrb.mxu1 %v12269_v48  ;;  %4741 = vmatpush.bf16.msrb.mxu2 %v12271_v10  ;;  %v8739_v10 = vld [vmem:[%s10477_s12 + $0xc00] sm:$0xf]  ;;  %v9894_v48 = vld [vmem:[%s10477_s12 + $0xc04] sm:$0xf0] }
 0x1ce   : > { %16025 = vst [vmem:[#allocation333_spill] sm:$0xff] %v12276_v42  ;;  %4755 = vmatpush.bf16.msrb.mxu3 %v12276_v42  ;;  %v9912_v42 = vld [vmem:[%s10477_s12 + $0xc94] sm:$0xf0] }
 0x1cf   : > { %v2599_v39 = vpop.f32.mrf.mxu2  ;;  %v2613_v50 = vpop.f32.mrf.mxu3 }
 0x1d0   : > { %v2600_v45 = vadd.f32 %v2599_v39, %v2586_v16  ;;  %v2751_v39 = vrot.slane %v2750_v9, 1  ;;  %v8395_v16 = vld [vmem:[%s10477_s12 + $0x950] sm:$0xf] }
 0x1d1   : > { %v12284_v24 = vor.u32 %v9808_v61, %v8395_v16  ;;  %v8451_v61 = vld [vmem:[%s10477_s12 + $0x9c0] sm:$0xf] }
 0x1d2   : > { %v2614_v53 = vadd.f32 %v2613_v50, %v2600_v45  ;;  %v9824_v50 = vld [vmem:[%s10477_s12 + $0x9d4] sm:$0xf0]  ;;  %v2752_v45 = vadd.f32 %v2751_v39, %v2750_v9  ;;  %v8387_v9 = vld [vmem:[%s10477_s12 + $0x940] sm:$0xf]  ;;  %v9806_v39 = vld [vmem:[%s10477_s12 + $0x944] sm:$0xf0] }
 0x1d3   : > { %16026 = vst [vmem:[#allocation334_spill] sm:$0xff] %v12284_v24  ;;  %4715 = vmatpush.bf16.msrb.mxu0 %v12284_v24  ;;  %v8691_v24 = vld [vmem:[%s10477_s12 + $0xba0] sm:$0xf] }
 0x1de   : > { %v2625_v30 = vpop.f32.mrf.mxu0  ;;  %v2639_v58 = vpop.f32.mrf.mxu1 }
 0x1df   : > { %v2626_v36 = vadd.f32 %v2625_v30, %v2612_v2  ;;  %v2734_v30 = vadd.f32 %v2733_v23, %v2732_v37  ;;  %v8459_v2 = vld [vmem:[%s10477_s12 + $0x9d0] sm:$0xf]  ;;  %v8531_v37 = vld [vmem:[%s10477_s12 + $0xa60] sm:$0xf]  ;;  %v9842_v23 = vld [vmem:[%s10477_s12 + $0xa64] sm:$0xf0] }
 0x1e0   : > { %v12289_v47 = vor.u32 %v9824_v50, %v8459_v2  ;;  %v12291_v31 = vor.u32 %v9842_v23, %v8531_v37  ;;  %v9840_v50 = vld [vmem:[%s10477_s12 + $0xa54] sm:$0xf0]  ;;  %v2762_v37 = vmul.f32 0.11111111, %v2752_v45 }
 0x1e1   : > { %v2640_v56 = vadd.f32 %v2639_v58, %v2626_v36  ;;  %v9858_v58 = vld [vmem:[%s10477_s12 + $0xae4] sm:$0xf0] }
 0x1e2   : > { %16027 = vst [vmem:[#allocation335_spill] sm:$0xff] %v12289_v47  ;;  %v12298_v16 = vor.u32 %v9858_v58, %v8595_v15  ;;  %4729 = vmatpush.bf16.msrb.mxu1 %v12289_v47  ;;  %4742 = vmatpush.bf16.msrb.mxu2 %v12291_v31 }
 0x1e3   : > { %16028 = vst [vmem:[#allocation336_spill] sm:$0xff] %v12291_v31  ;;  %v8587_v31 = vld [vmem:[%s10477_s12 + $0xad0] sm:$0xf] }
 0x1e4   : > { %16029 = vst [vmem:[#allocation337_spill] sm:$0xff] %v12298_v16  ;;  %4756 = vmatpush.bf16.msrb.mxu3 %v12298_v16 }
 0x1e6   : > { %v2627_v49 = vpop.f32.mrf.mxu0  ;;  %v2641_v6 = vpop.f32.mrf.mxu1 }
 0x1e7   : > { %v2653_v46 = vpop.f32.mrf.mxu2  ;;  %v12252_v59 = vpop.f32.mrf.mxu3  ;;  %v2628_v17 = vadd.f32 %v2627_v49, %v2614_v53  ;;  %v12295_v49 = vmul.f32 0.11111111, %v2734_v30  ;;  %v12306_v30 = vor.u32 %v9806_v39, %v8387_v9 }
 0x1e8   : > { %v2654_v36 = vadd.f32 %v2653_v46, %v2640_v56  ;;  %v9822_v46 = vld [vmem:[%s10477_s12 + $0x9c4] sm:$0xf0]  ;;  %v8523_v56 = vld [vmem:[%s10477_s12 + $0xa50] sm:$0xf] }
 0x1e9   : > { %v2642_v2 = vadd.f32 %v2641_v6, %v2628_v17  ;;  %16030 = vst [vmem:[#allocation338_spill] sm:$0xff] %v12306_v30  ;;  %v12311_v15 = vor.u32 %v9822_v46, %v8451_v61  ;;  %v12313_v58 = vor.u32 %v9840_v50, %v8523_v56  ;;  %v9856_v6 = vld [vmem:[%s10477_s12 + $0xad4] sm:$0xf0]  ;;  %v2764_v17 = vmul.f32 %v12295_v49, %v12295_v49  ;;  %v8379_v61 = vld [vmem:[%s10477_s12 + $0x930] sm:$0xf] }
 0x1ea   : > { %v2668_v9 = vadd.f32 %v12252_v59, %v2654_v36  ;;  %4716 = vmatpush.bf16.msrb.mxu0 %v12306_v30  ;;  %v12321_v45 = vor.u32 %v9856_v6, %v8587_v31  ;;  %v9804_v46 = vld [vmem:[%s10477_s12 + $0x934] sm:$0xf0]  ;;  %v8443_v56 = vld [vmem:[%s10477_s12 + $0x9b0] sm:$0xf]  ;;  %v9838_v36 = vld [vmem:[%s10477_s12 + $0xa44] sm:$0xf0] }
 0x1eb   : > { %16031 = vst [vmem:[#allocation339_spill] sm:$0xff] %v12311_v15  ;;  %4730 = vmatpush.bf16.msrb.mxu1 %v12311_v15  ;;  %4743 = vmatpush.bf16.msrb.mxu2 %v12313_v58  ;;  %v12329_v16 = vor.u32 %v9804_v46, %v8379_v61  ;;  %v9820_v59 = vld [vmem:[%s10477_s12 + $0x9b4] sm:$0xf0]  ;;  %v9854_v15 = vld [vmem:[%s10477_s12 + $0xac4] sm:$0xf0]  ;;  %v2766_v30 = vsub.f32 %v2762_v37, %v2764_v17 }
 0x1ec   : > { %16032 = vst [vmem:[#allocation340_spill] sm:$0xff] %v12313_v58  ;;  %4757 = vmatpush.bf16.msrb.mxu3 %v12321_v45  ;;  %v8579_v58 = vld [vmem:[%s10477_s12 + $0xac0] sm:$0xf]  ;;  %v9818_v17 = vld [vmem:[%s10477_s12 + $0x9a4] sm:$0xf0] }
 0x1ed   : > { %16033 = vst [vmem:[#allocation341_spill] sm:$0xff] %v12321_v45  ;;  %v12341_v46 = vor.u32 %v9854_v15, %v8579_v58  ;;  %v8507_v15 = vld [vmem:[%s10477_s12 + $0xa30] sm:$0xf]  ;;  %v9836_v58 = vld [vmem:[%s10477_s12 + $0xa34] sm:$0xf0] }
 0x1ee   : > { %16034 = vst [vmem:[#allocation342_spill] sm:$0xff] %v12329_v16  ;;  %4717 = vmatpush.bf16.msrb.mxu0 %v12329_v16  ;;  %v9852_v16 = vld [vmem:[%s10477_s12 + $0xab4] sm:$0xf0] }
 0x1ef   : > { %v2655_v62 = vpop.f32.mrf.mxu2  ;;  %v2669_v44 = vpop.f32.mrf.mxu3  ;;  %16037 = vst [vmem:[#allocation345_spill] sm:$0xff] %v12341_v46  ;;  %v9908_v45 = vld [vmem:[%s10477_s12 + $0xc74] sm:$0xf0] }
 0x1f0   : > { %v2656_v39 = vadd.f32 %v2655_v62, %v2642_v2  ;;  %v8515_v62 = vld [vmem:[%s10477_s12 + $0xa40] sm:$0xf]  ;;  %v12334_v2 = vor.u32 %v9820_v59, %v8443_v56  ;;  %v9802_v59 = vld [vmem:[%s10477_s12 + $0x924] sm:$0xf0]  ;;  %4758 = vmatpush.bf16.msrb.mxu3 %v12341_v46 }
 0x1f1   : > { %v12336_v6 = vor.u32 %v9838_v36, %v8515_v62  ;;  %v8371_v56 = vld [vmem:[%s10477_s12 + $0x920] sm:$0xf] }
 0x1f2   : > { %16035 = vst [vmem:[#allocation343_spill] sm:$0xff] %v12334_v2  ;;  %4731 = vmatpush.bf16.msrb.mxu1 %v12334_v2  ;;  %v8435_v62 = vld [vmem:[%s10477_s12 + $0x9a0] sm:$0xf]  ;;  %v12356_v2 = vor.u32 %v9836_v58, %v8507_v15 }
 0x1f3   : > { %16036 = vst [vmem:[#allocation344_spill] sm:$0xff] %v12336_v6  ;;  %4744 = vmatpush.bf16.msrb.mxu2 %v12336_v6  ;;  %v8571_v6 = vld [vmem:[%s10477_s12 + $0xab0] sm:$0xf] }
 0x1f4   : > { %16040 = vst [vmem:[#allocation348_spill] sm:$0xff] %v12356_v2 }
 0x1f7   : > { %4745 = vmatpush.bf16.msrb.mxu2 %v12356_v2  ;;  %v8563_v2 = vld [vmem:[%s10477_s12 + $0xaa0] sm:$0xf] }
 0x1fe   : > { %v2681_v53 = vpop.f32.mrf.mxu0  ;;  %v2695_v23 = vpop.f32.mrf.mxu1 }
 0x1ff   : > { %v2682_v50 = vadd.f32 %v2681_v53, %v2668_v9  ;;  %v2670_v53 = vadd.f32 %v2669_v44, %v2656_v39  ;;  %v12349_v44 = vor.u32 %v9802_v59, %v8371_v56  ;;  %v12354_v39 = vor.u32 %v9818_v17, %v8435_v62  ;;  %v8363_v56 = vld [vmem:[%s10477_s12 + $0x910] sm:$0xf]  ;;  %v9800_v59 = vld [vmem:[%s10477_s12 + $0x914] sm:$0xf0] }
 0x200   : > { %v8427_v62 = vld [vmem:[%s10477_s12 + $0x990] sm:$0xf]  ;;  %v12369_v15 = vor.u32 %v9800_v59, %v8363_v56 }
 0x201   : > { %v2696_v36 = vadd.f32 %v2695_v23, %v2682_v50  ;;  %16038 = vst [vmem:[#allocation346_spill] sm:$0xff] %v12349_v44  ;;  %v2768_v23 = vmax.f32 %v2766_v30, 0.0  ;;  %4718 = vmatpush.bf16.msrb.mxu0 %v12349_v44  ;;  %4732 = vmatpush.bf16.msrb.mxu1 %v12354_v39  ;;  %v9816_v30 = vld [vmem:[%s10477_s12 + $0x994] sm:$0xf0]  ;;  %v8547_v44 = vld [vmem:[%s10477_s12 + $0xa80] sm:$0xf] }
 0x202   : > { %16039 = vst [vmem:[#allocation347_spill] sm:$0xff] %v12354_v39  ;;  %v9850_v39 = vld [vmem:[%s10477_s12 + $0xaa4] sm:$0xf0] }
 0x203   : > { %16042 = vst [vmem:[#allocation350_spill] sm:$0xff] %v12369_v15  ;;  %v12385_v59 = vor.u32 %v9850_v39, %v8563_v2  ;;  %v9814_v2 = vld [vmem:[%s10477_s12 + $0x984] sm:$0xf0]  ;;  %v8491_v39 = vld [vmem:[%s10477_s12 + $0xa10] sm:$0xf] }
 0x205   : > { %v2709_v31 = vpop.f32.mrf.mxu2  ;;  %v2723_v9 = vpop.f32.mrf.mxu3  ;;  %4719 = vmatpush.bf16.msrb.mxu0 %v12369_v15  ;;  %16045 = vst [vmem:[#allocation353_spill] sm:$0xff] %v12385_v59 }
 0x206   : > { %v2683_v61 = vpop.f32.mrf.mxu0  ;;  %v2710_v50 = vadd.f32 %v2709_v31, %v2696_v36  ;;  %v8499_v31 = vld [vmem:[%s10477_s12 + $0xa20] sm:$0xf]  ;;  %v12374_v36 = vor.u32 %v9816_v30, %v8427_v62 }
 0x207   : > { %v2684_v37 = vadd.f32 %v2683_v61, %v2670_v53  ;;  %v12361_v53 = vor.u32 %v9852_v16, %v8571_v6  ;;  %v2697_v61 = vpop.f32.mrf.mxu1  ;;  %v9834_v16 = vld [vmem:[%s10477_s12 + $0xa24] sm:$0xf0]  ;;  %v8355_v30 = vld [vmem:[%s10477_s12 + $0x900] sm:$0xf] }
 0x208   : > { %16043 = vst [vmem:[#allocation351_spill] sm:$0xff] %v12374_v36  ;;  %v12376_v58 = vor.u32 %v9834_v16, %v8499_v31  ;;  %4733 = vmatpush.bf16.msrb.mxu1 %v12374_v36  ;;  %v9798_v31 = vld [vmem:[%s10477_s12 + $0x904] sm:$0xf0]  ;;  %v9848_v36 = vld [vmem:[%s10477_s12 + $0xa94] sm:$0xf0] }
 0x209   : > { %16041 = vst [vmem:[#allocation349_spill] sm:$0xff] %v12361_v53  ;;  %v2698_v17 = vadd.f32 %v2697_v61, %v2684_v37  ;;  %4759 = vmatpush.bf16.msrb.mxu3 %v12361_v53  ;;  %v12380_v37 = vadd.f32 1e-05, %v2768_v23  ;;  %v12382_v61 = vadd.f32 %v2723_v9, %v2710_v50  ;;  %v8419_v23 = vld [vmem:[%s10477_s12 + $0x980] sm:$0xf]  ;;  %v12395_v9 = vor.u32 %v9798_v31, %v8355_v30 }
 0x20a   : > { %16044 = vst [vmem:[#allocation352_spill] sm:$0xff] %v12376_v58  ;;  %4746 = vmatpush.bf16.msrb.mxu2 %v12376_v58  ;;  %v9832_v50 = vld [vmem:[%s10477_s12 + $0xa14] sm:$0xf0]  ;;  %v8555_v58 = vld [vmem:[%s10477_s12 + $0xa90] sm:$0xf] }
 0x20b   : > { %16046 = vst [vmem:[#allocation354_spill] sm:$0xff] %v12395_v9  ;;  %4720 = vmatpush.bf16.msrb.mxu0 %v12395_v9  ;;  %v8483_v53 = vld [vmem:[%s10477_s12 + $0xa00] sm:$0xf]  ;;  %v9830_v9 = vld [vmem:[%s10477_s12 + $0xa04] sm:$0xf0]  ;;  %10161 = vrsqrt.f32 %v12380_v37  ;;  %vm2782_vm14 = vweird.f32 %v12380_v37 }
 0x20c   : > { %v12429_v46 = vor.u32 %v9830_v9, %v8483_v53 }
 0x20d   : > { %v2711_v6 = vpop.f32.mrf.mxu2  ;;  %v2725_v62 = vpop.f32.mrf.mxu3  ;;  %4760 = vmatpush.bf16.msrb.mxu3 %v12385_v59 }
 0x20e   : > { %v2712_v56 = vadd.f32 %v2711_v6, %v2698_v17  ;;  %v12400_v17 = vor.u32 %v9814_v2, %v8419_v23  ;;  %v12402_v6 = vor.u32 %v9832_v50, %v8491_v39  ;;  %v12414_v23 = vor.u32 %v9848_v36, %v8555_v58  ;;  %v9876_v2 = vld [vmem:[%s10477_s12 + $0xb74] sm:$0xf0]  ;;  %v8731_v39 = vld [vmem:[%s10477_s12 + $0xbf0] sm:$0xf]  ;;  %16052 = vst [vmem:[#allocation360_spill] sm:$0xff] %v12429_v46 }
 0x20f   : > { %v9892_v50 = vld [vmem:[%s10477_s12 + $0xbf4] sm:$0xf0] }
 0x210   : > { %v12392_v16 = vadd.f32 %v2725_v62, %v2712_v56  ;;  %16047 = vst [vmem:[#allocation355_spill] sm:$0xff] %v12400_v17  ;;  %v8667_v56 = vld [vmem:[%s10477_s12 + $0xb70] sm:$0xf]  ;;  %v2743_v62 = vmul.f32 %v12382_v61, %v12382_v61  ;;  %4734 = vmatpush.bf16.msrb.mxu1 %v12400_v17  ;;  %4747 = vmatpush.bf16.msrb.mxu2 %v12402_v6  ;;  %v9846_v17 = vld [vmem:[%s10477_s12 + $0xa84] sm:$0xf0] }
 0x211   : > { %16048 = vst [vmem:[#allocation356_spill] sm:$0xff] %v12402_v6  ;;  %v12421_v59 = vor.u32 %v9876_v2, %v8667_v56  ;;  %v12423_v15 = vor.u32 %v9892_v50, %v8731_v39  ;;  %4761 = vmatpush.bf16.msrb.mxu3 %v12414_v23  ;;  %v8659_v6 = vld [vmem:[%s10477_s12 + $0xb60] sm:$0xf]  ;;  %v12436_v56 = vor.u32 %v9846_v17, %v8547_v44  ;;  %v9874_v2 = vld [vmem:[%s10477_s12 + $0xb64] sm:$0xf0] }
 0x212   : > { %v2735_v30 = vadd.f32 %v12392_v16, %v12382_v61  ;;  %v2745_v31 = vmul.f32 %v12392_v16, %v12392_v16  ;;  %16049 = vst [vmem:[#allocation357_spill] sm:$0xff] %v12414_v23  ;;  %v12441_v9 = vor.u32 %v9874_v2, %v8659_v6  ;;  %v8795_v23 = vld [vmem:[%s10477_s12 + $0xc70] sm:$0xf] }
 0x213   : > { %16050 = vst [vmem:[#allocation358_spill] sm:$0xff] %v12421_v59  ;;  %4769 = vmatpush.bf16.msra.mxu0 %v12421_v59  ;;  %v12448_v44 = vor.u32 %v9908_v45, %v8795_v23  ;;  %v8859_v17 = vld [vmem:[%s10477_s12 + $0xcf0] sm:$0xf]  ;;  %v9888_v23 = vld [vmem:[%s10477_s12 + $0xbd4] sm:$0xf0] }
 0x214   : > { %16051 = vst [vmem:[#allocation359_spill] sm:$0xff] %v12423_v15  ;;  %v2736_v36 = vrot.slane %v2735_v30, 4  ;;  %v2753_v58 = vadd.f32 %v2745_v31, %v2743_v62  ;;  %4783 = vmatpush.bf16.msra.mxu1 %v12423_v15  ;;  %v8723_v62 = vld [vmem:[%s10477_s12 + $0xbe0] sm:$0xf]  ;;  %v9890_v31 = vld [vmem:[%s10477_s12 + $0xbe4] sm:$0xf0]  ;;  %4748 = vmatpush.bf16.msrb.mxu2 %v12429_v46 }
 0x215   : > { %16053 = vst [vmem:[#allocation361_spill] sm:$0xff] %v12436_v56  ;;  %v12443_v50 = vor.u32 %v9890_v31, %v8723_v62  ;;  %v9924_v15 = vld [vmem:[%s10477_s12 + $0xcf4] sm:$0xf0]  ;;  %4762 = vmatpush.bf16.msrb.mxu3 %v12436_v56  ;;  %v8715_v45 = vld [vmem:[%s10477_s12 + $0xbd0] sm:$0xf] }
 0x216   : > { %v2737_v39 = vadd.f32 %v2736_v36, %v2735_v30  ;;  %v2754_v53 = vrot.slane %v2753_v58, 4  ;;  %16054 = vst [vmem:[#allocation362_spill] sm:$0xff] %v12441_v9  ;;  %v12453_v6 = vor.u32 %v9924_v15, %v8859_v17  ;;  %v8651_v30 = vld [vmem:[%s10477_s12 + $0xb50] sm:$0xf]  ;;  %v9872_v36 = vld [vmem:[%s10477_s12 + $0xb54] sm:$0xf0]  ;;  %v12466_v15 = vor.u32 %v9888_v23, %v8715_v45 }
 0x217   : > { %16055 = vst [vmem:[#allocation363_spill] sm:$0xff] %v12443_v50  ;;  %4770 = vmatpush.bf16.msra.mxu0 %v12441_v9  ;;  %v12459_v2 = vor.u32 %v9872_v36, %v8651_v30  ;;  %v8851_v17 = vld [vmem:[%s10477_s12 + $0xce0] sm:$0xf]  ;;  %v12470_v30 = vpop.eup %10161 }
 0x218   : > { %16056 = vst [vmem:[#allocation364_spill] sm:$0xff] %v12448_v44  ;;  %v2738_v59 = vrot.slane %v2737_v39, 2  ;;  %v2755_v47 = vadd.f32 %v2754_v53, %v2753_v58  ;;  %4784 = vmatpush.bf16.msra.mxu1 %v12443_v50  ;;  %v8787_v58 = vld [vmem:[%s10477_s12 + $0xc60] sm:$0xf]  ;;  %4797 = vmatpush.bf16.msra.mxu2 %v12448_v44  ;;  %v9906_v53 = vld [vmem:[%s10477_s12 + $0xc64] sm:$0xf0]  ;;  %vm2783_vm13 = vweird.f32 %v12470_v30 }
 0x219   : > { %16057 = vst [vmem:[#allocation365_spill] sm:$0xff] %v12453_v6  ;;  %4811 = vmatpush.bf16.msra.mxu3 %v12453_v6  ;;  %v12472_v36 = vor.u32 %v9906_v53, %v8787_v58  ;;  %v9922_v50 = vld [vmem:[%s10477_s12 + $0xce4] sm:$0xf0]  ;;  %v8707_v23 = vld [vmem:[%s10477_s12 + $0xbc0] sm:$0xf]  ;;  %vm2784_vm15 = vmor %vm2782_vm14, %vm2783_vm13 }
 0x21a   : > { %16058 = vst [vmem:[#allocation366_spill] sm:$0xff] %v12459_v2  ;;  %v2739_v62 = vadd.f32 %v2738_v59, %v2737_v39  ;;  %v2756_v31 = vrot.slane %v2755_v47, 2  ;;  %v12475_v59 = vor.u32 %v9922_v50, %v8851_v17  ;;  %v8643_v39 = vld [vmem:[%s10477_s12 + $0xb40] sm:$0xf]  ;;  %v9870_v44 = vld [vmem:[%s10477_s12 + $0xb44] sm:$0xf0] }
 0x21b   : > { %16059 = vst [vmem:[#allocation367_spill] sm:$0xff] %v12466_v15  ;;  %4771 = vmatpush.bf16.msra.mxu0 %v12459_v2  ;;  %v12481_v45 = vor.u32 %v9870_v44, %v8643_v39  ;;  %v9886_v58 = vld [vmem:[%s10477_s12 + $0xbc4] sm:$0xf0]  ;;  %v8779_v53 = vld [vmem:[%s10477_s12 + $0xc50] sm:$0xf] }
 0x21c   : > { %16060 = vst [vmem:[#allocation368_spill] sm:$0xff] %v12472_v36  ;;  %v2740_v9 = vrot.slane %v2739_v62, 1  ;;  %v2757_v56 = vadd.f32 %v2756_v31, %v2755_v47  ;;  %4785 = vmatpush.bf16.msra.mxu1 %v12466_v15  ;;  %v2777_v47 = vmul.f32 %v12470_v30, %v12380_v37  ;;  %4798 = vmatpush.bf16.msra.mxu2 %v12472_v36  ;;  %v9904_v44 = vld [vmem:[%s10477_s12 + $0xc54] sm:$0xf0]  ;;  %v8843_v39 = vld [vmem:[%s10477_s12 + $0xcd0] sm:$0xf] }
 0x21d   : > { %16061 = vst [vmem:[#allocation369_spill] sm:$0xff] %v12475_v59  ;;  %4812 = vmatpush.bf16.msra.mxu3 %v12475_v59  ;;  %v12490_v17 = vor.u32 %v9886_v58, %v8707_v23  ;;  %v12494_v15 = vor.u32 %v9904_v44, %v8779_v53  ;;  %v9920_v2 = vld [vmem:[%s10477_s12 + $0xcd4] sm:$0xf0]  ;;  %v8699_v58 = vld [vmem:[%s10477_s12 + $0xbb0] sm:$0xf] }
 0x21e   : > { %16062 = vst [vmem:[#allocation370_spill] sm:$0xff] %v12481_v45  ;;  %v2741_v50 = vadd.f32 %v2740_v9, %v2739_v62  ;;  %v2758_v31 = vrot.slane %v2757_v56, 1  ;;  %v12499_v9 = vor.u32 %v9920_v2, %v8843_v39  ;;  %v8635_v62 = vld [vmem:[%s10477_s12 + $0xb30] sm:$0xf]  ;;  %v9868_v36 = vld [vmem:[%s10477_s12 + $0xb34] sm:$0xf0] }
 0x21f   : > { %16063 = vst [vmem:[#allocation371_spill] sm:$0xff] %v12490_v17  ;;  %4772 = vmatpush.bf16.msra.mxu0 %v12481_v45  ;;  %v12505_v23 = vor.u32 %v9868_v36, %v8635_v62  ;;  %v9884_v53 = vld [vmem:[%s10477_s12 + $0xbb4] sm:$0xf0]  ;;  %v9902_v36 = vld [vmem:[%s10477_s12 + $0xc44] sm:$0xf0] }
 0x220   : > { %16064 = vst [vmem:[#allocation372_spill] sm:$0xff] %v12494_v15  ;;  %v2759_v6 = vadd.f32 %v2758_v31, %v2757_v56  ;;  %v12497_v46 = vmul.f32 0.11111111, %v2741_v50  ;;  %4786 = vmatpush.bf16.msra.mxu1 %v12490_v17  ;;  %v8771_v56 = vld [vmem:[%s10477_s12 + $0xc40] sm:$0xf]  ;;  %v2778_v50 = vmul.f32 %v12470_v30, %v2777_v47  ;;  %4799 = vmatpush.bf16.msra.mxu2 %v12494_v15 }
 0x221   : > { %16065 = vst [vmem:[#allocation373_spill] sm:$0xff] %v12499_v9  ;;  %4813 = vmatpush.bf16.msra.mxu3 %v12499_v9  ;;  %v8835_v44 = vld [vmem:[%s10477_s12 + $0xcc0] sm:$0xf]  ;;  %v12517_v39 = vor.u32 %v9884_v53, %v8699_v58  ;;  %v12519_v62 = vor.u32 %v9902_v36, %v8771_v56  ;;  %v9918_v17 = vld [vmem:[%s10477_s12 + $0xcc4] sm:$0xf0] }
 0x222   : > { %16066 = vst [vmem:[#allocation374_spill] sm:$0xff] %v12505_v23  ;;  %v2763_v31 = vmul.f32 0.11111111, %v2759_v6  ;;  %v2765_v2 = vmul.f32 %v12497_v46, %v12497_v46  ;;  %v12522_v47 = vor.u32 %v9918_v17, %v8835_v44  ;;  %v8627_v6 = vld [vmem:[%s10477_s12 + $0xb20] sm:$0xf] }
 0x223   : > { %16067 = vst [vmem:[#allocation375_spill] sm:$0xff] %v12517_v39  ;;  %v9866_v59 = vld [vmem:[%s10477_s12 + $0xb24] sm:$0xf0]  ;;  %4773 = vmatpush.bf16.msra.mxu0 %v12505_v23  ;;  %v8763_v56 = vld [vmem:[%s10477_s12 + $0xc30] sm:$0xf] }
 0x224   : > { %16068 = vst [vmem:[#allocation376_spill] sm:$0xff] %v12519_v62  ;;  %v2767_v45 = vsub.f32 %v2763_v31, %v2765_v2  ;;  %4787 = vmatpush.bf16.msra.mxu1 %v12517_v39  ;;  %v12529_v58 = vor.u32 %v9866_v59, %v8627_v6  ;;  %v9882_v53 = vld [vmem:[%s10477_s12 + $0xba4] sm:$0xf0]  ;;  %v9900_v17 = vld [vmem:[%s10477_s12 + $0xc34] sm:$0xf0]  ;;  %v2779_v31 = vmul.f32 0.5, %v2778_v50  ;;  %4800 = vmatpush.bf16.msra.mxu2 %v12519_v62 }
 0x225   : > { %16069 = vst [vmem:[#allocation377_spill] sm:$0xff] %v12522_v47  ;;  %4814 = vmatpush.bf16.msra.mxu3 %v12522_v47  ;;  %v12536_v36 = vor.u32 %v9882_v53, %v8691_v24  ;;  %v12538_v44 = vor.u32 %v9900_v17, %v8763_v56  ;;  %v8827_v59 = vld [vmem:[%s10477_s12 + $0xcb0] sm:$0xf]  ;;  %v9916_v6 = vld [vmem:[%s10477_s12 + $0xcb4] sm:$0xf0] }
 0x226   : > { %16070 = vst [vmem:[#allocation378_spill] sm:$0xff] %v12529_v58  ;;  %v2769_v2 = vmax.f32 %v2767_v45, 0.0  ;;  %v12542_v39 = vor.u32 %v9916_v6, %v8827_v59  ;;  %v8619_v23 = vld [vmem:[%s10477_s12 + $0xb10] sm:$0xf]  ;;  %v9864_v9 = vld [vmem:[%s10477_s12 + $0xb14] sm:$0xf0] }
 0x227   : > { %16071 = vst [vmem:[#allocation379_spill] sm:$0xff] %v12536_v36  ;;  %v8683_v15 = vld [vmem:[%s10477_s12 + $0xb90] sm:$0xf]  ;;  %v9880_v50 = vld [vmem:[%s10477_s12 + $0xb94] sm:$0xf0]  ;;  %4774 = vmatpush.bf16.msra.mxu0 %v12529_v58  ;;  %v12553_v24 = vor.u32 %v9864_v9, %v8619_v23 }
 0x228   : > { %16072 = vst [vmem:[#allocation380_spill] sm:$0xff] %v12538_v44  ;;  %v12547_v45 = vadd.f32 1e-05, %v2769_v2  ;;  %v8755_v47 = vld [vmem:[%s10477_s12 + $0xc20] sm:$0xf]  ;;  %4788 = vmatpush.bf16.msra.mxu1 %v12536_v36  ;;  %v12555_v53 = vor.u32 %v9880_v50, %v8683_v15  ;;  %4801 = vmatpush.bf16.msra.mxu2 %v12538_v44 }
 0x229   : > { %16073 = vst [vmem:[#allocation381_spill] sm:$0xff] %v12542_v39  ;;  %v9898_v56 = vld [vmem:[%s10477_s12 + $0xc24] sm:$0xf0]  ;;  %v8819_v17 = vld [vmem:[%s10477_s12 + $0xca0] sm:$0xf]  ;;  %4815 = vmatpush.bf16.msra.mxu3 %v12542_v39  ;;  %v2780_v39 = vsub.f32 1.5, %v2779_v31 }
 0x22a   : > { %16074 = vst [vmem:[#allocation382_spill] sm:$0xff] %v12553_v24  ;;  %v9914_v2 = vld [vmem:[%s10477_s12 + $0xca4] sm:$0xf0]  ;;  %10163 = vrsqrt.f32 %v12547_v45  ;;  %v12563_v59 = vor.u32 %v9898_v56, %v8755_v47  ;;  %v8611_v36 = vld [vmem:[%s10477_s12 + $0xb00] sm:$0xf]  ;;  %vm2792_vm4 = vweird.f32 %v12547_v45 }
 0x22b   : > { %16075 = vst [vmem:[#allocation383_spill] sm:$0xff] %v12555_v53  ;;  %v12565_v6 = vor.u32 %v9914_v2, %v8819_v17  ;;  %v9862_v9 = vld [vmem:[%s10477_s12 + $0xb04] sm:$0xf0]  ;;  %v8675_v23 = vld [vmem:[%s10477_s12 + $0xb80] sm:$0xf]  ;;  %4775 = vmatpush.bf16.msra.mxu0 %v12553_v24 }
 0x22c   : > { %16076 = vst [vmem:[#allocation384_spill] sm:$0xff] %v12563_v59  ;;  %v9878_v15 = vld [vmem:[%s10477_s12 + $0xb84] sm:$0xf0]  ;;  %v8747_v50 = vld [vmem:[%s10477_s12 + $0xc10] sm:$0xf]  ;;  %4789 = vmatpush.bf16.msra.mxu1 %v12555_v53  ;;  %v12577_v47 = vor.u32 %v9862_v9, %v8611_v36  ;;  %4802 = vmatpush.bf16.msra.mxu2 %v12563_v59 }
 0x22d   : > { %16077 = vst [vmem:[#allocation385_spill] sm:$0xff] %v12565_v6  ;;  %v9896_v58 = vld [vmem:[%s10477_s12 + $0xc14] sm:$0xf0]  ;;  %v8811_v62 = vld [vmem:[%s10477_s12 + $0xc90] sm:$0xf]  ;;  %v12579_v56 = vor.u32 %v9878_v15, %v8675_v23  ;;  %4816 = vmatpush.bf16.msra.mxu3 %v12565_v6 }
 0x22e   : > { %16078 = vst [vmem:[#allocation386_spill] sm:$0xff] %v12577_v47  ;;  %v12583_v17 = vor.u32 %v9896_v58, %v8747_v50  ;;  %v12585_v2 = vor.u32 %v9912_v42, %v8811_v62  ;;  %v8803_v24 = vld [vmem:[%s10477_s12 + $0xc80] sm:$0xf]  ;;  %v9910_v36 = vld [vmem:[%s10477_s12 + $0xc84] sm:$0xf0]  ;;  %v12596_v58 = vor.u32 %v9894_v48, %v8739_v10  ;;  %v2781_v62 = vmul.f32 %v12470_v30, %v2780_v39 }
 0x22f   : > { %16079 = vst [vmem:[#allocation387_spill] sm:$0xff] %v12579_v56  ;;  %4776 = vmatpush.bf16.msra.mxu0 %v12577_v47  ;;  %v12598_v42 = vor.u32 %v9910_v36, %v8803_v24  ;;  %v2770_v48 = vsub.f32 %v12227_v60, %v12295_v49  ;;  %v2772_v10 = vsub.f32 %v12241_v27, %v12295_v49  ;;  %v9051_v6 = vld [vmem:[%s10477_s12 + $0xe70] sm:$0xf]  ;;  %v9972_v59 = vld [vmem:[%s10477_s12 + $0xe74] sm:$0xf0] }
 0x230   : > { %16080 = vst [vmem:[#allocation388_spill] sm:$0xff] %v12583_v17  ;;  %v10164_v44 = vpop.eup %10163  ;;  %4790 = vmatpush.bf16.msra.mxu1 %v12579_v56  ;;  %4803 = vmatpush.bf16.msra.mxu2 %v12583_v17  ;;  %v2785_v23 = vsel %vm2784_vm15, %v12470_v30, %v2781_v62  ;;  %v2771_v24 = vsub.f32 %v12382_v61, %v12497_v46  ;;  %v9938_v17 = vld [vmem:[%s10477_s12 + $0xd64] sm:$0xf0] }
 0x231   : > { %16081 = vst [vmem:[#allocation389_spill] sm:$0xff] %v12585_v2  ;;  %v2787_v35 = vmul.f32 %v10164_v44, %v12547_v45  ;;  %4817 = vmatpush.bf16.msra.mxu3 %v12585_v2  ;;  %vm2793_vm1 = vweird.f32 %v10164_v44  ;;  %v2798_v37 = vmul.f32 %v2785_v23, %v2772_v10  ;;  %v2773_v50 = vsub.f32 %v12392_v16, %v12497_v46  ;;  %v8915_v2 = vld [vmem:[%s10477_s12 + $0xd60] sm:$0xf] }
 0x232   : > { %16082 = vst [vmem:[#allocation390_spill] sm:$0xff] %v12596_v58  ;;  %vm2794_vm6 = vmor %vm2792_vm4, %vm2793_vm1 }
 0x233   : > { %16083 = vst [vmem:[#allocation391_spill] sm:$0xff] %v12598_v42  ;;  %v2788_v31 = vmul.f32 %v10164_v44, %v2787_v35  ;;  %v2796_v35 = vmul.f32 %v2785_v23, %v2770_v48  ;;  %v2802_v60 = vmax.f32 %v2798_v37, 0.0  ;;  %v9940_v37 = vld [vmem:[%s10477_s12 + $0xd74] sm:$0xf0] }
 0x234   : > { %4804 = vmatpush.bf16.msra.mxu2 %v12596_v58 }
 0x235   : > { %v2789_v9 = vmul.f32 0.5, %v2788_v31  ;;  %4818 = vmatpush.bf16.msra.mxu3 %v12598_v42  ;;  %v2800_v31 = vmax.f32 %v2796_v35, 0.0  ;;  %v8923_v35 = vld [vmem:[%s10477_s12 + $0xd70] sm:$0xf] }
 0x237   : > { %v2790_v15 = vsub.f32 1.5, %v2789_v9 }
 0x239   : > { %v2791_v39 = vmul.f32 %v10164_v44, %v2790_v15 }
 0x23b   : > { %v2795_v30 = vsel %vm2794_vm6, %v10164_v44, %v2791_v39 }
 0x23c   : > { %v2797_v36 = vmul.f32 %v2795_v30, %v2771_v24  ;;  %v2799_v62 = vmul.f32 %v2795_v30, %v2773_v50 }
 0x23e   : > { %v2801_v27 = vmax.f32 %v2797_v36, 0.0  ;;  %v2803_v49 = vmax.f32 %v2799_v62, 0.0 }
 0x240   : > { %v2804_v9 = vpack.c.bf16 %v2801_v27, %v2800_v31  ;;  %v2805_v45 = vpack.c.bf16 %v2803_v49, %v2802_v60 }
 0x242   : > { %v2808_v15 = vunpack.c.l.b16 %v2804_v9  ;;  %v2809_v23 = vunpack.c.h.b16 %v2804_v9  ;;  %v2810_v48 = vunpack.c.l.b16 %v2805_v45  ;;  %v2811_v10 = vunpack.c.h.b16 %v2805_v45  ;;  %v8987_v45 = vld [vmem:[%s10477_s12 + $0xdf0] sm:$0xf] }
 0x244   : > { %v12615_v61 = vpack.c.b16 %v2810_v48, %v2808_v15  ;;  %v12617_v42 = vpack.c.b16 %v2811_v10, %v2809_v23  ;;  %v9956_v15 = vld [vmem:[%s10477_s12 + $0xdf4] sm:$0xf0]  ;;  %v12641_v23 = vor.u32 %v9940_v37, %v8923_v35 }
 0x245   : > { %v12651_v35 = vor.u32 %v9956_v15, %v8987_v45  ;;  %v12666_v15 = vor.u32 %v9938_v17, %v8915_v2  ;;  %v12679_v2 = vor.u32 %v9972_v59, %v9051_v6 }
 0x246   : > { %v2814_v46 = vrot.slane %v12615_v61, 6  ;;  %v2815_v16 = vrot.slane %v12617_v42, 6  ;;  %v12622_v44 = vshrl.u32 %v12615_v61, 16  ;;  %v12625_v39 = vshll.u32 %v12615_v61, 16  ;;  %16084 = vst [vmem:[#allocation392_spill] sm:$0xff] %v12641_v23 }
 0x247   : > { %v12630_v24 = vshrl.u32 %v12617_v42, 16  ;;  %v12633_v50 = vshll.u32 %v12617_v42, 16  ;;  %16085 = vst [vmem:[#allocation393_spill] sm:$0xff] %v12651_v35  ;;  %v2842_v56 = vrot.slane %v12615_v61, 7 }
 0x248   : > { %v2817_v30 = vsel %vm275_vm0, 0, %v2814_v46  ;;  %v2820_v36 = vsel %vm275_vm0, 0, %v2815_v16  ;;  %v2825_v62 = vrot.slane %v12622_v44, 6  ;;  %v2828_v31 = vrot.slane %v12625_v39, 7  ;;  %16086 = vst [vmem:[#allocation394_spill] sm:$0xff] %v12666_v15 }
 0x249   : > { %v2894_v60 = vunpack.c.l.bf16 %v2817_v30  ;;  %v2912_v27 = vunpack.c.h.bf16 %v2817_v30  ;;  %v2895_v49 = vunpack.c.l.bf16 %v2820_v36  ;;  %v2913_v9 = vunpack.c.h.bf16 %v2820_v36  ;;  %16088 = vst [vmem:[#allocation396_spill] sm:$0xff] %v12679_v2 }
 0x24a   : > { %v2829_v48 = vor.u32 %v2828_v31, %v2825_v62  ;;  %v2833_v10 = vrot.slane %v12630_v24, 6  ;;  %v2836_v46 = vrot.slane %v12633_v50, 7  ;;  %v8979_v31 = vld [vmem:[%s10477_s12 + $0xde0] sm:$0xf]  ;;  %v2852_v59 = vrot.slane %v12630_v24, 7 }
 0x24b   : > { %v2930_v16 = vmul.f32 %v2894_v60, %v10714_v1  ;;  %v2948_v58 = vmul.f32 %v2912_v27, %v10716_v40  ;;  %v2931_v30 = vmul.f32 %v2895_v49, %v10728_v3  ;;  %v2949_v36 = vmul.f32 %v2913_v9, %v10730_v7  ;;  %v9954_v9 = vld [vmem:[%s10477_s12 + $0xde4] sm:$0xf0] }
 0x24c   : > { %v2840_v37 = vsel %vm10776_vm3, 0, %v2829_v48  ;;  %v2837_v62 = vor.u32 %v2836_v46, %v2833_v10  ;;  %v2843_v48 = vrot.slane %v12617_v42, 7  ;;  %v12677_v17 = vor.u32 %v9954_v9, %v8979_v31  ;;  %v9952_v31 = vld [vmem:[%s10477_s12 + $0xdd4] sm:$0xf0]  ;;  %v9970_v9 = vld [vmem:[%s10477_s12 + $0xe64] sm:$0xf0] }
 0x24d   : > { %v12657_v60 = vpack.c.bf16 %v2948_v58, %v2930_v16  ;;  %v12659_v27 = vpack.c.bf16 %v2949_v36, %v2931_v30  ;;  %v2896_v49 = vunpack.c.l.bf16 %v2840_v37  ;;  %v2914_v47 = vunpack.c.h.bf16 %v2840_v37  ;;  %v9115_v30 = vld [vmem:[%s10477_s12 + $0xef0] sm:$0xf]  ;;  %v9988_v36 = vld [vmem:[%s10477_s12 + $0xef4] sm:$0xf0] }
 0x24e   : > { %v2841_v45 = vsel %vm10776_vm3, 0, %v2837_v62  ;;  %16087 = vst [vmem:[#allocation395_spill] sm:$0xff] %v12677_v17  ;;  %v8907_v37 = vld [vmem:[%s10477_s12 + $0xd50] sm:$0xf]  ;;  %v9936_v62 = vld [vmem:[%s10477_s12 + $0xd54] sm:$0xf0]  ;;  %v12692_v6 = vor.u32 %v9988_v36, %v9115_v30 }
 0x24f   : > { %4721 = vmatmul.bf16.vlgmr.msrb.gmra.mxu0 %v12657_v60  ;;  %4735 = vmatmul.bf16.vlgmr.msrb.gmra.mxu1 %v12659_v27  ;;  %v2932_v58 = vmul.f32 %v2896_v49, %v10724_v51  ;;  %v2950_v10 = vmul.f32 %v2914_v47, %v10733_v12  ;;  %v2897_v46 = vunpack.c.l.bf16 %v2841_v45  ;;  %v2915_v16 = vunpack.c.h.bf16 %v2841_v45  ;;  %v8963_v36 = vld [vmem:[%s10477_s12 + $0xdc0] sm:$0xf] }
 0x250   : > { %4825 = vmatpush.bf16.msrb.mxu0 %v12641_v23  ;;  %4839 = vmatpush.bf16.msrb.mxu1 %v12651_v35  ;;  %v2845_v47 = vsel %vm308_vm2, 0, %v2842_v56  ;;  %v2850_v49 = vrot.slane %v12622_v44, 7  ;;  %v8971_v35 = vld [vmem:[%s10477_s12 + $0xdd0] sm:$0xf]  ;;  %16089 = vst [vmem:[#allocation397_spill] sm:$0xff] %v12692_v6  ;;  %v2848_v11 = vsel %vm308_vm2, 0, %v2843_v48 }
 0x251   : > { %v12685_v45 = vpack.c.bf16 %v2950_v10, %v2932_v58  ;;  %v2933_v23 = vmul.f32 %v2897_v46, %v10739_v32  ;;  %v2951_v53 = vmul.f32 %v2915_v16, %v10741_v34  ;;  %v9043_v56 = vld [vmem:[%s10477_s12 + $0xe60] sm:$0xf]  ;;  %v12701_v46 = vor.u32 %v9936_v62, %v8907_v37  ;;  %v9934_v48 = vld [vmem:[%s10477_s12 + $0xd44] sm:$0xf0]  ;;  %v9035_v62 = vld [vmem:[%s10477_s12 + $0xe50] sm:$0xf] }
 0x252   : > { %v2851_v58 = vor.u32 %v2850_v49, %v12625_v39  ;;  %v9107_v16 = vld [vmem:[%s10477_s12 + $0xee0] sm:$0xf]  ;;  %v12708_v30 = vor.u32 %v9952_v31, %v8971_v35  ;;  %v9950_v49 = vld [vmem:[%s10477_s12 + $0xdc4] sm:$0xf0]  ;;  %v2898_v52 = vunpack.c.l.bf16 %v2845_v47  ;;  %v12716_v37 = vor.u32 %v9970_v9, %v9043_v56  ;;  %v9099_v56 = vld [vmem:[%s10477_s12 + $0xed0] sm:$0xf] }
 0x253   : > { %4749 = vmatmul.bf16.vlgmr.msrb.gmra.mxu2 %v12685_v45  ;;  %v12699_v10 = vpack.c.bf16 %v2951_v53, %v2933_v23  ;;  %16090 = vst [vmem:[#allocation398_spill] sm:$0xff] %v12701_v46  ;;  %v2916_v53 = vunpack.c.h.bf16 %v2845_v47  ;;  %v2853_v23 = vor.u32 %v2852_v59, %v12633_v50  ;;  %v2899_v35 = vunpack.c.l.bf16 %v2848_v11  ;;  %v9984_v9 = vld [vmem:[%s10477_s12 + $0xed4] sm:$0xf0] }
 0x254   : > { %4826 = vmatpush.bf16.msrb.mxu0 %v12666_v15  ;;  %4840 = vmatpush.bf16.msrb.mxu1 %v12677_v17  ;;  %16091 = vst [vmem:[#allocation399_spill] sm:$0xff] %v12708_v30  ;;  %v9968_v17 = vld [vmem:[%s10477_s12 + $0xe54] sm:$0xf0]  ;;  %v2917_v31 = vunpack.c.h.bf16 %v2848_v11  ;;  %v12721_v15 = vor.u32 %v9986_v55, %v9107_v16  ;;  %v2856_v47 = vsel %vm10884_vm5, 0, %v2851_v58  ;;  %v12725_v59 = vor.u32 %v9934_v48, %v8899_v20  ;;  %v16097_v55 = vld [vmem:[#allocation77_spill] sm:$0xff]  ;;  %v16098_v58 = vld [vmem:[#allocation78_spill] sm:$0xff] }
 0x255   : > { %4763 = vmatmul.bf16.vlgmr.msrb.gmra.mxu3 %v12699_v10  ;;  %4853 = vmatpush.bf16.msrb.mxu2 %v12679_v2  ;;  %16092 = vst [vmem:[#allocation400_spill] sm:$0xff] %v12716_v37  ;;  %v12727_v63 = vor.u32 %v9950_v49, %v8963_v36  ;;  %v8891_v2 = vld [vmem:[%s10477_s12 + $0xd30] sm:$0xf]  ;;  %v12734_v11 = vor.u32 %v9968_v17, %v9035_v62  ;;  %v9932_v48 = vld [vmem:[%s10477_s12 + $0xd34] sm:$0xf0]  ;;  %v2857_v49 = vsel %vm10884_vm5, 0, %v2853_v23  ;;  %v2900_v18 = vunpack.c.l.bf16 %v2856_v47 }
 0x256   : > { %4867 = vmatpush.bf16.msrb.mxu3 %v12692_v6  ;;  %16093 = vst [vmem:[#allocation401_spill] sm:$0xff] %v12721_v15  ;;  %v2934_v16 = vmul.f32 %v2898_v52, %v16097_v55  ;;  %v2952_v20 = vmul.f32 %v2916_v53, %v16098_v58  ;;  %v8955_v36 = vld [vmem:[%s10477_s12 + $0xdb0] sm:$0xf]  ;;  %v9027_v17 = vld [vmem:[%s10477_s12 + $0xe40] sm:$0xf]  ;;  %v2918_v52 = vunpack.c.h.bf16 %v2856_v47  ;;  %v12749_v53 = vor.u32 %v9984_v9, %v9099_v56 }
 0x257   : > { %16094 = vst [vmem:[#allocation402_spill] sm:$0xff] %v12725_v59  ;;  %v16099_v6 = vld [vmem:[#allocation83_spill] sm:$0xff]  ;;  %v9966_v62 = vld [vmem:[%s10477_s12 + $0xe44] sm:$0xf0]  ;;  %v2919_v14 = vunpack.c.h.bf16 %v2857_v49  ;;  %v8883_v56 = vld [vmem:[%s10477_s12 + $0xd20] sm:$0xf] }
 0x258   : > { %16095 = vst [vmem:[#allocation403_spill] sm:$0xff] %v12727_v63  ;;  %4827 = vmatpush.bf16.msrb.mxu0 %v12701_v46  ;;  %4841 = vmatpush.bf16.msrb.mxu1 %v12708_v30  ;;  %v2935_v25 = vmul.f32 %v2899_v35, %v16099_v6  ;;  %v16100_v46 = vld [vmem:[#allocation84_spill] sm:$0xff]  ;;  %v9982_v23 = vld [vmem:[%s10477_s12 + $0xec4] sm:$0xf0]  ;;  %v12755_v35 = vor.u32 %v9932_v48, %v8891_v2  ;;  %v8947_v48 = vld [vmem:[%s10477_s12 + $0xda0] sm:$0xf] }
 0x259   : > { %16096 = vst [vmem:[#allocation404_spill] sm:$0xff] %v12734_v11  ;;  %4854 = vmatpush.bf16.msrb.mxu2 %v12716_v37  ;;  %v2953_v28 = vmul.f32 %v2917_v31, %v16100_v46  ;;  %v9948_v30 = vld [vmem:[%s10477_s12 + $0xdb4] sm:$0xf0]  ;;  %v2901_v37 = vunpack.c.l.bf16 %v2857_v49  ;;  %v12759_v47 = vor.u32 %v9966_v62, %v9027_v17  ;;  %v12763_v9 = vpack.c.bf16 %v2952_v20, %v2934_v16  ;;  %v9930_v2 = vld [vmem:[%s10477_s12 + $0xd24] sm:$0xf0] }
 0x25a   : > { %4868 = vmatpush.bf16.msrb.mxu3 %v12721_v15  ;;  %16101 = vst [vmem:[#allocation405_spill] sm:$0xff] %v12749_v53  ;;  %v12757_v31 = vor.u32 %v9948_v30, %v8955_v36  ;;  %v12773_v30 = vor.u32 %v9982_v23, %v9091_v54  ;;  %v9019_v36 = vld [vmem:[%s10477_s12 + $0xe30] sm:$0xf]  ;;  %v9964_v16 = vld [vmem:[%s10477_s12 + $0xe34] sm:$0xf0]  ;;  %v2858_v54 = vrot.slane %v12625_v39, 1  ;;  %v12787_v23 = vor.u32 %v9930_v2, %v8883_v56 }
 0x25b   : > { %16102 = vst [vmem:[#allocation406_spill] sm:$0xff] %v12755_v35  ;;  %v12765_v49 = vpack.c.bf16 %v2953_v28, %v2935_v25  ;;  %v9083_v20 = vld [vmem:[%s10477_s12 + $0xeb0] sm:$0xf]  ;;  %v16108_v28 = vld [vmem:[#allocation88_spill] sm:$0xff]  ;;  %v16109_v25 = vld [vmem:[#allocation89_spill] sm:$0xff] }
 0x25c   : > { %4828 = vmatpush.bf16.msrb.mxu0 %v12725_v59  ;;  %4842 = vmatpush.bf16.msrb.mxu1 %v12727_v63  ;;  %16103 = vst [vmem:[#allocation407_spill] sm:$0xff] %v12757_v31  ;;  %v16105_v59 = vld [vmem:[#allocation85_spill] sm:$0xff]  ;;  %v16106_v63 = vld [vmem:[#allocation86_spill] sm:$0xff]  ;;  %v2955_v17 = vmul.f32 %v2919_v14, %v16109_v25  ;;  %v9980_v62 = vld [vmem:[%s10477_s12 + $0xeb4] sm:$0xf0]  ;;  %v2860_v14 = vrot.slane %v12633_v50, 1 }
 0x25d   : > { %16104 = vst [vmem:[#allocation408_spill] sm:$0xff] %v12759_v47  ;;  %4855 = vmatpush.bf16.msrb.mxu2 %v12734_v11  ;;  %v2936_v15 = vmul.f32 %v2900_v18, %v16105_v59  ;;  %v2954_v5 = vmul.f32 %v2918_v52, %v16106_v63  ;;  %v2937_v18 = vmul.f32 %v2901_v37, %v16108_v28  ;;  %v8875_v52 = vld [vmem:[%s10477_s12 + $0xd10] sm:$0xf]  ;;  %v9928_v37 = vld [vmem:[%s10477_s12 + $0xd14] sm:$0xf0] }
 0x25e   : > { %4869 = vmatpush.bf16.msrb.mxu3 %v12749_v53  ;;  %16107 = vst [vmem:[#allocation409_spill] sm:$0xff] %v12773_v30  ;;  %v12789_v53 = vor.u32 %v9946_v57, %v8947_v48  ;;  %v8939_v11 = vld [vmem:[%s10477_s12 + $0xd90] sm:$0xf]  ;;  %v9944_v28 = vld [vmem:[%s10477_s12 + $0xd94] sm:$0xf0]  ;;  %v12803_v57 = vor.u32 %v9980_v62, %v9083_v20  ;;  %v2859_v20 = vor.u32 %v2858_v54, %v12622_v44 }
 0x25f   : > { %4777 = vmatmul.bf16.vlgmr.msra.gmra.mxu0 %v12763_v9  ;;  %4791 = vmatmul.bf16.vlgmr.msra.gmra.mxu1 %v12765_v49  ;;  %16110 = vst [vmem:[#allocation410_spill] sm:$0xff] %v12787_v23  ;;  %v12795_v25 = vpack.c.bf16 %v2954_v5, %v2936_v15  ;;  %v9962_v63 = vld [vmem:[%s10477_s12 + $0xe24] sm:$0xf0]  ;;  %v9075_v56 = vld [vmem:[%s10477_s12 + $0xea0] sm:$0xf]  ;;  %v12811_v5 = vor.u32 %v9928_v37, %v8875_v52 }
 0x260   : > { %4829 = vmatpush.bf16.msrb.mxu0 %v12755_v35  ;;  %4843 = vmatpush.bf16.msrb.mxu1 %v12757_v31  ;;  %16111 = vst [vmem:[#allocation411_spill] sm:$0xff] %v12789_v53  ;;  %v12797_v35 = vor.u32 %v9964_v16, %v9019_v36  ;;  %v9011_v31 = vld [vmem:[%s10477_s12 + $0xe20] sm:$0xf]  ;;  %v9978_v2 = vld [vmem:[%s10477_s12 + $0xea4] sm:$0xf0]  ;;  %v12819_v62 = vor.u32 %v9944_v28, %v8939_v11  ;;  %v2902_v11 = vunpack.c.l.bf16 %v12615_v61  ;;  %v2921_v28 = vunpack.c.h.bf16 %v12617_v42 }
 0x261   : > { %4856 = vmatpush.bf16.msrb.mxu2 %v12759_v47  ;;  %16113 = vst [vmem:[#allocation413_spill] sm:$0xff] %v12803_v57  ;;  %v8867_v48 = vld [vmem:[%s10477_s12 + $0xd00] sm:$0xf]  ;;  %v12809_v47 = vpack.c.bf16 %v2955_v17, %v2937_v18  ;;  %v9926_v15 = vld [vmem:[%s10477_s12 + $0xd04] sm:$0xf0]  ;;  %v2861_v37 = vor.u32 %v2860_v14, %v12630_v24  ;;  %v12837_v14 = vor.u32 %v9978_v2, %v9075_v56  ;;  %v2864_v34 = vsel %vm11045_vm8, %v2859_v20, 0 }
 0x262   : > { %16112 = vst [vmem:[#allocation412_spill] sm:$0xff] %v12797_v35  ;;  %4870 = vmatpush.bf16.msrb.mxu3 %v12773_v30  ;;  %v8931_v36 = vld [vmem:[%s10477_s12 + $0xd80] sm:$0xf]  ;;  %v9942_v16 = vld [vmem:[%s10477_s12 + $0xd84] sm:$0xf0]  ;;  %v12821_v30 = vor.u32 %v9962_v63, %v9011_v31  ;;  %v2920_v63 = vunpack.c.h.bf16 %v12615_v61  ;;  %v2903_v31 = vunpack.c.l.bf16 %v12617_v42  ;;  %v12840_v46 = vor.u32 %v9926_v15, %v8867_v48 }
 0x263   : > { %4805 = vmatmul.bf16.vlgmr.msra.gmra.mxu2 %v12795_v25  ;;  %16114 = vst [vmem:[#allocation414_spill] sm:$0xff] %v12811_v5  ;;  %v9003_v18 = vld [vmem:[%s10477_s12 + $0xe10] sm:$0xf]  ;;  %v9960_v17 = vld [vmem:[%s10477_s12 + $0xe14] sm:$0xf0]  ;;  %v2938_v20 = vmul.f32 %v2902_v11, %v11061_v29  ;;  %v2904_v55 = vunpack.c.l.bf16 %v2864_v34  ;;  %v2922_v11 = vunpack.c.h.bf16 %v2864_v34  ;;  %v2875_v29 = vrot.slane %v12625_v39, 2 }
 0x264   : > { %4830 = vmatpush.bf16.msrb.mxu0 %v12787_v23  ;;  %4844 = vmatpush.bf16.msrb.mxu1 %v12789_v53  ;;  %16115 = vst [vmem:[#allocation415_spill] sm:$0xff] %v12819_v62  ;;  %v9067_v52 = vld [vmem:[%s10477_s12 + $0xe90] sm:$0xf]  ;;  %v9976_v54 = vld [vmem:[%s10477_s12 + $0xe94] sm:$0xf0]  ;;  %v12844_v6 = vor.u32 %v9960_v17, %v9003_v18  ;;  %v16124_v18 = vld [vmem:[#allocation117_spill] sm:$0xff] }
 0x265   : > { %16116 = vst [vmem:[#allocation416_spill] sm:$0xff] %v12821_v30  ;;  %4819 = vmatmul.bf16.vlgmr.msra.gmra.mxu3 %v12809_v47  ;;  %4857 = vmatpush.bf16.msrb.mxu2 %v12797_v35  ;;  %v9179_v23 = vld [vmem:[%s10477_s12 + $0xf70] sm:$0xf]  ;;  %v10004_v59 = vld [vmem:[%s10477_s12 + $0xf74] sm:$0xf0]  ;;  %v12842_v35 = vor.u32 %v9942_v16, %v8931_v36  ;;  %v12852_v56 = vor.u32 %v9976_v54, %v9067_v52  ;;  %v2865_v36 = vsel %vm11045_vm8, %v2861_v37, 0 }
 0x266   : > { %4871 = vmatpush.bf16.msrb.mxu3 %v12803_v57  ;;  %16117 = vst [vmem:[#allocation417_spill] sm:$0xff] %v12837_v14  ;;  %v9243_v53 = vld [vmem:[%s10477_s12 + $0xff0] sm:$0xf]  ;;  %v8995_v58 = vld [vmem:[%s10477_s12 + $0xe00] sm:$0xf]  ;;  %v12854_v2 = vor.u32 %v10004_v59, %v9179_v23  ;;  %v2874_v16 = vrot.slane %v12622_v44, 1  ;;  %v2956_v17 = vmul.f32 %v2920_v63, %v16124_v18 }
 0x267   : > { %16118 = vst [vmem:[#allocation418_spill] sm:$0xff] %v12840_v46  ;;  %v9958_v48 = vld [vmem:[%s10477_s12 + $0xe04] sm:$0xf0]  ;;  %v9059_v15 = vld [vmem:[%s10477_s12 + $0xe80] sm:$0xf]  ;;  %v16125_v52 = vld [vmem:[#allocation119_spill] sm:$0xff]  ;;  %v12870_v37 = vor.u32 %v10020_v22, %v9243_v53 }
 0x268   : > { %16119 = vst [vmem:[#allocation419_spill] sm:$0xff] %v12842_v35  ;;  %4831 = vmatpush.bf16.msrb.mxu0 %v12811_v5  ;;  %4845 = vmatpush.bf16.msrb.mxu1 %v12819_v62  ;;  %v2939_v54 = vmul.f32 %v2903_v31, %v16125_v52  ;;  %v16126_v59 = vld [vmem:[#allocation121_spill] sm:$0xff]  ;;  %v9974_v62 = vld [vmem:[%s10477_s12 + $0xe84] sm:$0xf0]  ;;  %v12875_v63 = vor.u32 %v9958_v48, %v8995_v58  ;;  %v9307_v31 = vld [vmem:[%s10477_s12 + $0x1070] sm:$0xf] }
 0x269   : > { %16120 = vst [vmem:[#allocation420_spill] sm:$0xff] %v12844_v6  ;;  %4858 = vmatpush.bf16.msrb.mxu2 %v12821_v30  ;;  %v2957_v23 = vmul.f32 %v2921_v28, %v16126_v59  ;;  %v9171_v5 = vld [vmem:[%s10477_s12 + $0xf60] sm:$0xf]  ;;  %v10002_v57 = vld [vmem:[%s10477_s12 + $0xf64] sm:$0xf0]  ;;  %v2905_v28 = vunpack.c.l.bf16 %v2865_v36  ;;  %v2923_v59 = vunpack.c.h.bf16 %v2865_v36  ;;  %v12881_v22 = vor.u32 %v9974_v62, %v9059_v15  ;;  %v16134_v48 = vld [vmem:[#allocation120_spill] sm:$0xff] }
 0x26a   : > { %16122 = vst [vmem:[#allocation421_spill] sm:$0xff] %v12852_v56  ;;  %4872 = vmatpush.bf16.msrb.mxu3 %v12837_v14  ;;  %v9235_v44 = vld [vmem:[%s10477_s12 + $0xfe0] sm:$0xf]  ;;  %v10018_v30 = vld [vmem:[%s10477_s12 + $0xfe4] sm:$0xf0]  ;;  %v12883_v53 = vor.u32 %v10002_v57, %v9171_v5  ;;  %v12887_v18 = vor.u32 %v2875_v29, %v2874_v16  ;;  %v12891_v39 = vpack.c.bf16 %v2956_v17, %v2938_v20 }
 0x26b   : > { %16123 = vst [vmem:[#allocation422_spill] sm:$0xff] %v12854_v2  ;;  %v10036_v52 = vld [vmem:[%s10477_s12 + $0x1074] sm:$0xf0]  ;;  %v9371_v14 = vld [vmem:[%s10477_s12 + $0x10f0] sm:$0xf]  ;;  %v12893_v58 = vpack.c.bf16 %v2957_v23, %v2939_v54  ;;  %v12895_v62 = vor.u32 %v10018_v30, %v9235_v44  ;;  %v16133_v57 = vld [vmem:[#allocation118_spill] sm:$0xff]  ;;  %v2958_v15 = vmul.f32 %v2922_v11, %v16134_v48 }
 0x26c   : > { %16127 = vst [vmem:[#allocation423_spill] sm:$0xff] %v12870_v37  ;;  %4832 = vmatpush.bf16.msrb.mxu0 %v12840_v46  ;;  %4846 = vmatpush.bf16.msrb.mxu1 %v12842_v35  ;;  %v10052_v34 = vld [vmem:[%s10477_s12 + $0x10f4] sm:$0xf0]  ;;  %v12899_v29 = vor.u32 %v10036_v52, %v9307_v31  ;;  %v2940_v5 = vmul.f32 %v2904_v55, %v16133_v57  ;;  %v9163_v36 = vld [vmem:[%s10477_s12 + $0xf50] sm:$0xf]  ;;  %v16136_v20 = vld [vmem:[#allocation122_spill] sm:$0xff] }
 0x26d   : > { %16128 = vst [vmem:[#allocation424_spill] sm:$0xff] %v12875_v63  ;;  %4859 = vmatpush.bf16.msrb.mxu2 %v12844_v6  ;;  %v10000_v16 = vld [vmem:[%s10477_s12 + $0xf54] sm:$0xf0]  ;;  %v12907_v30 = vor.u32 %v10052_v34, %v9371_v14  ;;  %v2941_v17 = vmul.f32 %v2905_v28, %v16136_v20  ;;  %v16137_v54 = vld [vmem:[#allocation123_spill] sm:$0xff]  ;;  %v9299_v31 = vld [vmem:[%s10477_s12 + $0x1060] sm:$0xf] }
 0x26e   : > { %16129 = vst [vmem:[#allocation425_spill] sm:$0xff] %v12881_v22  ;;  %4873 = vmatpush.bf16.msrb.mxu3 %v12852_v56  ;;  %v2959_v23 = vmul.f32 %v2923_v59, %v16137_v54  ;;  %v9227_v52 = vld [vmem:[%s10477_s12 + $0xfd0] sm:$0xf]  ;;  %v10016_v44 = vld [vmem:[%s10477_s12 + $0xfd4] sm:$0xf0]  ;;  %v12919_v14 = vor.u32 %v10000_v16, %v9163_v36  ;;  %v12923_v59 = vpack.c.bf16 %v2958_v15, %v2940_v5 }
 0x26f   : > { %16130 = vst [vmem:[#allocation426_spill] sm:$0xff] %v12883_v53  ;;  %4833 = vmatmul.bf16.vlgmr.msrb.gmra.mxu0 %v12891_v39  ;;  %4847 = vmatmul.bf16.vlgmr.msrb.gmra.mxu1 %v12893_v58  ;;  %v10034_v55 = vld [vmem:[%s10477_s12 + $0x1064] sm:$0xf0]  ;;  %v12925_v28 = vor.u32 %v10016_v44, %v9227_v52  ;;  %v9155_v34 = vld [vmem:[%s10477_s12 + $0xf40] sm:$0xf] }
 0x270   : > { %4881 = vmatpush.bf16.msra.mxu0 %v12854_v2  ;;  %16131 = vst [vmem:[#allocation427_spill] sm:$0xff] %v12895_v62  ;;  %4895 = vmatpush.bf16.msra.mxu1 %v12870_v37  ;;  %v9363_v37 = vld [vmem:[%s10477_s12 + $0x10e0] sm:$0xf]  ;;  %v10050_v11 = vld [vmem:[%s10477_s12 + $0x10e4] sm:$0xf0]  ;;  %v12931_v36 = vpack.c.bf16 %v2959_v23, %v2941_v17  ;;  %v12933_v16 = vor.u32 %v10034_v55, %v9299_v31 }
 0x271   : > { %16132 = vst [vmem:[#allocation428_spill] sm:$0xff] %v12899_v29  ;;  %4860 = vmatpush.bf16.msrb.mxu2 %v12875_v63  ;;  %v9998_v56 = vld [vmem:[%s10477_s12 + $0xf44] sm:$0xf0]  ;;  %v9291_v5 = vld [vmem:[%s10477_s12 + $0x1050] sm:$0xf] }
 0x272   : > { %16135 = vst [vmem:[#allocation429_spill] sm:$0xff] %v12907_v30  ;;  %4874 = vmatpush.bf16.msrb.mxu3 %v12881_v22  ;;  %v12935_v22 = vor.u32 %v10050_v11, %v9363_v37  ;;  %v10032_v15 = vld [vmem:[%s10477_s12 + $0x1054] sm:$0xf0]  ;;  %v9355_v52 = vld [vmem:[%s10477_s12 + $0x10d0] sm:$0xf]  ;;  %v12946_v37 = vor.u32 %v9998_v56, %v9155_v34 }
 0x273   : > { %16138 = vst [vmem:[#allocation430_spill] sm:$0xff] %v12919_v14  ;;  %v10048_v44 = vld [vmem:[%s10477_s12 + $0x10d4] sm:$0xf0]  ;;  %v9147_v23 = vld [vmem:[%s10477_s12 + $0xf30] sm:$0xf]  ;;  %v12955_v55 = vor.u32 %v10032_v15, %v9291_v5  ;;  %v2866_v5 = vrot.slane %v12615_v61, 1 }
 0x274   : > { %4882 = vmatpush.bf16.msra.mxu0 %v12883_v53  ;;  %4896 = vmatpush.bf16.msra.mxu1 %v12895_v62  ;;  %16139 = vst [vmem:[#allocation431_spill] sm:$0xff] %v12925_v28  ;;  %v9219_v62 = vld [vmem:[%s10477_s12 + $0xfc0] sm:$0xf]  ;;  %v10014_v53 = vld [vmem:[%s10477_s12 + $0xfc4] sm:$0xf0]  ;;  %v12957_v11 = vor.u32 %v10048_v44, %v9355_v52 }
 0x275   : > { %4909 = vmatpush.bf16.msra.mxu2 %v12899_v29  ;;  %16140 = vst [vmem:[#allocation432_spill] sm:$0xff] %v12933_v16  ;;  %4875 = vmatmul.bf16.vlgmr.msrb.gmra.mxu3 %v12931_v36  ;;  %v12949_v17 = vor.u32 %v10014_v53, %v9219_v62  ;;  %v9996_v31 = vld [vmem:[%s10477_s12 + $0xf34] sm:$0xf0]  ;;  %v9283_v34 = vld [vmem:[%s10477_s12 + $0x1040] sm:$0xf] }
 0x276   : > { %4923 = vmatpush.bf16.msra.mxu3 %v12907_v30  ;;  %16141 = vst [vmem:[#allocation433_spill] sm:$0xff] %v12935_v22  ;;  %4861 = vmatmul.bf16.vlgmr.msrb.gmra.mxu2 %v12923_v59  ;;  %v10012_v56 = vld [vmem:[%s10477_s12 + $0xfb4] sm:$0xf0]  ;;  %v10030_v30 = vld [vmem:[%s10477_s12 + $0x1044] sm:$0xf0]  ;;  %v12966_v62 = vor.u32 %v9996_v31, %v9147_v23 }
 0x277   : > { %16142 = vst [vmem:[#allocation434_spill] sm:$0xff] %v12946_v37  ;;  %v10046_v53 = vld [vmem:[%s10477_s12 + $0x10c4] sm:$0xf0]  ;;  %v9203_v44 = vld [vmem:[%s10477_s12 + $0xfa0] sm:$0xf]  ;;  %v12978_v23 = vor.u32 %v10030_v30, %v9283_v34  ;;  %v2869_v30 = vsel %vm339_vm9, %v2866_v5, 0 }
 0x278   : > { %4883 = vmatpush.bf16.msra.mxu0 %v12919_v14  ;;  %4897 = vmatpush.bf16.msra.mxu1 %v12925_v28  ;;  %16143 = vst [vmem:[#allocation435_spill] sm:$0xff] %v12949_v17  ;;  %v9211_v14 = vld [vmem:[%s10477_s12 + $0xfb0] sm:$0xf]  ;;  %v9347_v28 = vld [vmem:[%s10477_s12 + $0x10c0] sm:$0xf]  ;;  %v2878_v34 = vrot.slane %v12633_v50, 2 }
 0x279   : > { %4910 = vmatpush.bf16.msra.mxu2 %v12933_v16  ;;  %16144 = vst [vmem:[#allocation436_spill] sm:$0xff] %v12955_v55  ;;  %v12971_v15 = vor.u32 %v10012_v56, %v9211_v14  ;;  %v9994_v52 = vld [vmem:[%s10477_s12 + $0xf24] sm:$0xf0]  ;;  %v2867_v16 = vrot.slane %v12617_v42, 1  ;;  %v12980_v31 = vor.u32 %v10046_v53, %v9347_v28  ;;  %v9275_v29 = vld [vmem:[%s10477_s12 + $0x1030] sm:$0xf] }
 0x27a   : > { %4924 = vmatpush.bf16.msra.mxu3 %v12935_v22  ;;  %16145 = vst [vmem:[#allocation437_spill] sm:$0xff] %v12957_v11  ;;  %v9139_v22 = vld [vmem:[%s10477_s12 + $0xf20] sm:$0xf]  ;;  %v10028_v63 = vld [vmem:[%s10477_s12 + $0x1034] sm:$0xf0]  ;;  %v2877_v28 = vrot.slane %v12630_v24, 1 }
 0x27b   : > { %16146 = vst [vmem:[#allocation438_spill] sm:$0xff] %v12966_v62  ;;  %v9339_v2 = vld [vmem:[%s10477_s12 + $0x10b0] sm:$0xf]  ;;  %v10044_v14 = vld [vmem:[%s10477_s12 + $0x10b4] sm:$0xf0] }
 0x27c   : > { %4884 = vmatpush.bf16.msra.mxu0 %v12946_v37  ;;  %4898 = vmatpush.bf16.msra.mxu1 %v12949_v17  ;;  %16147 = vst [vmem:[#allocation439_spill] sm:$0xff] %v12971_v15  ;;  %v10010_v37 = vld [vmem:[%s10477_s12 + $0xfa4] sm:$0xf0]  ;;  %v9131_v56 = vld [vmem:[%s10477_s12 + $0xf10] sm:$0xf]  ;;  %v12989_v17 = vor.u32 %v9994_v52, %v9139_v22  ;;  %v13001_v22 = vor.u32 %v10028_v63, %v9275_v29 }
 0x27d   : > { %4911 = vmatpush.bf16.msra.mxu2 %v12955_v55  ;;  %16148 = vst [vmem:[#allocation440_spill] sm:$0xff] %v12978_v23  ;;  %v9992_v55 = vld [vmem:[%s10477_s12 + $0xf14] sm:$0xf0]  ;;  %v12996_v53 = vor.u32 %v10010_v37, %v9203_v44  ;;  %v13003_v5 = vor.u32 %v10044_v14, %v9339_v2  ;;  %v9195_v52 = vld [vmem:[%s10477_s12 + $0xf90] sm:$0xf]  ;;  %v2924_v2 = vunpack.c.h.bf16 %v2869_v30 }
 0x27e   : > { %4925 = vmatpush.bf16.msra.mxu3 %v12957_v11  ;;  %16149 = vst [vmem:[#allocation441_spill] sm:$0xff] %v12980_v31  ;;  %v10008_v24 = vld [vmem:[%s10477_s12 + $0xf94] sm:$0xf0]  ;;  %v9267_v50 = vld [vmem:[%s10477_s12 + $0x1020] sm:$0xf] }
 0x27f   : > { %16150 = vst [vmem:[#allocation442_spill] sm:$0xff] %v12989_v17  ;;  %v10026_v37 = vld [vmem:[%s10477_s12 + $0x1024] sm:$0xf0]  ;;  %v9331_v44 = vld [vmem:[%s10477_s12 + $0x10a0] sm:$0xf] }
 0x280   : > { %4885 = vmatpush.bf16.msra.mxu0 %v12966_v62  ;;  %4899 = vmatpush.bf16.msra.mxu1 %v12971_v15  ;;  %16151 = vst [vmem:[#allocation443_spill] sm:$0xff] %v12996_v53  ;;  %v2872_v62 = vsel %vm339_vm9, %v2867_v16, 0  ;;  %v13008_v15 = vor.u32 %v9992_v55, %v9131_v56  ;;  %v10042_v11 = vld [vmem:[%s10477_s12 + $0x10a4] sm:$0xf0]  ;;  %v2906_v16 = vunpack.c.l.bf16 %v2869_v30  ;;  %v13017_v55 = vor.u32 %v10008_v24, %v9195_v52  ;;  %v9187_v56 = vld [vmem:[%s10477_s12 + $0xf80] sm:$0xf] }
 0x281   : > { %4912 = vmatpush.bf16.msra.mxu2 %v12978_v23  ;;  %16152 = vst [vmem:[#allocation444_spill] sm:$0xff] %v13001_v22  ;;  %v9990_v63 = vld [vmem:[%s10477_s12 + $0xf04] sm:$0xf0]  ;;  %v2907_v29 = vunpack.c.l.bf16 %v2872_v62  ;;  %v2925_v14 = vunpack.c.h.bf16 %v2872_v62  ;;  %v2879_v23 = vor.u32 %v2878_v34, %v2877_v28  ;;  %v13024_v35 = vor.u32 %v10026_v37, %v9267_v50  ;;  %v10024_v62 = vld [vmem:[%s10477_s12 + $0x1014] sm:$0xf0] }
 0x282   : > { %4926 = vmatpush.bf16.msra.mxu3 %v12980_v31  ;;  %16153 = vst [vmem:[#allocation445_spill] sm:$0xff] %v13003_v5  ;;  %v9123_v31 = vld [vmem:[%s10477_s12 + $0xf00] sm:$0xf]  ;;  %v10006_v6 = vld [vmem:[%s10477_s12 + $0xf84] sm:$0xf0]  ;;  %v13026_v30 = vor.u32 %v10042_v11, %v9331_v44  ;;  %v2960_v37 = vmul.f32 %v2924_v2, %v11294_v19 }
 0x283   : > { %16154 = vst [vmem:[#allocation446_spill] sm:$0xff] %v13008_v15  ;;  %v9435_v46 = vld [vmem:[%s10477_s12 + $0x1170] sm:$0xf]  ;;  %v10068_v28 = vld [vmem:[%s10477_s12 + $0x1174] sm:$0xf0]  ;;  %v13031_v34 = vor.u32 %v9990_v63, %v9123_v31  ;;  %v2943_v31 = vmul.f32 %v2907_v29, %v11306_v21  ;;  %v2961_v44 = vmul.f32 %v2925_v14, %v11312_v4 }
 0x284   : > { %4886 = vmatpush.bf16.msra.mxu0 %v12989_v17  ;;  %4900 = vmatpush.bf16.msra.mxu1 %v12996_v53  ;;  %16155 = vst [vmem:[#allocation447_spill] sm:$0xff] %v13017_v55  ;;  %v9259_v17 = vld [vmem:[%s10477_s12 + $0x1010] sm:$0xf]  ;;  %v10040_v24 = vld [vmem:[%s10477_s12 + $0x1094] sm:$0xf0]  ;;  %v2942_v53 = vmul.f32 %v2906_v16, %v11290_v8  ;;  %v2883_v16 = vsel %vm11260_vm11, %v2879_v23, 0  ;;  %v13050_v63 = vor.u32 %v10068_v28, %v9435_v46 }
 0x285   : > { %4913 = vmatpush.bf16.msra.mxu2 %v13001_v22  ;;  %16156 = vst [vmem:[#allocation448_spill] sm:$0xff] %v13024_v35  ;;  %v9323_v52 = vld [vmem:[%s10477_s12 + $0x1090] sm:$0xf]  ;;  %v10084_v50 = vld [vmem:[%s10477_s12 + $0x11f4] sm:$0xf0]  ;;  %v13057_v2 = vor.u32 %v10024_v62, %v9259_v17  ;;  %v2927_v21 = vunpack.c.h.bf16 %v2883_v16  ;;  %v13071_v62 = vpack.c.bf16 %v2961_v44, %v2943_v31  ;;  %v16170_v31 = vld [vmem:[#allocation161_spill] sm:$0xff] }
 0x286   : > { %4927 = vmatpush.bf16.msra.mxu3 %v13003_v5  ;;  %16157 = vst [vmem:[#allocation449_spill] sm:$0xff] %v13026_v30  ;;  %v2882_v5 = vsel %vm11260_vm11, %v12887_v18, 0  ;;  %v9499_v11 = vld [vmem:[%s10477_s12 + $0x11f0] sm:$0xf]  ;;  %v13048_v18 = vor.u32 %v10006_v6, %v9187_v56  ;;  %v10022_v8 = vld [vmem:[%s10477_s12 + $0x1004] sm:$0xf0]  ;;  %v13059_v23 = vor.u32 %v10040_v24, %v9323_v52  ;;  %v13069_v17 = vpack.c.bf16 %v2960_v37, %v2942_v53 }
 0x287   : > { %16158 = vst [vmem:[#allocation450_spill] sm:$0xff] %v13031_v34  ;;  %v9315_v54 = vld [vmem:[%s10477_s12 + $0x1080] sm:$0xf]  ;;  %v10038_v29 = vld [vmem:[%s10477_s12 + $0x1084] sm:$0xf0]  ;;  %v2908_v56 = vunpack.c.l.bf16 %v2882_v5  ;;  %v13064_v46 = vor.u32 %v10084_v50, %v9499_v11 }
 0x288   : > { %4887 = vmatpush.bf16.msra.mxu0 %v13008_v15  ;;  %4901 = vmatpush.bf16.msra.mxu1 %v13017_v55  ;;  %16160 = vst [vmem:[#allocation451_spill] sm:$0xff] %v13048_v18  ;;  %v9251_v15 = vld [vmem:[%s10477_s12 + $0x1000] sm:$0xf]  ;;  %v10066_v6 = vld [vmem:[%s10477_s12 + $0x1164] sm:$0xf0]  ;;  %v2926_v55 = vunpack.c.h.bf16 %v2882_v5  ;;  %v13079_v11 = vor.u32 %v10038_v29, %v9315_v54 }
 0x289   : > { %16161 = vst [vmem:[#allocation452_spill] sm:$0xff] %v13050_v63  ;;  %4914 = vmatpush.bf16.msra.mxu2 %v13024_v35  ;;  %v9427_v14 = vld [vmem:[%s10477_s12 + $0x1160] sm:$0xf]  ;;  %v10082_v4 = vld [vmem:[%s10477_s12 + $0x11e4] sm:$0xf0]  ;;  %v2909_v35 = vunpack.c.l.bf16 %v2883_v16  ;;  %v13077_v5 = vor.u32 %v10022_v8, %v9251_v15  ;;  %v2944_v8 = vmul.f32 %v2908_v56, %v11302_v13 }
 0x28a   : > { %4928 = vmatpush.bf16.msra.mxu3 %v13026_v30  ;;  %16162 = vst [vmem:[#allocation453_spill] sm:$0xff] %v13057_v2  ;;  %v9491_v28 = vld [vmem:[%s10477_s12 + $0x11e0] sm:$0xf]  ;;  %v9811_v52 = vld [vmem:[%s10477_s12 + $0x974] sm:$0xf]  ;;  %v13081_v50 = vor.u32 %v10066_v6, %v9427_v14  ;;  %v2962_v54 = vmul.f32 %v2926_v55, %v11304_v26  ;;  %v16171_v29 = vld [vmem:[#allocation162_spill] sm:$0xff] }
 0x28b   : > { %16163 = vst [vmem:[#allocation454_spill] sm:$0xff] %v13059_v23  ;;  %v8413_v24 = vld [vmem:[%s10477_s12 + $0x978] sm:$0xf0]  ;;  %v9827_v16 = vld [vmem:[%s10477_s12 + $0x9f4] sm:$0xf]  ;;  %v13087_v37 = vor.u32 %v10082_v4, %v9491_v28  ;;  %v2945_v44 = vmul.f32 %v2909_v35, %v16170_v31  ;;  %v2963_v14 = vmul.f32 %v2927_v21, %v16171_v29 }
 0x28c   : > { %16164 = vst [vmem:[#allocation455_spill] sm:$0xff] %v13064_v46  ;;  %4888 = vmatpush.bf16.msra.mxu0 %v13031_v34  ;;  %4902 = vmatpush.bf16.msra.mxu1 %v13048_v18  ;;  %v8477_v53 = vld [vmem:[%s10477_s12 + $0x9f8] sm:$0xf0]  ;;  %v13093_v15 = vor.u32 %v9811_v52, %v8413_v24  ;;  %v9419_v6 = vld [vmem:[%s10477_s12 + $0x1150] sm:$0xf]  ;;  %v13111_v21 = vpack.c.bf16 %v2962_v54, %v2944_v8 }
 0x28d   : > { %16165 = vst [vmem:[#allocation456_spill] sm:$0xff] %v13077_v5  ;;  %4915 = vmatpush.bf16.msra.mxu2 %v13057_v2  ;;  %v9483_v4 = vld [vmem:[%s10477_s12 + $0x11d0] sm:$0xf]  ;;  %v13101_v56 = vor.u32 %v9827_v16, %v8477_v53  ;;  %v10080_v55 = vld [vmem:[%s10477_s12 + $0x11d4] sm:$0xf0]  ;;  %v13117_v16 = vpack.c.bf16 %v2963_v14, %v2945_v44 }
 0x28e   : > { %16166 = vst [vmem:[#allocation457_spill] sm:$0xff] %v13079_v11  ;;  %4929 = vmatpush.bf16.msra.mxu3 %v13059_v23  ;;  %v10064_v23 = vld [vmem:[%s10477_s12 + $0x1154] sm:$0xf0]  ;;  %v9809_v28 = vld [vmem:[%s10477_s12 + $0x964] sm:$0xf]  ;;  %v13119_v53 = vor.u32 %v10080_v55, %v9483_v4 }
 0x28f   : > { %16167 = vst [vmem:[#allocation458_spill] sm:$0xff] %v13081_v50  ;;  %4889 = vmatmul.bf16.vlgmr.msra.gmra.mxu0 %v13069_v17  ;;  %4903 = vmatmul.bf16.vlgmr.msra.gmra.mxu1 %v13071_v62  ;;  %v9825_v52 = vld [vmem:[%s10477_s12 + $0x9e4] sm:$0xf]  ;;  %v8469_v35 = vld [vmem:[%s10477_s12 + $0x9e8] sm:$0xf0]  ;;  %v13113_v24 = vor.u32 %v10064_v23, %v9419_v6 }
 0x290   : > { %4937 = vmatpush.bf16.msrb.mxu0 %v13050_v63  ;;  %16168 = vst [vmem:[#allocation459_spill] sm:$0xff] %v13087_v37  ;;  %4951 = vmatpush.bf16.msrb.mxu1 %v13064_v46  ;;  %v8405_v46 = vld [vmem:[%s10477_s12 + $0x968] sm:$0xf0]  ;;  %v10062_v2 = vld [vmem:[%s10477_s12 + $0x1144] sm:$0xf0]  ;;  %v13127_v23 = vor.u32 %v9825_v52, %v8469_v35 }
 0x291   : > { %16169 = vst [vmem:[#allocation460_spill] sm:$0xff] %v13093_v15  ;;  %4916 = vmatpush.bf16.msra.mxu2 %v13077_v5  ;;  %v9411_v5 = vld [vmem:[%s10477_s12 + $0x1140] sm:$0xf]  ;;  %v10078_v8 = vld [vmem:[%s10477_s12 + $0x11c4] sm:$0xf0] }
 0x292   : > { %16172 = vst [vmem:[#allocation161_spill] sm:$0xff] %v13101_v56  ;;  %4930 = vmatpush.bf16.msra.mxu3 %v13079_v11  ;;  %v9475_v63 = vld [vmem:[%s10477_s12 + $0x11c0] sm:$0xf]  ;;  %v9807_v54 = vld [vmem:[%s10477_s12 + $0x954] sm:$0xf]  ;;  %v13137_v14 = vor.u32 %v10062_v2, %v9411_v5 }
 0x293   : > { %16173 = vst [vmem:[#allocation162_spill] sm:$0xff] %v13113_v24  ;;  %v8397_v6 = vld [vmem:[%s10477_s12 + $0x958] sm:$0xf0]  ;;  %v13141_v4 = vor.u32 %v10078_v8, %v9475_v63  ;;  %v10060_v52 = vld [vmem:[%s10477_s12 + $0x1134] sm:$0xf0] }
 0x294   : > { %4938 = vmatpush.bf16.msrb.mxu0 %v13081_v50  ;;  %4952 = vmatpush.bf16.msrb.mxu1 %v13087_v37  ;;  %16174 = vst [vmem:[#allocation461_spill] sm:$0xff] %v13119_v53  ;;  %v13121_v50 = vor.u32 %v9809_v28, %v8405_v46  ;;  %v9823_v46 = vld [vmem:[%s10477_s12 + $0x9d4] sm:$0xf]  ;;  %v8461_v44 = vld [vmem:[%s10477_s12 + $0x9d8] sm:$0xf0]  ;;  %v13143_v55 = vor.u32 %v9807_v54, %v8397_v6  ;;  %v2884_v54 = vrot.slane %v12615_v61, 2 }
 0x295   : > { %4965 = vmatpush.bf16.msrb.mxu2 %v13093_v15  ;;  %16176 = vst [vmem:[#allocation463_spill] sm:$0xff] %v13127_v23  ;;  %4931 = vmatmul.bf16.vlgmr.msra.gmra.mxu3 %v13117_v16  ;;  %v9403_v28 = vld [vmem:[%s10477_s12 + $0x1130] sm:$0xf]  ;;  %v10076_v2 = vld [vmem:[%s10477_s12 + $0x11b4] sm:$0xf0] }
 0x296   : > { %16175 = vst [vmem:[#allocation462_spill] sm:$0xff] %v13121_v50  ;;  %4979 = vmatpush.bf16.msrb.mxu3 %v13101_v56  ;;  %4917 = vmatmul.bf16.vlgmr.msra.gmra.mxu2 %v13111_v21  ;;  %v9467_v35 = vld [vmem:[%s10477_s12 + $0x11b0] sm:$0xf]  ;;  %v13149_v56 = vor.u32 %v9823_v46, %v8461_v44  ;;  %v9805_v5 = vld [vmem:[%s10477_s12 + $0x944] sm:$0xf]  ;;  %v13157_v8 = vor.u32 %v10060_v52, %v9403_v28 }
 0x297   : > { %16177 = vst [vmem:[#allocation464_spill] sm:$0xff] %v13137_v14  ;;  %v8453_v63 = vld [vmem:[%s10477_s12 + $0x9c8] sm:$0xf0]  ;;  %v13162_v6 = vor.u32 %v10076_v2, %v9467_v35  ;;  %v9395_v44 = vld [vmem:[%s10477_s12 + $0x1120] sm:$0xf] }
 0x298   : > { %4939 = vmatpush.bf16.msrb.mxu0 %v13113_v24  ;;  %4953 = vmatpush.bf16.msrb.mxu1 %v13119_v53  ;;  %16178 = vst [vmem:[#allocation465_spill] sm:$0xff] %v13141_v4  ;;  %v8389_v53 = vld [vmem:[%s10477_s12 + $0x948] sm:$0xf0]  ;;  %v9459_v24 = vld [vmem:[%s10477_s12 + $0x11a0] sm:$0xf] }
 0x299   : > { %4966 = vmatpush.bf16.msrb.mxu2 %v13121_v50  ;;  %16179 = vst [vmem:[#allocation466_spill] sm:$0xff] %v13143_v55  ;;  %v9821_v50 = vld [vmem:[%s10477_s12 + $0x9c4] sm:$0xf]  ;;  %v13164_v46 = vor.u32 %v9805_v5, %v8389_v53  ;;  %v10074_v28 = vld [vmem:[%s10477_s12 + $0x11a4] sm:$0xf0]  ;;  %v2885_v53 = vrot.slane %v12617_v42, 2 }
 0x29a   : > { %4980 = vmatpush.bf16.msrb.mxu3 %v13127_v23  ;;  %16180 = vst [vmem:[#allocation467_spill] sm:$0xff] %v13149_v56  ;;  %v10058_v23 = vld [vmem:[%s10477_s12 + $0x1124] sm:$0xf0]  ;;  %v9803_v61 = vld [vmem:[%s10477_s12 + $0x934] sm:$0xf]  ;;  %v13184_v5 = vor.u32 %v10074_v28, %v9459_v24 }
 0x29b   : > { %16181 = vst [vmem:[#allocation468_spill] sm:$0xff] %v13157_v8  ;;  %v8381_v52 = vld [vmem:[%s10477_s12 + $0x938] sm:$0xf0]  ;;  %v13179_v2 = vor.u32 %v10058_v23, %v9395_v44  ;;  %v9451_v42 = vld [vmem:[%s10477_s12 + $0x1190] sm:$0xf]  ;;  %v2890_v24 = vsel %vm361_vm12, %v2885_v53, 0 }
 0x29c   : > { %4940 = vmatpush.bf16.msrb.mxu0 %v13137_v14  ;;  %4954 = vmatpush.bf16.msrb.mxu1 %v13141_v4  ;;  %16182 = vst [vmem:[#allocation469_spill] sm:$0xff] %v13162_v6  ;;  %v13170_v14 = vor.u32 %v9821_v50, %v8453_v63  ;;  %v9819_v4 = vld [vmem:[%s10477_s12 + $0x9b4] sm:$0xf]  ;;  %v8445_v35 = vld [vmem:[%s10477_s12 + $0x9b8] sm:$0xf0]  ;;  %v2887_v50 = vsel %vm361_vm12, %v2884_v54, 0  ;;  %v13186_v63 = vor.u32 %v9803_v61, %v8381_v52  ;;  %v2929_v11 = vunpack.c.h.bf16 %v2890_v24 }
 0x29d   : > { %4967 = vmatpush.bf16.msrb.mxu2 %v13143_v55  ;;  %16183 = vst [vmem:[#allocation470_spill] sm:$0xff] %v13164_v46  ;;  %v10056_v55 = vld [vmem:[%s10477_s12 + $0x1114] sm:$0xf0]  ;;  %v9801_v54 = vld [vmem:[%s10477_s12 + $0x924] sm:$0xf]  ;;  %v2910_v52 = vunpack.c.l.bf16 %v2887_v50 }
 0x29e   : > { %4981 = vmatpush.bf16.msrb.mxu3 %v13149_v56  ;;  %16184 = vst [vmem:[#allocation471_spill] sm:$0xff] %v13170_v14  ;;  %v9387_v56 = vld [vmem:[%s10477_s12 + $0x1110] sm:$0xf]  ;;  %v10072_v23 = vld [vmem:[%s10477_s12 + $0x1194] sm:$0xf0] }
 0x29f   : > { %16185 = vst [vmem:[#allocation472_spill] sm:$0xff] %v13179_v2  ;;  %v8373_v44 = vld [vmem:[%s10477_s12 + $0x928] sm:$0xf0]  ;;  %v13201_v28 = vor.u32 %v10056_v55, %v9387_v56  ;;  %v9379_v61 = vld [vmem:[%s10477_s12 + $0x1100] sm:$0xf]  ;;  %v2928_v56 = vunpack.c.h.bf16 %v2887_v50 }
 0x2a0   : > { %4941 = vmatpush.bf16.msrb.mxu0 %v13157_v8  ;;  %4955 = vmatpush.bf16.msrb.mxu1 %v13162_v6  ;;  %16186 = vst [vmem:[#allocation473_spill] sm:$0xff] %v13184_v5  ;;  %v13192_v8 = vor.u32 %v9819_v4, %v8445_v35  ;;  %v9817_v6 = vld [vmem:[%s10477_s12 + $0x9a4] sm:$0xf]  ;;  %v13206_v4 = vor.u32 %v10072_v23, %v9451_v42  ;;  %v10054_v53 = vld [vmem:[%s10477_s12 + $0x1104] sm:$0xf0] }
 0x2a1   : > { %4968 = vmatpush.bf16.msrb.mxu2 %v13164_v46  ;;  %16187 = vst [vmem:[#allocation474_spill] sm:$0xff] %v13186_v63  ;;  %v8437_v46 = vld [vmem:[%s10477_s12 + $0x9a8] sm:$0xf0]  ;;  %v13208_v35 = vor.u32 %v9801_v54, %v8373_v44  ;;  %v9799_v15 = vld [vmem:[%s10477_s12 + $0x914] sm:$0xf]  ;;  %v13223_v44 = vor.u32 %v10054_v53, %v9379_v61  ;;  %v2964_v61 = vmul.f32 %v2928_v56, %v11496_v41 }
 0x2a2   : > { %4982 = vmatpush.bf16.msrb.mxu3 %v13170_v14  ;;  %16188 = vst [vmem:[#allocation475_spill] sm:$0xff] %v13192_v8  ;;  %v9443_v14 = vld [vmem:[%s10477_s12 + $0x1180] sm:$0xf]  ;;  %v13214_v55 = vor.u32 %v9817_v6, %v8437_v46  ;;  %v9815_v37 = vld [vmem:[%s10477_s12 + $0x994] sm:$0xf]  ;;  %v2946_v6 = vmul.f32 %v2910_v52, %v11494_v43 }
 0x2a3   : > { %16189 = vst [vmem:[#allocation476_spill] sm:$0xff] %v13201_v28  ;;  %v8429_v42 = vld [vmem:[%s10477_s12 + $0x998] sm:$0xf0]  ;;  %v9843_v23 = vld [vmem:[%s10477_s12 + $0xa74] sm:$0xf] }
 0x2a4   : > { %4942 = vmatpush.bf16.msrb.mxu0 %v13179_v2  ;;  %4956 = vmatpush.bf16.msrb.mxu1 %v13184_v5  ;;  %16190 = vst [vmem:[#allocation477_spill] sm:$0xff] %v13206_v4  ;;  %v10070_v2 = vld [vmem:[%s10477_s12 + $0x1184] sm:$0xf0]  ;;  %v8365_v5 = vld [vmem:[%s10477_s12 + $0x918] sm:$0xf0]  ;;  %v13237_v52 = vor.u32 %v9815_v37, %v8429_v42 }
 0x2a5   : > { %4969 = vmatpush.bf16.msrb.mxu2 %v13186_v63  ;;  %16191 = vst [vmem:[#allocation478_spill] sm:$0xff] %v13208_v35  ;;  %v2911_v63 = vunpack.c.l.bf16 %v2890_v24  ;;  %v8541_v54 = vld [vmem:[%s10477_s12 + $0xa78] sm:$0xf0]  ;;  %v9859_v50 = vld [vmem:[%s10477_s12 + $0xaf4] sm:$0xf]  ;;  %v13230_v46 = vor.u32 %v10070_v2, %v9443_v14  ;;  %v13232_v24 = vor.u32 %v9799_v15, %v8365_v5 }
 0x2a6   : > { %4983 = vmatpush.bf16.msrb.mxu3 %v13192_v8  ;;  %16192 = vst [vmem:[#allocation479_spill] sm:$0xff] %v13214_v55  ;;  %v8605_v8 = vld [vmem:[%s10477_s12 + $0xaf8] sm:$0xf0]  ;;  %v9797_v53 = vld [vmem:[%s10477_s12 + $0x904] sm:$0xf] }
 0x2a7   : > { %16193 = vst [vmem:[#allocation480_spill] sm:$0xff] %v13223_v44  ;;  %v8357_v14 = vld [vmem:[%s10477_s12 + $0x908] sm:$0xf0]  ;;  %v9813_v15 = vld [vmem:[%s10477_s12 + $0x984] sm:$0xf]  ;;  %v13246_v5 = vor.u32 %v9859_v50, %v8605_v8 }
 0x2a8   : > { %4943 = vmatpush.bf16.msrb.mxu0 %v13201_v28  ;;  %4957 = vmatpush.bf16.msrb.mxu1 %v13206_v4  ;;  %16194 = vst [vmem:[#allocation481_spill] sm:$0xff] %v13230_v46  ;;  %v13239_v28 = vor.u32 %v9843_v23, %v8541_v54  ;;  %v2947_v4 = vmul.f32 %v2911_v63, %v11503_v33  ;;  %v8421_v2 = vld [vmem:[%s10477_s12 + $0x988] sm:$0xf0]  ;;  %v9841_v56 = vld [vmem:[%s10477_s12 + $0xa64] sm:$0xf] }
 0x2a9   : > { %4970 = vmatpush.bf16.msrb.mxu2 %v13208_v35  ;;  %16195 = vst [vmem:[#allocation482_spill] sm:$0xff] %v13232_v24  ;;  %v2965_v35 = vmul.f32 %v2929_v11, %v11505_v38  ;;  %v8533_v18 = vld [vmem:[%s10477_s12 + $0xa68] sm:$0xf0]  ;;  %v9857_v34 = vld [vmem:[%s10477_s12 + $0xae4] sm:$0xf]  ;;  %v13257_v11 = vpack.c.bf16 %v2964_v61, %v2946_v6  ;;  %v13259_v63 = vor.u32 %v9797_v53, %v8357_v14 }
 0x2aa   : > { %4984 = vmatpush.bf16.msrb.mxu3 %v13214_v55  ;;  %16196 = vst [vmem:[#allocation483_spill] sm:$0xff] %v13237_v52  ;;  %v8597_v37 = vld [vmem:[%s10477_s12 + $0xae8] sm:$0xf0]  ;;  %v9875_v42 = vld [vmem:[%s10477_s12 + $0xb74] sm:$0xf] }
 0x2ab   : > { %16197 = vst [vmem:[#allocation484_spill] sm:$0xff] %v13239_v28  ;;  %v8669_v23 = vld [vmem:[%s10477_s12 + $0xb78] sm:$0xf0]  ;;  %v9891_v8 = vld [vmem:[%s10477_s12 + $0xbf4] sm:$0xf]  ;;  %v13265_v50 = vpack.c.bf16 %v2965_v35, %v2947_v4  ;;  %v13273_v6 = vor.u32 %v9857_v34, %v8597_v37 }
 0x2ac   : > { %16198 = vst [vmem:[#allocation485_spill] sm:$0xff] %v13246_v5  ;;  %4944 = vmatpush.bf16.msrb.mxu0 %v13223_v44  ;;  %4958 = vmatpush.bf16.msrb.mxu1 %v13230_v46  ;;  %v8733_v54 = vld [vmem:[%s10477_s12 + $0xbf8] sm:$0xf0]  ;;  %v13267_v46 = vor.u32 %v9813_v15, %v8421_v2  ;;  %v13275_v61 = vor.u32 %v9875_v42, %v8669_v23  ;;  %v9839_v53 = vld [vmem:[%s10477_s12 + $0xa54] sm:$0xf] }
 0x2ad   : > { %4971 = vmatpush.bf16.msrb.mxu2 %v13232_v24  ;;  %16199 = vst [vmem:[#allocation486_spill] sm:$0xff] %v13259_v63  ;;  %v13269_v24 = vor.u32 %v9841_v56, %v8533_v18  ;;  %v8525_v14 = vld [vmem:[%s10477_s12 + $0xa58] sm:$0xf0]  ;;  %v13281_v4 = vor.u32 %v9891_v8, %v8733_v54  ;;  %v9873_v35 = vld [vmem:[%s10477_s12 + $0xb64] sm:$0xf] }
 0x2ae   : > { %4985 = vmatpush.bf16.msrb.mxu3 %v13237_v52  ;;  %16200 = vst [vmem:[#allocation487_spill] sm:$0xff] %v13267_v46  ;;  %v9855_v52 = vld [vmem:[%s10477_s12 + $0xad4] sm:$0xf]  ;;  %v8589_v18 = vld [vmem:[%s10477_s12 + $0xad8] sm:$0xf0]  ;;  %v13291_v56 = vor.u32 %v9839_v53, %v8525_v14 }
 0x2af   : > { %16201 = vst [vmem:[#allocation488_spill] sm:$0xff] %v13269_v24  ;;  %4945 = vmatmul.bf16.vlgmr.msrb.gmra.mxu0 %v13257_v11  ;;  %4959 = vmatmul.bf16.vlgmr.msrb.gmra.mxu1 %v13265_v50  ;;  %v8661_v15 = vld [vmem:[%s10477_s12 + $0xb68] sm:$0xf0]  ;;  %v9889_v34 = vld [vmem:[%s10477_s12 + $0xbe4] sm:$0xf]  ;;  %v13295_v37 = vor.u32 %v9855_v52, %v8589_v18 }
 0x2b0   : > { %4993 = vmatpush.bf16.msra.mxu0 %v13239_v28  ;;  %5007 = vmatpush.bf16.msra.mxu1 %v13246_v5  ;;  %16202 = vst [vmem:[#allocation489_spill] sm:$0xff] %v13273_v6  ;;  %v8725_v2 = vld [vmem:[%s10477_s12 + $0xbe8] sm:$0xf0]  ;;  %v13297_v42 = vor.u32 %v9873_v35, %v8661_v15  ;;  %v9837_v23 = vld [vmem:[%s10477_s12 + $0xa44] sm:$0xf] }
 0x2b1   : > { %16203 = vst [vmem:[#allocation490_spill] sm:$0xff] %v13275_v61  ;;  %4972 = vmatpush.bf16.msrb.mxu2 %v13259_v63  ;;  %v8517_v8 = vld [vmem:[%s10477_s12 + $0xa48] sm:$0xf0]  ;;  %v9853_v54 = vld [vmem:[%s10477_s12 + $0xac4] sm:$0xf]  ;;  %v13304_v53 = vor.u32 %v9889_v34, %v8725_v2 }
 0x2b2   : > { %16204 = vst [vmem:[#allocation491_spill] sm:$0xff] %v13281_v4  ;;  %4986 = vmatpush.bf16.msrb.mxu3 %v13267_v46  ;;  %v8581_v14 = vld [vmem:[%s10477_s12 + $0xac8] sm:$0xf0]  ;;  %v9887_v52 = vld [vmem:[%s10477_s12 + $0xbd4] sm:$0xf]  ;;  %v13313_v35 = vor.u32 %v9837_v23, %v8517_v8 }
 0x2b3   : > { %16205 = vst [vmem:[#allocation492_spill] sm:$0xff] %v13291_v56  ;;  %v8717_v18 = vld [vmem:[%s10477_s12 + $0xbd8] sm:$0xf0]  ;;  %v9835_v34 = vld [vmem:[%s10477_s12 + $0xa34] sm:$0xf] }
 0x2b4   : > { %4994 = vmatpush.bf16.msra.mxu0 %v13269_v24  ;;  %5008 = vmatpush.bf16.msra.mxu1 %v13273_v6  ;;  %16206 = vst [vmem:[#allocation493_spill] sm:$0xff] %v13295_v37  ;;  %v9871_v6 = vld [vmem:[%s10477_s12 + $0xb54] sm:$0xf]  ;;  %v8573_v23 = vld [vmem:[%s10477_s12 + $0xab8] sm:$0xf0] }
 0x2b5   : > { %5021 = vmatpush.bf16.msra.mxu2 %v13275_v61  ;;  %16207 = vst [vmem:[#allocation494_spill] sm:$0xff] %v13297_v42  ;;  %v8653_v61 = vld [vmem:[%s10477_s12 + $0xb58] sm:$0xf0]  ;;  %4987 = vmatmul.bf16.vlgmr.msrb.gmra.mxu3 %v12659_v27  ;;  %v9851_v2 = vld [vmem:[%s10477_s12 + $0xab4] sm:$0xf] }
 0x2b6   : > { %5035 = vmatpush.bf16.msra.mxu3 %v13281_v4  ;;  %4973 = vmatmul.bf16.vlgmr.msrb.gmra.mxu2 %v12657_v60  ;;  %16208 = vst [vmem:[#allocation495_spill] sm:$0xff] %v13304_v53  ;;  %v13317_v60 = vor.u32 %v9853_v54, %v8581_v14  ;;  %v13319_v15 = vor.u32 %v9871_v6, %v8653_v61  ;;  %v8509_v27 = vld [vmem:[%s10477_s12 + $0xa38] sm:$0xf0]  ;;  %v9869_v8 = vld [vmem:[%s10477_s12 + $0xb44] sm:$0xf] }
 0x2b7   : > { %16209 = vst [vmem:[#allocation496_spill] sm:$0xff] %v13313_v35  ;;  %v13325_v4 = vor.u32 %v9887_v52, %v8717_v18  ;;  %v9885_v54 = vld [vmem:[%s10477_s12 + $0xbc4] sm:$0xf]  ;;  %v8709_v6 = vld [vmem:[%s10477_s12 + $0xbc8] sm:$0xf0]  ;;  %v13333_v61 = vor.u32 %v9835_v34, %v8509_v27  ;;  %v13337_v14 = vor.u32 %v9851_v2, %v8573_v23 }
 0x2b8   : > { %4995 = vmatpush.bf16.msra.mxu0 %v13291_v56  ;;  %5009 = vmatpush.bf16.msra.mxu1 %v13295_v37  ;;  %16210 = vst [vmem:[#allocation497_spill] sm:$0xff] %v13317_v60  ;;  %v8645_v37 = vld [vmem:[%s10477_s12 + $0xb48] sm:$0xf0]  ;;  %v9833_v18 = vld [vmem:[%s10477_s12 + $0xa24] sm:$0xf]  ;;  %v13345_v56 = vor.u32 %v9885_v54, %v8709_v6 }
 0x2b9   : > { %5022 = vmatpush.bf16.msra.mxu2 %v13297_v42  ;;  %16211 = vst [vmem:[#allocation498_spill] sm:$0xff] %v13319_v15  ;;  %v13339_v52 = vor.u32 %v9869_v8, %v8645_v37  ;;  %v9849_v42 = vld [vmem:[%s10477_s12 + $0xaa4] sm:$0xf]  ;;  %v8565_v34 = vld [vmem:[%s10477_s12 + $0xaa8] sm:$0xf0] }
 0x2ba   : > { %5036 = vmatpush.bf16.msra.mxu3 %v13304_v53  ;;  %16212 = vst [vmem:[#allocation499_spill] sm:$0xff] %v13325_v4  ;;  %v8501_v53 = vld [vmem:[%s10477_s12 + $0xa28] sm:$0xf0]  ;;  %v9867_v27 = vld [vmem:[%s10477_s12 + $0xb34] sm:$0xf]  ;;  %v13357_v8 = vor.u32 %v9849_v42, %v8565_v34 }
 0x2bb   : > { %16213 = vst [vmem:[#allocation500_spill] sm:$0xff] %v13333_v61  ;;  %v9883_v2 = vld [vmem:[%s10477_s12 + $0xbb4] sm:$0xf]  ;;  %v8701_v37 = vld [vmem:[%s10477_s12 + $0xbb8] sm:$0xf0]  ;;  %v13353_v23 = vor.u32 %v9833_v18, %v8501_v53 }
 0x2bc   : > { %4996 = vmatpush.bf16.msra.mxu0 %v13313_v35  ;;  %5010 = vmatpush.bf16.msra.mxu1 %v13317_v60  ;;  %16214 = vst [vmem:[#allocation501_spill] sm:$0xff] %v13337_v14  ;;  %v8637_v60 = vld [vmem:[%s10477_s12 + $0xb38] sm:$0xf0]  ;;  %v9831_v6 = vld [vmem:[%s10477_s12 + $0xa14] sm:$0xf] }
 0x2bd   : > { %5023 = vmatpush.bf16.msra.mxu2 %v13319_v15  ;;  %16215 = vst [vmem:[#allocation502_spill] sm:$0xff] %v13339_v52  ;;  %v13359_v54 = vor.u32 %v9867_v27, %v8637_v60  ;;  %v9847_v15 = vld [vmem:[%s10477_s12 + $0xa94] sm:$0xf]  ;;  %v8557_v53 = vld [vmem:[%s10477_s12 + $0xa98] sm:$0xf0] }
 0x2be   : > { %5037 = vmatpush.bf16.msra.mxu3 %v13325_v4  ;;  %16216 = vst [vmem:[#allocation503_spill] sm:$0xff] %v13345_v56  ;;  %v8493_v4 = vld [vmem:[%s10477_s12 + $0xa18] sm:$0xf0]  ;;  %v9865_v18 = vld [vmem:[%s10477_s12 + $0xb24] sm:$0xf]  ;;  %v13378_v27 = vor.u32 %v9847_v15, %v8557_v53 }
 0x2bf   : > { %16217 = vst [vmem:[#allocation504_spill] sm:$0xff] %v13353_v23  ;;  %v8693_v42 = vld [vmem:[%s10477_s12 + $0xba8] sm:$0xf0]  ;;  %v13373_v60 = vor.u32 %v9831_v6, %v8493_v4  ;;  %v9829_v34 = vld [vmem:[%s10477_s12 + $0xa04] sm:$0xf] }
 0x2c0   : > { %4997 = vmatpush.bf16.msra.mxu0 %v13333_v61  ;;  %5011 = vmatpush.bf16.msra.mxu1 %v13337_v14  ;;  %16218 = vst [vmem:[#allocation505_spill] sm:$0xff] %v13357_v8  ;;  %v13365_v61 = vor.u32 %v9883_v2, %v8701_v37  ;;  %v8629_v14 = vld [vmem:[%s10477_s12 + $0xb28] sm:$0xf0]  ;;  %v9863_v6 = vld [vmem:[%s10477_s12 + $0xb14] sm:$0xf] }
 0x2c1   : > { %5024 = vmatpush.bf16.msra.mxu2 %v13339_v52  ;;  %16219 = vst [vmem:[#allocation506_spill] sm:$0xff] %v13359_v54  ;;  %v9881_v52 = vld [vmem:[%s10477_s12 + $0xba4] sm:$0xf]  ;;  %v13380_v2 = vor.u32 %v9865_v18, %v8629_v14  ;;  %v8485_v37 = vld [vmem:[%s10477_s12 + $0xa08] sm:$0xf0] }
 0x2c2   : > { %5038 = vmatpush.bf16.msra.mxu3 %v13345_v56  ;;  %16220 = vst [vmem:[#allocation507_spill] sm:$0xff] %v13365_v61  ;;  %v9845_v56 = vld [vmem:[%s10477_s12 + $0xa84] sm:$0xf]  ;;  %v8549_v35 = vld [vmem:[%s10477_s12 + $0xa88] sm:$0xf0]  ;;  %v13386_v4 = vor.u32 %v9881_v52, %v8693_v42  ;;  %v13395_v14 = vor.u32 %v9829_v34, %v8485_v37 }
 0x2c3   : > { %16221 = vst [vmem:[#allocation508_spill] sm:$0xff] %v13373_v60  ;;  %v9879_v24 = vld [vmem:[%s10477_s12 + $0xb94] sm:$0xf]  ;;  %v8797_v15 = vld [vmem:[%s10477_s12 + $0xc78] sm:$0xf0]  ;;  %v13401_v52 = vor.u32 %v9845_v56, %v8549_v35 }
 0x2c4   : > { %4998 = vmatpush.bf16.msra.mxu0 %v13353_v23  ;;  %5012 = vmatpush.bf16.msra.mxu1 %v13357_v8  ;;  %16222 = vst [vmem:[#allocation509_spill] sm:$0xff] %v13378_v27  ;;  %v8621_v23 = vld [vmem:[%s10477_s12 + $0xb18] sm:$0xf0]  ;;  %v9923_v53 = vld [vmem:[%s10477_s12 + $0xcf4] sm:$0xf] }
 0x2c5   : > { %5025 = vmatpush.bf16.msra.mxu2 %v13359_v54  ;;  %16223 = vst [vmem:[#allocation510_spill] sm:$0xff] %v13380_v2  ;;  %v8685_v8 = vld [vmem:[%s10477_s12 + $0xb98] sm:$0xf0]  ;;  %v9907_v54 = vld [vmem:[%s10477_s12 + $0xc74] sm:$0xf]  ;;  %v13403_v42 = vor.u32 %v9863_v6, %v8621_v23 }
 0x2c6   : > { %5039 = vmatpush.bf16.msra.mxu3 %v13365_v61  ;;  %16224 = vst [vmem:[#allocation511_spill] sm:$0xff] %v13386_v4  ;;  %v8861_v18 = vld [vmem:[%s10477_s12 + $0xcf8] sm:$0xf0]  ;;  %v9861_v61 = vld [vmem:[%s10477_s12 + $0xb04] sm:$0xf]  ;;  %v13407_v34 = vor.u32 %v9879_v24, %v8685_v8  ;;  %v13409_v37 = vor.u32 %v9907_v54, %v8797_v15 }
 0x2c7   : > { %16225 = vst [vmem:[#allocation512_spill] sm:$0xff] %v13395_v14  ;;  %v8677_v46 = vld [vmem:[%s10477_s12 + $0xb88] sm:$0xf0]  ;;  %v13414_v63 = vor.u32 %v9923_v53, %v8861_v18  ;;  %v9921_v35 = vld [vmem:[%s10477_s12 + $0xce4] sm:$0xf] }
 0x2c8   : > { %4999 = vmatpush.bf16.msra.mxu0 %v13373_v60  ;;  %5013 = vmatpush.bf16.msra.mxu1 %v13378_v27  ;;  %16226 = vst [vmem:[#allocation513_spill] sm:$0xff] %v13401_v52  ;;  %v8613_v60 = vld [vmem:[%s10477_s12 + $0xb08] sm:$0xf0]  ;;  %v9877_v27 = vld [vmem:[%s10477_s12 + $0xb84] sm:$0xf] }
 0x2c9   : > { %5026 = vmatpush.bf16.msra.mxu2 %v13380_v2  ;;  %16227 = vst [vmem:[#allocation514_spill] sm:$0xff] %v13403_v42  ;;  %v9905_v2 = vld [vmem:[%s10477_s12 + $0xc64] sm:$0xf]  ;;  %v8789_v56 = vld [vmem:[%s10477_s12 + $0xc68] sm:$0xf0]  ;;  %v13425_v8 = vor.u32 %v9861_v61, %v8613_v60  ;;  %v13431_v53 = vor.u32 %v9877_v27, %v8677_v46 }
 0x2ca   : > { %5040 = vmatpush.bf16.msra.mxu3 %v13386_v4  ;;  %16228 = vst [vmem:[#allocation515_spill] sm:$0xff] %v13407_v34  ;;  %v8853_v23 = vld [vmem:[%s10477_s12 + $0xce8] sm:$0xf0]  ;;  %v9939_v6 = vld [vmem:[%s10477_s12 + $0xd74] sm:$0xf]  ;;  %v13433_v18 = vor.u32 %v9905_v2, %v8789_v56 }
 0x2cb   : > { %16229 = vst [vmem:[#allocation516_spill] sm:$0xff] %v13409_v37  ;;  %v8925_v24 = vld [vmem:[%s10477_s12 + $0xd78] sm:$0xf0]  ;;  %v9955_v54 = vld [vmem:[%s10477_s12 + $0xdf4] sm:$0xf]  ;;  %v13437_v61 = vor.u32 %v9921_v35, %v8853_v23 }
 0x2cc   : > { %16230 = vst [vmem:[#allocation517_spill] sm:$0xff] %v13414_v63  ;;  %5000 = vmatpush.bf16.msra.mxu0 %v13395_v14  ;;  %5014 = vmatpush.bf16.msra.mxu1 %v13401_v52  ;;  %v8989_v15 = vld [vmem:[%s10477_s12 + $0xdf8] sm:$0xf0]  ;;  %v13439_v60 = vor.u32 %v9939_v6, %v8925_v24  ;;  %v9919_v14 = vld [vmem:[%s10477_s12 + $0xcd4] sm:$0xf] }
 0x2cd   : > { %5027 = vmatpush.bf16.msra.mxu2 %v13403_v42  ;;  %16231 = vst [vmem:[#allocation518_spill] sm:$0xff] %v13425_v8  ;;  %v9903_v42 = vld [vmem:[%s10477_s12 + $0xc54] sm:$0xf]  ;;  %v8781_v52 = vld [vmem:[%s10477_s12 + $0xc58] sm:$0xf0]  ;;  %v13445_v46 = vor.u32 %v9955_v54, %v8989_v15 }
 0x2ce   : > { %5041 = vmatpush.bf16.msra.mxu3 %v13407_v34  ;;  %16232 = vst [vmem:[#allocation519_spill] sm:$0xff] %v13431_v53  ;;  %v8845_v27 = vld [vmem:[%s10477_s12 + $0xcd8] sm:$0xf0]  ;;  %v9937_v2 = vld [vmem:[%s10477_s12 + $0xd64] sm:$0xf] }
 0x2cf   : > { %16233 = vst [vmem:[#allocation520_spill] sm:$0xff] %v13433_v18  ;;  %5001 = vmatmul.bf16.vlgmr.msra.gmra.mxu0 %v12685_v45  ;;  %5015 = vmatmul.bf16.vlgmr.msra.gmra.mxu1 %v12699_v10  ;;  %v8917_v56 = vld [vmem:[%s10477_s12 + $0xd68] sm:$0xf0]  ;;  %v9953_v45 = vld [vmem:[%s10477_s12 + $0xde4] sm:$0xf]  ;;  %v13455_v10 = vor.u32 %v9903_v42, %v8781_v52  ;;  %v13459_v23 = vor.u32 %v9919_v14, %v8845_v27 }
 0x2d0   : > { %5049 = vmatpush.bf16.msrb.mxu0 %v13409_v37  ;;  %5063 = vmatpush.bf16.msrb.mxu1 %v13414_v63  ;;  %16234 = vst [vmem:[#allocation521_spill] sm:$0xff] %v13437_v61  ;;  %v8981_v35 = vld [vmem:[%s10477_s12 + $0xde8] sm:$0xf0]  ;;  %v13461_v6 = vor.u32 %v9937_v2, %v8917_v56  ;;  %v9901_v24 = vld [vmem:[%s10477_s12 + $0xc44] sm:$0xf] }
 0x2d1   : > { %16235 = vst [vmem:[#allocation522_spill] sm:$0xff] %v13439_v60  ;;  %5028 = vmatpush.bf16.msra.mxu2 %v13425_v8  ;;  %v8773_v54 = vld [vmem:[%s10477_s12 + $0xc48] sm:$0xf0]  ;;  %v9917_v15 = vld [vmem:[%s10477_s12 + $0xcc4] sm:$0xf]  ;;  %v13468_v52 = vor.u32 %v9953_v45, %v8981_v35 }
 0x2d2   : > { %16236 = vst [vmem:[#allocation523_spill] sm:$0xff] %v13445_v46  ;;  %5042 = vmatpush.bf16.msra.mxu3 %v13431_v53  ;;  %v8837_v42 = vld [vmem:[%s10477_s12 + $0xcc8] sm:$0xf0]  ;;  %v9951_v14 = vld [vmem:[%s10477_s12 + $0xdd4] sm:$0xf]  ;;  %v13477_v2 = vor.u32 %v9901_v24, %v8773_v54 }
 0x2d3   : > { %16237 = vst [vmem:[#allocation524_spill] sm:$0xff] %v13455_v10  ;;  %v8973_v27 = vld [vmem:[%s10477_s12 + $0xdd8] sm:$0xf0]  ;;  %v9899_v45 = vld [vmem:[%s10477_s12 + $0xc34] sm:$0xf] }
 0x2d4   : > { %5050 = vmatpush.bf16.msrb.mxu0 %v13433_v18  ;;  %5064 = vmatpush.bf16.msrb.mxu1 %v13437_v61  ;;  %16238 = vst [vmem:[#allocation525_spill] sm:$0xff] %v13459_v23  ;;  %v9935_v61 = vld [vmem:[%s10477_s12 + $0xd54] sm:$0xf]  ;;  %v8829_v24 = vld [vmem:[%s10477_s12 + $0xcb8] sm:$0xf0] }
 0x2d5   : > { %5077 = vmatpush.bf16.msrb.mxu2 %v13439_v60  ;;  %16239 = vst [vmem:[#allocation526_spill] sm:$0xff] %v13461_v6  ;;  %v8909_v60 = vld [vmem:[%s10477_s12 + $0xd58] sm:$0xf0]  ;;  %5043 = vmatmul.bf16.vlgmr.msra.gmra.mxu3 %v12765_v49  ;;  %v9915_v35 = vld [vmem:[%s10477_s12 + $0xcb4] sm:$0xf] }
 0x2d6   : > { %5091 = vmatpush.bf16.msrb.mxu3 %v13445_v46  ;;  %5029 = vmatmul.bf16.vlgmr.msra.gmra.mxu2 %v12763_v9  ;;  %16240 = vst [vmem:[#allocation527_spill] sm:$0xff] %v13468_v52  ;;  %v13481_v9 = vor.u32 %v9917_v15, %v8837_v42  ;;  %v13483_v56 = vor.u32 %v9935_v61, %v8909_v60  ;;  %v8765_v49 = vld [vmem:[%s10477_s12 + $0xc38] sm:$0xf0]  ;;  %v9933_v54 = vld [vmem:[%s10477_s12 + $0xd44] sm:$0xf] }
 0x2d7   : > { %16241 = vst [vmem:[#allocation528_spill] sm:$0xff] %v13477_v2  ;;  %v13489_v46 = vor.u32 %v9951_v14, %v8973_v27  ;;  %v9949_v15 = vld [vmem:[%s10477_s12 + $0xdc4] sm:$0xf]  ;;  %v8965_v61 = vld [vmem:[%s10477_s12 + $0xdc8] sm:$0xf0]  ;;  %v13497_v60 = vor.u32 %v9899_v45, %v8765_v49  ;;  %v13501_v42 = vor.u32 %v9915_v35, %v8829_v24 }
 0x2d8   : > { %5051 = vmatpush.bf16.msrb.mxu0 %v13455_v10  ;;  %5065 = vmatpush.bf16.msrb.mxu1 %v13459_v23  ;;  %16242 = vst [vmem:[#allocation529_spill] sm:$0xff] %v13481_v9  ;;  %v8901_v23 = vld [vmem:[%s10477_s12 + $0xd48] sm:$0xf0]  ;;  %v9897_v27 = vld [vmem:[%s10477_s12 + $0xc24] sm:$0xf]  ;;  %v13509_v10 = vor.u32 %v9949_v15, %v8965_v61 }
 0x2d9   : > { %5078 = vmatpush.bf16.msrb.mxu2 %v13461_v6  ;;  %16243 = vst [vmem:[#allocation530_spill] sm:$0xff] %v13483_v56  ;;  %v13503_v14 = vor.u32 %v9933_v54, %v8901_v23  ;;  %v9913_v6 = vld [vmem:[%s10477_s12 + $0xca4] sm:$0xf]  ;;  %v8821_v45 = vld [vmem:[%s10477_s12 + $0xca8] sm:$0xf0] }
 0x2da   : > { %5092 = vmatpush.bf16.msrb.mxu3 %v13468_v52  ;;  %16244 = vst [vmem:[#allocation531_spill] sm:$0xff] %v13489_v46  ;;  %v8757_v52 = vld [vmem:[%s10477_s12 + $0xc28] sm:$0xf0]  ;;  %v9931_v49 = vld [vmem:[%s10477_s12 + $0xd34] sm:$0xf]  ;;  %v13521_v54 = vor.u32 %v9913_v6, %v8821_v45  ;;  %v13536_v6 = vpop.f32.mrf.mxu0 }
 0x2db   : > { %16245 = vst [vmem:[#allocation532_spill] sm:$0xff] %v13497_v60  ;;  %v9947_v35 = vld [vmem:[%s10477_s12 + $0xdb4] sm:$0xf]  ;;  %v8957_v23 = vld [vmem:[%s10477_s12 + $0xdb8] sm:$0xf0]  ;;  %v13517_v24 = vor.u32 %v9897_v27, %v8757_v52 }
 0x2dc   : > { %5052 = vmatpush.bf16.msrb.mxu0 %v13477_v2  ;;  %5066 = vmatpush.bf16.msrb.mxu1 %v13481_v9  ;;  %16246 = vst [vmem:[#allocation533_spill] sm:$0xff] %v13501_v42  ;;  %v8893_v9 = vld [vmem:[%s10477_s12 + $0xd38] sm:$0xf0]  ;;  %v9895_v61 = vld [vmem:[%s10477_s12 + $0xc14] sm:$0xf]  ;;  %v13529_v2 = vor.u32 %v9947_v35, %v8957_v23 }
 0x2dd   : > { %5079 = vmatpush.bf16.msrb.mxu2 %v13483_v56  ;;  %16247 = vst [vmem:[#allocation534_spill] sm:$0xff] %v13503_v14  ;;  %v13523_v15 = vor.u32 %v9931_v49, %v8893_v9  ;;  %v9911_v56 = vld [vmem:[%s10477_s12 + $0xc94] sm:$0xf]  ;;  %v8813_v52 = vld [vmem:[%s10477_s12 + $0xc98] sm:$0xf0]  ;;  %v13542_v49 = vpop.f32.mrf.mxu1 }
 0x2de   : > { %5093 = vmatpush.bf16.msrb.mxu3 %v13489_v46  ;;  %16248 = vst [vmem:[#allocation535_spill] sm:$0xff] %v13509_v10  ;;  %v8749_v46 = vld [vmem:[%s10477_s12 + $0xc18] sm:$0xf0]  ;;  %v9929_v27 = vld [vmem:[%s10477_s12 + $0xd24] sm:$0xf]  ;;  %v13546_v35 = vor.u32 %v9911_v56, %v8813_v52 }
 0x2df   : > { %16249 = vst [vmem:[#allocation536_spill] sm:$0xff] %v13517_v24  ;;  %v13539_v9 = vor.u32 %v9895_v61, %v8749_v46  ;;  %v9893_v45 = vld [vmem:[%s10477_s12 + $0xc04] sm:$0xf]  ;;  %v8805_v18 = vld [vmem:[%s10477_s12 + $0xc88] sm:$0xf0] }
 0x2e0   : > { %5053 = vmatpush.bf16.msrb.mxu0 %v13497_v60  ;;  %5067 = vmatpush.bf16.msrb.mxu1 %v13501_v42  ;;  %16250 = vst [vmem:[#allocation537_spill] sm:$0xff] %v13521_v54  ;;  %v8885_v42 = vld [vmem:[%s10477_s12 + $0xd28] sm:$0xf0]  ;;  %v9945_v60 = vld [vmem:[%s10477_s12 + $0xda4] sm:$0xf] }
 0x2e1   : > { %5080 = vmatpush.bf16.msrb.mxu2 %v13503_v14  ;;  %16251 = vst [vmem:[#allocation538_spill] sm:$0xff] %v13523_v15  ;;  %v8949_v14 = vld [vmem:[%s10477_s12 + $0xda8] sm:$0xf0]  ;;  %v13548_v23 = vor.u32 %v9929_v27, %v8885_v42  ;;  %v9927_v61 = vld [vmem:[%s10477_s12 + $0xd14] sm:$0xf] }
 0x2e2   : > { %5094 = vmatpush.bf16.msrb.mxu3 %v13509_v10  ;;  %16252 = vst [vmem:[#allocation539_spill] sm:$0xff] %v13529_v2  ;;  %v8741_v10 = vld [vmem:[%s10477_s12 + $0xc08] sm:$0xf0]  ;;  %v13554_v46 = vor.u32 %v9945_v60, %v8949_v14  ;;  %v8877_v53 = vld [vmem:[%s10477_s12 + $0xd18] sm:$0xf0] }
 0x2e3   : > { %16253 = vst [vmem:[#allocation540_spill] sm:$0xff] %v13539_v9  ;;  %v9943_v8 = vld [vmem:[%s10477_s12 + $0xd94] sm:$0xf]  ;;  %v9053_v56 = vld [vmem:[%s10477_s12 + $0xe78] sm:$0xf0]  ;;  %v13563_v42 = vor.u32 %v9893_v45, %v8741_v10  ;;  %v13571_v14 = vor.u32 %v9927_v61, %v8877_v53  ;;  %v13587_v53 = vpop.f32.mrf.mxu2 }
 0x2e4   : > { %5054 = vmatpush.bf16.msrb.mxu0 %v13517_v24  ;;  %5068 = vmatpush.bf16.msrb.mxu1 %v13521_v54  ;;  %16254 = vst [vmem:[#allocation541_spill] sm:$0xff] %v13546_v35  ;;  %v9909_v24 = vld [vmem:[%s10477_s12 + $0xc84] sm:$0xf]  ;;  %v8941_v54 = vld [vmem:[%s10477_s12 + $0xd98] sm:$0xf0] }
 0x2e5   : > { %5081 = vmatpush.bf16.msrb.mxu2 %v13523_v15  ;;  %16255 = vst [vmem:[#allocation542_spill] sm:$0xff] %v13548_v23  ;;  %v9971_v15 = vld [vmem:[%s10477_s12 + $0xe74] sm:$0xf]  ;;  %v9117_v27 = vld [vmem:[%s10477_s12 + $0xef8] sm:$0xf0]  ;;  %v13569_v60 = vor.u32 %v9909_v24, %v8805_v18  ;;  %v13575_v10 = vor.u32 %v9943_v8, %v8941_v54 }
 0x2e6   : > { %5095 = vmatpush.bf16.msrb.mxu3 %v13529_v2  ;;  %16256 = vst [vmem:[#allocation543_spill] sm:$0xff] %v13554_v46  ;;  %v9987_v52 = vld [vmem:[%s10477_s12 + $0xef4] sm:$0xf]  ;;  %v9925_v2 = vld [vmem:[%s10477_s12 + $0xd04] sm:$0xf]  ;;  %v13577_v45 = vor.u32 %v9971_v15, %v9053_v56 }
 0x2e7   : > { %16257 = vst [vmem:[#allocation544_spill] sm:$0xff] %v13563_v42  ;;  %v8933_v63 = vld [vmem:[%s10477_s12 + $0xd88] sm:$0xf0]  ;;  %v9969_v18 = vld [vmem:[%s10477_s12 + $0xe64] sm:$0xf] }
 0x2e8   : > { %5055 = vmatpush.bf16.msrb.mxu0 %v13539_v9  ;;  %5069 = vmatpush.bf16.msrb.mxu1 %v13546_v35  ;;  %16258 = vst [vmem:[#allocation545_spill] sm:$0xff] %v13569_v60  ;;  %v8869_v9 = vld [vmem:[%s10477_s12 + $0xd08] sm:$0xf0]  ;;  %v9941_v35 = vld [vmem:[%s10477_s12 + $0xd84] sm:$0xf] }
 0x2e9   : > { %5082 = vmatpush.bf16.msrb.mxu2 %v13548_v23  ;;  %16259 = vst [vmem:[#allocation546_spill] sm:$0xff] %v13571_v14  ;;  %v13582_v23 = vor.u32 %v9987_v52, %v9117_v27  ;;  %v9045_v24 = vld [vmem:[%s10477_s12 + $0xe68] sm:$0xf0]  ;;  %v9985_v37 = vld [vmem:[%s10477_s12 + $0xee4] sm:$0xf]  ;;  %v13595_v54 = vor.u32 %v9925_v2, %v8869_v9  ;;  %v13599_v52 = vpop.f32.mrf.mxu0  ;;  %v13603_v27 = vor.u32 %v9941_v35, %v8933_v63 }
 0x2ea   : > { %5096 = vmatpush.bf16.msrb.mxu3 %v13554_v46  ;;  %16260 = vst [vmem:[#allocation547_spill] sm:$0xff] %v13575_v10  ;;  %v9109_v61 = vld [vmem:[%s10477_s12 + $0xee8] sm:$0xf0]  ;;  %v10003_v46 = vld [vmem:[%s10477_s12 + $0xf74] sm:$0xf] }
 0x2eb   : > { %16261 = vst [vmem:[#allocation548_spill] sm:$0xff] %v13577_v45  ;;  %v9181_v8 = vld [vmem:[%s10477_s12 + $0xf78] sm:$0xf0]  ;;  %v10019_v15 = vld [vmem:[%s10477_s12 + $0xff4] sm:$0xf]  ;;  %v13611_v2 = vor.u32 %v9985_v37, %v9109_v61 }
 0x2ec   : > { %16262 = vst [vmem:[#allocation549_spill] sm:$0xff] %v13582_v23  ;;  %5056 = vmatpush.bf16.msrb.mxu0 %v13563_v42  ;;  %5070 = vmatpush.bf16.msrb.mxu1 %v13569_v60  ;;  %v9245_v56 = vld [vmem:[%s10477_s12 + $0xff8] sm:$0xf0]  ;;  %v13605_v60 = vor.u32 %v9969_v18, %v9045_v24  ;;  %v13613_v9 = vor.u32 %v10003_v46, %v9181_v8  ;;  %v9983_v34 = vld [vmem:[%s10477_s12 + $0xed4] sm:$0xf]  ;;  %v13627_v46 = vpop.f32.mrf.mxu3 }
 0x2ed   : > { %5083 = vmatpush.bf16.msrb.mxu2 %v13571_v14  ;;  %16263 = vst [vmem:[#allocation550_spill] sm:$0xff] %v13595_v54  ;;  %v13607_v14 = vpop.f32.mrf.mxu1  ;;  %v9037_v42 = vld [vmem:[%s10477_s12 + $0xe58] sm:$0xf0]  ;;  %v13619_v63 = vor.u32 %v10019_v15, %v9245_v56  ;;  %v10001_v18 = vld [vmem:[%s10477_s12 + $0xf64] sm:$0xf] }
 0x2ee   : > { %5097 = vmatpush.bf16.msrb.mxu3 %v13575_v10  ;;  %16264 = vst [vmem:[#allocation551_spill] sm:$0xff] %v13603_v27  ;;  %v9967_v10 = vld [vmem:[%s10477_s12 + $0xe54] sm:$0xf]  ;;  %v9101_v35 = vld [vmem:[%s10477_s12 + $0xed8] sm:$0xf0] }
 0x2ef   : > { %16265 = vst [vmem:[#allocation552_spill] sm:$0xff] %v13605_v60  ;;  %5057 = vmatmul.bf16.vlgmr.msrb.gmra.mxu0 %v12795_v25  ;;  %5071 = vmatmul.bf16.vlgmr.msrb.gmra.mxu1 %v12809_v47  ;;  %v9173_v24 = vld [vmem:[%s10477_s12 + $0xf68] sm:$0xf0]  ;;  %v10017_v25 = vld [vmem:[%s10477_s12 + $0xfe4] sm:$0xf]  ;;  %v13631_v47 = vor.u32 %v9967_v10, %v9037_v42  ;;  %v13635_v61 = vor.u32 %v9983_v34, %v9101_v35 }
 0x2f0   : > { %5105 = vmatpush.bf16.msra.mxu0 %v13577_v45  ;;  %5119 = vmatpush.bf16.msra.mxu1 %v13582_v23  ;;  %16266 = vst [vmem:[#allocation553_spill] sm:$0xff] %v13611_v2  ;;  %v9237_v37 = vld [vmem:[%s10477_s12 + $0xfe8] sm:$0xf0]  ;;  %v13637_v8 = vor.u32 %v10001_v18, %v9173_v24  ;;  %v9965_v15 = vld [vmem:[%s10477_s12 + $0xe44] sm:$0xf]  ;;  %v13652_v18 = vpop.f32.mrf.mxu2 }
 0x2f1   : > { %16267 = vst [vmem:[#allocation554_spill] sm:$0xff] %v13613_v9  ;;  %5084 = vmatpush.bf16.msrb.mxu2 %v13595_v54  ;;  %v9029_v56 = vld [vmem:[%s10477_s12 + $0xe48] sm:$0xf0]  ;;  %v9981_v54 = vld [vmem:[%s10477_s12 + $0xec4] sm:$0xf]  ;;  %v13644_v42 = vor.u32 %v10017_v25, %v9237_v37 }
 0x2f2   : > { %16268 = vst [vmem:[#allocation555_spill] sm:$0xff] %v13619_v63  ;;  %5098 = vmatpush.bf16.msrb.mxu3 %v13603_v27  ;;  %v9093_v10 = vld [vmem:[%s10477_s12 + $0xec8] sm:$0xf0]  ;;  %v10015_v34 = vld [vmem:[%s10477_s12 + $0xfd4] sm:$0xf] }
 0x2f3   : > { %16269 = vst [vmem:[#allocation556_spill] sm:$0xff] %v13631_v47  ;;  %v9229_v35 = vld [vmem:[%s10477_s12 + $0xfd8] sm:$0xf0]  ;;  %v13659_v24 = vor.u32 %v9981_v54, %v9093_v10  ;;  %v9963_v25 = vld [vmem:[%s10477_s12 + $0xe34] sm:$0xf] }
 0x2f4   : > { %5106 = vmatpush.bf16.msra.mxu0 %v13605_v60  ;;  %5120 = vmatpush.bf16.msra.mxu1 %v13611_v2  ;;  %16270 = vst [vmem:[#allocation557_spill] sm:$0xff] %v13635_v61  ;;  %v9999_v2 = vld [vmem:[%s10477_s12 + $0xf54] sm:$0xf]  ;;  %v9165_v60 = vld [vmem:[%s10477_s12 + $0xf58] sm:$0xf0]  ;;  %v13690_v23 = vpop.f32.mrf.mxu3 }
 0x2f5   : > { %5133 = vmatpush.bf16.msra.mxu2 %v13613_v9  ;;  %16271 = vst [vmem:[#allocation558_spill] sm:$0xff] %v13637_v8  ;;  %5099 = vmatmul.bf16.vlgmr.msrb.gmra.mxu3 %v12893_v58  ;;  %v13661_v58 = vor.u32 %v9999_v2, %v9165_v60  ;;  %v9021_v37 = vld [vmem:[%s10477_s12 + $0xe38] sm:$0xf0]  ;;  %v13666_v9 = vpop.f32.mrf.mxu0  ;;  %v13674_v54 = vpop.f32.mrf.mxu1  ;;  %v10013_v60 = vld [vmem:[%s10477_s12 + $0xfc4] sm:$0xf] }
 0x2f6   : > { %5147 = vmatpush.bf16.msra.mxu3 %v13619_v63  ;;  %5085 = vmatmul.bf16.vlgmr.msrb.gmra.mxu2 %v12891_v39  ;;  %16272 = vst [vmem:[#allocation559_spill] sm:$0xff] %v13644_v42  ;;  %v13655_v39 = vor.u32 %v9965_v15, %v9029_v56  ;;  %v9979_v63 = vld [vmem:[%s10477_s12 + $0xeb4] sm:$0xf]  ;;  %v13669_v15 = vor.u32 %v10015_v34, %v9229_v35  ;;  %v9085_v56 = vld [vmem:[%s10477_s12 + $0xeb8] sm:$0xf0] }
 0x2f7   : > { %16274 = vst [vmem:[#allocation561_spill] sm:$0xff] %v13659_v24  ;;  %v9221_v2 = vld [vmem:[%s10477_s12 + $0xfc8] sm:$0xf0]  ;;  %v13679_v10 = vor.u32 %v9963_v25, %v9021_v37  ;;  %v13683_v34 = vor.u32 %v9979_v63, %v9085_v56  ;;  %v9977_v27 = vld [vmem:[%s10477_s12 + $0xea4] sm:$0xf] }
 0x2f8   : > { %5107 = vmatpush.bf16.msra.mxu0 %v13631_v47  ;;  %16273 = vst [vmem:[#allocation560_spill] sm:$0xff] %v13655_v39  ;;  %5121 = vmatpush.bf16.msra.mxu1 %v13635_v61  ;;  %v9997_v61 = vld [vmem:[%s10477_s12 + $0xf44] sm:$0xf]  ;;  %v9157_v47 = vld [vmem:[%s10477_s12 + $0xf48] sm:$0xf0]  ;;  %v13693_v25 = vor.u32 %v10013_v60, %v9221_v2  ;;  %v13712_v45 = vpop.f32.mrf.mxu2 }
 0x2f9   : > { %5134 = vmatpush.bf16.msra.mxu2 %v13637_v8  ;;  %16275 = vst [vmem:[#allocation562_spill] sm:$0xff] %v13661_v58  ;;  %v13685_v35 = vor.u32 %v9997_v61, %v9157_v47  ;;  %v9013_v8 = vld [vmem:[%s10477_s12 + $0xe28] sm:$0xf0]  ;;  %v10011_v63 = vld [vmem:[%s10477_s12 + $0xfb4] sm:$0xf] }
 0x2fa   : > { %5148 = vmatpush.bf16.msra.mxu3 %v13644_v42  ;;  %16276 = vst [vmem:[#allocation563_spill] sm:$0xff] %v13669_v15  ;;  %v9961_v42 = vld [vmem:[%s10477_s12 + $0xe24] sm:$0xf]  ;;  %v9077_v37 = vld [vmem:[%s10477_s12 + $0xea8] sm:$0xf0] }
 0x2fb   : > { %16277 = vst [vmem:[#allocation564_spill] sm:$0xff] %v13679_v10  ;;  %v9213_v47 = vld [vmem:[%s10477_s12 + $0xfb8] sm:$0xf0]  ;;  %v13701_v61 = vor.u32 %v9961_v42, %v9013_v8  ;;  %v13705_v56 = vor.u32 %v9977_v27, %v9077_v37  ;;  %v9959_v2 = vld [vmem:[%s10477_s12 + $0xe14] sm:$0xf] }
 0x2fc   : > { %5108 = vmatpush.bf16.msra.mxu0 %v13655_v39  ;;  %5122 = vmatpush.bf16.msra.mxu1 %v13659_v24  ;;  %16278 = vst [vmem:[#allocation565_spill] sm:$0xff] %v13683_v34  ;;  %v9995_v24 = vld [vmem:[%s10477_s12 + $0xf34] sm:$0xf]  ;;  %v9069_v8 = vld [vmem:[%s10477_s12 + $0xe98] sm:$0xf0] }
 0x2fd   : > { %5135 = vmatpush.bf16.msra.mxu2 %v13661_v58  ;;  %16279 = vst [vmem:[#allocation566_spill] sm:$0xff] %v13685_v35  ;;  %v9149_v58 = vld [vmem:[%s10477_s12 + $0xf38] sm:$0xf0]  ;;  %v9975_v39 = vld [vmem:[%s10477_s12 + $0xe94] sm:$0xf] }
 0x2fe   : > { %5149 = vmatpush.bf16.msra.mxu3 %v13669_v15  ;;  %16280 = vst [vmem:[#allocation567_spill] sm:$0xff] %v13693_v25  ;;  %v13707_v60 = vor.u32 %v9995_v24, %v9149_v58  ;;  %v9005_v15 = vld [vmem:[%s10477_s12 + $0xe18] sm:$0xf0]  ;;  %v9993_v42 = vld [vmem:[%s10477_s12 + $0xf24] sm:$0xf]  ;;  %v13722_v24 = vpop.f32.mrf.mxu0 }
 0x2ff   : > { %16281 = vst [vmem:[#allocation568_spill] sm:$0xff] %v13701_v61  ;;  %v10009_v27 = vld [vmem:[%s10477_s12 + $0xfa4] sm:$0xf]  ;;  %v9205_v37 = vld [vmem:[%s10477_s12 + $0xfa8] sm:$0xf0]  ;;  %v13725_v58 = vor.u32 %v9959_v2, %v9005_v15 }
 0x300   : > { %5109 = vmatpush.bf16.msra.mxu0 %v13679_v10  ;;  %5123 = vmatpush.bf16.msra.mxu1 %v13683_v34  ;;  %16282 = vst [vmem:[#allocation569_spill] sm:$0xff] %v13705_v56  ;;  %v13715_v10 = vor.u32 %v10011_v63, %v9213_v47  ;;  %v9957_v63 = vld [vmem:[%s10477_s12 + $0xe04] sm:$0xf]  ;;  %v13728_v47 = vpop.f32.mrf.mxu1  ;;  %v8997_v4 = vld [vmem:[%s10477_s12 + $0xe08] sm:$0xf0]  ;;  %v13740_v15 = vor.u32 %v10009_v27, %v9205_v37 }
 0x301   : > { %5136 = vmatpush.bf16.msra.mxu2 %v13685_v35  ;;  %16283 = vst [vmem:[#allocation570_spill] sm:$0xff] %v13707_v60  ;;  %v9141_v35 = vld [vmem:[%s10477_s12 + $0xf28] sm:$0xf0]  ;;  %v9991_v2 = vld [vmem:[%s10477_s12 + $0xf14] sm:$0xf] }
 0x302   : > { %5150 = vmatpush.bf16.msra.mxu3 %v13693_v25  ;;  %16284 = vst [vmem:[#allocation571_spill] sm:$0xff] %v13715_v10  ;;  %v13732_v25 = vor.u32 %v9975_v39, %v9069_v8  ;;  %v13734_v34 = vor.u32 %v9993_v42, %v9141_v35  ;;  %v9061_v5 = vld [vmem:[%s10477_s12 + $0xe88] sm:$0xf0]  ;;  %v9133_v28 = vld [vmem:[%s10477_s12 + $0xf18] sm:$0xf0]  ;;  %v13748_v8 = vpop.f32.mrf.mxu3  ;;  %v13751_v35 = vor.u32 %v9957_v63, %v8997_v4 }
 0x303   : > { %16285 = vst [vmem:[#allocation572_spill] sm:$0xff] %v13725_v58  ;;  %v10007_v44 = vld [vmem:[%s10477_s12 + $0xf94] sm:$0xf]  ;;  %v9309_v39 = vld [vmem:[%s10477_s12 + $0x1078] sm:$0xf0]  ;;  %v4737_v4 = vadd.f32 %v13542_v49, %v13536_v6  ;;  %v13778_v6 = vpop.f32.mrf.mxu2 }
 0x304   : > { %5110 = vmatpush.bf16.msra.mxu0 %v13701_v61  ;;  %5124 = vmatpush.bf16.msra.mxu1 %v13705_v56  ;;  %16286 = vst [vmem:[#allocation573_spill] sm:$0xff] %v13732_v25  ;;  %v9973_v61 = vld [vmem:[%s10477_s12 + $0xe84] sm:$0xf]  ;;  %v9197_v56 = vld [vmem:[%s10477_s12 + $0xf98] sm:$0xf0] }
 0x305   : > { %5137 = vmatpush.bf16.msra.mxu2 %v13707_v60  ;;  %16287 = vst [vmem:[#allocation574_spill] sm:$0xff] %v13734_v34  ;;  %v10035_v55 = vld [vmem:[%s10477_s12 + $0x1074] sm:$0xf]  ;;  %v9373_v27 = vld [vmem:[%s10477_s12 + $0x10f8] sm:$0xf0]  ;;  %v13757_v37 = vor.u32 %v9973_v61, %v9061_v5  ;;  %v13765_v63 = vor.u32 %v10007_v44, %v9197_v56  ;;  %v4751_v38 = vadd.f32 %v13587_v53, %v4737_v4 }
 0x306   : > { %5151 = vmatpush.bf16.msra.mxu3 %v13715_v10  ;;  %16288 = vst [vmem:[#allocation575_spill] sm:$0xff] %v13740_v15  ;;  %v10051_v42 = vld [vmem:[%s10477_s12 + $0x10f4] sm:$0xf]  ;;  %v13759_v10 = vor.u32 %v9991_v2, %v9133_v28  ;;  %v9989_v60 = vld [vmem:[%s10477_s12 + $0xf04] sm:$0xf] }
 0x307   : > { %16289 = vst [vmem:[#allocation576_spill] sm:$0xff] %v13751_v35  ;;  %v9189_v5 = vld [vmem:[%s10477_s12 + $0xf88] sm:$0xf0]  ;;  %v13772_v28 = vor.u32 %v10051_v42, %v9373_v27  ;;  %v10033_v61 = vld [vmem:[%s10477_s12 + $0x1064] sm:$0xf]  ;;  %v13790_v27 = vpop.f32.mrf.mxu0 }
 0x308   : > { %5111 = vmatpush.bf16.msra.mxu0 %v13725_v58  ;;  %5125 = vmatpush.bf16.msra.mxu1 %v13732_v25  ;;  %16290 = vst [vmem:[#allocation577_spill] sm:$0xff] %v13757_v37  ;;  %v13767_v58 = vor.u32 %v10035_v55, %v9309_v39  ;;  %v9125_v25 = vld [vmem:[%s10477_s12 + $0xf08] sm:$0xf0]  ;;  %v10049_v30 = vld [vmem:[%s10477_s12 + $0x10e4] sm:$0xf] }
 0x309   : > { %5138 = vmatpush.bf16.msra.mxu2 %v13734_v34  ;;  %16291 = vst [vmem:[#allocation578_spill] sm:$0xff] %v13759_v10  ;;  %v10005_v34 = vld [vmem:[%s10477_s12 + $0xf84] sm:$0xf]  ;;  %v9301_v2 = vld [vmem:[%s10477_s12 + $0x1068] sm:$0xf0]  ;;  %v13786_v56 = vor.u32 %v9989_v60, %v9125_v25  ;;  %v4739_v25 = vadd.f32 %v13607_v14, %v13599_v52  ;;  %v13800_v60 = vpop.f32.mrf.mxu1 }
 0x30a   : > { %5152 = vmatpush.bf16.msra.mxu3 %v13740_v15  ;;  %16292 = vst [vmem:[#allocation579_spill] sm:$0xff] %v13765_v63  ;;  %v9365_v44 = vld [vmem:[%s10477_s12 + $0x10e8] sm:$0xf0]  ;;  %v10067_v49 = vld [vmem:[%s10477_s12 + $0x1174] sm:$0xf]  ;;  %v13794_v53 = vor.u32 %v10005_v34, %v9189_v5  ;;  %v13796_v4 = vor.u32 %v10033_v61, %v9301_v2  ;;  %v4765_v61 = vadd.f32 %v13627_v46, %v4751_v38  ;;  %v13823_v38 = vpop.f32.mrf.mxu3 }
 0x30b   : > { %16293 = vst [vmem:[#allocation580_spill] sm:$0xff] %v13767_v58  ;;  %v9437_v55 = vld [vmem:[%s10477_s12 + $0x1178] sm:$0xf0]  ;;  %v10083_v39 = vld [vmem:[%s10477_s12 + $0x11f4] sm:$0xf] }
 0x30c   : > { %16294 = vst [vmem:[#allocation581_spill] sm:$0xff] %v13772_v28  ;;  %5112 = vmatpush.bf16.msra.mxu0 %v13751_v35  ;;  %5126 = vmatpush.bf16.msra.mxu1 %v13757_v37  ;;  %v9501_v42 = vld [vmem:[%s10477_s12 + $0x11f8] sm:$0xf0]  ;;  %v10031_v34 = vld [vmem:[%s10477_s12 + $0x1054] sm:$0xf] }
 0x30d   : > { %5139 = vmatpush.bf16.msra.mxu2 %v13759_v10  ;;  %16295 = vst [vmem:[#allocation582_spill] sm:$0xff] %v13786_v56  ;;  %v9293_v5 = vld [vmem:[%s10477_s12 + $0x1058] sm:$0xf0]  ;;  %v10047_v10 = vld [vmem:[%s10477_s12 + $0x10d4] sm:$0xf]  ;;  %v13813_v14 = vor.u32 %v10083_v39, %v9501_v42 }
 0x30e   : > { %5153 = vmatpush.bf16.msra.mxu3 %v13765_v63  ;;  %16296 = vst [vmem:[#allocation583_spill] sm:$0xff] %v13794_v53  ;;  %v13804_v63 = vor.u32 %v10049_v30, %v9365_v44  ;;  %v9357_v52 = vld [vmem:[%s10477_s12 + $0x10d8] sm:$0xf0]  ;;  %v10065_v2 = vld [vmem:[%s10477_s12 + $0x1164] sm:$0xf] }
 0x30f   : > { %16297 = vst [vmem:[#allocation584_spill] sm:$0xff] %v13796_v4  ;;  %5113 = vmatmul.bf16.vlgmr.msra.gmra.mxu0 %v12923_v59  ;;  %5127 = vmatmul.bf16.vlgmr.msra.gmra.mxu1 %v12931_v36  ;;  %v4753_v59 = vadd.f32 %v13652_v18, %v4739_v25  ;;  %v10081_v30 = vld [vmem:[%s10477_s12 + $0x11e4] sm:$0xf]  ;;  %v9493_v44 = vld [vmem:[%s10477_s12 + $0x11e8] sm:$0xf0]  ;;  %v13827_v36 = vor.u32 %v10031_v34, %v9293_v5  ;;  %v16400_v35 = vld [vmem:[#allocation76_spill] sm:$0xff] }
 0x310   : > { %5161 = vmatpush.bf16.msrb.mxu0 %v13767_v58  ;;  %5175 = vmatpush.bf16.msrb.mxu1 %v13772_v28  ;;  %16298 = vst [vmem:[#allocation585_spill] sm:$0xff] %v13804_v63  ;;  %v13806_v58 = vor.u32 %v10067_v49, %v9437_v55  ;;  %v9429_v28 = vld [vmem:[%s10477_s12 + $0x1168] sm:$0xf0]  ;;  %v4779_v49 = vadd.f32 %v13666_v9, %v4765_v61  ;;  %v10029_v9 = vld [vmem:[%s10477_s12 + $0x1044] sm:$0xf] }
 0x311   : > { %16300 = vst [vmem:[#allocation587_spill] sm:$0xff] %v13813_v14  ;;  %5140 = vmatpush.bf16.msra.mxu2 %v13786_v56  ;;  %v13831_v46 = vor.u32 %v10047_v10, %v9357_v52  ;;  %v13833_v18 = vor.u32 %v10065_v2, %v9429_v28  ;;  %v9285_v55 = vld [vmem:[%s10477_s12 + $0x1048] sm:$0xf0]  ;;  %v10045_v39 = vld [vmem:[%s10477_s12 + $0x10c4] sm:$0xf]  ;;  %v13840_v42 = vor.u32 %v10081_v30, %v9493_v44  ;;  %v13850_v2 = vpop.f32.mrf.mxu2 }
 0x312   : > { %16299 = vst [vmem:[#allocation586_spill] sm:$0xff] %v13806_v58  ;;  %5154 = vmatpush.bf16.msra.mxu3 %v13794_v53  ;;  %v9349_v25 = vld [vmem:[%s10477_s12 + $0x10c8] sm:$0xf0]  ;;  %v10063_v34 = vld [vmem:[%s10477_s12 + $0x1154] sm:$0xf]  ;;  %v4767_v10 = vadd.f32 %v13690_v23, %v4753_v59  ;;  %v4793_v52 = vadd.f32 %v13674_v54, %v4779_v49 }
 0x313   : > { %16301 = vst [vmem:[#allocation588_spill] sm:$0xff] %v13827_v36  ;;  %v9421_v5 = vld [vmem:[%s10477_s12 + $0x1158] sm:$0xf0]  ;;  %v10079_v28 = vld [vmem:[%s10477_s12 + $0x11d4] sm:$0xf] }
 0x314   : > { %5162 = vmatpush.bf16.msrb.mxu0 %v13796_v4  ;;  %5176 = vmatpush.bf16.msrb.mxu1 %v13804_v63  ;;  %16302 = vst [vmem:[#allocation589_spill] sm:$0xff] %v13831_v46  ;;  %v9485_v61 = vld [vmem:[%s10477_s12 + $0x11d8] sm:$0xf0]  ;;  %v4781_v30 = vadd.f32 %v13722_v24, %v4767_v10  ;;  %v13860_v23 = vor.u32 %v10063_v34, %v9421_v5  ;;  %v10027_v54 = vld [vmem:[%s10477_s12 + $0x1034] sm:$0xf]  ;;  %v16396_v4 = vld [vmem:[#allocation73_spill] sm:$0xff] }
 0x315   : > { %5189 = vmatpush.bf16.msrb.mxu2 %v13806_v58  ;;  %16303 = vst [vmem:[#allocation590_spill] sm:$0xff] %v13833_v18  ;;  %5155 = vmatmul.bf16.vlgmr.msra.gmra.mxu3 %v13071_v62  ;;  %v13858_v62 = vor.u32 %v10045_v39, %v9349_v25  ;;  %v9277_v59 = vld [vmem:[%s10477_s12 + $0x1038] sm:$0xf0]  ;;  %v10043_v44 = vld [vmem:[%s10477_s12 + $0x10b4] sm:$0xf]  ;;  %v4807_v49 = vadd.f32 %v13712_v45, %v4793_v52  ;;  %v13872_v39 = vpop.f32.mrf.mxu1 }
 0x316   : > { %5203 = vmatpush.bf16.msrb.mxu3 %v13813_v14  ;;  %5141 = vmatmul.bf16.vlgmr.msra.gmra.mxu2 %v13069_v17  ;;  %16304 = vst [vmem:[#allocation591_spill] sm:$0xff] %v13840_v42  ;;  %v13853_v17 = vor.u32 %v10029_v9, %v9285_v55  ;;  %v13867_v24 = vor.u32 %v10079_v28, %v9485_v61  ;;  %v9341_v9 = vld [vmem:[%s10477_s12 + $0x10b8] sm:$0xf0]  ;;  %v10061_v55 = vld [vmem:[%s10477_s12 + $0x1144] sm:$0xf] }
 0x317   : > { %16306 = vst [vmem:[#allocation593_spill] sm:$0xff] %v13858_v62  ;;  %v9413_v10 = vld [vmem:[%s10477_s12 + $0x1148] sm:$0xf0]  ;;  %v10077_v25 = vld [vmem:[%s10477_s12 + $0x11c4] sm:$0xf]  ;;  %v13877_v45 = vor.u32 %v10027_v54, %v9277_v59  ;;  %v4795_v5 = vadd.f32 %v13728_v47, %v4781_v30  ;;  %v13882_v28 = vor.u32 %v10043_v44, %v9341_v9  ;;  %v16395_v58 = vld [vmem:[#allocation84_spill] sm:$0xff] }
 0x318   : > { %5163 = vmatpush.bf16.msrb.mxu0 %v13827_v36  ;;  %16305 = vst [vmem:[#allocation592_spill] sm:$0xff] %v13853_v17  ;;  %5177 = vmatpush.bf16.msrb.mxu1 %v13831_v46  ;;  %v4836_v36 = vpop.f32.mrf.mxu0  ;;  %v9477_v34 = vld [vmem:[%s10477_s12 + $0x11c8] sm:$0xf0]  ;;  %v13884_v61 = vor.u32 %v10061_v55, %v9413_v10  ;;  %v10025_v52 = vld [vmem:[%s10477_s12 + $0x1024] sm:$0xf]  ;;  %v4876_v46 = vpop.f32.mrf.mxu3 }
 0x319   : > { %5190 = vmatpush.bf16.msrb.mxu2 %v13833_v18  ;;  %16307 = vst [vmem:[#allocation594_spill] sm:$0xff] %v13860_v23  ;;  %v10041_v18 = vld [vmem:[%s10477_s12 + $0x10a4] sm:$0xf]  ;;  %v13891_v47 = vor.u32 %v10077_v25, %v9477_v34  ;;  %v9333_v30 = vld [vmem:[%s10477_s12 + $0x10a8] sm:$0xf0]  ;;  %v4809_v44 = vadd.f32 %v13778_v6, %v4795_v5 }
 0x31a   : > { %5204 = vmatpush.bf16.msrb.mxu3 %v13840_v42  ;;  %16308 = vst [vmem:[#allocation595_spill] sm:$0xff] %v13867_v24  ;;  %v9269_v42 = vld [vmem:[%s10477_s12 + $0x1028] sm:$0xf0]  ;;  %v10059_v54 = vld [vmem:[%s10477_s12 + $0x1134] sm:$0xf] }
 0x31b   : > { %16309 = vst [vmem:[#allocation596_spill] sm:$0xff] %v13877_v45  ;;  %v9405_v59 = vld [vmem:[%s10477_s12 + $0x1138] sm:$0xf0]  ;;  %v10075_v9 = vld [vmem:[%s10477_s12 + $0x11b4] sm:$0xf] }
 0x31c   : > { %5164 = vmatpush.bf16.msrb.mxu0 %v13853_v17  ;;  %5178 = vmatpush.bf16.msrb.mxu1 %v13858_v62  ;;  %16310 = vst [vmem:[#allocation597_spill] sm:$0xff] %v13882_v28  ;;  %v4821_v17 = vadd.f32 %v13748_v8, %v4807_v49  ;;  %v9469_v55 = vld [vmem:[%s10477_s12 + $0x11b8] sm:$0xf0]  ;;  %v13901_v8 = vor.u32 %v10025_v52, %v9269_v42  ;;  %v10023_v25 = vld [vmem:[%s10477_s12 + $0x1014] sm:$0xf] }
 0x31d   : > { %5191 = vmatpush.bf16.msrb.mxu2 %v13860_v23  ;;  %16311 = vst [vmem:[#allocation598_spill] sm:$0xff] %v13884_v61  ;;  %v13905_v49 = vor.u32 %v10041_v18, %v9333_v30  ;;  %v13907_v6 = vor.u32 %v10059_v54, %v9405_v59  ;;  %v9261_v34 = vld [vmem:[%s10477_s12 + $0x1018] sm:$0xf0]  ;;  %v10039_v5 = vld [vmem:[%s10477_s12 + $0x1094] sm:$0xf]  ;;  %v4823_v18 = vadd.f32 %v13823_v38, %v4809_v44  ;;  %v4904_v30 = vpop.f32.mrf.mxu1 }
 0x31e   : > { %5205 = vmatpush.bf16.msrb.mxu3 %v13867_v24  ;;  %16312 = vst [vmem:[#allocation599_spill] sm:$0xff] %v13891_v47  ;;  %v4835_v10 = vadd.f32 %v13790_v27, %v4821_v17  ;;  %v4864_v24 = vpop.f32.mrf.mxu2  ;;  %v13913_v17 = vor.u32 %v10075_v9, %v9469_v55  ;;  %v9325_v42 = vld [vmem:[%s10477_s12 + $0x1098] sm:$0xf0]  ;;  %v10057_v52 = vld [vmem:[%s10477_s12 + $0x1124] sm:$0xf]  ;;  %v13923_v9 = vor.u32 %v10023_v25, %v9261_v34 }
 0x31f   : > { %16313 = vst [vmem:[#allocation600_spill] sm:$0xff] %v13901_v8  ;;  %v10073_v54 = vld [vmem:[%s10477_s12 + $0x11a4] sm:$0xf]  ;;  %v9461_v59 = vld [vmem:[%s10477_s12 + $0x11a8] sm:$0xf0]  ;;  %v4837_v55 = vadd.f32 %v4836_v36, %v4823_v18  ;;  %v13927_v38 = vor.u32 %v10039_v5, %v9325_v42  ;;  %v16392_v62 = vld [vmem:[#allocation72_spill] sm:$0xff] }
 0x320   : > { %5165 = vmatpush.bf16.msrb.mxu0 %v13877_v45  ;;  %5179 = vmatpush.bf16.msrb.mxu1 %v13882_v28  ;;  %16314 = vst [vmem:[#allocation601_spill] sm:$0xff] %v13905_v49  ;;  %v4890_v27 = vpop.f32.mrf.mxu0  ;;  %v4849_v28 = vadd.f32 %v13800_v60, %v4835_v10  ;;  %v9253_v45 = vld [vmem:[%s10477_s12 + $0x1008] sm:$0xf0]  ;;  %v10037_v23 = vld [vmem:[%s10477_s12 + $0x1084] sm:$0xf]  ;;  %v13935_v60 = vor.u32 %v10073_v54, %v9461_v59  ;;  %v4878_v5 = vpop.f32.mrf.mxu3 }
 0x321   : > { %5192 = vmatpush.bf16.msrb.mxu2 %v13884_v61  ;;  %16315 = vst [vmem:[#allocation602_spill] sm:$0xff] %v13907_v6  ;;  %v9397_v61 = vld [vmem:[%s10477_s12 + $0x1128] sm:$0xf0]  ;;  %v10055_v25 = vld [vmem:[%s10477_s12 + $0x1114] sm:$0xf]  ;;  %v4851_v42 = vadd.f32 %v13872_v39, %v4837_v55 }
 0x322   : > { %5206 = vmatpush.bf16.msrb.mxu3 %v13891_v47  ;;  %16316 = vst [vmem:[#allocation603_spill] sm:$0xff] %v13913_v17  ;;  %v13929_v44 = vor.u32 %v10057_v52, %v9397_v61  ;;  %v10021_v47 = vld [vmem:[%s10477_s12 + $0x1004] sm:$0xf]  ;;  %v9317_v10 = vld [vmem:[%s10477_s12 + $0x1088] sm:$0xf0]  ;;  %v4863_v36 = vadd.f32 %v13850_v2, %v4849_v28 }
 0x323   : > { %16317 = vst [vmem:[#allocation604_spill] sm:$0xff] %v13923_v9  ;;  %v9389_v34 = vld [vmem:[%s10477_s12 + $0x1118] sm:$0xf0]  ;;  %v10071_v18 = vld [vmem:[%s10477_s12 + $0x1194] sm:$0xf]  ;;  %v13944_v61 = vor.u32 %v10021_v47, %v9253_v45  ;;  %v13949_v52 = vor.u32 %v10037_v23, %v9317_v10  ;;  %v4865_v45 = vadd.f32 %v4864_v24, %v4851_v42  ;;  %v16328_v24 = vld [vmem:[#allocation14_spill] sm:$0xff] }
 0x324   : > { %5166 = vmatpush.bf16.msrb.mxu0 %v13901_v8  ;;  %5180 = vmatpush.bf16.msrb.mxu1 %v13905_v49  ;;  %16318 = vst [vmem:[#allocation605_spill] sm:$0xff] %v13927_v38  ;;  %v13951_v54 = vor.u32 %v10055_v25, %v9389_v34  ;;  %v10053_v59 = vld [vmem:[%s10477_s12 + $0x1104] sm:$0xf]  ;;  %v9445_v49 = vld [vmem:[%s10477_s12 + $0x1188] sm:$0xf0] }
 0x325   : > { %5193 = vmatpush.bf16.msrb.mxu2 %v13907_v6  ;;  %16319 = vst [vmem:[#allocation606_spill] sm:$0xff] %v13929_v44  ;;  %v9453_v6 = vld [vmem:[%s10477_s12 + $0x1198] sm:$0xf0]  ;;  %v10069_v47 = vld [vmem:[%s10477_s12 + $0x1184] sm:$0xf] }
 0x326   : > { %5207 = vmatpush.bf16.msrb.mxu3 %v13913_v17  ;;  %16320 = vst [vmem:[#allocation607_spill] sm:$0xff] %v13935_v60  ;;  %v4918_v2 = vpop.f32.mrf.mxu2  ;;  %v13954_v28 = vor.u32 %v10071_v18, %v9453_v6  ;;  %v9381_v17 = vld [vmem:[%s10477_s12 + $0x1108] sm:$0xf0]  ;;  %v16326_v6 = vld [vmem:[#allocation13_spill] sm:$0xff]  ;;  %v13967_v10 = vor.u32 %v10069_v47, %v9445_v49  ;;  %v16331_v49 = vld [vmem:[#allocation15_spill] sm:$0xff] }
 0x327   : > { %16321 = vst [vmem:[#allocation608_spill] sm:$0xff] %v13944_v61  ;;  %v13963_v23 = vor.u32 %v10053_v59, %v9381_v17  ;;  %v16329_v17 = vld [vmem:[#allocation17_spill] sm:$0xff]  ;;  %v16334_v47 = vld [vmem:[#allocation22_spill] sm:$0xff] }
 0x328   : > { %5167 = vmatpush.bf16.msrb.mxu0 %v13923_v9  ;;  %5181 = vmatpush.bf16.msrb.mxu1 %v13927_v38  ;;  %16322 = vst [vmem:[#allocation609_spill] sm:$0xff] %v13949_v52  ;;  %v4877_v9 = vadd.f32 %v4876_v46, %v4863_v36  ;;  %v4892_v39 = vpop.f32.mrf.mxu0  ;;  %v4879_v46 = vadd.f32 %v4878_v5, %v4865_v45  ;;  %v4932_v25 = vpop.f32.mrf.mxu3  ;;  %v16330_v36 = vld [vmem:[#allocation18_spill] sm:$0xff]  ;;  %v16332_v5 = vld [vmem:[#allocation16_spill] sm:$0xff]  ;;  %v16333_v42 = vld [vmem:[#allocation21_spill] sm:$0xff] }
 0x329   : > { %5194 = vmatpush.bf16.msrb.mxu2 %v13929_v44  ;;  %16323 = vst [vmem:[#allocation610_spill] sm:$0xff] %v13951_v54  ;;  %v4906_v44 = vpop.f32.mrf.mxu1 }
 0x32a   : > { %5208 = vmatpush.bf16.msrb.mxu3 %v13935_v60  ;;  %16324 = vst [vmem:[#allocation611_spill] sm:$0xff] %v13954_v28  ;;  %v4891_v55 = vadd.f32 %v4890_v27, %v4877_v9  ;;  %v4893_v9 = vadd.f32 %v4892_v39, %v4879_v46  ;;  %v16336_v39 = vld [vmem:[#allocation20_spill] sm:$0xff]  ;;  %v16337_v46 = vld [vmem:[#allocation25_spill] sm:$0xff]  ;;  %v16382_v60 = vld [vmem:[#allocation70_spill] sm:$0xff] }
 0x32b   : > { %16325 = vst [vmem:[#allocation612_spill] sm:$0xff] %v13963_v23 }
 0x32c   : > { %5168 = vmatpush.bf16.msrb.mxu0 %v13944_v61  ;;  %5182 = vmatpush.bf16.msrb.mxu1 %v13949_v52  ;;  %16327 = vst [vmem:[#allocation13_spill] sm:$0xff] %v13967_v10  ;;  %v4905_v27 = vadd.f32 %v4904_v30, %v4891_v55  ;;  %v16377_v52 = vld [vmem:[#allocation66_spill] sm:$0xff]  ;;  %v16381_v61 = vld [vmem:[#allocation61_spill] sm:$0xff] }
 0x32d   : > { %5195 = vmatpush.bf16.msrb.mxu2 %v13951_v54 }
 0x32e   : > { %5209 = vmatpush.bf16.msrb.mxu3 %v13954_v28  ;;  %v4919_v34 = vadd.f32 %v4918_v2, %v4905_v27  ;;  %v4920_v18 = vpop.f32.mrf.mxu2  ;;  %v16335_v2 = vld [vmem:[#allocation19_spill] sm:$0xff] }
 0x32f   : > { %5169 = vmatmul.bf16.vlgmr.msrb.gmra.mxu0 %v13111_v21  ;;  %5183 = vmatmul.bf16.vlgmr.msrb.gmra.mxu1 %v13117_v16  ;;  %v4907_v16 = vadd.f32 %v4906_v44, %v4893_v9  ;;  %v16339_v44 = vld [vmem:[#allocation23_spill] sm:$0xff] }
 0x330   : > { %5473 = vmatpush.bf16.msra.mxu0 %v16326_v6  ;;  %5487 = vmatpush.bf16.msra.mxu1 %v16328_v24  ;;  %v4946_v21 = vpop.f32.mrf.mxu0  ;;  %v4933_v59 = vadd.f32 %v4932_v25, %v4919_v34  ;;  %v4934_v6 = vpop.f32.mrf.mxu3  ;;  %v16338_v24 = vld [vmem:[#allocation26_spill] sm:$0xff] }
 0x331   : > { %5196 = vmatpush.bf16.msrb.mxu2 %v13963_v23  ;;  %v4960_v30 = vpop.f32.mrf.mxu1  ;;  %v4921_v45 = vadd.f32 %v4920_v18, %v4907_v16 }
 0x332   : > { %5210 = vmatpush.bf16.msrb.mxu3 %v13967_v10  ;;  %v4947_v55 = vadd.f32 %v4946_v21, %v4933_v59 }
 0x334   : > { %5474 = vmatpush.bf16.msra.mxu0 %v16329_v17  ;;  %5488 = vmatpush.bf16.msra.mxu1 %v16330_v36  ;;  %v13988_v25 = vadd.f32 %v4960_v30, %v4947_v55  ;;  %v16341_v17 = vld [vmem:[#allocation29_spill] sm:$0xff]  ;;  %v16342_v36 = vld [vmem:[#allocation30_spill] sm:$0xff] }
 0x335   : > { %5501 = vmatpush.bf16.msra.mxu2 %v16331_v49  ;;  %5211 = vmatmul.bf16.vlgmr.msrb.gmra.mxu3 %v13265_v50  ;;  %v16340_v50 = vld [vmem:[#allocation24_spill] sm:$0xff]  ;;  %v16343_v49 = vld [vmem:[#allocation27_spill] sm:$0xff] }
 0x336   : > { %5515 = vmatpush.bf16.msra.mxu3 %v16332_v5  ;;  %5197 = vmatmul.bf16.vlgmr.msrb.gmra.mxu2 %v13257_v11  ;;  %v4935_v11 = vadd.f32 %v4934_v6, %v4921_v45  ;;  %v16344_v5 = vld [vmem:[#allocation28_spill] sm:$0xff]  ;;  %v5231_v21 = vmul.f32 %v13988_v25, %v13988_v25 }
 0x338   : > { %5475 = vmatpush.bf16.msra.mxu0 %v16333_v42  ;;  %5489 = vmatpush.bf16.msra.mxu1 %v16334_v47  ;;  %v4948_v27 = vpop.f32.mrf.mxu0  ;;  %v16345_v42 = vld [vmem:[#allocation33_spill] sm:$0xff]  ;;  %v16346_v47 = vld [vmem:[#allocation34_spill] sm:$0xff] }
 0x339   : > { %5502 = vmatpush.bf16.msra.mxu2 %v16335_v2  ;;  %v4949_v9 = vadd.f32 %v4948_v27, %v4935_v11  ;;  %v4962_v34 = vpop.f32.mrf.mxu1  ;;  %v16347_v2 = vld [vmem:[#allocation31_spill] sm:$0xff]  ;;  %v16352_v27 = vld [vmem:[#allocation36_spill] sm:$0xff] }
 0x33a   : > { %5516 = vmatpush.bf16.msra.mxu3 %v16336_v39  ;;  %v16348_v39 = vld [vmem:[#allocation32_spill] sm:$0xff] }
 0x33b   : > { %v13993_v18 = vadd.f32 %v4962_v34, %v4949_v9  ;;  %v16353_v34 = vld [vmem:[#allocation41_spill] sm:$0xff] }
 0x33c   : > { %5476 = vmatpush.bf16.msra.mxu0 %v16337_v46  ;;  %5490 = vmatpush.bf16.msra.mxu1 %v16338_v24  ;;  %v16349_v46 = vld [vmem:[#allocation37_spill] sm:$0xff] }
 0x33d   : > { %5503 = vmatpush.bf16.msra.mxu2 %v16339_v44  ;;  %v5217_v16 = vadd.f32 %v13993_v18, %v13988_v25  ;;  %v5233_v30 = vmul.f32 %v13993_v18, %v13993_v18  ;;  %v16350_v44 = vld [vmem:[#allocation38_spill] sm:$0xff] }
 0x33e   : > { %5517 = vmatpush.bf16.msra.mxu3 %v16340_v50  ;;  %v16351_v50 = vld [vmem:[#allocation35_spill] sm:$0xff] }
 0x33f   : > { %v5218_v59 = vrot.slane %v5217_v16, 4  ;;  %v5235_v45 = vadd.f32 %v5233_v30, %v5231_v21  ;;  %v16355_v21 = vld [vmem:[#allocation39_spill] sm:$0xff]  ;;  %v16357_v30 = vld [vmem:[#allocation45_spill] sm:$0xff] }
 0x340   : > { %5477 = vmatpush.bf16.msra.mxu0 %v16341_v17  ;;  %5491 = vmatpush.bf16.msra.mxu1 %v16342_v36 }
 0x341   : > { %5504 = vmatpush.bf16.msra.mxu2 %v16343_v49  ;;  %v5219_v55 = vadd.f32 %v5218_v59, %v5217_v16  ;;  %v5236_v6 = vrot.slane %v5235_v45, 4  ;;  %v16356_v16 = vld [vmem:[#allocation40_spill] sm:$0xff] }
 0x342   : > { %5518 = vmatpush.bf16.msra.mxu3 %v16344_v5  ;;  %v16354_v5 = vld [vmem:[#allocation42_spill] sm:$0xff] }
 0x343   : > { %v5220_v11 = vrot.slane %v5219_v55, 2  ;;  %v5237_v24 = vadd.f32 %v5236_v6, %v5235_v45  ;;  %v16358_v45 = vld [vmem:[#allocation46_spill] sm:$0xff]  ;;  %v16361_v6 = vld [vmem:[#allocation49_spill] sm:$0xff] }
 0x344   : > { %5478 = vmatpush.bf16.msra.mxu0 %v16345_v42  ;;  %5492 = vmatpush.bf16.msra.mxu1 %v16346_v47 }
 0x345   : > { %5505 = vmatpush.bf16.msra.mxu2 %v16347_v2  ;;  %v5221_v9 = vadd.f32 %v5220_v11, %v5219_v55  ;;  %v5238_v17 = vrot.slane %v5237_v24, 2  ;;  %v16360_v55 = vld [vmem:[#allocation44_spill] sm:$0xff]  ;;  %v260_v11 = vld [vmem:[#allocation8 + $0x28] sm:$0xff] }
 0x346   : > { %5519 = vmatpush.bf16.msra.mxu3 %v16348_v39  ;;  %v16359_v39 = vld [vmem:[#allocation43_spill] sm:$0xff] }
 0x347   : > { %v5222_v36 = vrot.slane %v5221_v9, 1  ;;  %v5239_v49 = vadd.f32 %v5238_v17, %v5237_v24  ;;  %v261_v24 = vld [vmem:[#allocation8 + $0x30] sm:$0xff]  ;;  %v262_v17 = vld [vmem:[#allocation8 + $0x38] sm:$0xff] }
 0x348   : > { %5479 = vmatpush.bf16.msra.mxu0 %v16349_v46  ;;  %5493 = vmatpush.bf16.msra.mxu1 %v16350_v44  ;;  %v259_v46 = vld [vmem:[#allocation8 + $0x20] sm:$0xff] }
 0x349   : > { %5506 = vmatpush.bf16.msra.mxu2 %v16351_v50  ;;  %v5223_v42 = vadd.f32 %v5222_v36, %v5221_v9  ;;  %v5240_v59 = vrot.slane %v5239_v49, 1  ;;  %v16363_v9 = vld [vmem:[#allocation47_spill] sm:$0xff]  ;;  %v5293_v36 = vpack.c.bf16 %v260_v11, %v259_v46  ;;  %v16369_v11 = vld [vmem:[#allocation57_spill] sm:$0xff] }
 0x34a   : > { %5520 = vmatpush.bf16.msra.mxu3 %v16352_v27  ;;  %v16362_v27 = vld [vmem:[#allocation50_spill] sm:$0xff] }
 0x34b   : > { %v5241_v47 = vadd.f32 %v5240_v59, %v5239_v49  ;;  %v14016_v2 = vmul.f32 0.11111111, %v5223_v42  ;;  %v5294_v49 = vpack.c.bf16 %v262_v17, %v261_v24  ;;  %v5298_v42 = vunpack.c.h.b16 %v5293_v36  ;;  %v16370_v17 = vld [vmem:[#allocation58_spill] sm:$0xff] }
 0x34c   : > { %5480 = vmatpush.bf16.msra.mxu0 %v16353_v34  ;;  %5494 = vmatpush.bf16.msra.mxu1 %v16354_v5  ;;  %v16364_v34 = vld [vmem:[#allocation48_spill] sm:$0xff] }
 0x34d   : > { %5507 = vmatpush.bf16.msra.mxu2 %v16355_v21  ;;  %v5251_v44 = vmul.f32 0.11111111, %v5241_v47  ;;  %v5253_v50 = vmul.f32 %v14016_v2, %v14016_v2  ;;  %v16365_v21 = vld [vmem:[#allocation53_spill] sm:$0xff]  ;;  %v5300_v59 = vunpack.c.h.b16 %v5294_v49  ;;  %v16366_v47 = vld [vmem:[#allocation54_spill] sm:$0xff] }
 0x34e   : > { %5521 = vmatpush.bf16.msra.mxu3 %v16356_v16  ;;  %v5297_v16 = vunpack.c.l.b16 %v5293_v36 }
 0x34f   : > { %v5255_v5 = vsub.f32 %v5251_v44, %v5253_v50 }
 0x350   : > { %5529 = vmatpush.bf16.msrb.mxu0 %v16357_v30  ;;  %5543 = vmatpush.bf16.msrb.mxu1 %v16358_v45  ;;  %v5299_v30 = vunpack.c.l.b16 %v5294_v49 }
 0x351   : > { %5508 = vmatpush.bf16.msra.mxu2 %v16359_v39  ;;  %v5257_v45 = vmax.f32 %v5255_v5, 0.0  ;;  %v16367_v39 = vld [vmem:[#allocation51_spill] sm:$0xff]  ;;  %v16372_v5 = vld [vmem:[#allocation56_spill] sm:$0xff] }
 0x352   : > { %5522 = vmatpush.bf16.msra.mxu3 %v16360_v55  ;;  %v16368_v55 = vld [vmem:[#allocation52_spill] sm:$0xff] }
 0x353   : > { %v14034_v46 = vadd.f32 1e-05, %v5257_v45 }
 0x354   : > { %5530 = vmatpush.bf16.msrb.mxu0 %v16361_v6  ;;  %5544 = vmatpush.bf16.msrb.mxu1 %v16362_v27  ;;  %v14030_v6 = vpack.c.b16 %v5299_v30, %v5297_v16  ;;  %v14032_v27 = vpack.c.b16 %v5300_v59, %v5298_v42 }
 0x355   : > { %5557 = vmatpush.bf16.msrb.mxu2 %v16363_v9  ;;  %10165 = vrsqrt.f32 %v14034_v46  ;;  %vm5271_vm10 = vweird.f32 %v14034_v46 }
 0x356   : > { %5571 = vmatpush.bf16.msrb.mxu3 %v16364_v34  ;;  %v5303_v24 = vrot.slane %v14030_v6, 6  ;;  %v5304_v44 = vrot.slane %v14032_v27, 6  ;;  %v14040_v50 = vshrl.u32 %v14030_v6, 16  ;;  %v14043_v9 = vshll.u32 %v14030_v6, 16  ;;  %v16371_v34 = vld [vmem:[#allocation55_spill] sm:$0xff] }
 0x357   : > { %v14049_v36 = vshrl.u32 %v14032_v27, 16  ;;  %v14052_v49 = vshll.u32 %v14032_v27, 16  ;;  %v5331_v23 = vrot.slane %v14030_v6, 7 }
 0x358   : > { %5531 = vmatpush.bf16.msrb.mxu0 %v16365_v21  ;;  %5545 = vmatpush.bf16.msrb.mxu1 %v16366_v47  ;;  %v5306_v21 = vsel %vm275_vm0, 0, %v5303_v24  ;;  %v5309_v16 = vsel %vm275_vm0, 0, %v5304_v44  ;;  %v5314_v30 = vrot.slane %v14040_v50, 6  ;;  %v5317_v42 = vrot.slane %v14043_v9, 7  ;;  %v16375_v24 = vld [vmem:[#allocation59_spill] sm:$0xff] }
 0x359   : > { %5558 = vmatpush.bf16.msrb.mxu2 %v16367_v39  ;;  %v5383_v59 = vunpack.c.l.bf16 %v5306_v21  ;;  %v5401_v45 = vunpack.c.h.bf16 %v5306_v21  ;;  %v5384_v47 = vunpack.c.l.bf16 %v5309_v16  ;;  %v16373_v39 = vld [vmem:[#allocation62_spill] sm:$0xff]  ;;  %v16376_v21 = vld [vmem:[#allocation60_spill] sm:$0xff] }
 0x35a   : > { %5572 = vmatpush.bf16.msrb.mxu3 %v16368_v55  ;;  %v5402_v55 = vunpack.c.h.bf16 %v5309_v16 }
 0x35b   : > { %v5419_v44 = vmul.f32 %v5383_v59, %v10714_v1  ;;  %v5437_v10 = vmul.f32 %v5401_v45, %v10716_v40  ;;  %v10166_v28 = vpop.eup %10165 }
 0x35c   : > { %5532 = vmatpush.bf16.msrb.mxu0 %v16369_v11  ;;  %5546 = vmatpush.bf16.msrb.mxu1 %v16370_v17  ;;  %v5318_v11 = vor.u32 %v5317_v42, %v5314_v30  ;;  %v5322_v17 = vrot.slane %v14049_v36, 6  ;;  %v5438_v16 = vmul.f32 %v5402_v55, %v10730_v7  ;;  %v5266_v59 = vmul.f32 %v10166_v28, %v14034_v46 }
 0x35d   : > { %5559 = vmatpush.bf16.msrb.mxu2 %v16371_v34  ;;  %v5325_v34 = vrot.slane %v14052_v49, 7  ;;  %vm5272_vm7 = vweird.f32 %v10166_v28  ;;  %v5261_v46 = vsub.f32 %v13993_v18, %v14016_v2 }
 0x35e   : > { %5573 = vmatpush.bf16.msrb.mxu3 %v16372_v5  ;;  %v16374_v5 = vld [vmem:[#allocation63_spill] sm:$0xff]  ;;  %v5329_v30 = vsel %vm10776_vm3, 0, %v5318_v11  ;;  %vm5273_vm13 = vmor %vm5271_vm10, %vm5272_vm7 }
 0x35f   : > { %v5326_v42 = vor.u32 %v5325_v34, %v5322_v17  ;;  %v5403_v54 = vunpack.c.h.bf16 %v5329_v30  ;;  %v16378_v17 = vld [vmem:[#allocation67_spill] sm:$0xff]  ;;  %v5267_v34 = vmul.f32 %v10166_v28, %v5266_v59 }
 0x360   : > { %5533 = vmatpush.bf16.msrb.mxu0 %v16373_v39  ;;  %5547 = vmatpush.bf16.msrb.mxu1 %v16374_v5  ;;  %v5420_v39 = vmul.f32 %v5384_v47, %v10728_v3  ;;  %v14072_v5 = vpack.c.bf16 %v5437_v10, %v5419_v44  ;;  %v16379_v44 = vld [vmem:[#allocation64_spill] sm:$0xff] }
 0x361   : > { %5560 = vmatpush.bf16.msrb.mxu2 %v16375_v24  ;;  %v5385_v24 = vunpack.c.l.bf16 %v5329_v30  ;;  %v5330_v47 = vsel %vm10776_vm3, 0, %v5326_v42  ;;  %v5439_v11 = vmul.f32 %v5403_v54, %v10733_v12  ;;  %v16380_v30 = vld [vmem:[#allocation65_spill] sm:$0xff] }
 0x362   : > { %5574 = vmatpush.bf16.msrb.mxu3 %v16376_v21  ;;  %v14075_v45 = vpack.c.bf16 %v5438_v16, %v5420_v39  ;;  %5481 = vmatmul.bf16.vlgmr.msra.gmra.mxu0 %v14072_v5  ;;  %v5386_v10 = vunpack.c.l.bf16 %v5330_v47  ;;  %v5404_v21 = vunpack.c.h.bf16 %v5330_v47  ;;  %v5332_v39 = vrot.slane %v14032_v27, 7 }
 0x363   : > { %v5421_v55 = vmul.f32 %v5385_v24, %v10724_v51  ;;  %v5339_v47 = vrot.slane %v14040_v50, 7 }
 0x364   : > { %5534 = vmatpush.bf16.msrb.mxu0 %v16377_v52  ;;  %5548 = vmatpush.bf16.msrb.mxu1 %v16378_v17  ;;  %v5334_v52 = vsel %vm308_vm2, 0, %v5331_v23  ;;  %v5422_v42 = vmul.f32 %v5386_v10, %v10739_v32  ;;  %v5268_v17 = vmul.f32 0.5, %v5267_v34  ;;  %v5440_v59 = vmul.f32 %v5404_v21, %v16381_v61  ;;  %v16383_v23 = vld [vmem:[#allocation71_spill] sm:$0xff]  ;;  %v16385_v21 = vld [vmem:[#allocation69_spill] sm:$0xff]  ;;  %v16429_v61 = vld [vmem:[#allocation114_spill] sm:$0xff] }
 0x365   : > { %5495 = vmatmul.bf16.vlgmr.msra.gmra.mxu1 %v14075_v45  ;;  %5561 = vmatpush.bf16.msrb.mxu2 %v16379_v44  ;;  %v14088_v16 = vpack.c.bf16 %v5439_v11, %v5421_v55  ;;  %v5387_v54 = vunpack.c.l.bf16 %v5334_v52  ;;  %v5405_v24 = vunpack.c.h.bf16 %v5334_v52  ;;  %v5337_v44 = vsel %vm308_vm2, 0, %v5332_v39  ;;  %v16384_v52 = vld [vmem:[#allocation68_spill] sm:$0xff]  ;;  %v16386_v39 = vld [vmem:[#allocation77_spill] sm:$0xff] }
 0x366   : > { %5575 = vmatpush.bf16.msrb.mxu3 %v16380_v30  ;;  %v5388_v55 = vunpack.c.l.bf16 %v5337_v44  ;;  %v5406_v11 = vunpack.c.h.bf16 %v5337_v44  ;;  %v5269_v30 = vsub.f32 1.5, %v5268_v17  ;;  %v14098_v10 = vpack.c.bf16 %v5440_v59, %v5422_v42  ;;  %v16388_v17 = vld [vmem:[#allocation78_spill] sm:$0xff] }
 0x367   : > { %5509 = vmatmul.bf16.vlgmr.msra.gmra.mxu2 %v14088_v16  ;;  %v5340_v34 = vor.u32 %v5339_v47, %v14043_v9  ;;  %v5423_v38 = vmul.f32 %v5387_v54, %v16386_v39  ;;  %v5441_v42 = vmul.f32 %v5405_v24, %v16388_v17  ;;  %v16390_v54 = vld [vmem:[#allocation75_spill] sm:$0xff] }
 0x368   : > { %5535 = vmatpush.bf16.msrb.mxu0 %v16382_v60  ;;  %5549 = vmatpush.bf16.msrb.mxu1 %v16383_v23  ;;  %v5341_v60 = vrot.slane %v14049_v36, 7  ;;  %v5270_v8 = vmul.f32 %v10166_v28, %v5269_v30  ;;  %v16387_v23 = vld [vmem:[#allocation74_spill] sm:$0xff]  ;;  %v16391_v30 = vld [vmem:[#allocation80_spill] sm:$0xff] }
 0x369   : > { %5562 = vmatpush.bf16.msrb.mxu2 %v16384_v52  ;;  %5523 = vmatmul.bf16.vlgmr.msra.gmra.mxu3 %v14098_v10  ;;  %v5345_v44 = vsel %vm10884_vm5, 0, %v5340_v34  ;;  %v5259_v52 = vsub.f32 %v13988_v25, %v14016_v2  ;;  %v16393_v34 = vld [vmem:[#allocation81_spill] sm:$0xff]  ;;  %v5442_v25 = vmul.f32 %v5406_v11, %v16395_v58  ;;  %v16399_v11 = vld [vmem:[#allocation86_spill] sm:$0xff] }
 0x36a   : > { %5576 = vmatpush.bf16.msrb.mxu3 %v16385_v21  ;;  %v5342_v47 = vor.u32 %v5341_v60, %v14052_v49  ;;  %v5389_v21 = vunpack.c.l.bf16 %v5345_v44  ;;  %v5274_v24 = vsel %vm5273_vm13, %v10166_v28, %v5270_v8  ;;  %v16394_v60 = vld [vmem:[#allocation83_spill] sm:$0xff]  ;;  %v10177_v8 = vld [vmem:[#allocation8] sm:$0xff] }
 0x36b   : > { %v5424_v14 = vmul.f32 %v5388_v55, %v16394_v60  ;;  %v5285_v2 = vmul.f32 %v5274_v24, %v5259_v52  ;;  %v5287_v63 = vmul.f32 %v5274_v24, %v5261_v46  ;;  %v16398_v55 = vld [vmem:[#allocation85_spill] sm:$0xff]  ;;  %v16404_v46 = vld [vmem:[#allocation90_spill] sm:$0xff] }
 0x36c   : > { %5536 = vmatpush.bf16.msrb.mxu0 %v16387_v23  ;;  %5550 = vmatpush.bf16.msrb.mxu1 %v16390_v54  ;;  %v5407_v23 = vunpack.c.h.bf16 %v5345_v44  ;;  %v5346_v18 = vsel %vm10884_vm5, 0, %v5342_v47  ;;  %v14126_v54 = vpack.c.bf16 %v5441_v42, %v5423_v38  ;;  %v5425_v56 = vmul.f32 %v5389_v21, %v16398_v55  ;;  %v16401_v47 = vld [vmem:[#allocation92_spill] sm:$0xff]  ;;  %v16402_v38 = vld [vmem:[#allocation79_spill] sm:$0xff]  ;;  %v16406_v24 = vld [vmem:[#allocation89_spill] sm:$0xff] }
 0x36d   : > { %5563 = vmatpush.bf16.msrb.mxu2 %v16392_v62  ;;  %v5408_v44 = vunpack.c.h.bf16 %v5346_v18  ;;  %v5289_v28 = vadd.f32 %v10177_v8, %v5285_v2  ;;  %v10178_v62 = vld [vmem:[#allocation8 + $0x10] sm:$0xff]  ;;  %v14133_v52 = vpack.c.bf16 %v5442_v25, %v5424_v14  ;;  %v16405_v21 = vld [vmem:[#allocation88_spill] sm:$0xff]  ;;  %v16409_v2 = vld [vmem:[#allocation93_spill] sm:$0xff] }
 0x36e   : > { %5577 = vmatpush.bf16.msrb.mxu3 %v16396_v4  ;;  %v5291_v53 = vadd.f32 %v10178_v62, %v5287_v63  ;;  %v5443_v37 = vmul.f32 %v5407_v23, %v16399_v11  ;;  %v14135_v4 = vpop.f32.mrf.mxu2  ;;  %v16403_v42 = vld [vmem:[#allocation87_spill] sm:$0xff]  ;;  %v14139_v63 = vpop.f32.mrf.mxu3  ;;  %v16410_v8 = vld [vmem:[#allocation94_spill] sm:$0xff] }
 0x36f   : > { %6813 = vst [vmem:[#allocation8] sm:$0xff] %v5289_v28  ;;  %v16407_v25 = vld [vmem:[#allocation95_spill] sm:$0xff]  ;;  %v5347_v28 = vrot.slane %v14043_v9, 1 }
 0x370   : > { %5585 = vmatpush.bf16.msra.mxu0 %v16391_v30  ;;  %5599 = vmatpush.bf16.msra.mxu1 %v16393_v34  ;;  %v5390_v30 = vunpack.c.l.bf16 %v5346_v18  ;;  %v16397_v34 = vld [vmem:[#allocation91_spill] sm:$0xff]  ;;  %6815 = vst [vmem:[#allocation8 + $0x10] sm:$0xff] %v5291_v53  ;;  %v14145_v14 = vpack.c.bf16 %v5443_v37, %v5425_v56  ;;  %v16408_v18 = vld [vmem:[#allocation96_spill] sm:$0xff]  ;;  %v16413_v56 = vld [vmem:[#allocation97_spill] sm:$0xff] }
 0x371   : > { %5564 = vmatpush.bf16.msrb.mxu2 %v16400_v35  ;;  %v5444_v35 = vmul.f32 %v5408_v44, %v16406_v24  ;;  %v14156_v44 = vpop.f32.mrf.mxu0  ;;  %v16412_v37 = vld [vmem:[#allocation100_spill] sm:$0xff]  ;;  %v16423_v24 = vld [vmem:[#allocation106_spill] sm:$0xff] }
 0x372   : > { %5578 = vmatpush.bf16.msrb.mxu3 %v16402_v38  ;;  %v5426_v23 = vmul.f32 %v5390_v30, %v16405_v21  ;;  %5537 = vmatmul.bf16.vlgmr.msrb.gmra.mxu0 %v14126_v54  ;;  %v16411_v30 = vld [vmem:[#allocation99_spill] sm:$0xff] }
 0x374   : > { %5586 = vmatpush.bf16.msra.mxu0 %v16397_v34  ;;  %5600 = vmatpush.bf16.msra.mxu1 %v16401_v47  ;;  %v14151_v53 = vpack.c.bf16 %v5444_v35, %v5426_v23  ;;  %v16414_v34 = vld [vmem:[#allocation98_spill] sm:$0xff]  ;;  %v5349_v47 = vrot.slane %v14052_v49, 1  ;;  %v16417_v23 = vld [vmem:[#allocation101_spill] sm:$0xff]  ;;  %v5348_v35 = vor.u32 %v5347_v28, %v14040_v50 }
 0x375   : > { %5613 = vmatpush.bf16.msra.mxu2 %v16403_v42  ;;  %5551 = vmatmul.bf16.vlgmr.msrb.gmra.mxu1 %v14133_v52  ;;  %v16415_v42 = vld [vmem:[#allocation103_spill] sm:$0xff] }
 0x376   : > { %5627 = vmatpush.bf16.msra.mxu3 %v16404_v46  ;;  %v14162_v62 = vpop.f32.mrf.mxu2  ;;  %v14166_v38 = vpop.f32.mrf.mxu3  ;;  %v16416_v46 = vld [vmem:[#allocation104_spill] sm:$0xff] }
 0x377   : > { %5565 = vmatmul.bf16.vlgmr.msrb.gmra.mxu2 %v14145_v14 }
 0x378   : > { %5587 = vmatpush.bf16.msra.mxu0 %v16407_v25  ;;  %5601 = vmatpush.bf16.msra.mxu1 %v16408_v18  ;;  %v14172_v25 = vpop.f32.mrf.mxu1  ;;  %v16418_v18 = vld [vmem:[#allocation102_spill] sm:$0xff] }
 0x379   : > { %5614 = vmatpush.bf16.msra.mxu2 %v16409_v2  ;;  %5579 = vmatmul.bf16.vlgmr.msrb.gmra.mxu3 %v14151_v53  ;;  %v5391_v2 = vunpack.c.l.bf16 %v14030_v6 }
 0x37a   : > { %5628 = vmatpush.bf16.msra.mxu3 %v16410_v8  ;;  %v5409_v8 = vunpack.c.h.bf16 %v14030_v6 }
 0x37c   : > { %5588 = vmatpush.bf16.msra.mxu0 %v16411_v30  ;;  %5602 = vmatpush.bf16.msra.mxu1 %v16412_v37  ;;  %v5350_v30 = vor.u32 %v5349_v47, %v14049_v36  ;;  %v16419_v37 = vld [vmem:[#allocation107_spill] sm:$0xff] }
 0x37d   : > { %5615 = vmatpush.bf16.msra.mxu2 %v16413_v56  ;;  %v5392_v56 = vunpack.c.l.bf16 %v14032_v27  ;;  %v16424_v47 = vld [vmem:[#allocation111_spill] sm:$0xff] }
 0x37e   : > { %5629 = vmatpush.bf16.msra.mxu3 %v16414_v34  ;;  %v5410_v34 = vunpack.c.h.bf16 %v14032_v27  ;;  %v14187_v15 = vpop.f32.mrf.mxu2  ;;  %v5427_v21 = vmul.f32 %v5391_v2, %v16424_v47  ;;  %v5354_v55 = vsel %vm11045_vm8, %v5350_v30, 0  ;;  %v14194_v58 = vpop.f32.mrf.mxu3  ;;  %v16432_v30 = vld [vmem:[#allocation124_spill] sm:$0xff] }
 0x37f   : > { %v5394_v2 = vunpack.c.l.bf16 %v5354_v55  ;;  %v5412_v47 = vunpack.c.h.bf16 %v5354_v55  ;;  %v16436_v55 = vld [vmem:[#allocation129_spill] sm:$0xff] }
 0x380   : > { %5589 = vmatpush.bf16.msra.mxu0 %v16415_v42  ;;  %5603 = vmatpush.bf16.msra.mxu1 %v16416_v46  ;;  %v16420_v42 = vld [vmem:[#allocation109_spill] sm:$0xff] }
 0x381   : > { %5616 = vmatpush.bf16.msra.mxu2 %v16417_v23  ;;  %v16421_v46 = vld [vmem:[#allocation105_spill] sm:$0xff]  ;;  %v5353_v23 = vsel %vm11045_vm8, %v5348_v35, 0 }
 0x382   : > { %5630 = vmatpush.bf16.msra.mxu3 %v16418_v18  ;;  %v14185_v18 = vpop.f32.mrf.mxu0  ;;  %v16428_v35 = vld [vmem:[#allocation121_spill] sm:$0xff]  ;;  %v5393_v39 = vunpack.c.l.bf16 %v5353_v23  ;;  %v5411_v59 = vunpack.c.h.bf16 %v5353_v23 }
 0x383   : > { %v5446_v17 = vmul.f32 %v5410_v34, %v16428_v35  ;;  %v16433_v23 = vld [vmem:[#allocation125_spill] sm:$0xff] }
 0x384   : > { %5590 = vmatpush.bf16.msra.mxu0 %v16419_v37  ;;  %5604 = vmatpush.bf16.msra.mxu1 %v16420_v42  ;;  %v16425_v37 = vld [vmem:[#allocation117_spill] sm:$0xff]  ;;  %v5447_v34 = vmul.f32 %v5411_v59, %v16134_v48 }
 0x385   : > { %5617 = vmatpush.bf16.msra.mxu2 %v16421_v46  ;;  %v5445_v11 = vmul.f32 %v5409_v8, %v16425_v37  ;;  %v16426_v42 = vld [vmem:[#allocation113_spill] sm:$0xff]  ;;  %v16427_v46 = vld [vmem:[#allocation119_spill] sm:$0xff]  ;;  %v16431_v8 = vld [vmem:[#allocation112_spill] sm:$0xff] }
 0x386   : > { %5631 = vmatpush.bf16.msra.mxu3 %v16423_v24  ;;  %v5428_v60 = vmul.f32 %v5392_v56, %v16427_v46  ;;  %v16430_v24 = vld [vmem:[#allocation110_spill] sm:$0xff]  ;;  %v5429_v56 = vmul.f32 %v5393_v39, %v16133_v57  ;;  %v5032_v59 = vpop.f32.mrf.mxu2 }
 0x387   : > { %v14202_v37 = vpack.c.bf16 %v5445_v11, %v5427_v21  ;;  %v5430_v11 = vmul.f32 %v5394_v2, %v16136_v20  ;;  %v16437_v21 = vld [vmem:[#allocation123_spill] sm:$0xff]  ;;  %v16454_v20 = vld [vmem:[#allocation145_spill] sm:$0xff] }
 0x388   : > { %5591 = vmatpush.bf16.msra.mxu0 %v16426_v42  ;;  %5605 = vmatpush.bf16.msra.mxu1 %v16429_v61  ;;  %v14205_v28 = vpack.c.bf16 %v5446_v17, %v5428_v60  ;;  %v5018_v42 = vpop.f32.mrf.mxu1  ;;  %v16434_v61 = vld [vmem:[#allocation115_spill] sm:$0xff]  ;;  %v16438_v17 = vld [vmem:[#allocation116_spill] sm:$0xff]  ;;  %v14218_v39 = vpack.c.bf16 %v5447_v34, %v5429_v56  ;;  %v5366_v56 = vrot.slane %v14049_v36, 1 }
 0x389   : > { %5618 = vmatpush.bf16.msra.mxu2 %v16430_v24  ;;  %v16435_v24 = vld [vmem:[#allocation126_spill] sm:$0xff]  ;;  %v16439_v60 = vld [vmem:[#allocation127_spill] sm:$0xff] }
 0x38a   : > { %5632 = vmatpush.bf16.msra.mxu3 %v16431_v8  ;;  %v5448_v8 = vmul.f32 %v5412_v47, %v16437_v21  ;;  %v5363_v47 = vrot.slane %v14040_v50, 1  ;;  %v5364_v21 = vrot.slane %v14043_v9, 2  ;;  %v16444_v34 = vld [vmem:[#allocation131_spill] sm:$0xff]  ;;  %v16445_v50 = vld [vmem:[#allocation136_spill] sm:$0xff]  ;;  %v16447_v9 = vld [vmem:[#allocation134_spill] sm:$0xff] }
 0x38c   : > { %5592 = vmatpush.bf16.msra.mxu0 %v16432_v30  ;;  %5606 = vmatpush.bf16.msra.mxu1 %v16433_v23  ;;  %v5058_v30 = vpop.f32.mrf.mxu0  ;;  %v5046_v23 = vpop.f32.mrf.mxu3  ;;  %v14223_v2 = vpack.c.bf16 %v5448_v8, %v5430_v11  ;;  %v4989_v11 = vadd.f32 %v14139_v63, %v14135_v4  ;;  %v16449_v4 = vld [vmem:[#allocation140_spill] sm:$0xff]  ;;  %v5355_v63 = vrot.slane %v14030_v6, 1 }
 0x38d   : > { %5619 = vmatpush.bf16.msra.mxu2 %v16434_v61  ;;  %v16440_v61 = vld [vmem:[#allocation132_spill] sm:$0xff] }
 0x38e   : > { %5633 = vmatpush.bf16.msra.mxu3 %v16438_v17  ;;  %v16443_v17 = vld [vmem:[#allocation130_spill] sm:$0xff]  ;;  %v5003_v36 = vadd.f32 %v14156_v44, %v4989_v11  ;;  %v5356_v44 = vrot.slane %v14032_v27, 1 }
 0x38f   : > { %5593 = vmatmul.bf16.vlgmr.msra.gmra.mxu0 %v14202_v37  ;;  %5607 = vmatmul.bf16.vlgmr.msra.gmra.mxu1 %v14205_v28 }
 0x390   : > { %5641 = vmatpush.bf16.msrb.mxu0 %v16435_v24  ;;  %5655 = vmatpush.bf16.msrb.mxu1 %v16436_v55  ;;  %v16441_v24 = vld [vmem:[#allocation133_spill] sm:$0xff]  ;;  %v16442_v55 = vld [vmem:[#allocation128_spill] sm:$0xff]  ;;  %v5017_v11 = vadd.f32 %v14172_v25, %v5003_v36 }
 0x391   : > { %5620 = vmatpush.bf16.msra.mxu2 %v16439_v60  ;;  %v5367_v60 = vrot.slane %v14052_v49, 2  ;;  %v4991_v49 = vadd.f32 %v14166_v38, %v14162_v62  ;;  %v16453_v38 = vld [vmem:[#allocation144_spill] sm:$0xff] }
 0x392   : > { %5634 = vmatpush.bf16.msra.mxu3 %v16442_v55  ;;  %v16446_v55 = vld [vmem:[#allocation137_spill] sm:$0xff]  ;;  %v5031_v62 = vadd.f32 %v14187_v15, %v5017_v11 }
 0x393   : > { %v5368_v8 = vor.u32 %v5367_v60, %v5366_v56  ;;  %v5005_v56 = vadd.f32 %v14185_v18, %v4991_v49  ;;  %v16450_v60 = vld [vmem:[#allocation141_spill] sm:$0xff]  ;;  %v16455_v18 = vld [vmem:[#allocation142_spill] sm:$0xff]  ;;  %v5361_v49 = vsel %vm339_vm9, %v5356_v44, 0 }
 0x394   : > { %5642 = vmatpush.bf16.msrb.mxu0 %v16440_v61  ;;  %5656 = vmatpush.bf16.msrb.mxu1 %v16441_v24  ;;  %v5072_v61 = vpop.f32.mrf.mxu1  ;;  %v5365_v24 = vor.u32 %v5364_v21, %v5363_v47  ;;  %v5060_v21 = vpop.f32.mrf.mxu0  ;;  %v5045_v15 = vadd.f32 %v14194_v58, %v5031_v62  ;;  %v16457_v11 = vld [vmem:[#allocation149_spill] sm:$0xff] }
 0x395   : > { %5669 = vmatpush.bf16.msrb.mxu2 %v16443_v17  ;;  %5635 = vmatmul.bf16.vlgmr.msra.gmra.mxu3 %v14223_v2  ;;  %v16448_v17 = vld [vmem:[#allocation135_spill] sm:$0xff]  ;;  %v5086_v47 = vpop.f32.mrf.mxu2  ;;  %v16461_v62 = vld [vmem:[#allocation157_spill] sm:$0xff] }
 0x396   : > { %5683 = vmatpush.bf16.msrb.mxu3 %v16444_v34  ;;  %5621 = vmatmul.bf16.vlgmr.msra.gmra.mxu2 %v14218_v39  ;;  %v14243_v34 = vpop.f32.mrf.mxu3  ;;  %v5371_v44 = vsel %vm11260_vm11, %v5365_v24, 0 }
 0x397   : > { %v5397_v35 = vunpack.c.l.bf16 %v5371_v44  ;;  %v5415_v24 = vunpack.c.h.bf16 %v5371_v44 }
 0x398   : > { %5643 = vmatpush.bf16.msrb.mxu0 %v16445_v50  ;;  %5657 = vmatpush.bf16.msrb.mxu1 %v16446_v55  ;;  %v16451_v50 = vld [vmem:[#allocation138_spill] sm:$0xff]  ;;  %v16452_v55 = vld [vmem:[#allocation139_spill] sm:$0xff] }
 0x399   : > { %5670 = vmatpush.bf16.msrb.mxu2 %v16447_v9  ;;  %v5358_v9 = vsel %vm339_vm9, %v5355_v63, 0  ;;  %v5414_v63 = vunpack.c.h.bf16 %v5361_v49  ;;  %v5451_v44 = vmul.f32 %v5415_v24, %v11304_v26  ;;  %v16475_v24 = vld [vmem:[#allocation166_spill] sm:$0xff] }
 0x39a   : > { %5684 = vmatpush.bf16.msrb.mxu3 %v16448_v17  ;;  %v5019_v17 = vadd.f32 %v5018_v42, %v5005_v56  ;;  %v5395_v36 = vunpack.c.l.bf16 %v5358_v9  ;;  %v16458_v56 = vld [vmem:[#allocation150_spill] sm:$0xff] }
 0x39c   : > { %5644 = vmatpush.bf16.msrb.mxu0 %v16449_v4  ;;  %5658 = vmatpush.bf16.msrb.mxu1 %v16450_v60  ;;  %v5074_v4 = vpop.f32.mrf.mxu1  ;;  %v16456_v60 = vld [vmem:[#allocation143_spill] sm:$0xff]  ;;  %v5114_v25 = vpop.f32.mrf.mxu0 }
 0x39d   : > { %5671 = vmatpush.bf16.msrb.mxu2 %v16451_v50  ;;  %v5033_v50 = vadd.f32 %v5032_v59, %v5019_v17  ;;  %v5088_v42 = vpop.f32.mrf.mxu2  ;;  %v16460_v59 = vld [vmem:[#allocation147_spill] sm:$0xff]  ;;  %v5431_v17 = vmul.f32 %v5395_v36, %v16461_v62  ;;  %v16467_v36 = vld [vmem:[#allocation152_spill] sm:$0xff] }
 0x39e   : > { %5685 = vmatpush.bf16.msrb.mxu3 %v16452_v55  ;;  %v5413_v55 = vunpack.c.h.bf16 %v5358_v9  ;;  %v5372_v9 = vsel %vm11260_vm11, %v5368_v8, 0 }
 0x39f   : > { %v5047_v58 = vadd.f32 %v5046_v23, %v5033_v50  ;;  %v5398_v22 = vunpack.c.l.bf16 %v5372_v9  ;;  %v5416_v8 = vunpack.c.h.bf16 %v5372_v9  ;;  %v16470_v9 = vld [vmem:[#allocation155_spill] sm:$0xff] }
 0x3a0   : > { %5645 = vmatpush.bf16.msrb.mxu0 %v16453_v38  ;;  %5659 = vmatpush.bf16.msrb.mxu1 %v16454_v20  ;;  %v5396_v38 = vunpack.c.l.bf16 %v5361_v49  ;;  %v16459_v20 = vld [vmem:[#allocation146_spill] sm:$0xff]  ;;  %v5449_v49 = vmul.f32 %v5413_v55, %v11294_v19  ;;  %v16468_v19 = vld [vmem:[#allocation163_spill] sm:$0xff] }
 0x3a1   : > { %5672 = vmatpush.bf16.msrb.mxu2 %v16455_v18  ;;  %v5059_v18 = vadd.f32 %v5058_v30, %v5045_v15  ;;  %v16465_v15 = vld [vmem:[#allocation154_spill] sm:$0xff]  ;;  %v5061_v50 = vadd.f32 %v5060_v21, %v5047_v58  ;;  %v5452_v21 = vmul.f32 %v5416_v8, %v16171_v29  ;;  %v16471_v58 = vld [vmem:[#allocation156_spill] sm:$0xff]  ;;  %v16476_v8 = vld [vmem:[#allocation171_spill] sm:$0xff] }
 0x3a2   : > { %5686 = vmatpush.bf16.msrb.mxu3 %v16456_v60  ;;  %v5102_v60 = vpop.f32.mrf.mxu3  ;;  %v14277_v55 = vpack.c.bf16 %v5449_v49, %v5431_v17 }
 0x3a3   : > { %v5073_v23 = vadd.f32 %v5072_v61, %v5059_v18  ;;  %v5434_v61 = vmul.f32 %v5398_v22, %v16170_v31  ;;  %v5075_v18 = vadd.f32 %v5074_v4, %v5061_v50  ;;  %v16474_v22 = vld [vmem:[#allocation165_spill] sm:$0xff]  ;;  %v16477_v50 = vld [vmem:[#allocation172_spill] sm:$0xff] }
 0x3a4   : > { %5646 = vmatpush.bf16.msrb.mxu0 %v16457_v11  ;;  %5660 = vmatpush.bf16.msrb.mxu1 %v16458_v56  ;;  %v16462_v11 = vld [vmem:[#allocation153_spill] sm:$0xff]  ;;  %v16463_v56 = vld [vmem:[#allocation159_spill] sm:$0xff]  ;;  %v5128_v30 = vpop.f32.mrf.mxu1 }
 0x3a5   : > { %5673 = vmatpush.bf16.msrb.mxu2 %v16459_v20  ;;  %v5432_v48 = vmul.f32 %v5396_v38, %v16463_v56  ;;  %v16464_v20 = vld [vmem:[#allocation160_spill] sm:$0xff]  ;;  %v14297_v49 = vpack.c.bf16 %v5452_v21, %v5434_v61  ;;  %v16482_v61 = vld [vmem:[#allocation173_spill] sm:$0xff] }
 0x3a6   : > { %5687 = vmatpush.bf16.msrb.mxu3 %v16460_v59  ;;  %v5450_v57 = vmul.f32 %v5414_v63, %v16464_v20  ;;  %v16466_v59 = vld [vmem:[#allocation151_spill] sm:$0xff]  ;;  %v5433_v63 = vmul.f32 %v5397_v35, %v11302_v13  ;;  %v5142_v20 = vpop.f32.mrf.mxu2  ;;  %v5089_v35 = vadd.f32 %v5088_v42, %v5075_v18  ;;  %v16479_v42 = vld [vmem:[#allocation170_spill] sm:$0xff] }
 0x3a8   : > { %5647 = vmatpush.bf16.msrb.mxu0 %v16462_v11  ;;  %5661 = vmatpush.bf16.msrb.mxu1 %v16465_v15  ;;  %v5087_v11 = vadd.f32 %v5086_v47, %v5073_v23  ;;  %v14280_v38 = vpack.c.bf16 %v5450_v57, %v5432_v48  ;;  %v5116_v15 = vpop.f32.mrf.mxu0  ;;  %v16473_v57 = vld [vmem:[#allocation168_spill] sm:$0xff]  ;;  %v14294_v17 = vpack.c.bf16 %v5451_v44, %v5433_v63 }
 0x3a9   : > { %5674 = vmatpush.bf16.msrb.mxu2 %v16466_v59  ;;  %v16469_v59 = vld [vmem:[#allocation164_spill] sm:$0xff] }
 0x3aa   : > { %5688 = vmatpush.bf16.msrb.mxu3 %v16467_v36  ;;  %v5156_v47 = vpop.f32.mrf.mxu3  ;;  %v5101_v48 = vadd.f32 %v14243_v34, %v5087_v11  ;;  %v16478_v36 = vld [vmem:[#allocation169_spill] sm:$0xff]  ;;  %v5103_v34 = vadd.f32 %v5102_v60, %v5089_v35 }
 0x3ab   : > { %v16486_v35 = vld [vmem:[#allocation177_spill] sm:$0xff] }
 0x3ac   : > { %5648 = vmatpush.bf16.msrb.mxu0 %v16468_v19  ;;  %5662 = vmatpush.bf16.msrb.mxu1 %v16469_v59  ;;  %v16472_v19 = vld [vmem:[#allocation167_spill] sm:$0xff]  ;;  %v5115_v4 = vadd.f32 %v5114_v25, %v5101_v48  ;;  %v5130_v23 = vpop.f32.mrf.mxu1  ;;  %v5117_v44 = vadd.f32 %v5116_v15, %v5103_v34  ;;  %v16485_v48 = vld [vmem:[#allocation180_spill] sm:$0xff]  ;;  %v16491_v34 = vld [vmem:[#allocation182_spill] sm:$0xff] }
 0x3ad   : > { %5675 = vmatpush.bf16.msrb.mxu2 %v16470_v9  ;;  %v16480_v25 = vld [vmem:[#allocation175_spill] sm:$0xff]  ;;  %v16481_v9 = vld [vmem:[#allocation176_spill] sm:$0xff] }
 0x3ae   : > { %5689 = vmatpush.bf16.msrb.mxu3 %v16471_v58  ;;  %v5129_v63 = vadd.f32 %v5128_v30, %v5115_v4  ;;  %v5144_v59 = vpop.f32.mrf.mxu2  ;;  %v16483_v58 = vld [vmem:[#allocation174_spill] sm:$0xff]  ;;  %v5131_v60 = vadd.f32 %v5130_v23, %v5117_v44 }
 0x3af   : > { %5649 = vmatmul.bf16.vlgmr.msrb.gmra.mxu0 %v14277_v55  ;;  %5663 = vmatmul.bf16.vlgmr.msrb.gmra.mxu1 %v14280_v38 }
 0x3b0   : > { %5697 = vmatpush.bf16.msra.mxu0 %v16472_v19  ;;  %5711 = vmatpush.bf16.msra.mxu1 %v16473_v57  ;;  %v5170_v11 = vpop.f32.mrf.mxu0  ;;  %v5143_v21 = vadd.f32 %v5142_v20, %v5129_v63  ;;  %v16484_v19 = vld [vmem:[#allocation179_spill] sm:$0xff]  ;;  %v5145_v15 = vadd.f32 %v5144_v59, %v5131_v60  ;;  %v16490_v20 = vld [vmem:[#allocation181_spill] sm:$0xff]  ;;  %v16497_v60 = vld [vmem:[#allocation192_spill] sm:$0xff] }
 0x3b1   : > { %5676 = vmatpush.bf16.msrb.mxu2 %v16474_v22  ;;  %v16487_v22 = vld [vmem:[#allocation178_spill] sm:$0xff]  ;;  %v16494_v59 = vld [vmem:[#allocation185_spill] sm:$0xff] }
 0x3b2   : > { %5690 = vmatpush.bf16.msrb.mxu3 %v16475_v24  ;;  %v5158_v18 = vpop.f32.mrf.mxu3  ;;  %v5157_v30 = vadd.f32 %v5156_v47, %v5143_v21  ;;  %v16488_v24 = vld [vmem:[#allocation183_spill] sm:$0xff]  ;;  %v16493_v47 = vld [vmem:[#allocation188_spill] sm:$0xff] }
 0x3b4   : > { %5698 = vmatpush.bf16.msra.mxu0 %v16476_v8  ;;  %5712 = vmatpush.bf16.msra.mxu1 %v16477_v50  ;;  %v5184_v57 = vpop.f32.mrf.mxu1  ;;  %v5171_v4 = vadd.f32 %v5170_v11, %v5157_v30  ;;  %v16489_v8 = vld [vmem:[#allocation184_spill] sm:$0xff]  ;;  %v16495_v11 = vld [vmem:[#allocation186_spill] sm:$0xff] }
 0x3b5   : > { %5725 = vmatpush.bf16.msra.mxu2 %v16478_v36  ;;  %5691 = vmatmul.bf16.vlgmr.msrb.gmra.mxu3 %v14297_v49  ;;  %v5159_v36 = vadd.f32 %v5158_v18, %v5145_v15  ;;  %v16498_v18 = vld [vmem:[#allocation189_spill] sm:$0xff]  ;;  %v16500_v15 = vld [vmem:[#allocation196_spill] sm:$0xff] }
 0x3b6   : > { %5739 = vmatpush.bf16.msra.mxu3 %v16479_v42  ;;  %5677 = vmatmul.bf16.vlgmr.msrb.gmra.mxu2 %v14294_v17  ;;  %v5185_v63 = vadd.f32 %v5184_v57, %v5171_v4  ;;  %v16501_v4 = vld [vmem:[#allocation197_spill] sm:$0xff] }
 0x3b8   : > { %5699 = vmatpush.bf16.msra.mxu0 %v16480_v25  ;;  %5713 = vmatpush.bf16.msra.mxu1 %v16481_v9  ;;  %v5172_v50 = vpop.f32.mrf.mxu0  ;;  %v16492_v25 = vld [vmem:[#allocation187_spill] sm:$0xff] }
 0x3b9   : > { %5726 = vmatpush.bf16.msra.mxu2 %v16482_v61  ;;  %v5198_v23 = vpop.f32.mrf.mxu2  ;;  %v5173_v44 = vadd.f32 %v5172_v50, %v5159_v36  ;;  %v16503_v50 = vld [vmem:[#allocation195_spill] sm:$0xff] }
 0x3ba   : > { %5740 = vmatpush.bf16.msra.mxu3 %v16483_v58  ;;  %v5212_v42 = vpop.f32.mrf.mxu3  ;;  %v5199_v9 = vadd.f32 %v5198_v23, %v5185_v63  ;;  %v16496_v58 = vld [vmem:[#allocation191_spill] sm:$0xff] }
 0x3bc   : > { %5700 = vmatpush.bf16.msra.mxu0 %v16484_v19  ;;  %5714 = vmatpush.bf16.msra.mxu1 %v16485_v48  ;;  %v5186_v61 = vpop.f32.mrf.mxu1  ;;  %v14325_v57 = vadd.f32 %v5212_v42, %v5199_v9  ;;  %v16499_v48 = vld [vmem:[#allocation190_spill] sm:$0xff]  ;;  %v16505_v42 = vld [vmem:[#allocation201_spill] sm:$0xff] }
 0x3bd   : > { %5727 = vmatpush.bf16.msra.mxu2 %v16486_v35  ;;  %v5187_v21 = vadd.f32 %v5186_v61, %v5173_v44  ;;  %v5374_v44 = vrot.slane %v14032_v27, 2 }
 0x3be   : > { %5741 = vmatpush.bf16.msra.mxu3 %v16487_v22 }
 0x3bf   : > { %v5379_v9 = vsel %vm361_vm12, %v5374_v44, 0  ;;  %v16514_v44 = vld [vmem:[#allocation209_spill] sm:$0xff] }
 0x3c0   : > { %5701 = vmatpush.bf16.msra.mxu0 %v16488_v24  ;;  %5715 = vmatpush.bf16.msra.mxu1 %v16489_v8  ;;  %v16502_v24 = vld [vmem:[#allocation193_spill] sm:$0xff]  ;;  %v5373_v8 = vrot.slane %v14030_v6, 2  ;;  %v5418_v27 = vunpack.c.h.bf16 %v5379_v9 }
 0x3c1   : > { %5728 = vmatpush.bf16.msra.mxu2 %v16490_v20  ;;  %v5200_v19 = vpop.f32.mrf.mxu2  ;;  %v5232_v20 = vmul.f32 %v14325_v57, %v14325_v57 }
 0x3c2   : > { %5742 = vmatpush.bf16.msra.mxu3 %v16491_v34  ;;  %v5201_v35 = vadd.f32 %v5200_v19, %v5187_v21  ;;  %v5214_v30 = vpop.f32.mrf.mxu3  ;;  %v16504_v34 = vld [vmem:[#allocation200_spill] sm:$0xff]  ;;  %v5376_v63 = vsel %vm361_vm12, %v5373_v8, 0  ;;  %v16511_v8 = vld [vmem:[#allocation203_spill] sm:$0xff] }
 0x3c3   : > { %v16508_v19 = vld [vmem:[#allocation204_spill] sm:$0xff] }
 0x3c4   : > { %5702 = vmatpush.bf16.msra.mxu0 %v16492_v25  ;;  %5716 = vmatpush.bf16.msra.mxu1 %v16493_v47  ;;  %v14329_v22 = vadd.f32 %v5214_v30, %v5201_v35  ;;  %v5399_v47 = vunpack.c.l.bf16 %v5376_v63  ;;  %v16509_v35 = vld [vmem:[#allocation205_spill] sm:$0xff]  ;;  %v16510_v30 = vld [vmem:[#allocation202_spill] sm:$0xff] }
 0x3c5   : > { %5729 = vmatpush.bf16.msra.mxu2 %v16494_v59  ;;  %v5417_v59 = vunpack.c.h.bf16 %v5376_v63  ;;  %v16513_v63 = vld [vmem:[#allocation208_spill] sm:$0xff] }
 0x3c6   : > { %5743 = vmatpush.bf16.msra.mxu3 %v16495_v11  ;;  %v5224_v23 = vadd.f32 %v14329_v22, %v14325_v57  ;;  %v5234_v36 = vmul.f32 %v14329_v22, %v14329_v22  ;;  %v16506_v11 = vld [vmem:[#allocation198_spill] sm:$0xff] }
 0x3c8   : > { %5703 = vmatpush.bf16.msra.mxu0 %v16496_v58  ;;  %5717 = vmatpush.bf16.msra.mxu1 %v16497_v60  ;;  %v5225_v6 = vrot.slane %v5224_v23, 4  ;;  %v5242_v25 = vadd.f32 %v5234_v36, %v5232_v20  ;;  %v5435_v58 = vmul.f32 %v5399_v47, %v11494_v43  ;;  %v5453_v60 = vmul.f32 %v5417_v59, %v11496_v41  ;;  %v16515_v47 = vld [vmem:[#allocation206_spill] sm:$0xff] }
 0x3c9   : > { %5730 = vmatpush.bf16.msra.mxu2 %v16498_v18  ;;  %v16507_v18 = vld [vmem:[#allocation199_spill] sm:$0xff] }
 0x3ca   : > { %5744 = vmatpush.bf16.msra.mxu3 %v16499_v48  ;;  %v5226_v61 = vadd.f32 %v5225_v6, %v5224_v23  ;;  %v5243_v21 = vrot.slane %v5242_v25, 4  ;;  %v5400_v48 = vunpack.c.l.bf16 %v5379_v9  ;;  %v16518_v9 = vld [vmem:[#allocation213_spill] sm:$0xff] }
 0x3cc   : > { %5704 = vmatpush.bf16.msra.mxu0 %v16500_v15  ;;  %5718 = vmatpush.bf16.msra.mxu1 %v16501_v4  ;;  %v5227_v15 = vrot.slane %v5226_v61, 2  ;;  %v5244_v4 = vadd.f32 %v5243_v21, %v5242_v25  ;;  %v5436_v20 = vmul.f32 %v5400_v48, %v11503_v33  ;;  %v16521_v48 = vld [vmem:[#allocation216_spill] sm:$0xff] }
 0x3cd   : > { %5731 = vmatpush.bf16.msra.mxu2 %v16502_v24  ;;  %v14353_v24 = vpack.c.bf16 %v5453_v60, %v5435_v58  ;;  %v16519_v58 = vld [vmem:[#allocation210_spill] sm:$0xff]  ;;  %v16520_v60 = vld [vmem:[#allocation211_spill] sm:$0xff] }
 0x3ce   : > { %5745 = vmatpush.bf16.msra.mxu3 %v16503_v50  ;;  %v16512_v50 = vld [vmem:[#allocation194_spill] sm:$0xff]  ;;  %v5228_v36 = vadd.f32 %v5227_v15, %v5226_v61  ;;  %v16524_v15 = vld [vmem:[#allocation215_spill] sm:$0xff] }
 0x3cf   : > { %v5454_v23 = vmul.f32 %v5418_v27, %v16512_v50  ;;  %5705 = vmatmul.bf16.vlgmr.msra.gmra.mxu0 %v14353_v24  ;;  %v16522_v27 = vld [vmem:[#allocation217_spill] sm:$0xff] }
 0x3d0   : > { %5753 = vmatpush.bf16.msrb.mxu0 %v16504_v34  ;;  %5767 = vmatpush.bf16.msrb.mxu1 %v16505_v42  ;;  %v5245_v34 = vrot.slane %v5244_v4, 2  ;;  %v5229_v6 = vrot.slane %v5228_v36, 1 }
 0x3d1   : > { %5732 = vmatpush.bf16.msra.mxu2 %v16506_v11  ;;  %v14361_v42 = vpack.c.bf16 %v5454_v23, %v5436_v20  ;;  %v16517_v11 = vld [vmem:[#allocation212_spill] sm:$0xff]  ;;  %v16526_v20 = vld [vmem:[#allocation221_spill] sm:$0xff] }
 0x3d2   : > { %5746 = vmatpush.bf16.msra.mxu3 %v16507_v18  ;;  %v5246_v25 = vadd.f32 %v5245_v34, %v5244_v4  ;;  %v5230_v59 = vadd.f32 %v5229_v6, %v5228_v36  ;;  %v16527_v36 = vld [vmem:[#allocation218_spill] sm:$0xff]  ;;  %v16528_v34 = vld [vmem:[#allocation219_spill] sm:$0xff] }
 0x3d3   : > { %5719 = vmatmul.bf16.vlgmr.msra.gmra.mxu1 %v14361_v42  ;;  %v16531_v6 = vld [vmem:[#allocation222_spill] sm:$0xff] }
 0x3d4   : > { %5754 = vmatpush.bf16.msrb.mxu0 %v16508_v19  ;;  %5768 = vmatpush.bf16.msrb.mxu1 %v16509_v35  ;;  %v14370_v21 = vmul.f32 0.11111111, %v5230_v59 }
 0x3d5   : > { %5781 = vmatpush.bf16.msrb.mxu2 %v16510_v30  ;;  %5747 = vmatmul.bf16.vlgmr.msra.gmra.mxu3 %v14075_v45  ;;  %v5247_v45 = vrot.slane %v5246_v25, 1  ;;  %v16523_v30 = vld [vmem:[#allocation214_spill] sm:$0xff] }
 0x3d6   : > { %5795 = vmatpush.bf16.msrb.mxu3 %v16511_v8  ;;  %5733 = vmatmul.bf16.vlgmr.msra.gmra.mxu2 %v14072_v5  ;;  %v16516_v5 = vld [vmem:[#allocation207_spill] sm:$0xff]  ;;  %v5254_v19 = vmul.f32 %v14370_v21, %v14370_v21  ;;  %v16525_v8 = vld [vmem:[#allocation220_spill] sm:$0xff] }
 0x3d7   : > { %v5248_v61 = vadd.f32 %v5247_v45, %v5246_v25  ;;  %v16532_v25 = vld [vmem:[#allocation223_spill] sm:$0xff]  ;;  %v16533_v45 = vld [vmem:[#allocation228_spill] sm:$0xff] }
 0x3d8   : > { %5755 = vmatpush.bf16.msrb.mxu0 %v16513_v63  ;;  %5769 = vmatpush.bf16.msrb.mxu1 %v16514_v44  ;;  %v16529_v63 = vld [vmem:[#allocation224_spill] sm:$0xff]  ;;  %v16530_v44 = vld [vmem:[#allocation225_spill] sm:$0xff] }
 0x3d9   : > { %5782 = vmatpush.bf16.msrb.mxu2 %v16515_v47  ;;  %v5252_v18 = vmul.f32 0.11111111, %v5248_v61  ;;  %v16535_v61 = vld [vmem:[#allocation226_spill] sm:$0xff] }
 0x3da   : > { %5796 = vmatpush.bf16.msrb.mxu3 %v16516_v5 }
 0x3db   : > { %v5256_v35 = vsub.f32 %v5252_v18, %v5254_v19  ;;  %v16537_v18 = vld [vmem:[#allocation232_spill] sm:$0xff]  ;;  %v16538_v19 = vld [vmem:[#allocation233_spill] sm:$0xff] }
 0x3dc   : > { %5756 = vmatpush.bf16.msrb.mxu0 %v16517_v11  ;;  %5770 = vmatpush.bf16.msrb.mxu1 %v16518_v9  ;;  %v16534_v11 = vld [vmem:[#allocation229_spill] sm:$0xff] }
 0x3dd   : > { %5783 = vmatpush.bf16.msrb.mxu2 %v16519_v58  ;;  %v5258_v4 = vmax.f32 %v5256_v35, 0.0  ;;  %v16536_v58 = vld [vmem:[#allocation227_spill] sm:$0xff] }
 0x3de   : > { %5797 = vmatpush.bf16.msrb.mxu3 %v16520_v60  ;;  %v16540_v35 = vld [vmem:[#allocation231_spill] sm:$0xff] }
 0x3df   : > { %v5264_v23 = vadd.f32 1e-05, %v5258_v4  ;;  %v5482_v47 = vpop.f32.mrf.mxu0  ;;  %v16541_v4 = vld [vmem:[#allocation236_spill] sm:$0xff] }
 0x3e0   : > { %5757 = vmatpush.bf16.msrb.mxu0 %v16521_v48  ;;  %5771 = vmatpush.bf16.msrb.mxu1 %v16522_v27  ;;  %v16539_v27 = vld [vmem:[#allocation230_spill] sm:$0xff] }
 0x3e1   : > { %5784 = vmatpush.bf16.msrb.mxu2 %v16523_v30  ;;  %10167 = vrsqrt.f32 %v5264_v23  ;;  %vm5281_vm15 = vweird.f32 %v5264_v23 }
 0x3e2   : > { %5798 = vmatpush.bf16.msrb.mxu3 %v16524_v15  ;;  %v5496_v5 = vpop.f32.mrf.mxu1 }
 0x3e3   : > { %v5497_v59 = vadd.f32 %v5496_v5, %v5482_v47  ;;  %v16546_v47 = vld [vmem:[#allocation241_spill] sm:$0xff]  ;;  %v5260_v5 = vsub.f32 %v14325_v57, %v14370_v21 }
 0x3e4   : > { %5758 = vmatpush.bf16.msrb.mxu0 %v16525_v8  ;;  %5772 = vmatpush.bf16.msrb.mxu1 %v16526_v20  ;;  %v16542_v8 = vld [vmem:[#allocation237_spill] sm:$0xff] }
 0x3e5   : > { %5785 = vmatpush.bf16.msrb.mxu2 %v16527_v36  ;;  %v16543_v36 = vld [vmem:[#allocation234_spill] sm:$0xff] }
 0x3e6   : > { %5799 = vmatpush.bf16.msrb.mxu3 %v16528_v34  ;;  %v16544_v34 = vld [vmem:[#allocation235_spill] sm:$0xff] }
 0x3e7   : > { %v10168_v9 = vpop.eup %10167  ;;  %v14398_v30 = vpop.f32.mrf.mxu0 }
 0x3e8   : > { %5759 = vmatpush.bf16.msrb.mxu0 %v16529_v63  ;;  %5773 = vmatpush.bf16.msrb.mxu1 %v16530_v44  ;;  %v5276_v60 = vmul.f32 %v10168_v9, %v5264_v23  ;;  %vm5282_vm14 = vweird.f32 %v10168_v9 }
 0x3e9   : > { %5786 = vmatpush.bf16.msrb.mxu2 %v16531_v6  ;;  %vm5283_vm1 = vmor %vm5281_vm15, %vm5282_vm14 }
 0x3ea   : > { %5800 = vmatpush.bf16.msrb.mxu3 %v16532_v25  ;;  %v5277_v48 = vmul.f32 %v10168_v9, %v5276_v60  ;;  %v14402_v20 = vpop.f32.mrf.mxu1  ;;  %v16545_v25 = vld [vmem:[#allocation240_spill] sm:$0xff] }
 0x3eb   : > { %v16549_v60 = vld [vmem:[#allocation244_spill] sm:$0xff] }
 0x3ec   : > { %5760 = vmatpush.bf16.msrb.mxu0 %v16533_v45  ;;  %5774 = vmatpush.bf16.msrb.mxu1 %v16534_v11  ;;  %v5278_v15 = vmul.f32 0.5, %v5277_v48  ;;  %v5524_v6 = vpop.f32.mrf.mxu3  ;;  %v5262_v45 = vsub.f32 %v14329_v22, %v14370_v21  ;;  %v10179_v48 = vld [vmem:[#allocation8 + $0x8] sm:$0xff]  ;;  %v16552_v21 = vld [vmem:[#allocation243_spill] sm:$0xff] }
 0x3ed   : > { %5787 = vmatpush.bf16.msrb.mxu2 %v16535_v61  ;;  %v16551_v22 = vld [vmem:[#allocation242_spill] sm:$0xff] }
 0x3ee   : > { %5801 = vmatpush.bf16.msrb.mxu3 %v16536_v58 }
 0x3ef   : > { %5761 = vmatmul.bf16.vlgmr.msrb.gmra.mxu0 %v14088_v16  ;;  %5775 = vmatmul.bf16.vlgmr.msrb.gmra.mxu1 %v14098_v10  ;;  %v5510_v16 = vpop.f32.mrf.mxu2  ;;  %v5279_v10 = vsub.f32 1.5, %v5278_v15  ;;  %v5538_v58 = vpop.f32.mrf.mxu0 }
 0x3f0   : > { %5809 = vmatpush.bf16.msra.mxu0 %v16537_v18  ;;  %5823 = vmatpush.bf16.msra.mxu1 %v16538_v19  ;;  %v5511_v63 = vadd.f32 %v5510_v16, %v5497_v59  ;;  %v16547_v59 = vld [vmem:[#allocation238_spill] sm:$0xff]  ;;  %v16550_v18 = vld [vmem:[#allocation245_spill] sm:$0xff] }
 0x3f1   : > { %5788 = vmatpush.bf16.msrb.mxu2 %v16539_v27  ;;  %v5280_v44 = vmul.f32 %v10168_v9, %v5279_v10  ;;  %v10180_v27 = vld [vmem:[#allocation8 + $0x18] sm:$0xff]  ;;  %v16555_v16 = vld [vmem:[#allocation246_spill] sm:$0xff]  ;;  %v16556_v10 = vld [vmem:[#allocation247_spill] sm:$0xff] }
 0x3f2   : > { %5802 = vmatpush.bf16.msrb.mxu3 %v16540_v35  ;;  %v5525_v11 = vadd.f32 %v5524_v6, %v5511_v63  ;;  %v16557_v63 = vld [vmem:[#allocation252_spill] sm:$0xff]  ;;  %v16559_v6 = vld [vmem:[#allocation250_spill] sm:$0xff] }
 0x3f4   : > { %5810 = vmatpush.bf16.msra.mxu0 %v16541_v4  ;;  %5824 = vmatpush.bf16.msra.mxu1 %v16542_v8  ;;  %v5539_v19 = vadd.f32 %v5538_v58, %v5525_v11  ;;  %v5552_v4 = vpop.f32.mrf.mxu1  ;;  %v14422_v8 = vpop.f32.mrf.mxu3  ;;  %v16561_v11 = vld [vmem:[#allocation256_spill] sm:$0xff] }
 0x3f5   : > { %5837 = vmatpush.bf16.msra.mxu2 %v16543_v36  ;;  %5803 = vmatmul.bf16.vlgmr.msrb.gmra.mxu3 %v14133_v52  ;;  %v5284_v52 = vsel %vm5283_vm1, %v10168_v9, %v5280_v44  ;;  %v16553_v36 = vld [vmem:[#allocation248_spill] sm:$0xff]  ;;  %v16558_v44 = vld [vmem:[#allocation253_spill] sm:$0xff] }
 0x3f6   : > { %5851 = vmatpush.bf16.msra.mxu3 %v16544_v34  ;;  %5789 = vmatmul.bf16.vlgmr.msrb.gmra.mxu2 %v14126_v54  ;;  %v16548_v54 = vld [vmem:[#allocation239_spill] sm:$0xff]  ;;  %v5286_v61 = vmul.f32 %v5284_v52, %v5260_v5  ;;  %v5288_v23 = vmul.f32 %v5284_v52, %v5262_v45  ;;  %v5553_v9 = vadd.f32 %v5552_v4, %v5539_v19  ;;  %v16554_v34 = vld [vmem:[#allocation249_spill] sm:$0xff]  ;;  %v16563_v52 = vld [vmem:[#allocation254_spill] sm:$0xff] }
 0x3f7   : > { %v14420_v15 = vpop.f32.mrf.mxu2  ;;  %v16567_v19 = vld [vmem:[#allocation258_spill] sm:$0xff]  ;;  %v16574_v4 = vld [vmem:[#allocation269_spill] sm:$0xff] }
 0x3f8   : > { %5811 = vmatpush.bf16.msra.mxu0 %v16545_v25  ;;  %5825 = vmatpush.bf16.msra.mxu1 %v16546_v47  ;;  %v5290_v57 = vadd.f32 %v10179_v48, %v5286_v61  ;;  %v5292_v35 = vadd.f32 %v10180_v27, %v5288_v23  ;;  %v16560_v25 = vld [vmem:[#allocation251_spill] sm:$0xff]  ;;  %v14436_v23 = vpop.f32.mrf.mxu0  ;;  %v16570_v27 = vld [vmem:[#allocation265_spill] sm:$0xff] }
 0x3f9   : > { %5838 = vmatpush.bf16.msra.mxu2 %v16547_v59  ;;  %v16562_v59 = vld [vmem:[#allocation257_spill] sm:$0xff]  ;;  %v16564_v61 = vld [vmem:[#allocation255_spill] sm:$0xff] }
 0x3fa   : > { %5852 = vmatpush.bf16.msra.mxu3 %v16548_v54  ;;  %6814 = vst [vmem:[#allocation8 + $0x8] sm:$0xff] %v5290_v57  ;;  %v16568_v48 = vld [vmem:[#allocation259_spill] sm:$0xff]  ;;  %v16569_v57 = vld [vmem:[#allocation264_spill] sm:$0xff] }
 0x3fb   : > { %6816 = vst [vmem:[#allocation8 + $0x18] sm:$0xff] %v5292_v35  ;;  %v16571_v35 = vld [vmem:[#allocation262_spill] sm:$0xff] }
 0x3fc   : > { %5812 = vmatpush.bf16.msra.mxu0 %v16549_v60  ;;  %5826 = vmatpush.bf16.msra.mxu1 %v16550_v18  ;;  %v5580_v45 = vpop.f32.mrf.mxu3  ;;  %v14438_v58 = vpop.f32.mrf.mxu1  ;;  %v16565_v60 = vld [vmem:[#allocation260_spill] sm:$0xff]  ;;  %v16566_v18 = vld [vmem:[#allocation261_spill] sm:$0xff] }
 0x3fd   : > { %5839 = vmatpush.bf16.msra.mxu2 %v16551_v22  ;;  %v16572_v22 = vld [vmem:[#allocation263_spill] sm:$0xff] }
 0x3fe   : > { %5853 = vmatpush.bf16.msra.mxu3 %v16552_v21  ;;  %v16573_v21 = vld [vmem:[#allocation268_spill] sm:$0xff] }
 0x3ff   : > { %v5566_v47 = vpop.f32.mrf.mxu2 }
 0x400   : > { %5813 = vmatpush.bf16.msra.mxu0 %v16553_v36  ;;  %5827 = vmatpush.bf16.msra.mxu1 %v16554_v34  ;;  %v5567_v5 = vadd.f32 %v5566_v47, %v5553_v9  ;;  %v16575_v9 = vld [vmem:[#allocation266_spill] sm:$0xff]  ;;  %v16576_v36 = vld [vmem:[#allocation267_spill] sm:$0xff] }
 0x401   : > { %5840 = vmatpush.bf16.msra.mxu2 %v16555_v16 }
 0x402   : > { %5854 = vmatpush.bf16.msra.mxu3 %v16556_v10  ;;  %v5581_v54 = vadd.f32 %v5580_v45, %v5567_v5  ;;  %v16577_v10 = vld [vmem:[#allocation272_spill] sm:$0xff]  ;;  %v16584_v45 = vld [vmem:[#allocation275_spill] sm:$0xff] }
 0x403   : > { %v16581_v5 = vld [vmem:[#allocation276_spill] sm:$0xff] }
 0x404   : > { %5814 = vmatpush.bf16.msra.mxu0 %v16557_v63  ;;  %5828 = vmatpush.bf16.msra.mxu1 %v16558_v44  ;;  %v16578_v63 = vld [vmem:[#allocation273_spill] sm:$0xff]  ;;  %v14462_v47 = vpop.f32.mrf.mxu3 }
 0x405   : > { %5841 = vmatpush.bf16.msra.mxu2 %v16559_v6  ;;  %v16579_v6 = vld [vmem:[#allocation270_spill] sm:$0xff] }
 0x406   : > { %5855 = vmatpush.bf16.msra.mxu3 %v16560_v25  ;;  %v16580_v25 = vld [vmem:[#allocation271_spill] sm:$0xff] }
 0x408   : > { %5815 = vmatpush.bf16.msra.mxu0 %v16561_v11  ;;  %5829 = vmatpush.bf16.msra.mxu1 %v16562_v59  ;;  %v16585_v11 = vld [vmem:[#allocation280_spill] sm:$0xff]  ;;  %v16586_v59 = vld [vmem:[#allocation281_spill] sm:$0xff] }
 0x409   : > { %5842 = vmatpush.bf16.msra.mxu2 %v16563_v52  ;;  %v16587_v52 = vld [vmem:[#allocation278_spill] sm:$0xff] }
 0x40a   : > { %5856 = vmatpush.bf16.msra.mxu3 %v16564_v61  ;;  %v16588_v61 = vld [vmem:[#allocation279_spill] sm:$0xff] }
 0x40c   : > { %5816 = vmatpush.bf16.msra.mxu0 %v16565_v60  ;;  %5830 = vmatpush.bf16.msra.mxu1 %v16566_v18  ;;  %v5594_v34 = vpop.f32.mrf.mxu0  ;;  %v5608_v16 = vpop.f32.mrf.mxu1 }
 0x40d   : > { %5843 = vmatpush.bf16.msra.mxu2 %v16567_v19 }
 0x40e   : > { %5857 = vmatpush.bf16.msra.mxu3 %v16568_v48  ;;  %v16589_v48 = vld [vmem:[#allocation284_spill] sm:$0xff] }
 0x40f   : > { %5817 = vmatmul.bf16.vlgmr.msra.gmra.mxu0 %v14145_v14  ;;  %5831 = vmatmul.bf16.vlgmr.msra.gmra.mxu1 %v14151_v53  ;;  %v5595_v14 = vadd.f32 %v5594_v34, %v5581_v54  ;;  %v14456_v53 = vpop.f32.mrf.mxu2 }
 0x410   : > { %5865 = vmatpush.bf16.msrb.mxu0 %v16569_v57  ;;  %5879 = vmatpush.bf16.msrb.mxu1 %v16570_v27  ;;  %v16590_v57 = vld [vmem:[#allocation285_spill] sm:$0xff]  ;;  %v16591_v27 = vld [vmem:[#allocation282_spill] sm:$0xff] }
 0x411   : > { %5844 = vmatpush.bf16.msra.mxu2 %v16571_v35  ;;  %v5609_v44 = vadd.f32 %v5608_v16, %v5595_v14  ;;  %v16592_v35 = vld [vmem:[#allocation283_spill] sm:$0xff]  ;;  %v16597_v14 = vld [vmem:[#allocation292_spill] sm:$0xff]  ;;  %v16598_v16 = vld [vmem:[#allocation293_spill] sm:$0xff] }
 0x412   : > { %5858 = vmatpush.bf16.msra.mxu3 %v16572_v22  ;;  %v16593_v22 = vld [vmem:[#allocation288_spill] sm:$0xff] }
 0x414   : > { %5866 = vmatpush.bf16.msrb.mxu0 %v16573_v21  ;;  %5880 = vmatpush.bf16.msrb.mxu1 %v16574_v4  ;;  %v16594_v21 = vld [vmem:[#allocation289_spill] sm:$0xff]  ;;  %v16595_v4 = vld [vmem:[#allocation286_spill] sm:$0xff]  ;;  %v14482_v34 = vpop.f32.mrf.mxu1 }
 0x415   : > { %5893 = vmatpush.bf16.msrb.mxu2 %v16575_v9  ;;  %5859 = vmatmul.bf16.vlgmr.msra.gmra.mxu3 %v14205_v28  ;;  %v16583_v28 = vld [vmem:[#allocation274_spill] sm:$0xff]  ;;  %v16596_v9 = vld [vmem:[#allocation287_spill] sm:$0xff] }
 0x416   : > { %5907 = vmatpush.bf16.msrb.mxu3 %v16576_v36  ;;  %5845 = vmatmul.bf16.vlgmr.msra.gmra.mxu2 %v14202_v37  ;;  %v16582_v37 = vld [vmem:[#allocation277_spill] sm:$0xff]  ;;  %v14480_v36 = vpop.f32.mrf.mxu0 }
 0x418   : > { %5867 = vmatpush.bf16.msrb.mxu0 %v16577_v10  ;;  %5881 = vmatpush.bf16.msrb.mxu1 %v16578_v63  ;;  %v5636_v18 = vpop.f32.mrf.mxu3  ;;  %v16599_v10 = vld [vmem:[#allocation290_spill] sm:$0xff]  ;;  %v16600_v63 = vld [vmem:[#allocation291_spill] sm:$0xff] }
 0x419   : > { %5894 = vmatpush.bf16.msrb.mxu2 %v16579_v6  ;;  %v5622_v54 = vpop.f32.mrf.mxu2  ;;  %v16602_v6 = vld [vmem:[#allocation297_spill] sm:$0xff] }
 0x41a   : > { %5908 = vmatpush.bf16.msrb.mxu3 %v16580_v25  ;;  %v5623_v60 = vadd.f32 %v5622_v54, %v5609_v44  ;;  %v16601_v44 = vld [vmem:[#allocation296_spill] sm:$0xff]  ;;  %v16603_v25 = vld [vmem:[#allocation294_spill] sm:$0xff] }
 0x41c   : > { %5868 = vmatpush.bf16.msrb.mxu0 %v16581_v5  ;;  %5882 = vmatpush.bf16.msrb.mxu1 %v16582_v37  ;;  %v5637_v19 = vadd.f32 %v5636_v18, %v5623_v60  ;;  %v16604_v5 = vld [vmem:[#allocation295_spill] sm:$0xff]  ;;  %v16605_v37 = vld [vmem:[#allocation300_spill] sm:$0xff] }
 0x41d   : > { %5895 = vmatpush.bf16.msrb.mxu2 %v16583_v28  ;;  %v16606_v28 = vld [vmem:[#allocation301_spill] sm:$0xff] }
 0x41e   : > { %5909 = vmatpush.bf16.msrb.mxu3 %v16584_v45  ;;  %v16607_v45 = vld [vmem:[#allocation298_spill] sm:$0xff] }
 0x420   : > { %5869 = vmatpush.bf16.msrb.mxu0 %v16585_v11  ;;  %5883 = vmatpush.bf16.msrb.mxu1 %v16586_v59  ;;  %v16608_v11 = vld [vmem:[#allocation299_spill] sm:$0xff]  ;;  %v14504_v18 = vpop.f32.mrf.mxu3 }
 0x421   : > { %5896 = vmatpush.bf16.msrb.mxu2 %v16587_v52  ;;  %v16609_v52 = vld [vmem:[#allocation304_spill] sm:$0xff] }
 0x422   : > { %5910 = vmatpush.bf16.msrb.mxu3 %v16588_v61  ;;  %v16610_v61 = vld [vmem:[#allocation305_spill] sm:$0xff] }
 0x424   : > { %5870 = vmatpush.bf16.msrb.mxu0 %v16589_v48  ;;  %5884 = vmatpush.bf16.msrb.mxu1 %v16590_v57  ;;  %v16611_v48 = vld [vmem:[#allocation302_spill] sm:$0xff]  ;;  %v16612_v57 = vld [vmem:[#allocation303_spill] sm:$0xff] }
 0x425   : > { %5897 = vmatpush.bf16.msrb.mxu2 %v16591_v27  ;;  %v16613_v27 = vld [vmem:[#allocation308_spill] sm:$0xff] }
 0x426   : > { %5911 = vmatpush.bf16.msrb.mxu3 %v16592_v35  ;;  %v16617_v35 = vld [vmem:[#allocation312_spill] sm:$0xff] }
 0x428   : > { %5871 = vmatpush.bf16.msrb.mxu0 %v16593_v22  ;;  %5885 = vmatpush.bf16.msrb.mxu1 %v16594_v21  ;;  %v16618_v22 = vld [vmem:[#allocation313_spill] sm:$0xff] }
 0x429   : > { %5898 = vmatpush.bf16.msrb.mxu2 %v16595_v4  ;;  %v16619_v4 = vld [vmem:[#allocation310_spill] sm:$0xff] }
 0x42a   : > { %5912 = vmatpush.bf16.msrb.mxu3 %v16596_v9  ;;  %v16620_v9 = vld [vmem:[#allocation311_spill] sm:$0xff] }
 0x42c   : > { %5872 = vmatpush.bf16.msrb.mxu0 %v16597_v14  ;;  %5886 = vmatpush.bf16.msrb.mxu1 %v16598_v16  ;;  %v5650_v59 = vpop.f32.mrf.mxu0  ;;  %v5664_v54 = vpop.f32.mrf.mxu1 }
 0x42d   : > { %5899 = vmatpush.bf16.msrb.mxu2 %v16599_v10 }
 0x42e   : > { %5913 = vmatpush.bf16.msrb.mxu3 %v16600_v63  ;;  %v16621_v63 = vld [vmem:[#allocation316_spill] sm:$0xff] }
 0x42f   : > { %5873 = vmatmul.bf16.vlgmr.msrb.gmra.mxu0 %v14218_v39  ;;  %5887 = vmatmul.bf16.vlgmr.msrb.gmra.mxu1 %v14223_v2  ;;  %v5651_v39 = vadd.f32 %v5650_v59, %v5637_v19  ;;  %v14500_v2 = vpop.f32.mrf.mxu2  ;;  %v16616_v19 = vld [vmem:[#allocation307_spill] sm:$0xff]  ;;  %v16630_v59 = vld [vmem:[#allocation325_spill] sm:$0xff] }
 0x430   : > { %5921 = vmatpush.bf16.msra.mxu0 %v16601_v44  ;;  %5935 = vmatpush.bf16.msra.mxu1 %v16602_v6  ;;  %v16622_v44 = vld [vmem:[#allocation317_spill] sm:$0xff]  ;;  %v16623_v6 = vld [vmem:[#allocation314_spill] sm:$0xff] }
 0x431   : > { %5900 = vmatpush.bf16.msrb.mxu2 %v16603_v25  ;;  %v5665_v60 = vadd.f32 %v5664_v54, %v5651_v39  ;;  %v16624_v25 = vld [vmem:[#allocation315_spill] sm:$0xff]  ;;  %v16631_v39 = vld [vmem:[#allocation322_spill] sm:$0xff] }
 0x432   : > { %5914 = vmatpush.bf16.msrb.mxu3 %v16604_v5  ;;  %v16625_v5 = vld [vmem:[#allocation320_spill] sm:$0xff]  ;;  %v16632_v54 = vld [vmem:[#allocation323_spill] sm:$0xff] }
 0x434   : > { %5922 = vmatpush.bf16.msra.mxu0 %v16605_v37  ;;  %5936 = vmatpush.bf16.msra.mxu1 %v16606_v28  ;;  %v16626_v37 = vld [vmem:[#allocation321_spill] sm:$0xff]  ;;  %v16627_v28 = vld [vmem:[#allocation318_spill] sm:$0xff] }
 0x435   : > { %5949 = vmatpush.bf16.msra.mxu2 %v16607_v45  ;;  %5915 = vmatmul.bf16.vlgmr.msrb.gmra.mxu3 %v14280_v38  ;;  %v16615_v38 = vld [vmem:[#allocation306_spill] sm:$0xff]  ;;  %v16628_v45 = vld [vmem:[#allocation319_spill] sm:$0xff] }
 0x436   : > { %5963 = vmatpush.bf16.msra.mxu3 %v16608_v11  ;;  %5901 = vmatmul.bf16.vlgmr.msrb.gmra.mxu2 %v14277_v55  ;;  %v16614_v55 = vld [vmem:[#allocation309_spill] sm:$0xff]  ;;  %v16629_v11 = vld [vmem:[#allocation324_spill] sm:$0xff] }
 0x438   : > { %5923 = vmatpush.bf16.msra.mxu0 %v16609_v52  ;;  %5937 = vmatpush.bf16.msra.mxu1 %v16610_v61  ;;  %v5692_v16 = vpop.f32.mrf.mxu3  ;;  %v16633_v52 = vld [vmem:[#allocation328_spill] sm:$0xff]  ;;  %v16634_v61 = vld [vmem:[#allocation329_spill] sm:$0xff] }
 0x439   : > { %5950 = vmatpush.bf16.msra.mxu2 %v16611_v48  ;;  %v5678_v21 = vpop.f32.mrf.mxu2  ;;  %v16636_v48 = vld [vmem:[#allocation327_spill] sm:$0xff] }
 0x43a   : > { %5964 = vmatpush.bf16.msra.mxu3 %v16612_v57  ;;  %v5679_v14 = vadd.f32 %v5678_v21, %v5665_v60  ;;  %v16635_v60 = vld [vmem:[#allocation326_spill] sm:$0xff]  ;;  %v14534_v57 = vpop.f32.mrf.mxu0  ;;  %v16644_v21 = vld [vmem:[#allocation337_spill] sm:$0xff] }
 0x43c   : > { %5924 = vmatpush.bf16.msra.mxu0 %v16613_v27  ;;  %5938 = vmatpush.bf16.msra.mxu1 %v16614_v55  ;;  %v5693_v10 = vadd.f32 %v5692_v16, %v5679_v14  ;;  %v16637_v27 = vld [vmem:[#allocation330_spill] sm:$0xff]  ;;  %v16638_v55 = vld [vmem:[#allocation331_spill] sm:$0xff] }
 0x43d   : > { %5951 = vmatpush.bf16.msra.mxu2 %v16615_v38  ;;  %v16639_v38 = vld [vmem:[#allocation332_spill] sm:$0xff]  ;;  %v16646_v14 = vld [vmem:[#allocation339_spill] sm:$0xff] }
 0x43e   : > { %5965 = vmatpush.bf16.msra.mxu3 %v16616_v19  ;;  %v16640_v19 = vld [vmem:[#allocation333_spill] sm:$0xff] }
 0x440   : > { %5925 = vmatpush.bf16.msra.mxu0 %v16617_v35  ;;  %5939 = vmatpush.bf16.msra.mxu1 %v16618_v22  ;;  %v16642_v35 = vld [vmem:[#allocation335_spill] sm:$0xff]  ;;  %v16643_v22 = vld [vmem:[#allocation336_spill] sm:$0xff] }
 0x441   : > { %5952 = vmatpush.bf16.msra.mxu2 %v16619_v4 }
 0x442   : > { %5966 = vmatpush.bf16.msra.mxu3 %v16620_v9  ;;  %v16645_v9 = vld [vmem:[#allocation338_spill] sm:$0xff] }
 0x444   : > { %5926 = vmatpush.bf16.msra.mxu0 %v16621_v63  ;;  %5940 = vmatpush.bf16.msra.mxu1 %v16622_v44  ;;  %v16647_v63 = vld [vmem:[#allocation340_spill] sm:$0xff] }
 0x445   : > { %5953 = vmatpush.bf16.msra.mxu2 %v16623_v6  ;;  %v16649_v6 = vld [vmem:[#allocation342_spill] sm:$0xff] }
 0x446   : > { %5967 = vmatpush.bf16.msra.mxu3 %v16624_v25  ;;  %v16650_v25 = vld [vmem:[#allocation343_spill] sm:$0xff] }
 0x448   : > { %5927 = vmatpush.bf16.msra.mxu0 %v16625_v5  ;;  %5941 = vmatpush.bf16.msra.mxu1 %v16626_v37  ;;  %v16651_v5 = vld [vmem:[#allocation344_spill] sm:$0xff]  ;;  %v16652_v37 = vld [vmem:[#allocation345_spill] sm:$0xff] }
 0x449   : > { %5954 = vmatpush.bf16.msra.mxu2 %v16627_v28  ;;  %v16653_v28 = vld [vmem:[#allocation346_spill] sm:$0xff] }
 0x44a   : > { %5968 = vmatpush.bf16.msra.mxu3 %v16628_v45  ;;  %v16654_v45 = vld [vmem:[#allocation347_spill] sm:$0xff] }
 0x44c   : > { %5928 = vmatpush.bf16.msra.mxu0 %v16629_v11  ;;  %5942 = vmatpush.bf16.msra.mxu1 %v16630_v59  ;;  %v5706_v4 = vpop.f32.mrf.mxu0  ;;  %v16656_v11 = vld [vmem:[#allocation349_spill] sm:$0xff]  ;;  %v16657_v59 = vld [vmem:[#allocation350_spill] sm:$0xff] }
 0x44d   : > { %5955 = vmatpush.bf16.msra.mxu2 %v16631_v39  ;;  %v5707_v16 = vadd.f32 %v5706_v4, %v5693_v10  ;;  %v16655_v10 = vld [vmem:[#allocation348_spill] sm:$0xff]  ;;  %v16658_v39 = vld [vmem:[#allocation351_spill] sm:$0xff]  ;;  %v16672_v4 = vld [vmem:[#allocation365_spill] sm:$0xff] }
 0x44e   : > { %5969 = vmatpush.bf16.msra.mxu3 %v16632_v54  ;;  %v16659_v54 = vld [vmem:[#allocation352_spill] sm:$0xff] }
 0x44f   : > { %5929 = vmatmul.bf16.vlgmr.msra.gmra.mxu0 %v14294_v17  ;;  %5943 = vmatmul.bf16.vlgmr.msra.gmra.mxu1 %v14297_v49  ;;  %v14542_v17 = vpop.f32.mrf.mxu1  ;;  %v16641_v49 = vld [vmem:[#allocation334_spill] sm:$0xff] }
 0x450   : > { %6233 = vmatpush.bf16.msrb.mxu0 %v16633_v52  ;;  %6247 = vmatpush.bf16.msrb.mxu1 %v16634_v61  ;;  %v16660_v52 = vld [vmem:[#allocation353_spill] sm:$0xff]  ;;  %v16661_v61 = vld [vmem:[#allocation354_spill] sm:$0xff] }
 0x451   : > { %5956 = vmatpush.bf16.msra.mxu2 %v16635_v60  ;;  %v16662_v60 = vld [vmem:[#allocation355_spill] sm:$0xff] }
 0x452   : > { %5970 = vmatpush.bf16.msra.mxu3 %v16636_v48  ;;  %v16663_v48 = vld [vmem:[#allocation356_spill] sm:$0xff] }
 0x454   : > { %6234 = vmatpush.bf16.msrb.mxu0 %v16637_v27  ;;  %6248 = vmatpush.bf16.msrb.mxu1 %v16638_v55  ;;  %v16664_v27 = vld [vmem:[#allocation357_spill] sm:$0xff]  ;;  %v16665_v55 = vld [vmem:[#allocation358_spill] sm:$0xff] }
 0x455   : > { %6261 = vmatpush.bf16.msrb.mxu2 %v16639_v38  ;;  %5971 = vmatmul.bf16.vlgmr.msra.gmra.mxu3 %v14361_v42  ;;  %v16666_v38 = vld [vmem:[#allocation359_spill] sm:$0xff] }
 0x456   : > { %6275 = vmatpush.bf16.msrb.mxu3 %v16640_v19  ;;  %5957 = vmatmul.bf16.vlgmr.msra.gmra.mxu2 %v14353_v24  ;;  %v16648_v24 = vld [vmem:[#allocation341_spill] sm:$0xff]  ;;  %v16667_v19 = vld [vmem:[#allocation360_spill] sm:$0xff] }
 0x457   : > { %v5720_v42 = vpop.f32.mrf.mxu1 }
 0x458   : > { %6235 = vmatpush.bf16.msrb.mxu0 %v16641_v49  ;;  %6249 = vmatpush.bf16.msrb.mxu1 %v16642_v35  ;;  %v14552_v44 = vadd.f32 %v5720_v42, %v5707_v16  ;;  %v16668_v49 = vld [vmem:[#allocation361_spill] sm:$0xff]  ;;  %v16669_v35 = vld [vmem:[#allocation362_spill] sm:$0xff]  ;;  %v16675_v16 = vld [vmem:[#allocation368_spill] sm:$0xff] }
 0x459   : > { %6262 = vmatpush.bf16.msrb.mxu2 %v16643_v22  ;;  %v16670_v22 = vld [vmem:[#allocation363_spill] sm:$0xff] }
 0x45a   : > { %6276 = vmatpush.bf16.msrb.mxu3 %v16644_v21  ;;  %v16671_v21 = vld [vmem:[#allocation364_spill] sm:$0xff]  ;;  %v16678_v42 = vld [vmem:[#allocation371_spill] sm:$0xff] }
 0x45c   : > { %6236 = vmatpush.bf16.msrb.mxu0 %v16645_v9  ;;  %6250 = vmatpush.bf16.msrb.mxu1 %v16646_v14  ;;  %v16673_v9 = vld [vmem:[#allocation366_spill] sm:$0xff]  ;;  %v16674_v14 = vld [vmem:[#allocation367_spill] sm:$0xff] }
 0x45d   : > { %6263 = vmatpush.bf16.msrb.mxu2 %v16647_v63  ;;  %v16676_v63 = vld [vmem:[#allocation369_spill] sm:$0xff] }
 0x45e   : > { %6277 = vmatpush.bf16.msrb.mxu3 %v16648_v24  ;;  %v16677_v24 = vld [vmem:[#allocation370_spill] sm:$0xff] }
 0x460   : > { %6237 = vmatpush.bf16.msrb.mxu0 %v16649_v6  ;;  %6251 = vmatpush.bf16.msrb.mxu1 %v16650_v25  ;;  %v16679_v6 = vld [vmem:[#allocation372_spill] sm:$0xff]  ;;  %v16680_v25 = vld [vmem:[#allocation373_spill] sm:$0xff] }
 0x461   : > { %6264 = vmatpush.bf16.msrb.mxu2 %v16651_v5  ;;  %v16681_v5 = vld [vmem:[#allocation374_spill] sm:$0xff] }
 0x462   : > { %6278 = vmatpush.bf16.msrb.mxu3 %v16652_v37  ;;  %v16682_v37 = vld [vmem:[#allocation375_spill] sm:$0xff] }
 0x464   : > { %6238 = vmatpush.bf16.msrb.mxu0 %v16653_v28  ;;  %6252 = vmatpush.bf16.msrb.mxu1 %v16654_v45  ;;  %v16683_v28 = vld [vmem:[#allocation376_spill] sm:$0xff]  ;;  %v16684_v45 = vld [vmem:[#allocation377_spill] sm:$0xff] }
 0x465   : > { %6265 = vmatpush.bf16.msrb.mxu2 %v16655_v10  ;;  %v16685_v10 = vld [vmem:[#allocation378_spill] sm:$0xff] }
 0x466   : > { %6279 = vmatpush.bf16.msrb.mxu3 %v16656_v11  ;;  %v16686_v11 = vld [vmem:[#allocation379_spill] sm:$0xff] }
 0x468   : > { %6239 = vmatpush.bf16.msrb.mxu0 %v16657_v59  ;;  %6253 = vmatpush.bf16.msrb.mxu1 %v16658_v39  ;;  %v16687_v59 = vld [vmem:[#allocation380_spill] sm:$0xff]  ;;  %v16688_v39 = vld [vmem:[#allocation381_spill] sm:$0xff] }
 0x469   : > { %6266 = vmatpush.bf16.msrb.mxu2 %v16659_v54  ;;  %v5499_v54 = vadd.f32 %v14402_v20, %v14398_v30 }
 0x46a   : > { %6280 = vmatpush.bf16.msrb.mxu3 %v16660_v52  ;;  %v16689_v52 = vld [vmem:[#allocation382_spill] sm:$0xff] }
 0x46c   : > { %6240 = vmatpush.bf16.msrb.mxu0 %v16661_v61  ;;  %6254 = vmatpush.bf16.msrb.mxu1 %v16662_v60  ;;  %v16690_v61 = vld [vmem:[#allocation383_spill] sm:$0xff]  ;;  %v5680_v60 = vpop.f32.mrf.mxu2 }
 0x46d   : > { %6267 = vmatpush.bf16.msrb.mxu2 %v16663_v48  ;;  %v5694_v48 = vpop.f32.mrf.mxu3 }
 0x46e   : > { %6281 = vmatpush.bf16.msrb.mxu3 %v16664_v27  ;;  %v16691_v27 = vld [vmem:[#allocation384_spill] sm:$0xff] }
 0x470   : > { %6289 = vmatpush.bf16.msra.mxu0 %v16665_v55  ;;  %6303 = vmatpush.bf16.msra.mxu1 %v16666_v38  ;;  %v16692_v55 = vld [vmem:[#allocation385_spill] sm:$0xff]  ;;  %v5513_v38 = vadd.f32 %v14420_v15, %v5499_v54 }
 0x471   : > { %6268 = vmatpush.bf16.msrb.mxu2 %v16667_v19  ;;  %v16693_v19 = vld [vmem:[#allocation386_spill] sm:$0xff] }
 0x472   : > { %6282 = vmatpush.bf16.msrb.mxu3 %v16668_v49  ;;  %v16694_v49 = vld [vmem:[#allocation387_spill] sm:$0xff]  ;;  %v5527_v30 = vadd.f32 %v14422_v8, %v5513_v38 }
 0x474   : > { %6290 = vmatpush.bf16.msra.mxu0 %v16669_v35  ;;  %6304 = vmatpush.bf16.msra.mxu1 %v16670_v22  ;;  %v16695_v35 = vld [vmem:[#allocation388_spill] sm:$0xff]  ;;  %v16696_v22 = vld [vmem:[#allocation389_spill] sm:$0xff]  ;;  %v5734_v20 = vpop.f32.mrf.mxu2 }
 0x475   : > { %6317 = vmatpush.bf16.msra.mxu2 %v16671_v21  ;;  %v5748_v21 = vpop.f32.mrf.mxu3 }
 0x476   : > { %6331 = vmatpush.bf16.msra.mxu3 %v16672_v4  ;;  %v16697_v4 = vld [vmem:[#allocation390_spill] sm:$0xff] }
 0x478   : > { %6291 = vmatpush.bf16.msra.mxu0 %v16673_v9  ;;  %6305 = vmatpush.bf16.msra.mxu1 %v16674_v14  ;;  %v16698_v9 = vld [vmem:[#allocation391_spill] sm:$0xff]  ;;  %v5708_v14 = vpop.f32.mrf.mxu0 }
 0x479   : > { %6318 = vmatpush.bf16.msra.mxu2 %v16675_v16  ;;  %v5541_v16 = vadd.f32 %v14436_v23, %v5527_v30 }
 0x47a   : > { %6332 = vmatpush.bf16.msra.mxu3 %v16676_v63  ;;  %v5722_v63 = vpop.f32.mrf.mxu1 }
 0x47b   : > { %v5555_v15 = vadd.f32 %v14438_v58, %v5541_v16 }
 0x47c   : > { %6292 = vmatpush.bf16.msra.mxu0 %v16677_v24  ;;  %6306 = vmatpush.bf16.msra.mxu1 %v16678_v42 }
 0x47d   : > { %6319 = vmatpush.bf16.msra.mxu2 %v16679_v6  ;;  %v5569_v24 = vadd.f32 %v14456_v53, %v5555_v15  ;;  %v5736_v6 = vpop.f32.mrf.mxu2 }
 0x47e   : > { %6333 = vmatpush.bf16.msra.mxu3 %v16680_v25  ;;  %v5750_v25 = vpop.f32.mrf.mxu3 }
 0x47f   : > { %v5751_v38 = vadd.f32 %v5750_v25, %v5736_v6 }
 0x480   : > { %6293 = vmatpush.bf16.msra.mxu0 %v16681_v5  ;;  %6307 = vmatpush.bf16.msra.mxu1 %v16682_v37  ;;  %v5762_v42 = vpop.f32.mrf.mxu0  ;;  %v5583_v5 = vadd.f32 %v14462_v47, %v5569_v24 }
 0x481   : > { %6320 = vmatpush.bf16.msra.mxu2 %v16683_v28 }
 0x482   : > { %6334 = vmatpush.bf16.msra.mxu3 %v16684_v45  ;;  %v5597_v8 = vadd.f32 %v14480_v36, %v5583_v5  ;;  %v5776_v37 = vpop.f32.mrf.mxu1 }
 0x484   : > { %6294 = vmatpush.bf16.msra.mxu0 %v16685_v10  ;;  %6308 = vmatpush.bf16.msra.mxu1 %v16686_v11  ;;  %v5611_v28 = vadd.f32 %v14482_v34, %v5597_v8 }
 0x485   : > { %6321 = vmatpush.bf16.msra.mxu2 %v16687_v59  ;;  %v5790_v10 = vpop.f32.mrf.mxu2 }
 0x486   : > { %6335 = vmatpush.bf16.msra.mxu3 %v16688_v39  ;;  %v5804_v11 = vpop.f32.mrf.mxu3  ;;  %v5625_v23 = vadd.f32 %v14500_v2, %v5611_v28 }
 0x488   : > { %6295 = vmatpush.bf16.msra.mxu0 %v16689_v52  ;;  %6309 = vmatpush.bf16.msra.mxu1 %v16690_v61  ;;  %v5764_v45 = vpop.f32.mrf.mxu0  ;;  %v5639_v58 = vadd.f32 %v14504_v18, %v5625_v23  ;;  %v5749_v61 = vadd.f32 %v5748_v21, %v5734_v20 }
 0x489   : > { %6322 = vmatpush.bf16.msra.mxu2 %v16691_v27  ;;  %v5765_v18 = vadd.f32 %v5764_v45, %v5751_v38 }
 0x48a   : > { %6336 = vmatpush.bf16.msra.mxu3 %v16692_v55  ;;  %v5778_v59 = vpop.f32.mrf.mxu1  ;;  %v5653_v53 = vadd.f32 %v14534_v57, %v5639_v58  ;;  %v5763_v55 = vadd.f32 %v5762_v42, %v5749_v61 }
 0x48c   : > { %6296 = vmatpush.bf16.msra.mxu0 %v16693_v19  ;;  %6310 = vmatpush.bf16.msra.mxu1 %v16694_v49  ;;  %v5667_v47 = vadd.f32 %v14542_v17, %v5653_v53 }
 0x48d   : > { %6323 = vmatpush.bf16.msra.mxu2 %v16695_v35  ;;  %v5792_v54 = vpop.f32.mrf.mxu2 }
 0x48e   : > { %6337 = vmatpush.bf16.msra.mxu3 %v16696_v22  ;;  %v5806_v52 = vpop.f32.mrf.mxu3  ;;  %v5681_v36 = vadd.f32 %v5680_v60, %v5667_v47  ;;  %v5777_v22 = vadd.f32 %v5776_v37, %v5763_v55 }
 0x490   : > { %v5818_v39 = vpop.f32.mrf.mxu0  ;;  %v5695_v34 = vadd.f32 %v5694_v48, %v5681_v36  ;;  %v5791_v57 = vadd.f32 %v5790_v10, %v5777_v22 }
 0x491   : > { %6324 = vmatpush.bf16.msra.mxu2 %v16697_v4 }
 0x492   : > { %6338 = vmatpush.bf16.msra.mxu3 %v16698_v9  ;;  %v5832_v27 = vpop.f32.mrf.mxu1  ;;  %v5709_v2 = vadd.f32 %v5708_v14, %v5695_v34  ;;  %v5779_v9 = vadd.f32 %v5778_v59, %v5765_v18  ;;  %v5805_v48 = vadd.f32 %v5804_v11, %v5791_v57  ;;  %v5991_v14 = vmul.f32 %v14552_v44, %v14552_v44 }
 0x494   : > { %v14618_v30 = vadd.f32 %v5722_v63, %v5709_v2  ;;  %v5793_v20 = vadd.f32 %v5792_v54, %v5779_v9  ;;  %v5819_v24 = vadd.f32 %v5818_v39, %v5805_v48 }
 0x496   : > { %v5977_v17 = vadd.f32 %v14618_v30, %v14552_v44  ;;  %v5993_v60 = vmul.f32 %v14618_v30, %v14618_v30  ;;  %v5807_v6 = vadd.f32 %v5806_v52, %v5793_v20  ;;  %v5833_v5 = vadd.f32 %v5832_v27, %v5819_v24 }
 0x498   : > { %v5820_v19 = vpop.f32.mrf.mxu0  ;;  %v5860_v35 = vpop.f32.mrf.mxu3  ;;  %v5978_v63 = vrot.slane %v5977_v17, 4  ;;  %v5995_v42 = vadd.f32 %v5993_v60, %v5991_v14 }
 0x499   : > { %v5846_v49 = vpop.f32.mrf.mxu2  ;;  %v5821_v8 = vadd.f32 %v5820_v19, %v5807_v6 }
 0x49a   : > { %v5834_v4 = vpop.f32.mrf.mxu1  ;;  %v5979_v37 = vadd.f32 %v5978_v63, %v5977_v17  ;;  %v5996_v28 = vrot.slane %v5995_v42, 4  ;;  %v5847_v45 = vadd.f32 %v5846_v49, %v5833_v5 }
 0x49b   : > { %v5835_v11 = vadd.f32 %v5834_v4, %v5821_v8 }
 0x49c   : > { %v5980_v59 = vrot.slane %v5979_v37, 2  ;;  %v5997_v53 = vadd.f32 %v5996_v28, %v5995_v42  ;;  %v5861_v54 = vadd.f32 %v5860_v35, %v5847_v45 }
 0x49e   : > { %v5981_v39 = vadd.f32 %v5980_v59, %v5979_v37  ;;  %v5998_v55 = vrot.slane %v5997_v53, 2 }
 0x4a0   : > { %v5862_v15 = vpop.f32.mrf.mxu3  ;;  %v5982_v22 = vrot.slane %v5981_v39, 1  ;;  %v5999_v49 = vadd.f32 %v5998_v55, %v5997_v53 }
 0x4a1   : > { %v5848_v21 = vpop.f32.mrf.mxu2 }
 0x4a2   : > { %v5849_v47 = vadd.f32 %v5848_v21, %v5835_v11  ;;  %v5983_v4 = vadd.f32 %v5982_v22, %v5981_v39  ;;  %v6000_v17 = vrot.slane %v5999_v49, 1 }
 0x4a4   : > { %v5863_v34 = vadd.f32 %v5862_v15, %v5849_v47  ;;  %v6001_v14 = vadd.f32 %v6000_v17, %v5999_v49  ;;  %v14626_v15 = vmul.f32 0.11111111, %v5983_v4 }
 0x4a6   : > { %v6011_v6 = vmul.f32 0.11111111, %v6001_v14 }
 0x4ac   : > { %v5874_v16 = vpop.f32.mrf.mxu0  ;;  %v5888_v25 = vpop.f32.mrf.mxu1 }
 0x4ad   : > { %v5875_v61 = vadd.f32 %v5874_v16, %v5861_v54 }
 0x4af   : > { %v5889_v38 = vadd.f32 %v5888_v25, %v5875_v61  ;;  %v6013_v25 = vmul.f32 %v14626_v15, %v14626_v15 }
 0x4b1   : > { %v6015_v45 = vsub.f32 %v6011_v6, %v6013_v25 }
 0x4b3   : > { %v6017_v59 = vmax.f32 %v6015_v45, 0.0  ;;  %v6021_v45 = vsub.f32 %v14618_v30, %v14626_v15 }
 0x4b4   : > { %v5876_v10 = vpop.f32.mrf.mxu0  ;;  %v5890_v36 = vpop.f32.mrf.mxu1 }
 0x4b5   : > { %v5877_v27 = vadd.f32 %v5876_v10, %v5863_v34  ;;  %v6023_v39 = vadd.f32 1e-05, %v6017_v59 }
 0x4b7   : > { %v5891_v57 = vadd.f32 %v5890_v36, %v5877_v27  ;;  %10169 = vrsqrt.f32 %v6023_v39  ;;  %vm6031_vm6 = vweird.f32 %v6023_v39 }
 0x4b8   : > { %v5916_v58 = vpop.f32.mrf.mxu3 }
 0x4b9   : > { %v5902_v23 = vpop.f32.mrf.mxu2 }
 0x4ba   : > { %v5903_v18 = vadd.f32 %v5902_v23, %v5889_v38 }
 0x4bc   : > { %v5917_v60 = vadd.f32 %v5916_v58, %v5903_v18 }
 0x4c0   : > { %v5918_v2 = vpop.f32.mrf.mxu3 }
 0x4c1   : > { %v5904_v19 = vpop.f32.mrf.mxu2 }
 0x4c2   : > { %v5905_v35 = vadd.f32 %v5904_v19, %v5891_v57  ;;  %v10170_v57 = vpop.eup %10169 }
 0x4c3   : > { %vm6032_vm4 = vweird.f32 %v10170_v57 }
 0x4c4   : > { %v5919_v24 = vadd.f32 %v5918_v2, %v5905_v35  ;;  %v6026_v35 = vmul.f32 %v10170_v57, %v6023_v39  ;;  %vm6033_vm7 = vmor %vm6031_vm6, %vm6032_vm4 }
 0x4cc   : > { %v5930_v52 = vpop.f32.mrf.mxu0  ;;  %v5944_v9 = vpop.f32.mrf.mxu1 }
 0x4cd   : > { %v5931_v48 = vadd.f32 %v5930_v52, %v5917_v60 }
 0x4cf   : > { %v5945_v63 = vadd.f32 %v5944_v9, %v5931_v48 }
 0x4d4   : > { %v5932_v16 = vpop.f32.mrf.mxu0  ;;  %v5946_v8 = vpop.f32.mrf.mxu1 }
 0x4d5   : > { %v5933_v42 = vadd.f32 %v5932_v16, %v5919_v24 }
 0x4d7   : > { %v5947_v37 = vadd.f32 %v5946_v8, %v5933_v42 }
 0x4d8   : > { %v5972_v21 = vpop.f32.mrf.mxu3 }
 0x4d9   : > { %v5958_v20 = vpop.f32.mrf.mxu2 }
 0x4da   : > { %v5959_v5 = vadd.f32 %v5958_v20, %v5945_v63  ;;  %v6027_v20 = vmul.f32 %v10170_v57, %v6026_v35 }
 0x4dc   : > { %v5973_v10 = vadd.f32 %v5972_v21, %v5959_v5  ;;  %v6028_v14 = vmul.f32 0.5, %v6027_v20 }
 0x4de   : > { %v5992_v53 = vmul.f32 %v5973_v10, %v5973_v10  ;;  %v6029_v24 = vsub.f32 1.5, %v6028_v14 }
 0x4e0   : > { %v5974_v58 = vpop.f32.mrf.mxu3  ;;  %v6030_v6 = vmul.f32 %v10170_v57, %v6029_v24 }
 0x4e1   : > { %v5960_v28 = vpop.f32.mrf.mxu2 }
 0x4e2   : > { %v5961_v23 = vadd.f32 %v5960_v28, %v5947_v37  ;;  %v6034_v8 = vsel %vm6033_vm7, %v10170_v57, %v6030_v6  ;;  %v6019_v28 = vsub.f32 %v14552_v44, %v14626_v15 }
 0x4e3   : > { %v6047_v59 = vmul.f32 %v6034_v8, %v6021_v45 }
 0x4e4   : > { %v5975_v11 = vadd.f32 %v5974_v58, %v5961_v23  ;;  %v6045_v58 = vmul.f32 %v6034_v8, %v6019_v28 }
 0x4e6   : > { %v5984_v54 = vadd.f32 %v5975_v11, %v5973_v10  ;;  %v5994_v47 = vmul.f32 %v5975_v11, %v5975_v11  ;;  %v6049_v39 = vmax.f32 %v6045_v58, 0.0 }
 0x4e8   : > { %v5985_v61 = vrot.slane %v5984_v54, 4  ;;  %v6002_v36 = vadd.f32 %v5994_v47, %v5992_v53 }
 0x4ea   : > { %v5986_v55 = vadd.f32 %v5985_v61, %v5984_v54  ;;  %v6003_v34 = vrot.slane %v6002_v36, 4 }
 0x4ec   : > { %v5987_v52 = vrot.slane %v5986_v55, 2  ;;  %v6004_v38 = vadd.f32 %v6003_v34, %v6002_v36 }
 0x4ee   : > { %v5988_v27 = vadd.f32 %v5987_v52, %v5986_v55  ;;  %v6005_v19 = vrot.slane %v6004_v38, 2  ;;  %v6051_v55 = vmax.f32 %v6047_v59, 0.0 }
 0x4f0   : > { %v5989_v2 = vrot.slane %v5988_v27, 1  ;;  %v6006_v22 = vadd.f32 %v6005_v19, %v6004_v38 }
 0x4f2   : > { %v5990_v49 = vadd.f32 %v5989_v2, %v5988_v27  ;;  %v6007_v18 = vrot.slane %v6006_v22, 1 }
 0x4f4   : > { %v6008_v9 = vadd.f32 %v6007_v18, %v6006_v22  ;;  %v6010_v4 = vmul.f32 0.11111111, %v5990_v49 }
 0x4f6   : > { %v6012_v17 = vmul.f32 0.11111111, %v6008_v9  ;;  %v6014_v60 = vmul.f32 %v6010_v4, %v6010_v4  ;;  %v6020_v53 = vsub.f32 %v5973_v10, %v6010_v4  ;;  %v6022_v54 = vsub.f32 %v5975_v11, %v6010_v4 }
 0x4f8   : > { %v6016_v48 = vsub.f32 %v6012_v17, %v6014_v60 }
 0x4fa   : > { %v6018_v16 = vmax.f32 %v6016_v48, 0.0 }
 0x4fc   : > { %v6024_v21 = vadd.f32 1e-05, %v6018_v16 }
 0x4fe   : > { %10171 = vrsqrt.f32 %v6024_v21  ;;  %vm6041_vm13 = vweird.f32 %v6024_v21 }
 0x504   : > { %v10172_v63 = vpop.eup %10171 }
 0x505   : > { %v6036_v42 = vmul.f32 %v10172_v63, %v6024_v21  ;;  %vm6042_vm10 = vweird.f32 %v10172_v63 }
 0x506   : > { %vm6043_vm14 = vmor %vm6041_vm13, %vm6042_vm10 }
 0x507   : > { %v6037_v25 = vmul.f32 %v10172_v63, %v6036_v42 }
 0x509   : > { %v6038_v5 = vmul.f32 0.5, %v6037_v25 }
 0x50b   : > { %v6039_v37 = vsub.f32 1.5, %v6038_v5 }
 0x50d   : > { %v6040_v23 = vmul.f32 %v10172_v63, %v6039_v37 }
 0x50f   : > { %v6044_v47 = vsel %vm6043_vm14, %v10172_v63, %v6040_v23 }
 0x510   : > { %v6046_v61 = vmul.f32 %v6044_v47, %v6020_v53  ;;  %v6048_v36 = vmul.f32 %v6044_v47, %v6022_v54  ;;  %v16699_v47 = vld [vmem:[#allocation392_spill] sm:$0xff] }
 0x512   : > { %v6050_v34 = vmax.f32 %v6046_v61, 0.0  ;;  %v6052_v52 = vmax.f32 %v6048_v36, 0.0  ;;  %v16700_v61 = vld [vmem:[#allocation393_spill] sm:$0xff] }
 0x514   : > { %v6053_v38 = vpack.c.bf16 %v6050_v34, %v6049_v39  ;;  %v6054_v27 = vpack.c.bf16 %v6052_v52, %v6051_v55  ;;  %v16701_v52 = vld [vmem:[#allocation61_spill] sm:$0xff] }
 0x516   : > { %v6057_v44 = vunpack.c.l.b16 %v6053_v38  ;;  %v6058_v19 = vunpack.c.h.b16 %v6053_v38  ;;  %v6059_v2 = vunpack.c.l.b16 %v6054_v27  ;;  %v6060_v30 = vunpack.c.h.b16 %v6054_v27 }
 0x518   : > { %v14634_v15 = vpack.c.b16 %v6059_v2, %v6057_v44  ;;  %v14636_v22 = vpack.c.b16 %v6060_v30, %v6058_v19  ;;  %v16702_v19 = vld [vmem:[#allocation394_spill] sm:$0xff]  ;;  %v16703_v2 = vld [vmem:[#allocation395_spill] sm:$0xff] }
 0x51a   : > { %v6063_v10 = vrot.slane %v14634_v15, 6  ;;  %v6064_v11 = vrot.slane %v14636_v22, 6  ;;  %v14641_v49 = vshrl.u32 %v14634_v15, 16  ;;  %v14644_v18 = vshll.u32 %v14634_v15, 16 }
 0x51b   : > { %v14647_v57 = vshrl.u32 %v14636_v22, 16  ;;  %v14650_v9 = vshll.u32 %v14636_v22, 16  ;;  %v6091_v28 = vrot.slane %v14634_v15, 7  ;;  %v6092_v45 = vrot.slane %v14636_v22, 7 }
 0x51c   : > { %v6066_v4 = vsel %vm275_vm0, 0, %v6063_v10  ;;  %v6069_v17 = vsel %vm275_vm0, 0, %v6064_v11  ;;  %v6074_v60 = vrot.slane %v14641_v49, 6  ;;  %v6077_v35 = vrot.slane %v14644_v18, 7 }
 0x51d   : > { %v6143_v48 = vunpack.c.l.bf16 %v6066_v4  ;;  %v6161_v16 = vunpack.c.h.bf16 %v6066_v4  ;;  %v6144_v20 = vunpack.c.l.bf16 %v6069_v17  ;;  %v6162_v21 = vunpack.c.h.bf16 %v6069_v17  ;;  %v16704_v4 = vld [vmem:[#allocation396_spill] sm:$0xff]  ;;  %v16705_v17 = vld [vmem:[#allocation397_spill] sm:$0xff] }
 0x51e   : > { %v6078_v14 = vor.u32 %v6077_v35, %v6074_v60  ;;  %v6082_v24 = vrot.slane %v14647_v57, 6  ;;  %v6085_v63 = vrot.slane %v14650_v9, 7  ;;  %v6094_v36 = vsel %vm308_vm2, 0, %v6091_v28 }
 0x51f   : > { %v6179_v42 = vmul.f32 %v6143_v48, %v10714_v1  ;;  %v6197_v6 = vmul.f32 %v6161_v16, %v10716_v40  ;;  %v6180_v25 = vmul.f32 %v6144_v20, %v10728_v3  ;;  %v6198_v5 = vmul.f32 %v6162_v21, %v10730_v7  ;;  %v16707_v48 = vld [vmem:[#allocation77_spill] sm:$0xff]  ;;  %v16708_v20 = vld [vmem:[#allocation398_spill] sm:$0xff]  ;;  %v16709_v21 = vld [vmem:[#allocation399_spill] sm:$0xff] }
 0x520   : > { %v6089_v8 = vsel %vm10776_vm3, 0, %v6078_v14  ;;  %v6086_v37 = vor.u32 %v6085_v63, %v6082_v24  ;;  %v6097_v39 = vsel %vm308_vm2, 0, %v6092_v45  ;;  %v6099_v0 = vrot.slane %v14641_v49, 7  ;;  %v16710_v14 = vld [vmem:[#allocation78_spill] sm:$0xff]  ;;  %v16711_v63 = vld [vmem:[#allocation83_spill] sm:$0xff]  ;;  %v16714_v45 = vld [vmem:[#allocation401_spill] sm:$0xff] }
 0x521   : > { %v14666_v23 = vpack.c.bf16 %v6197_v6, %v6179_v42  ;;  %v14668_v58 = vpack.c.bf16 %v6198_v5, %v6180_v25  ;;  %v6145_v59 = vunpack.c.l.bf16 %v6089_v8  ;;  %v6163_v1 = vunpack.c.h.bf16 %v6089_v8  ;;  %v16712_v6 = vld [vmem:[#allocation84_spill] sm:$0xff] }
 0x522   : > { %v6090_v40 = vsel %vm10776_vm3, 0, %v6086_v37  ;;  %v6100_v38 = vor.u32 %v6099_v0, %v14644_v18  ;;  %v6147_v44 = vunpack.c.l.bf16 %v6094_v36  ;;  %v6165_v30 = vunpack.c.h.bf16 %v6094_v36  ;;  %v16713_v8 = vld [vmem:[#allocation400_spill] sm:$0xff]  ;;  %v16719_v36 = vld [vmem:[#allocation86_spill] sm:$0xff] }
 0x523   : > { %6241 = vmatmul.bf16.vlgmr.msrb.gmra.mxu0 %v14666_v23  ;;  %6255 = vmatmul.bf16.vlgmr.msrb.gmra.mxu1 %v14668_v58  ;;  %v6181_v3 = vmul.f32 %v6145_v59, %v10724_v51  ;;  %v6199_v7 = vmul.f32 %v6163_v1, %v10733_v12  ;;  %v6146_v53 = vunpack.c.l.bf16 %v6090_v40  ;;  %v6164_v54 = vunpack.c.h.bf16 %v6090_v40  ;;  %v16715_v40 = vld [vmem:[#allocation402_spill] sm:$0xff] }
 0x524   : > { %6345 = vmatpush.bf16.msrb.mxu0 %v16699_v47  ;;  %6359 = vmatpush.bf16.msrb.mxu1 %v16700_v61  ;;  %v6101_v12 = vrot.slane %v14647_v57, 7  ;;  %v6148_v10 = vunpack.c.l.bf16 %v6097_v39  ;;  %v6166_v11 = vunpack.c.h.bf16 %v6097_v39  ;;  %v6105_v35 = vsel %vm10884_vm5, 0, %v6100_v38  ;;  %v16718_v47 = vld [vmem:[#allocation85_spill] sm:$0xff] }
 0x525   : > { %v14681_v55 = vpack.c.bf16 %v6199_v7, %v6181_v3  ;;  %v6182_v34 = vmul.f32 %v6146_v53, %v10739_v32  ;;  %v6200_v51 = vmul.f32 %v6164_v54, %v16701_v52  ;;  %v6183_v16 = vmul.f32 %v6147_v44, %v16707_v48  ;;  %v16716_v3 = vld [vmem:[#allocation403_spill] sm:$0xff]  ;;  %v16717_v54 = vld [vmem:[#allocation404_spill] sm:$0xff]  ;;  %v16720_v52 = vld [vmem:[#allocation405_spill] sm:$0xff] }
 0x526   : > { %v6102_v32 = vor.u32 %v6101_v12, %v14650_v9  ;;  %v6201_v24 = vmul.f32 %v6165_v30, %v16710_v14  ;;  %v6184_v42 = vmul.f32 %v6148_v10, %v16711_v63  ;;  %v6202_v25 = vmul.f32 %v6166_v11, %v16712_v6  ;;  %v16722_v38 = vld [vmem:[#allocation89_spill] sm:$0xff]  ;;  %v16724_v30 = vld [vmem:[#allocation407_spill] sm:$0xff]  ;;  %v16725_v11 = vld [vmem:[#allocation408_spill] sm:$0xff] }
 0x527   : > { %6269 = vmatmul.bf16.vlgmr.msrb.gmra.mxu2 %v14681_v55  ;;  %v14688_v27 = vpack.c.bf16 %v6200_v51, %v6182_v34  ;;  %v6149_v37 = vunpack.c.l.bf16 %v6105_v35  ;;  %v6167_v28 = vunpack.c.h.bf16 %v6105_v35  ;;  %v6123_v0 = vrot.slane %v14641_v49, 1  ;;  %v16721_v51 = vld [vmem:[#allocation88_spill] sm:$0xff]  ;;  %v16727_v35 = vld [vmem:[#allocation410_spill] sm:$0xff]  ;;  %v16728_v48 = vld [vmem:[#allocation411_spill] sm:$0xff] }
 0x528   : > { %6346 = vmatpush.bf16.msrb.mxu0 %v16702_v19  ;;  %6360 = vmatpush.bf16.msrb.mxu1 %v16703_v2  ;;  %v6106_v5 = vsel %vm10884_vm5, 0, %v6102_v32  ;;  %v14710_v7 = vpack.c.bf16 %v6201_v24, %v6183_v16  ;;  %v14712_v53 = vpack.c.bf16 %v6202_v25, %v6184_v42  ;;  %v6124_v34 = vrot.slane %v14644_v18, 2  ;;  %v16723_v2 = vld [vmem:[#allocation406_spill] sm:$0xff]  ;;  %v16730_v42 = vld [vmem:[#allocation413_spill] sm:$0xff] }
 0x529   : > { %6283 = vmatmul.bf16.vlgmr.msrb.gmra.mxu3 %v14688_v27  ;;  %6373 = vmatpush.bf16.msrb.mxu2 %v16704_v4  ;;  %v6150_v59 = vunpack.c.l.bf16 %v6106_v5  ;;  %v6168_v1 = vunpack.c.h.bf16 %v6106_v5  ;;  %v6185_v61 = vmul.f32 %v6149_v37, %v16718_v47  ;;  %v6203_v39 = vmul.f32 %v6167_v28, %v16719_v36  ;;  %v16732_v25 = vld [vmem:[#allocation414_spill] sm:$0xff]  ;;  %v16733_v5 = vld [vmem:[#allocation415_spill] sm:$0xff]  ;;  %v16734_v37 = vld [vmem:[#allocation416_spill] sm:$0xff] }
 0x52a   : > { %6387 = vmatpush.bf16.msrb.mxu3 %v16705_v17  ;;  %v6107_v19 = vrot.slane %v14644_v18, 1  ;;  %v6109_v10 = vrot.slane %v14650_v9, 1  ;;  %v14731_v4 = vor.u32 %v6124_v34, %v6123_v0  ;;  %v16726_v17 = vld [vmem:[#allocation409_spill] sm:$0xff]  ;;  %v6169_v14 = vunpack.c.h.bf16 %v14634_v15  ;;  %v16735_v28 = vld [vmem:[#allocation111_spill] sm:$0xff]  ;;  %v16739_v34 = vld [vmem:[#allocation418_spill] sm:$0xff] }
 0x52b   : > { %v6186_v12 = vmul.f32 %v6150_v59, %v16721_v51  ;;  %v6204_v44 = vmul.f32 %v6168_v1, %v16722_v38  ;;  %v14729_v32 = vpack.c.bf16 %v6203_v39, %v6185_v61  ;;  %v6152_v24 = vunpack.c.l.bf16 %v14636_v22  ;;  %v16736_v59 = vld [vmem:[#allocation117_spill] sm:$0xff]  ;;  %v16741_v51 = vld [vmem:[#allocation420_spill] sm:$0xff] }
 0x52c   : > { %6347 = vmatpush.bf16.msrb.mxu0 %v16708_v20  ;;  %6361 = vmatpush.bf16.msrb.mxu1 %v16709_v21  ;;  %v6108_v18 = vor.u32 %v6107_v19, %v14641_v49  ;;  %v6110_v16 = vor.u32 %v6109_v10, %v14647_v57  ;;  %v16729_v20 = vld [vmem:[#allocation412_spill] sm:$0xff]  ;;  %v6151_v21 = vunpack.c.l.bf16 %v14634_v15  ;;  %v6170_v63 = vunpack.c.h.bf16 %v14636_v22  ;;  %v16738_v47 = vld [vmem:[#allocation417_spill] sm:$0xff]  ;;  %v16744_v19 = vld [vmem:[#allocation423_spill] sm:$0xff] }
 0x52d   : > { %6374 = vmatpush.bf16.msrb.mxu2 %v16713_v8  ;;  %v14735_v60 = vpack.c.bf16 %v6204_v44, %v6186_v12  ;;  %v6205_v1 = vmul.f32 %v6169_v14, %v16736_v59  ;;  %v16742_v12 = vld [vmem:[#allocation422_spill] sm:$0xff]  ;;  %v16746_v10 = vld [vmem:[#allocation120_spill] sm:$0xff]  ;;  %v16752_v14 = vld [vmem:[#allocation427_spill] sm:$0xff] }
 0x52e   : > { %6388 = vmatpush.bf16.msrb.mxu3 %v16714_v45  ;;  %v6113_v6 = vsel %vm11045_vm8, %v6108_v18, 0  ;;  %v6114_v8 = vsel %vm11045_vm8, %v6110_v16, 0  ;;  %v6187_v45 = vmul.f32 %v6151_v21, %v16735_v28  ;;  %v16749_v16 = vld [vmem:[#allocation424_spill] sm:$0xff]  ;;  %v16751_v21 = vld [vmem:[#allocation425_spill] sm:$0xff]  ;;  %v16760_v28 = vld [vmem:[#allocation435_spill] sm:$0xff] }
 0x52f   : > { %v6153_v61 = vunpack.c.l.bf16 %v6113_v6  ;;  %v6171_v36 = vunpack.c.h.bf16 %v6113_v6  ;;  %v6154_v39 = vunpack.c.l.bf16 %v6114_v8  ;;  %v6172_v0 = vunpack.c.h.bf16 %v6114_v8  ;;  %v16755_v6 = vld [vmem:[#allocation430_spill] sm:$0xff]  ;;  %v16758_v8 = vld [vmem:[#allocation433_spill] sm:$0xff] }
 0x530   : > { %6348 = vmatpush.bf16.msrb.mxu0 %v16715_v40  ;;  %6362 = vmatpush.bf16.msrb.mxu1 %v16716_v3  ;;  %v6188_v40 = vmul.f32 %v6152_v24, %v16427_v46  ;;  %v16737_v3 = vld [vmem:[#allocation121_spill] sm:$0xff]  ;;  %v14764_v38 = vpack.c.bf16 %v6205_v1, %v6187_v45  ;;  %v16761_v45 = vld [vmem:[#allocation436_spill] sm:$0xff]  ;;  %v6115_v1 = vrot.slane %v14634_v15, 1 }
 0x531   : > { %6375 = vmatpush.bf16.msrb.mxu2 %v16717_v54  ;;  %v6206_v54 = vmul.f32 %v6170_v63, %v16737_v3  ;;  %v16743_v46 = vld [vmem:[#allocation421_spill] sm:$0xff]  ;;  %v16753_v63 = vld [vmem:[#allocation428_spill] sm:$0xff]  ;;  %v16763_v3 = vld [vmem:[#allocation438_spill] sm:$0xff] }
 0x532   : > { %6389 = vmatpush.bf16.msrb.mxu3 %v16720_v52  ;;  %v16740_v52 = vld [vmem:[#allocation419_spill] sm:$0xff]  ;;  %v16762_v59 = vld [vmem:[#allocation437_spill] sm:$0xff] }
 0x533   : > { %6297 = vmatmul.bf16.vlgmr.msra.gmra.mxu0 %v14710_v7  ;;  %6311 = vmatmul.bf16.vlgmr.msra.gmra.mxu1 %v14712_v53  ;;  %v14766_v44 = vpack.c.bf16 %v6206_v54, %v6188_v40  ;;  %v6116_v40 = vrot.slane %v14636_v22, 1  ;;  %v6126_v54 = vrot.slane %v14647_v57, 1  ;;  %v16769_v57 = vld [vmem:[#allocation444_spill] sm:$0xff] }
 0x534   : > { %6349 = vmatpush.bf16.msrb.mxu0 %v16723_v2  ;;  %6363 = vmatpush.bf16.msrb.mxu1 %v16724_v30  ;;  %v16745_v2 = vld [vmem:[#allocation118_spill] sm:$0xff] }
 0x535   : > { %6376 = vmatpush.bf16.msrb.mxu2 %v16725_v11  ;;  %v6189_v30 = vmul.f32 %v6153_v61, %v16745_v2  ;;  %v6207_v11 = vmul.f32 %v6171_v36, %v16746_v10  ;;  %v16764_v61 = vld [vmem:[#allocation439_spill] sm:$0xff]  ;;  %v16765_v36 = vld [vmem:[#allocation440_spill] sm:$0xff]  ;;  %v6134_v10 = vrot.slane %v14636_v22, 2 }
 0x536   : > { %6390 = vmatpush.bf16.msrb.mxu3 %v16726_v17  ;;  %v16747_v17 = vld [vmem:[#allocation122_spill] sm:$0xff] }
 0x537   : > { %6325 = vmatmul.bf16.vlgmr.msra.gmra.mxu2 %v14729_v32  ;;  %v6190_v18 = vmul.f32 %v6154_v39, %v16747_v17  ;;  %v14780_v24 = vpack.c.bf16 %v6207_v11, %v6189_v30  ;;  %v16766_v39 = vld [vmem:[#allocation441_spill] sm:$0xff]  ;;  %v6131_v11 = vsel %vm11260_vm11, %v14731_v4, 0  ;;  %v16772_v17 = vld [vmem:[#allocation446_spill] sm:$0xff] }
 0x538   : > { %6350 = vmatpush.bf16.msrb.mxu0 %v16727_v35  ;;  %6364 = vmatpush.bf16.msrb.mxu1 %v16728_v48  ;;  %v16748_v35 = vld [vmem:[#allocation123_spill] sm:$0xff]  ;;  %v6157_v4 = vunpack.c.l.bf16 %v6131_v11 }
 0x539   : > { %6339 = vmatmul.bf16.vlgmr.msra.gmra.mxu3 %v14735_v60  ;;  %6377 = vmatpush.bf16.msrb.mxu2 %v16729_v20  ;;  %v6208_v48 = vmul.f32 %v6172_v0, %v16748_v35  ;;  %v16750_v20 = vld [vmem:[#allocation426_spill] sm:$0xff]  ;;  %v6118_v0 = vsel %vm339_vm9, %v6115_v1, 0  ;;  %v16773_v35 = vld [vmem:[#allocation447_spill] sm:$0xff] }
 0x53a   : > { %6391 = vmatpush.bf16.msrb.mxu3 %v16730_v42  ;;  %v16754_v42 = vld [vmem:[#allocation429_spill] sm:$0xff]  ;;  %v16782_v1 = vld [vmem:[#allocation454_spill] sm:$0xff] }
 0x53b   : > { %v14784_v49 = vpack.c.bf16 %v6208_v48, %v6190_v18 }
 0x53c   : > { %6351 = vmatpush.bf16.msrb.mxu0 %v16732_v25  ;;  %6365 = vmatpush.bf16.msrb.mxu1 %v16733_v5  ;;  %v16756_v25 = vld [vmem:[#allocation431_spill] sm:$0xff]  ;;  %v16757_v5 = vld [vmem:[#allocation432_spill] sm:$0xff] }
 0x53d   : > { %6378 = vmatpush.bf16.msrb.mxu2 %v16734_v37  ;;  %v16759_v37 = vld [vmem:[#allocation434_spill] sm:$0xff] }
 0x53e   : > { %6392 = vmatpush.bf16.msrb.mxu3 %v16738_v47  ;;  %v6127_v47 = vrot.slane %v14650_v9, 2  ;;  %v16770_v9 = vld [vmem:[#allocation445_spill] sm:$0xff] }
 0x540   : > { %6352 = vmatpush.bf16.msrb.mxu0 %v16739_v34  ;;  %6366 = vmatpush.bf16.msrb.mxu1 %v16740_v52  ;;  %v6121_v34 = vsel %vm339_vm9, %v6116_v40, 0  ;;  %v16767_v52 = vld [vmem:[#allocation442_spill] sm:$0xff] }
 0x541   : > { %6379 = vmatpush.bf16.msrb.mxu2 %v16741_v51  ;;  %v6128_v51 = vor.u32 %v6127_v47, %v6126_v54  ;;  %v6156_v2 = vunpack.c.l.bf16 %v6121_v34  ;;  %v6174_v30 = vunpack.c.h.bf16 %v6121_v34  ;;  %v16787_v34 = vld [vmem:[#allocation459_spill] sm:$0xff] }
 0x542   : > { %6393 = vmatpush.bf16.msrb.mxu3 %v16743_v46  ;;  %v6155_v46 = vunpack.c.l.bf16 %v6118_v0 }
 0x543   : > { %6353 = vmatmul.bf16.vlgmr.msrb.gmra.mxu0 %v14764_v38  ;;  %6367 = vmatmul.bf16.vlgmr.msrb.gmra.mxu1 %v14766_v44  ;;  %v6132_v18 = vsel %vm11260_vm11, %v6128_v51, 0 }
 0x544   : > { %6401 = vmatpush.bf16.msra.mxu0 %v16742_v12  ;;  %6415 = vmatpush.bf16.msra.mxu1 %v16744_v19  ;;  %v16768_v12 = vld [vmem:[#allocation443_spill] sm:$0xff]  ;;  %v6173_v19 = vunpack.c.h.bf16 %v6118_v0  ;;  %v6191_v48 = vmul.f32 %v6155_v46, %v16461_v62  ;;  %v16786_v0 = vld [vmem:[#allocation457_spill] sm:$0xff] }
 0x545   : > { %6380 = vmatpush.bf16.msrb.mxu2 %v16749_v16  ;;  %v16774_v16 = vld [vmem:[#allocation158_spill] sm:$0xff]  ;;  %v16793_v46 = vld [vmem:[#allocation463_spill] sm:$0xff] }
 0x546   : > { %6394 = vmatpush.bf16.msrb.mxu3 %v16751_v21  ;;  %v16775_v21 = vld [vmem:[#allocation448_spill] sm:$0xff] }
 0x548   : > { %6402 = vmatpush.bf16.msra.mxu0 %v16750_v20  ;;  %6416 = vmatpush.bf16.msra.mxu1 %v16752_v14  ;;  %v6209_v20 = vmul.f32 %v6173_v19, %v16774_v16  ;;  %v16776_v14 = vld [vmem:[#allocation449_spill] sm:$0xff]  ;;  %v16794_v19 = vld [vmem:[#allocation464_spill] sm:$0xff]  ;;  %v6139_v16 = vsel %vm361_vm12, %v6134_v10, 0 }
 0x549   : > { %6429 = vmatpush.bf16.msra.mxu2 %v16753_v63  ;;  %6395 = vmatmul.bf16.vlgmr.msrb.gmra.mxu3 %v14784_v49  ;;  %v6192_v63 = vmul.f32 %v6156_v2, %v16463_v56  ;;  %v6193_v56 = vmul.f32 %v6157_v4, %v11302_v13  ;;  %v16788_v13 = vld [vmem:[#allocation460_spill] sm:$0xff]  ;;  %v16797_v2 = vld [vmem:[#allocation467_spill] sm:$0xff]  ;;  %v16835_v10 = vld [vmem:[#allocation505_spill] sm:$0xff] }
 0x54a   : > { %6443 = vmatpush.bf16.msra.mxu3 %v16754_v42  ;;  %6381 = vmatmul.bf16.vlgmr.msrb.gmra.mxu2 %v14780_v24  ;;  %v16777_v42 = vld [vmem:[#allocation160_spill] sm:$0xff]  ;;  %v14826_v62 = vpack.c.bf16 %v6209_v20, %v6191_v48 }
 0x54b   : > { %v16802_v20 = vld [vmem:[#allocation472_spill] sm:$0xff] }
 0x54c   : > { %6403 = vmatpush.bf16.msra.mxu0 %v16755_v6  ;;  %6417 = vmatpush.bf16.msra.mxu1 %v16756_v25  ;;  %v6210_v6 = vmul.f32 %v6174_v30, %v16777_v42  ;;  %v6175_v25 = vunpack.c.h.bf16 %v6131_v11  ;;  %v6133_v30 = vrot.slane %v14634_v15, 2  ;;  %v16798_v11 = vld [vmem:[#allocation468_spill] sm:$0xff]  ;;  %v6160_v42 = vunpack.c.l.bf16 %v6139_v16 }
 0x54d   : > { %6430 = vmatpush.bf16.msra.mxu2 %v16757_v5  ;;  %v6158_v5 = vunpack.c.l.bf16 %v6132_v18  ;;  %v16806_v4 = vld [vmem:[#allocation476_spill] sm:$0xff] }
 0x54e   : > { %6444 = vmatpush.bf16.msra.mxu3 %v16758_v8  ;;  %v6176_v8 = vunpack.c.h.bf16 %v6132_v18  ;;  %v14830_v40 = vpack.c.bf16 %v6210_v6, %v6192_v63  ;;  %v6211_v54 = vmul.f32 %v6175_v25, %v11304_v26  ;;  %v16789_v26 = vld [vmem:[#allocation161_spill] sm:$0xff]  ;;  %v16800_v18 = vld [vmem:[#allocation470_spill] sm:$0xff]  ;;  %v6136_v48 = vsel %vm361_vm12, %v6133_v30, 0  ;;  %v16805_v63 = vld [vmem:[#allocation475_spill] sm:$0xff] }
 0x54f   : > { %v6194_v47 = vmul.f32 %v6158_v5, %v16170_v31  ;;  %v16790_v31 = vld [vmem:[#allocation162_spill] sm:$0xff]  ;;  %v6159_v15 = vunpack.c.l.bf16 %v6136_v48  ;;  %v6177_v22 = vunpack.c.h.bf16 %v6136_v48  ;;  %v6178_v6 = vunpack.c.h.bf16 %v6139_v16  ;;  %v16807_v25 = vld [vmem:[#allocation477_spill] sm:$0xff]  ;;  %v16834_v30 = vld [vmem:[#allocation504_spill] sm:$0xff] }
 0x550   : > { %6404 = vmatpush.bf16.msra.mxu0 %v16759_v37  ;;  %6418 = vmatpush.bf16.msra.mxu1 %v16760_v28  ;;  %v16778_v37 = vld [vmem:[#allocation450_spill] sm:$0xff]  ;;  %v16779_v28 = vld [vmem:[#allocation451_spill] sm:$0xff] }
 0x551   : > { %6431 = vmatpush.bf16.msra.mxu2 %v16761_v45  ;;  %v16780_v45 = vld [vmem:[#allocation452_spill] sm:$0xff]  ;;  %v16808_v5 = vld [vmem:[#allocation478_spill] sm:$0xff]  ;;  %v16841_v16 = vld [vmem:[#allocation511_spill] sm:$0xff] }
 0x552   : > { %6445 = vmatpush.bf16.msra.mxu3 %v16762_v59  ;;  %v16781_v59 = vld [vmem:[#allocation453_spill] sm:$0xff]  ;;  %v16840_v48 = vld [vmem:[#allocation510_spill] sm:$0xff] }
 0x554   : > { %6405 = vmatpush.bf16.msra.mxu0 %v16763_v3  ;;  %6419 = vmatpush.bf16.msra.mxu1 %v16764_v61  ;;  %v16783_v3 = vld [vmem:[#allocation455_spill] sm:$0xff]  ;;  %v6212_v61 = vmul.f32 %v6176_v8, %v16171_v29  ;;  %v16791_v29 = vld [vmem:[#allocation461_spill] sm:$0xff]  ;;  %v6195_v8 = vmul.f32 %v6159_v15, %v11494_v43 }
 0x555   : > { %6432 = vmatpush.bf16.msra.mxu2 %v16765_v36  ;;  %v16784_v36 = vld [vmem:[#allocation458_spill] sm:$0xff]  ;;  %v16845_v15 = vld [vmem:[#allocation515_spill] sm:$0xff] }
 0x556   : > { %6446 = vmatpush.bf16.msra.mxu3 %v16766_v39  ;;  %v16785_v39 = vld [vmem:[#allocation456_spill] sm:$0xff]  ;;  %v14846_v51 = vpack.c.bf16 %v6212_v61, %v6194_v47  ;;  %v16813_v47 = vld [vmem:[#allocation483_spill] sm:$0xff] }
 0x557   : > { %v16814_v61 = vld [vmem:[#allocation484_spill] sm:$0xff] }
 0x558   : > { %6406 = vmatpush.bf16.msra.mxu0 %v16767_v52  ;;  %6420 = vmatpush.bf16.msra.mxu1 %v16768_v12  ;;  %v14844_v52 = vpack.c.bf16 %v6211_v54, %v6193_v56  ;;  %v16792_v12 = vld [vmem:[#allocation462_spill] sm:$0xff]  ;;  %v16811_v56 = vld [vmem:[#allocation481_spill] sm:$0xff] }
 0x559   : > { %6433 = vmatpush.bf16.msra.mxu2 %v16769_v57  ;;  %v16795_v57 = vld [vmem:[#allocation465_spill] sm:$0xff] }
 0x55a   : > { %6447 = vmatpush.bf16.msra.mxu3 %v16770_v9  ;;  %v16796_v9 = vld [vmem:[#allocation466_spill] sm:$0xff] }
 0x55c   : > { %6407 = vmatpush.bf16.msra.mxu0 %v16772_v17  ;;  %6421 = vmatpush.bf16.msra.mxu1 %v16773_v35  ;;  %v16799_v17 = vld [vmem:[#allocation469_spill] sm:$0xff]  ;;  %v16801_v35 = vld [vmem:[#allocation471_spill] sm:$0xff] }
 0x55d   : > { %6434 = vmatpush.bf16.msra.mxu2 %v16775_v21  ;;  %v16803_v21 = vld [vmem:[#allocation473_spill] sm:$0xff] }
 0x55e   : > { %6448 = vmatpush.bf16.msra.mxu3 %v16776_v14  ;;  %v16804_v14 = vld [vmem:[#allocation474_spill] sm:$0xff] }
 0x560   : > { %6408 = vmatpush.bf16.msra.mxu0 %v16778_v37  ;;  %6422 = vmatpush.bf16.msra.mxu1 %v16779_v28  ;;  %v6213_v37 = vmul.f32 %v6177_v22, %v11496_v41  ;;  %v16809_v28 = vld [vmem:[#allocation479_spill] sm:$0xff]  ;;  %v16815_v41 = vld [vmem:[#allocation485_spill] sm:$0xff]  ;;  %v16846_v22 = vld [vmem:[#allocation516_spill] sm:$0xff] }
 0x561   : > { %6435 = vmatpush.bf16.msra.mxu2 %v16781_v59  ;;  %v6214_v59 = vmul.f32 %v6178_v6, %v16512_v50  ;;  %v16817_v50 = vld [vmem:[#allocation487_spill] sm:$0xff] }
 0x562   : > { %6449 = vmatpush.bf16.msra.mxu3 %v16782_v1  ;;  %v16810_v1 = vld [vmem:[#allocation480_spill] sm:$0xff]  ;;  %v14882_v54 = vpack.c.bf16 %v6213_v37, %v6195_v8  ;;  %v16849_v6 = vld [vmem:[#allocation519_spill] sm:$0xff] }
 0x563   : > { %6409 = vmatmul.bf16.vlgmr.msra.gmra.mxu0 %v14826_v62  ;;  %6423 = vmatmul.bf16.vlgmr.msra.gmra.mxu1 %v14830_v40  ;;  %v16853_v8 = vld [vmem:[#allocation523_spill] sm:$0xff]  ;;  %v16854_v37 = vld [vmem:[#allocation524_spill] sm:$0xff] }
 0x564   : > { %6457 = vmatpush.bf16.msrb.mxu0 %v16780_v45  ;;  %6471 = vmatpush.bf16.msrb.mxu1 %v16783_v3  ;;  %v6196_v45 = vmul.f32 %v6160_v42, %v11503_v33  ;;  %v16812_v3 = vld [vmem:[#allocation482_spill] sm:$0xff] }
 0x565   : > { %6436 = vmatpush.bf16.msra.mxu2 %v16785_v39  ;;  %v16816_v33 = vld [vmem:[#allocation486_spill] sm:$0xff]  ;;  %v16819_v39 = vld [vmem:[#allocation489_spill] sm:$0xff] }
 0x566   : > { %6450 = vmatpush.bf16.msra.mxu3 %v16786_v0  ;;  %v14886_v43 = vpack.c.bf16 %v6214_v59, %v6196_v45  ;;  %v16820_v0 = vld [vmem:[#allocation490_spill] sm:$0xff]  ;;  %v16858_v45 = vld [vmem:[#allocation528_spill] sm:$0xff]  ;;  %v16859_v59 = vld [vmem:[#allocation529_spill] sm:$0xff] }
 0x567   : > { %v16848_v42 = vld [vmem:[#allocation518_spill] sm:$0xff] }
 0x568   : > { %6458 = vmatpush.bf16.msrb.mxu0 %v16784_v36  ;;  %6472 = vmatpush.bf16.msrb.mxu1 %v16787_v34  ;;  %v16818_v36 = vld [vmem:[#allocation488_spill] sm:$0xff]  ;;  %v16821_v34 = vld [vmem:[#allocation491_spill] sm:$0xff] }
 0x569   : > { %6485 = vmatpush.bf16.msrb.mxu2 %v16788_v13  ;;  %6451 = vmatmul.bf16.vlgmr.msra.gmra.mxu3 %v14846_v51  ;;  %v16822_v13 = vld [vmem:[#allocation492_spill] sm:$0xff] }
 0x56a   : > { %6499 = vmatpush.bf16.msrb.mxu3 %v16789_v26  ;;  %6437 = vmatmul.bf16.vlgmr.msra.gmra.mxu2 %v14844_v52  ;;  %v16823_v26 = vld [vmem:[#allocation493_spill] sm:$0xff] }
 0x56c   : > { %6459 = vmatpush.bf16.msrb.mxu0 %v16790_v31  ;;  %6473 = vmatpush.bf16.msrb.mxu1 %v16791_v29  ;;  %v16824_v31 = vld [vmem:[#allocation494_spill] sm:$0xff]  ;;  %v16825_v29 = vld [vmem:[#allocation495_spill] sm:$0xff] }
 0x56d   : > { %6486 = vmatpush.bf16.msrb.mxu2 %v16792_v12  ;;  %v16826_v12 = vld [vmem:[#allocation496_spill] sm:$0xff] }
 0x56e   : > { %6500 = vmatpush.bf16.msrb.mxu3 %v16793_v46  ;;  %v16827_v46 = vld [vmem:[#allocation497_spill] sm:$0xff] }
 0x570   : > { %6460 = vmatpush.bf16.msrb.mxu0 %v16794_v19  ;;  %6474 = vmatpush.bf16.msrb.mxu1 %v16795_v57  ;;  %v16828_v19 = vld [vmem:[#allocation498_spill] sm:$0xff]  ;;  %v16829_v57 = vld [vmem:[#allocation499_spill] sm:$0xff] }
 0x571   : > { %6487 = vmatpush.bf16.msrb.mxu2 %v16796_v9  ;;  %v16830_v9 = vld [vmem:[#allocation500_spill] sm:$0xff] }
 0x572   : > { %6501 = vmatpush.bf16.msrb.mxu3 %v16797_v2  ;;  %v16833_v2 = vld [vmem:[#allocation503_spill] sm:$0xff] }
 0x574   : > { %6461 = vmatpush.bf16.msrb.mxu0 %v16798_v11  ;;  %6475 = vmatpush.bf16.msrb.mxu1 %v16799_v17  ;;  %v16836_v11 = vld [vmem:[#allocation506_spill] sm:$0xff]  ;;  %v16837_v17 = vld [vmem:[#allocation507_spill] sm:$0xff] }
 0x575   : > { %6488 = vmatpush.bf16.msrb.mxu2 %v16800_v18  ;;  %v16838_v18 = vld [vmem:[#allocation508_spill] sm:$0xff] }
 0x576   : > { %6502 = vmatpush.bf16.msrb.mxu3 %v16801_v35  ;;  %v16839_v35 = vld [vmem:[#allocation509_spill] sm:$0xff] }
 0x578   : > { %6462 = vmatpush.bf16.msrb.mxu0 %v16802_v20  ;;  %6476 = vmatpush.bf16.msrb.mxu1 %v16803_v21  ;;  %v16842_v20 = vld [vmem:[#allocation512_spill] sm:$0xff]  ;;  %v16843_v21 = vld [vmem:[#allocation513_spill] sm:$0xff] }
 0x579   : > { %6489 = vmatpush.bf16.msrb.mxu2 %v16804_v14  ;;  %v16844_v14 = vld [vmem:[#allocation514_spill] sm:$0xff] }
 0x57a   : > { %6503 = vmatpush.bf16.msrb.mxu3 %v16805_v63  ;;  %v16847_v63 = vld [vmem:[#allocation517_spill] sm:$0xff] }
 0x57c   : > { %6463 = vmatpush.bf16.msrb.mxu0 %v16806_v4  ;;  %6477 = vmatpush.bf16.msrb.mxu1 %v16807_v25  ;;  %v16850_v4 = vld [vmem:[#allocation520_spill] sm:$0xff]  ;;  %v16851_v25 = vld [vmem:[#allocation521_spill] sm:$0xff] }
 0x57d   : > { %6490 = vmatpush.bf16.msrb.mxu2 %v16808_v5  ;;  %v16852_v5 = vld [vmem:[#allocation522_spill] sm:$0xff] }
 0x57e   : > { %6504 = vmatpush.bf16.msrb.mxu3 %v16809_v28  ;;  %v16857_v28 = vld [vmem:[#allocation527_spill] sm:$0xff] }
 0x580   : > { %6464 = vmatpush.bf16.msrb.mxu0 %v16810_v1  ;;  %6478 = vmatpush.bf16.msrb.mxu1 %v16811_v56  ;;  %v16860_v1 = vld [vmem:[#allocation530_spill] sm:$0xff]  ;;  %v16861_v56 = vld [vmem:[#allocation531_spill] sm:$0xff] }
 0x581   : > { %6491 = vmatpush.bf16.msrb.mxu2 %v16812_v3  ;;  %v16862_v3 = vld [vmem:[#allocation532_spill] sm:$0xff] }
 0x582   : > { %6505 = vmatpush.bf16.msrb.mxu3 %v16813_v47  ;;  %v16865_v47 = vld [vmem:[#allocation535_spill] sm:$0xff] }
 0x583   : > { %6465 = vmatmul.bf16.vlgmr.msrb.gmra.mxu0 %v14882_v54  ;;  %6479 = vmatmul.bf16.vlgmr.msrb.gmra.mxu1 %v14886_v43 }
 0x584   : > { %6513 = vmatpush.bf16.msra.mxu0 %v16814_v61  ;;  %6527 = vmatpush.bf16.msra.mxu1 %v16815_v41  ;;  %v16866_v41 = vld [vmem:[#allocation536_spill] sm:$0xff] }
 0x585   : > { %6492 = vmatpush.bf16.msrb.mxu2 %v16816_v33 }
 0x586   : > { %6506 = vmatpush.bf16.msrb.mxu3 %v16817_v50  ;;  %v16867_v50 = vld [vmem:[#allocation537_spill] sm:$0xff] }
 0x588   : > { %6514 = vmatpush.bf16.msra.mxu0 %v16818_v36  ;;  %6528 = vmatpush.bf16.msra.mxu1 %v16819_v39  ;;  %v16868_v36 = vld [vmem:[#allocation538_spill] sm:$0xff]  ;;  %v16869_v39 = vld [vmem:[#allocation539_spill] sm:$0xff] }
 0x589   : > { %6541 = vmatpush.bf16.msra.mxu2 %v16820_v0  ;;  %6507 = vmatmul.bf16.vlgmr.msrb.gmra.mxu3 %v14668_v58  ;;  %v16832_v58 = vld [vmem:[#allocation502_spill] sm:$0xff]  ;;  %v16870_v0 = vld [vmem:[#allocation540_spill] sm:$0xff] }
 0x58a   : > { %6555 = vmatpush.bf16.msra.mxu3 %v16821_v34  ;;  %6493 = vmatmul.bf16.vlgmr.msrb.gmra.mxu2 %v14666_v23  ;;  %v16831_v23 = vld [vmem:[#allocation501_spill] sm:$0xff] }
 0x58b   : > { %v16871_v34 = vld [vmem:[#allocation541_spill] sm:$0xff] }
 0x58c   : > { %6515 = vmatpush.bf16.msra.mxu0 %v16822_v13  ;;  %6529 = vmatpush.bf16.msra.mxu1 %v16823_v26  ;;  %v16872_v13 = vld [vmem:[#allocation542_spill] sm:$0xff]  ;;  %v16873_v26 = vld [vmem:[#allocation543_spill] sm:$0xff] }
 0x58d   : > { %6542 = vmatpush.bf16.msra.mxu2 %v16824_v31 }
 0x58e   : > { %6556 = vmatpush.bf16.msra.mxu3 %v16825_v29  ;;  %v16874_v29 = vld [vmem:[#allocation544_spill] sm:$0xff] }
 0x590   : > { %6516 = vmatpush.bf16.msra.mxu0 %v16826_v12  ;;  %6530 = vmatpush.bf16.msra.mxu1 %v16827_v46  ;;  %v16875_v12 = vld [vmem:[#allocation545_spill] sm:$0xff]  ;;  %v16876_v46 = vld [vmem:[#allocation546_spill] sm:$0xff] }
 0x591   : > { %6543 = vmatpush.bf16.msra.mxu2 %v16828_v19 }
 0x592   : > { %6557 = vmatpush.bf16.msra.mxu3 %v16829_v57  ;;  %v16877_v57 = vld [vmem:[#allocation547_spill] sm:$0xff] }
 0x594   : > { %6517 = vmatpush.bf16.msra.mxu0 %v16830_v9  ;;  %6531 = vmatpush.bf16.msra.mxu1 %v16831_v23  ;;  %v16878_v9 = vld [vmem:[#allocation548_spill] sm:$0xff] }
 0x595   : > { %6544 = vmatpush.bf16.msra.mxu2 %v16832_v58  ;;  %v16879_v58 = vld [vmem:[#allocation549_spill] sm:$0xff] }
 0x596   : > { %6558 = vmatpush.bf16.msra.mxu3 %v16833_v2  ;;  %v16880_v2 = vld [vmem:[#allocation550_spill] sm:$0xff] }
 0x598   : > { %6518 = vmatpush.bf16.msra.mxu0 %v16834_v30  ;;  %6532 = vmatpush.bf16.msra.mxu1 %v16835_v10  ;;  %v16881_v10 = vld [vmem:[#allocation551_spill] sm:$0xff] }
 0x599   : > { %6545 = vmatpush.bf16.msra.mxu2 %v16836_v11  ;;  %v16882_v11 = vld [vmem:[#allocation552_spill] sm:$0xff] }
 0x59a   : > { %6559 = vmatpush.bf16.msra.mxu3 %v16837_v17  ;;  %v16883_v17 = vld [vmem:[#allocation553_spill] sm:$0xff] }
 0x59c   : > { %6519 = vmatpush.bf16.msra.mxu0 %v16838_v18  ;;  %6533 = vmatpush.bf16.msra.mxu1 %v16839_v35  ;;  %v16884_v18 = vld [vmem:[#allocation554_spill] sm:$0xff]  ;;  %v16885_v35 = vld [vmem:[#allocation555_spill] sm:$0xff] }
 0x59d   : > { %6546 = vmatpush.bf16.msra.mxu2 %v16840_v48  ;;  %v16886_v48 = vld [vmem:[#allocation556_spill] sm:$0xff] }
 0x59e   : > { %6560 = vmatpush.bf16.msra.mxu3 %v16841_v16  ;;  %v16888_v16 = vld [vmem:[#allocation558_spill] sm:$0xff] }
 0x5a0   : > { %6520 = vmatpush.bf16.msra.mxu0 %v16842_v20  ;;  %6534 = vmatpush.bf16.msra.mxu1 %v16843_v21  ;;  %v6242_v61 = vpop.f32.mrf.mxu0  ;;  %v6256_v33 = vpop.f32.mrf.mxu1  ;;  %v16889_v21 = vld [vmem:[#allocation559_spill] sm:$0xff] }
 0x5a1   : > { %6547 = vmatpush.bf16.msra.mxu2 %v16844_v14 }
 0x5a2   : > { %6561 = vmatpush.bf16.msra.mxu3 %v16845_v15  ;;  %v16890_v15 = vld [vmem:[#allocation560_spill] sm:$0xff] }
 0x5a3   : > { %6521 = vmatmul.bf16.vlgmr.msra.gmra.mxu0 %v14681_v55  ;;  %6535 = vmatmul.bf16.vlgmr.msra.gmra.mxu1 %v14688_v27  ;;  %v16855_v55 = vld [vmem:[#allocation525_spill] sm:$0xff]  ;;  %v16856_v27 = vld [vmem:[#allocation526_spill] sm:$0xff] }
 0x5a4   : > { %6569 = vmatpush.bf16.msrb.mxu0 %v16846_v22  ;;  %6583 = vmatpush.bf16.msrb.mxu1 %v16847_v63  ;;  %v16891_v22 = vld [vmem:[#allocation561_spill] sm:$0xff]  ;;  %v16892_v63 = vld [vmem:[#allocation562_spill] sm:$0xff] }
 0x5a5   : > { %6548 = vmatpush.bf16.msra.mxu2 %v16848_v42  ;;  %v16893_v42 = vld [vmem:[#allocation563_spill] sm:$0xff] }
 0x5a6   : > { %6562 = vmatpush.bf16.msra.mxu3 %v16849_v6  ;;  %v16895_v6 = vld [vmem:[#allocation565_spill] sm:$0xff] }
 0x5a8   : > { %6570 = vmatpush.bf16.msrb.mxu0 %v16850_v4  ;;  %6584 = vmatpush.bf16.msrb.mxu1 %v16851_v25  ;;  %v6244_v19 = vpop.f32.mrf.mxu0  ;;  %v6258_v23 = vpop.f32.mrf.mxu1  ;;  %v16896_v4 = vld [vmem:[#allocation566_spill] sm:$0xff] }
 0x5a9   : > { %6597 = vmatpush.bf16.msrb.mxu2 %v16852_v5  ;;  %6563 = vmatmul.bf16.vlgmr.msra.gmra.mxu3 %v14712_v53  ;;  %v16864_v53 = vld [vmem:[#allocation534_spill] sm:$0xff]  ;;  %v16897_v5 = vld [vmem:[#allocation567_spill] sm:$0xff] }
 0x5aa   : > { %6611 = vmatpush.bf16.msrb.mxu3 %v16853_v8  ;;  %6549 = vmatmul.bf16.vlgmr.msra.gmra.mxu2 %v14710_v7  ;;  %v16863_v7 = vld [vmem:[#allocation533_spill] sm:$0xff]  ;;  %v6270_v31 = vpop.f32.mrf.mxu2 }
 0x5ac   : > { %6571 = vmatpush.bf16.msrb.mxu0 %v16854_v37  ;;  %6585 = vmatpush.bf16.msrb.mxu1 %v16855_v55  ;;  %v6284_v30 = vpop.f32.mrf.mxu3  ;;  %v16898_v37 = vld [vmem:[#allocation568_spill] sm:$0xff] }
 0x5ad   : > { %6598 = vmatpush.bf16.msrb.mxu2 %v16856_v27  ;;  %v16899_v27 = vld [vmem:[#allocation569_spill] sm:$0xff] }
 0x5ae   : > { %6612 = vmatpush.bf16.msrb.mxu3 %v16857_v28  ;;  %v16900_v28 = vld [vmem:[#allocation570_spill] sm:$0xff] }
 0x5b0   : > { %6572 = vmatpush.bf16.msrb.mxu0 %v16858_v45  ;;  %6586 = vmatpush.bf16.msrb.mxu1 %v16859_v59  ;;  %v6298_v20 = vpop.f32.mrf.mxu0  ;;  %v6312_v14 = vpop.f32.mrf.mxu1  ;;  %v16901_v45 = vld [vmem:[#allocation571_spill] sm:$0xff] }
 0x5b1   : > { %6599 = vmatpush.bf16.msrb.mxu2 %v16860_v1  ;;  %v16902_v1 = vld [vmem:[#allocation572_spill] sm:$0xff] }
 0x5b2   : > { %6613 = vmatpush.bf16.msrb.mxu3 %v16861_v56  ;;  %v16903_v56 = vld [vmem:[#allocation573_spill] sm:$0xff] }
 0x5b4   : > { %6573 = vmatpush.bf16.msrb.mxu0 %v16862_v3  ;;  %6587 = vmatpush.bf16.msrb.mxu1 %v16863_v7  ;;  %v16904_v3 = vld [vmem:[#allocation574_spill] sm:$0xff]  ;;  %v16905_v7 = vld [vmem:[#allocation575_spill] sm:$0xff] }
 0x5b5   : > { %6600 = vmatpush.bf16.msrb.mxu2 %v16864_v53  ;;  %v6257_v53 = vadd.f32 %v6256_v33, %v6242_v61 }
 0x5b6   : > { %6614 = vmatpush.bf16.msrb.mxu3 %v16865_v47 }
 0x5b8   : > { %6574 = vmatpush.bf16.msrb.mxu0 %v16866_v41  ;;  %6588 = vmatpush.bf16.msrb.mxu1 %v16867_v50  ;;  %v6300_v8 = vpop.f32.mrf.mxu0  ;;  %v6314_v55 = vpop.f32.mrf.mxu1  ;;  %v16906_v41 = vld [vmem:[#allocation576_spill] sm:$0xff]  ;;  %v6271_v50 = vadd.f32 %v6270_v31, %v6257_v53  ;;  %v16912_v31 = vld [vmem:[#allocation582_spill] sm:$0xff]  ;;  %v16935_v53 = vld [vmem:[#allocation605_spill] sm:$0xff] }
 0x5b9   : > { %6601 = vmatpush.bf16.msrb.mxu2 %v16868_v36  ;;  %v16907_v36 = vld [vmem:[#allocation577_spill] sm:$0xff] }
 0x5ba   : > { %6615 = vmatpush.bf16.msrb.mxu3 %v16869_v39  ;;  %v16908_v39 = vld [vmem:[#allocation578_spill] sm:$0xff]  ;;  %v6285_v61 = vadd.f32 %v6284_v30, %v6271_v50  ;;  %v16918_v30 = vld [vmem:[#allocation588_spill] sm:$0xff]  ;;  %v16937_v50 = vld [vmem:[#allocation607_spill] sm:$0xff] }
 0x5bc   : > { %6575 = vmatpush.bf16.msrb.mxu0 %v16870_v0  ;;  %6589 = vmatpush.bf16.msrb.mxu1 %v16871_v34  ;;  %v16909_v34 = vld [vmem:[#allocation579_spill] sm:$0xff] }
 0x5bd   : > { %6602 = vmatpush.bf16.msrb.mxu2 %v16872_v13  ;;  %v16910_v13 = vld [vmem:[#allocation580_spill] sm:$0xff] }
 0x5be   : > { %6616 = vmatpush.bf16.msrb.mxu3 %v16873_v26  ;;  %v6259_v26 = vadd.f32 %v6258_v23, %v6244_v19  ;;  %v16916_v19 = vld [vmem:[#allocation586_spill] sm:$0xff]  ;;  %v16917_v23 = vld [vmem:[#allocation587_spill] sm:$0xff] }
 0x5c0   : > { %6576 = vmatpush.bf16.msrb.mxu0 %v16874_v29  ;;  %6590 = vmatpush.bf16.msrb.mxu1 %v16875_v12  ;;  %v6354_v0 = vpop.f32.mrf.mxu0  ;;  %v6368_v29 = vpop.f32.mrf.mxu1  ;;  %v16911_v12 = vld [vmem:[#allocation581_spill] sm:$0xff] }
 0x5c1   : > { %6603 = vmatpush.bf16.msrb.mxu2 %v16876_v46 }
 0x5c2   : > { %6617 = vmatpush.bf16.msrb.mxu3 %v16877_v57  ;;  %v16913_v57 = vld [vmem:[#allocation583_spill] sm:$0xff] }
 0x5c3   : > { %6577 = vmatmul.bf16.vlgmr.msrb.gmra.mxu0 %v14729_v32  ;;  %6591 = vmatmul.bf16.vlgmr.msrb.gmra.mxu1 %v14735_v60  ;;  %v6272_v32 = vpop.f32.mrf.mxu2  ;;  %v16887_v60 = vld [vmem:[#allocation557_spill] sm:$0xff] }
 0x5c4   : > { %6625 = vmatpush.bf16.msra.mxu0 %v16878_v9  ;;  %6639 = vmatpush.bf16.msra.mxu1 %v16879_v58  ;;  %v6273_v33 = vadd.f32 %v6272_v32, %v6259_v26  ;;  %v16914_v9 = vld [vmem:[#allocation584_spill] sm:$0xff]  ;;  %v6299_v58 = vadd.f32 %v6298_v20, %v6285_v61  ;;  %v16921_v32 = vld [vmem:[#allocation591_spill] sm:$0xff]  ;;  %v16923_v20 = vld [vmem:[#allocation593_spill] sm:$0xff] }
 0x5c5   : > { %6604 = vmatpush.bf16.msrb.mxu2 %v16880_v2  ;;  %v16915_v2 = vld [vmem:[#allocation585_spill] sm:$0xff]  ;;  %v16941_v61 = vld [vmem:[#allocation611_spill] sm:$0xff] }
 0x5c6   : > { %6618 = vmatpush.bf16.msrb.mxu3 %v16881_v10  ;;  %v6313_v10 = vadd.f32 %v6312_v14, %v6299_v58  ;;  %v16943_v58 = vld [vmem:[#allocation13_spill] sm:$0xff] }
 0x5c8   : > { %6626 = vmatpush.bf16.msra.mxu0 %v16882_v11  ;;  %6640 = vmatpush.bf16.msra.mxu1 %v16883_v17  ;;  %v16919_v17 = vld [vmem:[#allocation589_spill] sm:$0xff] }
 0x5c9   : > { %6653 = vmatpush.bf16.msra.mxu2 %v16884_v18  ;;  %6619 = vmatmul.bf16.vlgmr.msrb.gmra.mxu3 %v14766_v44  ;;  %v16894_v44 = vld [vmem:[#allocation564_spill] sm:$0xff]  ;;  %v16920_v18 = vld [vmem:[#allocation590_spill] sm:$0xff] }
 0x5ca   : > { %6667 = vmatpush.bf16.msra.mxu3 %v16885_v35  ;;  %6605 = vmatmul.bf16.vlgmr.msrb.gmra.mxu2 %v14764_v38  ;;  %v6286_v38 = vpop.f32.mrf.mxu3  ;;  %v6356_v35 = vpop.f32.mrf.mxu0 }
 0x5cb   : > { %v6326_v25 = vpop.f32.mrf.mxu2 }
 0x5cc   : > { %6627 = vmatpush.bf16.msra.mxu0 %v16886_v48  ;;  %6641 = vmatpush.bf16.msra.mxu1 %v16887_v60  ;;  %v6327_v48 = vadd.f32 %v6326_v25, %v6313_v10  ;;  %v6370_v60 = vpop.f32.mrf.mxu1  ;;  %v16929_v25 = vld [vmem:[#allocation599_spill] sm:$0xff] }
 0x5cd   : > { %6654 = vmatpush.bf16.msra.mxu2 %v16888_v16  ;;  %v16922_v16 = vld [vmem:[#allocation592_spill] sm:$0xff] }
 0x5ce   : > { %6668 = vmatpush.bf16.msra.mxu3 %v16889_v21 }
 0x5d0   : > { %6628 = vmatpush.bf16.msra.mxu0 %v16890_v15  ;;  %6642 = vmatpush.bf16.msra.mxu1 %v16891_v22  ;;  %v16925_v15 = vld [vmem:[#allocation595_spill] sm:$0xff] }
 0x5d1   : > { %6655 = vmatpush.bf16.msra.mxu2 %v16892_v63  ;;  %v16926_v63 = vld [vmem:[#allocation596_spill] sm:$0xff] }
 0x5d2   : > { %6669 = vmatpush.bf16.msra.mxu3 %v16893_v42  ;;  %v6340_v59 = vpop.f32.mrf.mxu3  ;;  %v16927_v42 = vld [vmem:[#allocation597_spill] sm:$0xff] }
 0x5d3   : > { %v6328_v47 = vpop.f32.mrf.mxu2  ;;  %v6341_v14 = vadd.f32 %v6340_v59, %v6327_v48  ;;  %v16933_v59 = vld [vmem:[#allocation603_spill] sm:$0xff] }
 0x5d4   : > { %6629 = vmatpush.bf16.msra.mxu0 %v16894_v44  ;;  %6643 = vmatpush.bf16.msra.mxu1 %v16895_v6  ;;  %v16928_v44 = vld [vmem:[#allocation598_spill] sm:$0xff] }
 0x5d5   : > { %6656 = vmatpush.bf16.msra.mxu2 %v16896_v4 }
 0x5d6   : > { %6670 = vmatpush.bf16.msra.mxu3 %v16897_v5 }
 0x5d8   : > { %6630 = vmatpush.bf16.msra.mxu0 %v16898_v37  ;;  %6644 = vmatpush.bf16.msra.mxu1 %v16899_v27  ;;  %v16930_v37 = vld [vmem:[#allocation600_spill] sm:$0xff] }
 0x5d9   : > { %6657 = vmatpush.bf16.msra.mxu2 %v16900_v28  ;;  %v16931_v28 = vld [vmem:[#allocation601_spill] sm:$0xff] }
 0x5da   : > { %6671 = vmatpush.bf16.msra.mxu3 %v16901_v45  ;;  %v6342_v46 = vpop.f32.mrf.mxu3  ;;  %v16932_v45 = vld [vmem:[#allocation602_spill] sm:$0xff] }
 0x5dc   : > { %6631 = vmatpush.bf16.msra.mxu0 %v16902_v1  ;;  %6645 = vmatpush.bf16.msra.mxu1 %v16903_v56 }
 0x5dd   : > { %6658 = vmatpush.bf16.msra.mxu2 %v16904_v3  ;;  %v16934_v3 = vld [vmem:[#allocation604_spill] sm:$0xff] }
 0x5de   : > { %6672 = vmatpush.bf16.msra.mxu3 %v16905_v7 }
 0x5e0   : > { %6632 = vmatpush.bf16.msra.mxu0 %v16906_v41  ;;  %6646 = vmatpush.bf16.msra.mxu1 %v16907_v36  ;;  %v6410_v4 = vpop.f32.mrf.mxu0 }
 0x5e1   : > { %6659 = vmatpush.bf16.msra.mxu2 %v16908_v39 }
 0x5e2   : > { %6673 = vmatpush.bf16.msra.mxu3 %v16909_v34  ;;  %v6396_v21 = vpop.f32.mrf.mxu3  ;;  %v16938_v34 = vld [vmem:[#allocation608_spill] sm:$0xff] }
 0x5e3   : > { %6633 = vmatmul.bf16.vlgmr.msra.gmra.mxu0 %v14780_v24  ;;  %6647 = vmatmul.bf16.vlgmr.msra.gmra.mxu1 %v14784_v49  ;;  %v6287_v24 = vadd.f32 %v6286_v38, %v6273_v33  ;;  %v6382_v49 = vpop.f32.mrf.mxu2  ;;  %v6355_v38 = vadd.f32 %v6354_v0, %v6341_v14 }
 0x5e4   : > { %6681 = vmatpush.bf16.msrb.mxu0 %v16910_v13  ;;  %6695 = vmatpush.bf16.msrb.mxu1 %v16911_v12  ;;  %v16940_v12 = vld [vmem:[#allocation610_spill] sm:$0xff] }
 0x5e5   : > { %6660 = vmatpush.bf16.msra.mxu2 %v16912_v31  ;;  %v6301_v11 = vadd.f32 %v6300_v8, %v6287_v24  ;;  %v6424_v8 = vpop.f32.mrf.mxu1 }
 0x5e6   : > { %6674 = vmatpush.bf16.msra.mxu3 %v16913_v57 }
 0x5e8   : > { %6682 = vmatpush.bf16.msrb.mxu0 %v16914_v9  ;;  %6696 = vmatpush.bf16.msrb.mxu1 %v16915_v2  ;;  %v6412_v0 = vpop.f32.mrf.mxu0  ;;  %v16942_v9 = vld [vmem:[#allocation612_spill] sm:$0xff] }
 0x5e9   : > { %6709 = vmatpush.bf16.msrb.mxu2 %v16916_v19  ;;  %6675 = vmatmul.bf16.vlgmr.msra.gmra.mxu3 %v14830_v40  ;;  %v16924_v40 = vld [vmem:[#allocation594_spill] sm:$0xff] }
 0x5ea   : > { %6723 = vmatpush.bf16.msrb.mxu3 %v16917_v23  ;;  %6661 = vmatmul.bf16.vlgmr.msra.gmra.mxu2 %v14826_v62  ;;  %v6315_v62 = vadd.f32 %v6314_v55, %v6301_v11  ;;  %v6369_v55 = vadd.f32 %v6368_v29, %v6355_v38  ;;  %v6398_v56 = vpop.f32.mrf.mxu3  ;;  %v16939_v29 = vld [vmem:[#allocation609_spill] sm:$0xff] }
 0x5eb   : > { %v6384_v6 = vpop.f32.mrf.mxu2 }
 0x5ec   : > { %6683 = vmatpush.bf16.msrb.mxu0 %v16918_v30  ;;  %6697 = vmatpush.bf16.msrb.mxu1 %v16919_v17  ;;  %v6329_v22 = vadd.f32 %v6328_v47, %v6315_v62  ;;  %v6383_v1 = vadd.f32 %v6382_v49, %v6369_v55  ;;  %v16936_v47 = vld [vmem:[#allocation606_spill] sm:$0xff] }
 0x5ed   : > { %6710 = vmatpush.bf16.msrb.mxu2 %v16920_v18  ;;  %v6426_v26 = vpop.f32.mrf.mxu1 }
 0x5ee   : > { %6724 = vmatpush.bf16.msrb.mxu3 %v16921_v32  ;;  %v6343_v5 = vadd.f32 %v6342_v46, %v6329_v22  ;;  %v6397_v36 = vadd.f32 %v6396_v21, %v6383_v1 }
 0x5f0   : > { %6684 = vmatpush.bf16.msrb.mxu0 %v16922_v16  ;;  %6698 = vmatpush.bf16.msrb.mxu1 %v16923_v20  ;;  %v6357_v27 = vadd.f32 %v6356_v35, %v6343_v5  ;;  %v6411_v13 = vadd.f32 %v6410_v4, %v6397_v36 }
 0x5f1   : > { %6711 = vmatpush.bf16.msrb.mxu2 %v16924_v40 }
 0x5f2   : > { %6725 = vmatpush.bf16.msrb.mxu3 %v16925_v15  ;;  %v6371_v7 = vadd.f32 %v6370_v60, %v6357_v27  ;;  %v6452_v31 = vpop.f32.mrf.mxu3  ;;  %v6425_v46 = vadd.f32 %v6424_v8, %v6411_v13 }
 0x5f3   : > { %v6438_v41 = vpop.f32.mrf.mxu2 }
 0x5f4   : > { %6685 = vmatpush.bf16.msrb.mxu0 %v16926_v63  ;;  %6699 = vmatpush.bf16.msrb.mxu1 %v16927_v42  ;;  %v6385_v39 = vadd.f32 %v6384_v6, %v6371_v7  ;;  %v6439_v2 = vadd.f32 %v6438_v41, %v6425_v46 }
 0x5f5   : > { %6712 = vmatpush.bf16.msrb.mxu2 %v16928_v44 }
 0x5f6   : > { %6726 = vmatpush.bf16.msrb.mxu3 %v16929_v25  ;;  %v6399_v33 = vadd.f32 %v6398_v56, %v6385_v39  ;;  %v6453_v30 = vadd.f32 %v6452_v31, %v6439_v2  ;;  %v10182_v39 = vld [vmem:[#allocation8 + $0x30] sm:$0xff] }
 0x5f8   : > { %6686 = vmatpush.bf16.msrb.mxu0 %v16930_v37  ;;  %6700 = vmatpush.bf16.msrb.mxu1 %v16931_v28  ;;  %v6413_v57 = vadd.f32 %v6412_v0, %v6399_v33 }
 0x5f9   : > { %6713 = vmatpush.bf16.msrb.mxu2 %v16932_v45 }
 0x5fa   : > { %6727 = vmatpush.bf16.msrb.mxu3 %v16933_v59  ;;  %v6427_v24 = vadd.f32 %v6426_v26, %v6413_v57  ;;  %v6454_v11 = vpop.f32.mrf.mxu3 }
 0x5fb   : > { %v6440_v19 = vpop.f32.mrf.mxu2 }
 0x5fc   : > { %6687 = vmatpush.bf16.msrb.mxu0 %v16934_v3  ;;  %6701 = vmatpush.bf16.msrb.mxu1 %v16935_v53 }
 0x5fd   : > { %6714 = vmatpush.bf16.msrb.mxu2 %v16936_v47 }
 0x5fe   : > { %6728 = vmatpush.bf16.msrb.mxu3 %v16937_v50  ;;  %v10181_v50 = vld [vmem:[#allocation8 + $0x20] sm:$0xff] }
 0x600   : > { %6688 = vmatpush.bf16.msrb.mxu0 %v16938_v34  ;;  %6702 = vmatpush.bf16.msrb.mxu1 %v16939_v29  ;;  %v6466_v23 = vpop.f32.mrf.mxu0  ;;  %v6480_v49 = vpop.f32.mrf.mxu1 }
 0x601   : > { %6715 = vmatpush.bf16.msrb.mxu2 %v16940_v12  ;;  %v6467_v10 = vadd.f32 %v6466_v23, %v6453_v30 }
 0x602   : > { %6729 = vmatpush.bf16.msrb.mxu3 %v16941_v61 }
 0x603   : > { %6689 = vmatmul.bf16.vlgmr.msrb.gmra.mxu0 %v14844_v52  ;;  %6703 = vmatmul.bf16.vlgmr.msrb.gmra.mxu1 %v14846_v51  ;;  %v6441_v52 = vadd.f32 %v6440_v19, %v6427_v24  ;;  %v6481_v18 = vadd.f32 %v6480_v49, %v6467_v10 }
 0x605   : > { %6716 = vmatpush.bf16.msrb.mxu2 %v16942_v9  ;;  %v6455_v51 = vadd.f32 %v6454_v11, %v6441_v52  ;;  %v6751_v60 = vmul.f32 %v6481_v18, %v6481_v18 }
 0x606   : > { %6730 = vmatpush.bf16.msrb.mxu3 %v16943_v58 }
 0x608   : > { %6717 = vmatmul.bf16.vlgmr.msrb.gmra.mxu2 %v14882_v54  ;;  %v6468_v17 = vpop.f32.mrf.mxu0  ;;  %v6482_v32 = vpop.f32.mrf.mxu1 }
 0x609   : > { %6731 = vmatmul.bf16.vlgmr.msrb.gmra.mxu3 %v14886_v43  ;;  %v6469_v35 = vadd.f32 %v6468_v17, %v6455_v51 }
 0x60b   : > { %v6483_v48 = vadd.f32 %v6482_v32, %v6469_v35 }
 0x60c   : > { %v6508_v13 = vpop.f32.mrf.mxu3 }
 0x60d   : > { %v6737_v16 = vadd.f32 %v6483_v48, %v6481_v18  ;;  %v6753_v62 = vmul.f32 %v6483_v48, %v6483_v48  ;;  %v6494_v34 = vpop.f32.mrf.mxu2 }
 0x60e   : > { %v6509_v23 = vadd.f32 %v6508_v13, %v6494_v34 }
 0x60f   : > { %v6738_v20 = vrot.slane %v6737_v16, 4  ;;  %v6755_v54 = vadd.f32 %v6753_v62, %v6751_v60 }
 0x611   : > { %v6739_v40 = vadd.f32 %v6738_v20, %v6737_v16  ;;  %v6756_v21 = vrot.slane %v6755_v54, 4 }
 0x613   : > { %v6740_v15 = vrot.slane %v6739_v40, 2  ;;  %v6757_v43 = vadd.f32 %v6756_v21, %v6755_v54 }
 0x614   : > { %v6510_v12 = vpop.f32.mrf.mxu3 }
 0x615   : > { %v6741_v14 = vadd.f32 %v6740_v15, %v6739_v40  ;;  %v6758_v22 = vrot.slane %v6757_v43, 2  ;;  %v6496_v29 = vpop.f32.mrf.mxu2 }
 0x616   : > { %v6511_v52 = vadd.f32 %v6510_v12, %v6496_v29 }
 0x617   : > { %v6742_v63 = vrot.slane %v6741_v14, 1  ;;  %v6759_v38 = vadd.f32 %v6758_v22, %v6757_v43 }
 0x619   : > { %v6743_v42 = vadd.f32 %v6742_v63, %v6741_v14  ;;  %v6760_v44 = vrot.slane %v6759_v38, 1 }
 0x61b   : > { %v6761_v6 = vadd.f32 %v6760_v44, %v6759_v38  ;;  %v6769_v4 = vmul.f32 0.11111111, %v6743_v42 }
 0x61d   : > { %v6771_v25 = vmul.f32 0.11111111, %v6761_v6  ;;  %v6773_v5 = vmul.f32 %v6769_v4, %v6769_v4  ;;  %v6779_v3 = vsub.f32 %v6481_v18, %v6769_v4  ;;  %v6781_v7 = vsub.f32 %v6483_v48, %v6769_v4 }
 0x61f   : > { %v6775_v8 = vsub.f32 %v6771_v25, %v6773_v5 }
 0x620   : > { %v6522_v26 = vpop.f32.mrf.mxu0  ;;  %v6536_v61 = vpop.f32.mrf.mxu1 }
 0x621   : > { %v6777_v37 = vmax.f32 %v6775_v8, 0.0  ;;  %v6523_v24 = vadd.f32 %v6522_v26, %v6509_v23 }
 0x623   : > { %v6783_v55 = vadd.f32 1e-05, %v6777_v37  ;;  %v6537_v11 = vadd.f32 %v6536_v61, %v6523_v24 }
 0x625   : > { %10173 = vrsqrt.f32 %v6783_v55  ;;  %vm6791_vm2 = vweird.f32 %v6783_v55 }
 0x628   : > { %v6524_v33 = vpop.f32.mrf.mxu0  ;;  %v6538_v57 = vpop.f32.mrf.mxu1 }
 0x629   : > { %v6525_v51 = vadd.f32 %v6524_v33, %v6511_v52 }
 0x62b   : > { %v10174_v27 = vpop.eup %10173  ;;  %v6539_v35 = vadd.f32 %v6538_v57, %v6525_v51 }
 0x62c   : > { %v6786_v28 = vmul.f32 %v10174_v27, %v6783_v55  ;;  %vm6792_vm0 = vweird.f32 %v10174_v27  ;;  %v6564_v46 = vpop.f32.mrf.mxu3 }
 0x62d   : > { %vm6793_vm3 = vmor %vm6791_vm2, %vm6792_vm0  ;;  %v6550_v31 = vpop.f32.mrf.mxu2 }
 0x62e   : > { %v6787_v45 = vmul.f32 %v10174_v27, %v6786_v28  ;;  %v6551_v17 = vadd.f32 %v6550_v31, %v6537_v11 }
 0x630   : > { %v6788_v59 = vmul.f32 0.5, %v6787_v45  ;;  %v6565_v48 = vadd.f32 %v6564_v46, %v6551_v17 }
 0x632   : > { %v6789_v1 = vsub.f32 1.5, %v6788_v59 }
 0x634   : > { %v6790_v56 = vmul.f32 %v10174_v27, %v6789_v1  ;;  %v6566_v2 = vpop.f32.mrf.mxu3 }
 0x635   : > { %v6552_v58 = vpop.f32.mrf.mxu2 }
 0x636   : > { %v6794_v53 = vsel %vm6793_vm3, %v10174_v27, %v6790_v56  ;;  %v6553_v60 = vadd.f32 %v6552_v58, %v6539_v35 }
 0x637   : > { %v6805_v47 = vmul.f32 %v6794_v53, %v6779_v3  ;;  %v6807_v41 = vmul.f32 %v6794_v53, %v6781_v7 }
 0x638   : > { %v6567_v54 = vadd.f32 %v6566_v2, %v6553_v60 }
 0x639   : > { %v6809_v36 = vadd.f32 %v10181_v50, %v6805_v47  ;;  %v6811_v0 = vadd.f32 %v10182_v39, %v6807_v41 }
 0x63b   : > { %6817 = vst [vmem:[#allocation8 + $0x20] sm:$0xff] %v6809_v36 }
 0x63c   : > { %6819 = vst [vmem:[#allocation8 + $0x30] sm:$0xff] %v6811_v0 }
 0x640   : > { %v6578_v9 = vpop.f32.mrf.mxu0  ;;  %v6592_v19 = vpop.f32.mrf.mxu1 }
 0x641   : > { %v6579_v62 = vadd.f32 %v6578_v9, %v6565_v48 }
 0x643   : > { %v6593_v21 = vadd.f32 %v6592_v19, %v6579_v62 }
 0x648   : > { %v6580_v49 = vpop.f32.mrf.mxu0  ;;  %v6594_v18 = vpop.f32.mrf.mxu1 }
 0x649   : > { %v6581_v15 = vadd.f32 %v6580_v49, %v6567_v54 }
 0x64b   : > { %v6595_v63 = vadd.f32 %v6594_v18, %v6581_v15 }
 0x64c   : > { %v6620_v10 = vpop.f32.mrf.mxu3 }
 0x64d   : > { %v6606_v30 = vpop.f32.mrf.mxu2 }
 0x64e   : > { %v6607_v43 = vadd.f32 %v6606_v30, %v6593_v21 }
 0x650   : > { %v6621_v42 = vadd.f32 %v6620_v10, %v6607_v43 }
 0x654   : > { %v6622_v20 = vpop.f32.mrf.mxu3 }
 0x655   : > { %v6608_v16 = vpop.f32.mrf.mxu2 }
 0x656   : > { %v6609_v44 = vadd.f32 %v6608_v16, %v6595_v63 }
 0x658   : > { %v6623_v25 = vadd.f32 %v6622_v20, %v6609_v44  ;;  %v10184_v44 = vld [vmem:[#allocation8 + $0x38] sm:$0xff] }
 0x660   : > { %v6634_v32 = vpop.f32.mrf.mxu0  ;;  %v6648_v40 = vpop.f32.mrf.mxu1 }
 0x661   : > { %v6635_v6 = vadd.f32 %v6634_v32, %v6621_v42 }
 0x663   : > { %v6649_v8 = vadd.f32 %v6648_v40, %v6635_v6 }
 0x668   : > { %v6636_v14 = vpop.f32.mrf.mxu0  ;;  %v6650_v4 = vpop.f32.mrf.mxu1 }
 0x669   : > { %v6637_v37 = vadd.f32 %v6636_v14, %v6623_v25 }
 0x66b   : > { %v6651_v45 = vadd.f32 %v6650_v4, %v6637_v37 }
 0x66c   : > { %v6676_v38 = vpop.f32.mrf.mxu3 }
 0x66d   : > { %v6662_v22 = vpop.f32.mrf.mxu2 }
 0x66e   : > { %v6663_v27 = vadd.f32 %v6662_v22, %v6649_v8 }
 0x670   : > { %v6677_v1 = vadd.f32 %v6676_v38, %v6663_v27  ;;  %v10183_v38 = vld [vmem:[#allocation8 + $0x28] sm:$0xff] }
 0x674   : > { %v6678_v28 = vpop.f32.mrf.mxu3 }
 0x675   : > { %v6664_v55 = vpop.f32.mrf.mxu2 }
 0x676   : > { %v6665_v56 = vadd.f32 %v6664_v55, %v6651_v45 }
 0x678   : > { %v6679_v47 = vadd.f32 %v6678_v28, %v6665_v56 }
 0x680   : > { %v6690_v5 = vpop.f32.mrf.mxu0  ;;  %v6704_v59 = vpop.f32.mrf.mxu1 }
 0x681   : > { %v6691_v3 = vadd.f32 %v6690_v5, %v6677_v1 }
 0x683   : > { %v6705_v50 = vadd.f32 %v6704_v59, %v6691_v3 }
 0x688   : > { %v6692_v7 = vpop.f32.mrf.mxu0  ;;  %v6706_v0 = vpop.f32.mrf.mxu1 }
 0x689   : > { %v6693_v36 = vadd.f32 %v6692_v7, %v6679_v47 }
 0x68b   : > { %v6718_v53 = vpop.f32.mrf.mxu2  ;;  %v6707_v34 = vadd.f32 %v6706_v0, %v6693_v36 }
 0x68c   : > { %v6732_v41 = vpop.f32.mrf.mxu3  ;;  %v6719_v39 = vadd.f32 %v6718_v53, %v6705_v50 }
 0x68e   : > { %v6733_v26 = vadd.f32 %v6732_v41, %v6719_v39 }
 0x690   : > { %v6752_v33 = vmul.f32 %v6733_v26, %v6733_v26 }
 0x693   : > { %v6720_v13 = vpop.f32.mrf.mxu2 }
 0x694   : > { %v6721_v29 = vadd.f32 %v6720_v13, %v6707_v34  ;;  %v6734_v12 = vpop.f32.mrf.mxu3 }
 0x696   : > { %v6735_v61 = vadd.f32 %v6734_v12, %v6721_v29 }
 0x698   : > { %v6744_v31 = vadd.f32 %v6735_v61, %v6733_v26  ;;  %v6754_v46 = vmul.f32 %v6735_v61, %v6735_v61 }
 0x69a   : > { %v6745_v57 = vrot.slane %v6744_v31, 4  ;;  %v6762_v9 = vadd.f32 %v6754_v46, %v6752_v33 }
 0x69c   : > { %v6746_v58 = vadd.f32 %v6745_v57, %v6744_v31  ;;  %v6763_v2 = vrot.slane %v6762_v9, 4 }
 0x69e   : > { %v6747_v19 = vrot.slane %v6746_v58, 2  ;;  %v6764_v23 = vadd.f32 %v6763_v2, %v6762_v9 }
 0x6a0   : > { %v6748_v24 = vadd.f32 %v6747_v19, %v6746_v58  ;;  %v6765_v49 = vrot.slane %v6764_v23, 2 }
 0x6a2   : > { %v6749_v30 = vrot.slane %v6748_v24, 1  ;;  %v6766_v52 = vadd.f32 %v6765_v49, %v6764_v23 }
 0x6a4   : > { %v6750_v10 = vadd.f32 %v6749_v30, %v6748_v24  ;;  %v6767_v11 = vrot.slane %v6766_v52, 1 }
 0x6a6   : > { %v6768_v51 = vadd.f32 %v6767_v11, %v6766_v52  ;;  %v6770_v17 = vmul.f32 0.11111111, %v6750_v10 }
 0x6a8   : > { %v6772_v18 = vmul.f32 0.11111111, %v6768_v51  ;;  %v6774_v35 = vmul.f32 %v6770_v17, %v6770_v17  ;;  %v6780_v15 = vsub.f32 %v6733_v26, %v6770_v17  ;;  %v6782_v43 = vsub.f32 %v6735_v61, %v6770_v17 }
 0x6aa   : > { %v6776_v32 = vsub.f32 %v6772_v18, %v6774_v35 }
 0x6ac   : > { %v6778_v48 = vmax.f32 %v6776_v32, 0.0 }
 0x6ae   : > { %v6784_v60 = vadd.f32 1e-05, %v6778_v48 }
 0x6b0   : > { %10175 = vrsqrt.f32 %v6784_v60  ;;  %vm6801_vm8 = vweird.f32 %v6784_v60 }
 0x6b6   : > { %v10176_v16 = vpop.eup %10175 }
 0x6b7   : > { %v6796_v62 = vmul.f32 %v10176_v16, %v6784_v60  ;;  %vm6802_vm5 = vweird.f32 %v10176_v16 }
 0x6b8   : > { %vm6803_vm9 = vmor %vm6801_vm8, %vm6802_vm5 }
 0x6b9   : > { %v6797_v20 = vmul.f32 %v10176_v16, %v6796_v62 }
 0x6bb   : > { %v6798_v54 = vmul.f32 0.5, %v6797_v20 }
 0x6bd   : > { %v6799_v40 = vsub.f32 1.5, %v6798_v54 }
 0x6bf   : > { %v6800_v21 = vmul.f32 %v10176_v16, %v6799_v40 }
 0x6c1   : > { %v6804_v14 = vsel %vm6803_vm9, %v10176_v16, %v6800_v21 }
 0x6c2   : > { %v6806_v22 = vmul.f32 %v6804_v14, %v6780_v15  ;;  %v6808_v63 = vmul.f32 %v6804_v14, %v6782_v43 }
 0x6c4   : > { %v6810_v42 = vadd.f32 %v10183_v38, %v6806_v22  ;;  %v6812_v6 = vadd.f32 %v10184_v44, %v6808_v63 }
 0x6c6   : > { %6818 = vst [vmem:[#allocation8 + $0x28] sm:$0xff] %v6810_v42 }
 0x6c7   : > { %6820 = vst [vmem:[#allocation8 + $0x38] sm:$0xff] %v6812_v6 }
 0x6c8   : > { %10099 = dma.vmem_to_hbm [thread:$0]  (%p10118_p1), %s6827_s18, 1024, %s6829_s22, [#allocation4], %s10358_s23, %s10358_s23, %s10359_s24  }
 0x6c9   : > { %10332 = dma.done.wait (%p10118_p1), [#allocation4], 1024  }
 0x6ca   : > { %10334 = vsyncadd (%p10118_p1), [#allocation4], 4294966272 }
 0x6cb PF: > { %p13_p4 = scmp.ge.s32.totalorder %s10430_s6, 8   ;;  %s16944_s12 = smov %s10341_s13 }
 0x6cc   : > { %s16945_s13 = smov %s10345_s14  ;;  %s16946_s14 = smov %s10439_s9 }
 0x6cd   : > { %s16947_s15 = smov %s10430_s6  ;;  %15 = sbr.rel (!%p13_p4) target bundleno = 4 (0x4), region = 81 }
 0x6d2   :  { %6845 = vsyncpa [#allocation3], 1 }
 0x6d3   :  { %6847 = vsyncpa [#allocation3 + $0x1], 1 }
 0x6d4   :  { %6848 = vsyncpa [#allocation6], 1 }
 0x6d5   :  { %6849 = vsyncpa [#allocation4], 1 }
 0x6d6   :  { %6851 = vsyncpa [#allocation4 + $0x1], 1 }

</bundles_post_ra>
